<compile_context>
chip_gen: v7x
topology: tpu7x:2x2x1
jax: 0.10.0
libtpu: 0.0.40
codegen_flags: <defaults>
</compile_context>

<pallas_src>
import jax
import jax.numpy as jnp
from jax import lax
from jax.experimental import pallas as pl
from jax.experimental.pallas import tpu as pltpu


# ---------------------------------------------------------------------------
# Kernel
# ---------------------------------------------------------------------------
def _att_head_kernel(x_ref, w1_ref, b1_ref, w2_ref, b2_ref,
                     agg_ref, xn_ref, att_ref):
    """One grid step: NB batch elements, channel-major (C, P) tiles."""
    nb = x_ref.shape[0]
    w1 = w1_ref[...]                 # (Dh, C)  conv1 weight (native torch layout)
    b1 = b1_ref[...]                 # (Dh, 1)
    w2 = w2_ref[...]                 # (Dh, 1)  conv2 weight
    b2 = b2_ref[0]                   # scalar (SMEM)

    # Static unroll over the (small, capped) per-step batch block: each batch
    # element is fully independent (softmax over its own positions, L2 over
    # channels), so per-element 2-D tiles avoid any cross-dim relayouts.
    for n in range(nb):
        x = x_ref[n]                                                   # (C, P)

        # conv1 (1x1, C->Dh): one MXU matmul per batch element.
        # Note: default MXU f32 precision; thread precision=HIGHEST here if
        # exact parity with the fp32 torch conv is required.
        h = jnp.dot(w1, x, preferred_element_type=jnp.float32)         # (Dh, P)
        h = jnp.maximum(h + b1, 0.0)                                   # bias + ReLU

        # conv2 (1x1, Dh->1): per-channel weight + reduction over Dh (VPU/XLU).
        logits = jnp.sum(h * w2, axis=0, keepdims=True) + b2           # (1, P)

        # softmax over the flattened spatial positions (lane axis).
        m = jnp.max(logits, axis=-1, keepdims=True)
        e = jnp.exp(logits - m)
        att = e / jnp.sum(e, axis=-1, keepdims=True)                   # (1, P)

        # l2norm_dense: per-position L2 normalization over channels.
        # TODO(synk): l2norm_dense is not defined in the reference source;
        # assuming x / (||x||_2 over channels + 1e-6).
        sumsq = jnp.sum(x * x, axis=0, keepdims=True)                  # (1, P)
        xn = x / (jnp.sqrt(sumsq) + 1e-6)                              # (C, P)

        # attention-weighted aggregation over positions (lane reduction).
        agg = jnp.sum(xn * att, axis=-1, keepdims=True)                # (C, 1)

        agg_ref[n] = agg
        xn_ref[n] = xn
        att_ref[n] = att


# ---------------------------------------------------------------------------
# Tiling helpers
# ---------------------------------------------------------------------------
def _round_up(x, m):
    return (x + m - 1) // m * m


def _padded_f32_bytes(shape):
    """VMEM bytes of an f32 buffer with (8, 128) tiling on the last two dims."""
    lead = 1
    for d in shape[:-2]:
        lead *= d
    return 4 * lead * _round_up(shape[-2], 8) * _round_up(shape[-1], 128)


def _pick_batch_block(N, C, P, batch_block, *, unroll_cap=8, vmem_budget=12 << 20):
    """Pick per-grid-step batch block NB.

    Largest divisor of N such that the double-buffered per-step blocks stay
    under `vmem_budget` (sized for v7x's smaller VMEM) and the in-kernel unroll
    stays small.  Tiny N collapses to a single grid step; larger N gets several
    steps so the pipeline overlaps DMA with compute.  Weights are whole-array
    VMEM residents and excluded from this estimate.
    """
    if batch_block is not None:
        if N % batch_block != 0:
            raise ValueError(f"batch_block={batch_block} must divide N={N}")
        return batch_block
    per_elem = 2 * (_padded_f32_bytes((1, C, P)) * 2      # x in + xn out
                    + _padded_f32_bytes((1, C, 1))        # agg out
                    + _padded_f32_bytes((1, 1, P)))       # att out
    cap = max(1, min(unroll_cap, vmem_budget // max(per_elem, 1)))
    nb = 1
    for d in range(1, min(N, cap) + 1):
        if N % d == 0:
            nb = d
    return nb


# ---------------------------------------------------------------------------
# Wrapper
# ---------------------------------------------------------------------------
def att_retrieval_forward(features, w1, b1, w2, b2, *, scale=4, batch_block=None):
    """Pallas forward of AttRetrievalNet after the backbone.

    features: (N, C, H, W) float32 backbone feature map (NCHW, torch layout).
    w1: (Dh, C) conv1 weight (native torch (out, in) layout); b1: (Dh,)
    w2: (Dh,)   conv2 weight; b2: (1,)
    Returns (agg (N, C), x_re (N, C, Hp, Wp), att (N, 1, Hp, Wp)) — the
    module's NCHW outputs, produced without any HBM transpose passes.
    """
    N, C, H, W = features.shape
    Dh = w1.shape[0]
    assert w1.shape == (Dh, C)

    # F.max_pool2d(x, scale, scale) == VALID reduce_window directly on NCHW
    # (floor semantics); no layout change of the feature map.
    if scale != 1:
        neg_inf = jnp.array(-jnp.inf, dtype=features.dtype)
        pooled = lax.reduce_window(
            features, neg_inf, lax.max,
            window_dimensions=(1, 1, scale, scale),
            window_strides=(1, 1, scale, scale),
            padding="VALID")
    else:
        pooled = features
    Hp, Wp = pooled.shape[2], pooled.shape[3]
    P = Hp * Wp
    x = pooled.reshape(N, C, P)          # free reshape (trailing dims merge)

    NB = _pick_batch_block(N, C, P, batch_block)
    grid = (N // NB,)

    b1_col = b1.reshape(Dh, 1)
    w2_col = w2.reshape(Dh, 1)
    b2_1d = b2.reshape(1)

    grid_spec = pltpu.PrefetchScalarGridSpec(
        num_scalar_prefetch=0,
        grid=grid,
        in_specs=[
            # batch-blocked, double-buffered pipeline operand
            pl.BlockSpec((NB, C, P), lambda i: (i, 0, 0)),
            # weights: whole-array VMEM residents (loaded once, not windowed /
            # re-fetched per batch step)
            pl.BlockSpec(memory_space=pltpu.MemorySpace.VMEM),   # w1 (Dh, C)
            pl.BlockSpec(memory_space=pltpu.MemorySpace.VMEM),   # b1 (Dh, 1)
            pl.BlockSpec(memory_space=pltpu.MemorySpace.VMEM),   # w2 (Dh, 1)
            # conv2 bias: SMEM scalar
            pl.BlockSpec(memory_space=pltpu.MemorySpace.SMEM),   # b2 (1,)
        ],
        out_specs=[
            pl.BlockSpec((NB, C, 1), lambda i: (i, 0, 0)),       # agg
            pl.BlockSpec((NB, C, P), lambda i: (i, 0, 0)),       # xn
            pl.BlockSpec((NB, 1, P), lambda i: (i, 0, 0)),       # att
        ],
    )

    # Explicit VMEM budget (v7x: 64 MiB physical / ~32 MiB default scoped limit,
    # half of v5e/v6e — the NB chooser + this limit are sized for the smaller chip).
    pipeline_bytes = 2 * NB * (_padded_f32_bytes((1, C, P)) * 2
                               + _padded_f32_bytes((1, C, 1))
                               + _padded_f32_bytes((1, 1, P)))
    weight_bytes = (_padded_f32_bytes((Dh, C)) + 2 * _padded_f32_bytes((Dh, 1)))
    vmem_limit = min(int(1.5 * (pipeline_bytes + weight_bytes)) + (4 << 20),
                     100 << 20)

    flops = N * (2 * Dh * C * P + 2 * Dh * P + 8 * C * P)
    transcendentals = 2 * N * P
    bytes_accessed = 4 * (2 * N * C * P + Dh * C + 2 * Dh + 1 + N * C + N * P)

    agg, xn, att = pl.pallas_call(
        _att_head_kernel,
        out_shape=(
            jax.ShapeDtypeStruct((N, C, 1), jnp.float32),
            jax.ShapeDtypeStruct((N, C, P), jnp.float32),
            jax.ShapeDtypeStruct((N, 1, P), jnp.float32),
        ),
        grid_spec=grid_spec,
        compiler_params=pltpu.CompilerParams(
            dimension_semantics=("parallel",),
            vmem_limit_bytes=vmem_limit),
        cost_estimate=pl.CostEstimate(
            flops=flops, transcendentals=transcendentals,
            bytes_accessed=bytes_accessed),
    )(x, w1, b1_col, w2_col, b2_1d)

    # NCHW module outputs via FREE metadata reshapes (no transpose passes).
    return (agg.reshape(N, C),
            xn.reshape(N, C, Hp, Wp),
            att.reshape(N, 1, Hp, Wp))


# ---------------------------------------------------------------------------
# Pure-JAX reference mirroring the PyTorch forward (NCHW)
# ---------------------------------------------------------------------------
def reference_forward(features, w1, b1, w2, b2, *, scale=4):
    N, C, H, W = features.shape
    Hp, Wp = H // scale, W // scale
    xc = features[:, :, :Hp * scale, :Wp * scale]
    xr = xc.reshape(N, C, Hp, scale, Wp, scale).max(axis=(3, 5))
    h = jnp.einsum('dc,nchw->ndhw', w1, xr, precision=lax.Precision.HIGHEST)
    h = jnp.maximum(h + b1[None, :, None, None], 0.0)
    logits = jnp.einsum('d,ndhw->nhw', w2, h,
                        precision=lax.Precision.HIGHEST) + b2[0]
    att = jax.nn.softmax(logits.reshape(N, -1), axis=1).reshape(N, 1, Hp, Wp)
    nrm = jnp.sqrt(jnp.sum(xr * xr, axis=1, keepdims=True))
    xn = xr / (nrm + 1e-6)
    agg = (xn * att).sum((2, 3))
    return agg, xn, att


if __name__ == "__main__":
    key = jax.random.PRNGKey(0)
    kx, k1, k2, k3, k4 = jax.random.split(key, 5)

    # resnet34 backbone -> num_channels = 512; FeatureAttention hidden = 512.
    N, C, H, W = 2, 512, 16, 16
    Dh = 512
    scale = 4

    # Backbone feature-map stand-in (see TODO(synk) above).
    features = jax.random.normal(kx, (N, C, H, W), jnp.float32)

    # Conv2d-style init; weights kept in their native torch (out, in) layout.
    bound1 = 1.0 / (C ** 0.5)
    w1 = jax.random.uniform(k1, (Dh, C), jnp.float32, -bound1, bound1)
    b1 = jax.random.uniform(k2, (Dh,), jnp.float32, -bound1, bound1)
    bound2 = 1.0 / (Dh ** 0.5)
    w2 = jax.random.uniform(k3, (Dh,), jnp.float32, -bound2, bound2)
    b2 = jax.random.uniform(k4, (1,), jnp.float32, -bound2, bound2)

    agg_r, x_re_r, att_r = reference_forward(features, w1, b1, w2, b2, scale=scale)

    fwd = jax.jit(att_retrieval_forward, static_argnames=("scale", "batch_block"))

    # Tolerance covers default-precision MXU matmuls in the kernel vs the
    # HIGHEST-precision reference einsums.
    tol = dict(rtol=5e-3, atol=5e-3)

    # Auto batch blocking (collapses to a single grid step at this tiny N).
    agg, x_re, att = fwd(features, w1, b1, w2, b2, scale=scale, batch_block=None)
    jax.block_until_ready((agg, x_re, att))
    assert agg.shape == (N, C)
    assert x_re.shape == (N, C, H // scale, W // scale)
    assert att.shape == (N, 1, H // scale, W // scale)
    assert jnp.allclose(agg, agg_r, **tol)
    assert jnp.allclose(x_re, x_re_r, **tol)
    assert jnp.allclose(att, att_r, **tol)

    # Explicit batch pipelining: one batch element per grid step (exercises the
    # multi-step, double-buffered path that larger N would use).
    agg2, x_re2, att2 = fwd(features, w1, b1, w2, b2, scale=scale, batch_block=1)
    jax.block_until_ready((agg2, x_re2, att2))
    assert jnp.allclose(agg2, agg_r, **tol)
    assert jnp.allclose(x_re2, x_re_r, **tol)
    assert jnp.allclose(att2, att_r, **tol)

    print("KERNEL_OK")
</pallas_src>

<mosaic_0001>
module attributes {stable_mosaic.version = 11 : i64} {
  func.func @_att_head_kernel(%arg0: i32, %arg1: memref<2x512x16xf32, #tpu.memory_space<vmem>>, %arg2: memref<512x512xf32, #tpu.memory_space<vmem>>, %arg3: memref<512x1xf32, #tpu.memory_space<vmem>>, %arg4: memref<512x1xf32, #tpu.memory_space<vmem>>, %arg5: memref<1xf32, #tpu.memory_space<smem>>, %arg6: memref<2x512x1xf32, #tpu.memory_space<vmem>>, %arg7: memref<2x512x16xf32, #tpu.memory_space<vmem>>, %arg8: memref<2x1x16xf32, #tpu.memory_space<vmem>>) attributes {dimension_semantics = [#tpu.dimension_semantics<parallel>], iteration_bounds = array<i64: 1>, scalar_prefetch = 0 : i64, scratch_operands = 0 : i64, tpu.core_type = #tpu.core_type<tc>, window_params = [{transform_indices = @transform_0, window_bounds = array<i64: 2, 512, 16>}, {pipeline_mode = #tpu.pipeline_mode<synchronous>, transform_indices = @transform_1, window_bounds = array<i64: 512, 512>}, {pipeline_mode = #tpu.pipeline_mode<synchronous>, transform_indices = @transform_2, window_bounds = array<i64: 512, 1>}, {pipeline_mode = #tpu.pipeline_mode<synchronous>, transform_indices = @transform_3, window_bounds = array<i64: 512, 1>}, {transform_indices = @transform_4, window_bounds = array<i64: 1>}, {transform_indices = @transform_5, window_bounds = array<i64: 2, 512, 1>}, {transform_indices = @transform_6, window_bounds = array<i64: 2, 512, 16>}, {transform_indices = @transform_7, window_bounds = array<i64: 2, 1, 16>}]} {
    %c0 = arith.constant 0 : index
    %c0_0 = arith.constant 0 : index
    %0 = vector.load %arg2[%c0, %c0_0] : memref<512x512xf32, #tpu.memory_space<vmem>>, vector<512x512xf32>
    %c0_1 = arith.constant 0 : index
    %c0_2 = arith.constant 0 : index
    %1 = vector.load %arg3[%c0_1, %c0_2] : memref<512x1xf32, #tpu.memory_space<vmem>>, vector<512x1xf32>
    %c0_3 = arith.constant 0 : index
    %c0_4 = arith.constant 0 : index
    %2 = vector.load %arg4[%c0_3, %c0_4] : memref<512x1xf32, #tpu.memory_space<vmem>>, vector<512x1xf32>
    %c0_5 = arith.constant 0 : index
    %3 = memref.load %arg5[%c0_5] : memref<1xf32, #tpu.memory_space<smem>>
    %c0_6 = arith.constant 0 : index
    %c0_7 = arith.constant 0 : index
    %c0_8 = arith.constant 0 : index
    %4 = vector.load %arg1[%c0_6, %c0_7, %c0_8] : memref<2x512x16xf32, #tpu.memory_space<vmem>>, vector<1x512x16xf32>
    %5 = vector.shape_cast %4 : vector<1x512x16xf32> to vector<512x16xf32>
    %cst = arith.constant dense<0.000000e+00> : vector<512x16xf32>
    %6 = tpu.matmul %0, %5, %cst {dimension_numbers = #tpu.dot_dimension_numbers<[1], [0], [0], [1], [0, 0, 1, 1], [], []>} : vector<512x512xf32>, vector<512x16xf32>, vector<512x16xf32> -> vector<512x16xf32>
    %7 = vector.broadcast %1 : vector<512x1xf32> to vector<512x16xf32>
    %8 = arith.addf %6, %7 : vector<512x16xf32>
    %cst_9 = arith.constant 0.000000e+00 : f32
    %9 = vector.broadcast %cst_9 : f32 to vector<512x16xf32>
    %10 = arith.maximumf %8, %9 : vector<512x16xf32>
    %11 = vector.broadcast %2 : vector<512x1xf32> to vector<512x16xf32>
    %12 = arith.mulf %10, %11 : vector<512x16xf32>
    %cst_10 = arith.constant dense<0.000000e+00> : vector<16xf32>
    %13 = vector.multi_reduction <add>, %12, %cst_10 [0] : vector<512x16xf32> to vector<16xf32>
    %14 = vector.shape_cast %13 : vector<16xf32> to vector<1x16xf32>
    %15 = vector.broadcast %3 : f32 to vector<1x16xf32>
    %16 = arith.addf %14, %15 : vector<1x16xf32>
    %cst_11 = arith.constant dense<0xFF800000> : vector<1xf32>
    %17 = vector.multi_reduction <maximumf>, %16, %cst_11 [1] : vector<1x16xf32> to vector<1xf32>
    %18 = vector.shape_cast %17 : vector<1xf32> to vector<1x1xf32>
    %19 = vector.broadcast %18 : vector<1x1xf32> to vector<1x16xf32>
    %20 = arith.subf %16, %19 : vector<1x16xf32>
    %21 = math.exp %20 : vector<1x16xf32>
    %cst_12 = arith.constant dense<0.000000e+00> : vector<1xf32>
    %22 = vector.multi_reduction <add>, %21, %cst_12 [1] : vector<1x16xf32> to vector<1xf32>
    %23 = vector.shape_cast %22 : vector<1xf32> to vector<1x1xf32>
    %24 = vector.broadcast %23 : vector<1x1xf32> to vector<1x16xf32>
    %25 = arith.divf %21, %24 : vector<1x16xf32>
    %26 = arith.mulf %5, %5 : vector<512x16xf32>
    %cst_13 = arith.constant dense<0.000000e+00> : vector<16xf32>
    %27 = vector.multi_reduction <add>, %26, %cst_13 [0] : vector<512x16xf32> to vector<16xf32>
    %28 = vector.shape_cast %27 : vector<16xf32> to vector<1x16xf32>
    %29 = math.sqrt %28 : vector<1x16xf32>
    %cst_14 = arith.constant 9.99999997E-7 : f32
    %30 = vector.broadcast %cst_14 : f32 to vector<1x16xf32>
    %31 = arith.addf %29, %30 : vector<1x16xf32>
    %32 = vector.broadcast %31 : vector<1x16xf32> to vector<512x16xf32>
    %33 = arith.divf %5, %32 : vector<512x16xf32>
    %34 = vector.broadcast %25 : vector<1x16xf32> to vector<512x16xf32>
    %35 = arith.mulf %33, %34 : vector<512x16xf32>
    %cst_15 = arith.constant dense<0.000000e+00> : vector<512xf32>
    %36 = vector.multi_reduction <add>, %35, %cst_15 [1] : vector<512x16xf32> to vector<512xf32>
    %37 = vector.shape_cast %36 : vector<512xf32> to vector<512x1xf32>
    %c0_16 = arith.constant 0 : index
    %c0_17 = arith.constant 0 : index
    %c0_18 = arith.constant 0 : index
    %38 = vector.load %arg6[%c0_16, %c0_17, %c0_18] : memref<2x512x1xf32, #tpu.memory_space<vmem>>, vector<1x512x1xf32>
    %39 = vector.shape_cast %38 : vector<1x512x1xf32> to vector<512x1xf32>
    %40 = vector.shape_cast %37 : vector<512x1xf32> to vector<1x512x1xf32>
    tpu.vector_store %arg6[%c0_16, %c0_17, %c0_18], %40 {strides = array<i32>} : memref<2x512x1xf32, #tpu.memory_space<vmem>>, vector<1x512x1xf32>,
    %c0_19 = arith.constant 0 : index
    %c0_20 = arith.constant 0 : index
    %c0_21 = arith.constant 0 : index
    %41 = vector.load %arg7[%c0_19, %c0_20, %c0_21] : memref<2x512x16xf32, #tpu.memory_space<vmem>>, vector<1x512x16xf32>
    %42 = vector.shape_cast %41 : vector<1x512x16xf32> to vector<512x16xf32>
    %43 = vector.shape_cast %33 : vector<512x16xf32> to vector<1x512x16xf32>
    tpu.vector_store %arg7[%c0_19, %c0_20, %c0_21], %43 {strides = array<i32>} : memref<2x512x16xf32, #tpu.memory_space<vmem>>, vector<1x512x16xf32>,
    %c0_22 = arith.constant 0 : index
    %c0_23 = arith.constant 0 : index
    %c0_24 = arith.constant 0 : index
    %44 = vector.load %arg8[%c0_22, %c0_23, %c0_24] : memref<2x1x16xf32, #tpu.memory_space<vmem>>, vector<1x1x16xf32>
    %45 = vector.shape_cast %44 : vector<1x1x16xf32> to vector<1x16xf32>
    %46 = vector.shape_cast %25 : vector<1x16xf32> to vector<1x1x16xf32>
    tpu.vector_store %arg8[%c0_22, %c0_23, %c0_24], %46 {strides = array<i32>} : memref<2x1x16xf32, #tpu.memory_space<vmem>>, vector<1x1x16xf32>,
    %c1 = arith.constant 1 : index
    %c0_25 = arith.constant 0 : index
    %c0_26 = arith.constant 0 : index
    %47 = vector.load %arg1[%c1, %c0_25, %c0_26] : memref<2x512x16xf32, #tpu.memory_space<vmem>>, vector<1x512x16xf32>
    %48 = vector.shape_cast %47 : vector<1x512x16xf32> to vector<512x16xf32>
    %cst_27 = arith.constant dense<0.000000e+00> : vector<512x16xf32>
    %49 = tpu.matmul %0, %48, %cst_27 {dimension_numbers = #tpu.dot_dimension_numbers<[1], [0], [0], [1], [0, 0, 1, 1], [], []>} : vector<512x512xf32>, vector<512x16xf32>, vector<512x16xf32> -> vector<512x16xf32>
    %50 = vector.broadcast %1 : vector<512x1xf32> to vector<512x16xf32>
    %51 = arith.addf %49, %50 : vector<512x16xf32>
    %cst_28 = arith.constant 0.000000e+00 : f32
    %52 = vector.broadcast %cst_28 : f32 to vector<512x16xf32>
    %53 = arith.maximumf %51, %52 : vector<512x16xf32>
    %54 = vector.broadcast %2 : vector<512x1xf32> to vector<512x16xf32>
    %55 = arith.mulf %53, %54 : vector<512x16xf32>
    %cst_29 = arith.constant dense<0.000000e+00> : vector<16xf32>
    %56 = vector.multi_reduction <add>, %55, %cst_29 [0] : vector<512x16xf32> to vector<16xf32>
    %57 = vector.shape_cast %56 : vector<16xf32> to vector<1x16xf32>
    %58 = vector.broadcast %3 : f32 to vector<1x16xf32>
    %59 = arith.addf %57, %58 : vector<1x16xf32>
    %cst_30 = arith.constant dense<0xFF800000> : vector<1xf32>
    %60 = vector.multi_reduction <maximumf>, %59, %cst_30 [1] : vector<1x16xf32> to vector<1xf32>
    %61 = vector.shape_cast %60 : vector<1xf32> to vector<1x1xf32>
    %62 = vector.broadcast %61 : vector<1x1xf32> to vector<1x16xf32>
    %63 = arith.subf %59, %62 : vector<1x16xf32>
    %64 = math.exp %63 : vector<1x16xf32>
    %cst_31 = arith.constant dense<0.000000e+00> : vector<1xf32>
    %65 = vector.multi_reduction <add>, %64, %cst_31 [1] : vector<1x16xf32> to vector<1xf32>
    %66 = vector.shape_cast %65 : vector<1xf32> to vector<1x1xf32>
    %67 = vector.broadcast %66 : vector<1x1xf32> to vector<1x16xf32>
    %68 = arith.divf %64, %67 : vector<1x16xf32>
    %69 = arith.mulf %48, %48 : vector<512x16xf32>
    %cst_32 = arith.constant dense<0.000000e+00> : vector<16xf32>
    %70 = vector.multi_reduction <add>, %69, %cst_32 [0] : vector<512x16xf32> to vector<16xf32>
    %71 = vector.shape_cast %70 : vector<16xf32> to vector<1x16xf32>
    %72 = math.sqrt %71 : vector<1x16xf32>
    %cst_33 = arith.constant 9.99999997E-7 : f32
    %73 = vector.broadcast %cst_33 : f32 to vector<1x16xf32>
    %74 = arith.addf %72, %73 : vector<1x16xf32>
    %75 = vector.broadcast %74 : vector<1x16xf32> to vector<512x16xf32>
    %76 = arith.divf %48, %75 : vector<512x16xf32>
    %77 = vector.broadcast %68 : vector<1x16xf32> to vector<512x16xf32>
    %78 = arith.mulf %76, %77 : vector<512x16xf32>
    %cst_34 = arith.constant dense<0.000000e+00> : vector<512xf32>
    %79 = vector.multi_reduction <add>, %78, %cst_34 [1] : vector<512x16xf32> to vector<512xf32>
    %80 = vector.shape_cast %79 : vector<512xf32> to vector<512x1xf32>
    %c1_35 = arith.constant 1 : index
    %c0_36 = arith.constant 0 : index
    %c0_37 = arith.constant 0 : index
    %81 = vector.load %arg6[%c1_35, %c0_36, %c0_37] : memref<2x512x1xf32, #tpu.memory_space<vmem>>, vector<1x512x1xf32>
    %82 = vector.shape_cast %81 : vector<1x512x1xf32> to vector<512x1xf32>
    %83 = vector.shape_cast %80 : vector<512x1xf32> to vector<1x512x1xf32>
    tpu.vector_store %arg6[%c1_35, %c0_36, %c0_37], %83 {strides = array<i32>} : memref<2x512x1xf32, #tpu.memory_space<vmem>>, vector<1x512x1xf32>,
    %c1_38 = arith.constant 1 : index
    %c0_39 = arith.constant 0 : index
    %c0_40 = arith.constant 0 : index
    %84 = vector.load %arg7[%c1_38, %c0_39, %c0_40] : memref<2x512x16xf32, #tpu.memory_space<vmem>>, vector<1x512x16xf32>
    %85 = vector.shape_cast %84 : vector<1x512x16xf32> to vector<512x16xf32>
    %86 = vector.shape_cast %76 : vector<512x16xf32> to vector<1x512x16xf32>
    tpu.vector_store %arg7[%c1_38, %c0_39, %c0_40], %86 {strides = array<i32>} : memref<2x512x16xf32, #tpu.memory_space<vmem>>, vector<1x512x16xf32>,
    %c1_41 = arith.constant 1 : index
    %c0_42 = arith.constant 0 : index
    %c0_43 = arith.constant 0 : index
    %87 = vector.load %arg8[%c1_41, %c0_42, %c0_43] : memref<2x1x16xf32, #tpu.memory_space<vmem>>, vector<1x1x16xf32>
    %88 = vector.shape_cast %87 : vector<1x1x16xf32> to vector<1x16xf32>
    %89 = vector.shape_cast %68 : vector<1x16xf32> to vector<1x1x16xf32>
    tpu.vector_store %arg8[%c1_41, %c0_42, %c0_43], %89 {strides = array<i32>} : memref<2x1x16xf32, #tpu.memory_space<vmem>>, vector<1x1x16xf32>,
    return
  }
  func.func @transform_0(%arg0: i32) -> (i32, i32, i32) {
    %c0_i32 = arith.constant 0 : i32
    %c0_i32_0 = arith.constant 0 : i32
    %c0_i32_1 = arith.constant 0 : i32
    return %arg0, %c0_i32, %c0_i32_0 : i32, i32, i32
  }
  func.func @transform_1(%arg0: i32) -> (i32, i32) {
    %c0_i32 = arith.constant 0 : i32
    %c0_i32_0 = arith.constant 0 : i32
    %c0_i32_1 = arith.constant 0 : i32
    return %c0_i32, %c0_i32_0 : i32, i32
  }
  func.func @transform_2(%arg0: i32) -> (i32, i32) {
    %c0_i32 = arith.constant 0 : i32
    %c0_i32_0 = arith.constant 0 : i32
    %c0_i32_1 = arith.constant 0 : i32
    return %c0_i32, %c0_i32_0 : i32, i32
  }
  func.func @transform_3(%arg0: i32) -> (i32, i32) {
    %c0_i32 = arith.constant 0 : i32
    %c0_i32_0 = arith.constant 0 : i32
    %c0_i32_1 = arith.constant 0 : i32
    return %c0_i32, %c0_i32_0 : i32, i32
  }
  func.func @transform_4(%arg0: i32) -> i32 {
    %c0_i32 = arith.constant 0 : i32
    %c0_i32_0 = arith.constant 0 : i32
    return %c0_i32 : i32
  }
  func.func @transform_5(%arg0: i32) -> (i32, i32, i32) {
    %c0_i32 = arith.constant 0 : i32
    %c0_i32_0 = arith.constant 0 : i32
    %c0_i32_1 = arith.constant 0 : i32
    return %arg0, %c0_i32, %c0_i32_0 : i32, i32, i32
  }
  func.func @transform_6(%arg0: i32) -> (i32, i32, i32) {
    %c0_i32 = arith.constant 0 : i32
    %c0_i32_0 = arith.constant 0 : i32
    %c0_i32_1 = arith.constant 0 : i32
    return %arg0, %c0_i32, %c0_i32_0 : i32, i32, i32
  }
  func.func @transform_7(%arg0: i32) -> (i32, i32, i32) {
    %c0_i32 = arith.constant 0 : i32
    %c0_i32_0 = arith.constant 0 : i32
    %c0_i32_1 = arith.constant 0 : i32
    return %arg0, %c0_i32, %c0_i32_0 : i32, i32, i32
  }
}

</mosaic_0001>

<bundles_post_ra>
// kernel: att_retrieval_forward.1
= control target key start
LH: loop header
LB: loop body
LE: loop exit
PB: predicated region body
PF: predicated region fallthrough
CT: control target
= control target key end

     0   :  { %v5556_v0 = vmov 0.0|0.0   ;;  %vm2011_vm0 = vcmask 130048   ;;  %vm2813_vm5 = vcmask 122880   ;;  %vm2684_vm6 = vcmask 7168   ;;  %s10613_s0 = inlined_call_operand.vmem [shape: f32[2,512,16], index: 0, kind: input, shape index: {}]   ;;  %s10614_s1 = inlined_call_operand.vmem [shape: f32[512,512], index: 1, kind: input, shape index: {}]   ;;  %s10615_s2 = inlined_call_operand.vmem [shape: f32[512,1], index: 2, kind: input, shape index: {}]   ;;  %s10616_s3 = inlined_call_operand.vmem [shape: f32[512,1], index: 3, kind: input, shape index: {}]   ;;  %s10617_s4 = inlined_call_operand.<no memory space> [shape: f32[1], index: 4, kind: input, shape index: {}]   ;;  %s10618_s6 = inlined_call_operand.vmem [shape: f32[2,512,16], index: 6, kind: output, shape index: {1}]   ;;  %s10619_s7 = inlined_call_operand.vmem [shape: f32[2,1,16], index: 7, kind: output, shape index: {2}]   ;;  %s10620_s5 = inlined_call_operand.vmem [shape: f32[2,512,1], index: 5, kind: output, shape index: {0}]  }
   0x1   :  { %4786 = vmatprep.subr.bf16.mxu0 %v5556_v0  ;;  %4882 = vmatprep.subr.bf16.mxu1 %v5556_v0  ;;  %v409_v1 = vld [vmem:[%s10613_s0] sm:$0xff]  ;;  %v410_v2 = vld [vmem:[%s10613_s0 + $0x8] sm:$0xff]  ;;  %v411_v6 = vld [vmem:[%s10613_s0 + $0x10] sm:$0xff] }
   0x2   :  { %v4593_v3 = vld [vmem:[%s10613_s0 + $0x200] sm:$0xff]  ;;  %v4787_v4 = vpack.c.bf16 %v410_v2, %v409_v1  ;;  %v4594_v5 = vld [vmem:[%s10613_s0 + $0x208] sm:$0xff]  ;;  %v412_v7 = vld [vmem:[%s10613_s0 + $0x18] sm:$0xff] }
   0x3   :  { %v4883_v8 = vpack.c.bf16 %v4594_v5, %v4593_v3  ;;  %v4595_v9 = vld [vmem:[%s10613_s0 + $0x210] sm:$0xff]  ;;  %v4596_v10 = vld [vmem:[%s10613_s0 + $0x218] sm:$0xff]  ;;  %v4790_v11 = vpack.c.bf16 %v412_v7, %v411_v6  ;;  %v413_v13 = vld [vmem:[%s10613_s0 + $0x20] sm:$0xff]  ;;  %v5557_v3 = vmov 0  }
   0x4   :  { %4788 = vmatpush1.bf16.msra.mxu0 %v4787_v4  ;;  %v4886_v12 = vpack.c.bf16 %v4596_v10, %v4595_v9  ;;  %v414_v14 = vld [vmem:[%s10613_s0 + $0x28] sm:$0xff]  ;;  %v4597_v15 = vld [vmem:[%s10613_s0 + $0x220] sm:$0xff]  ;;  %v415_v19 = vld [vmem:[%s10613_s0 + $0x30] sm:$0xff]  ;;  %5364 = vset.pattern.permute.xlu0 %v5557_v3 }
   0x5   :  { %4884 = vmatpush1.bf16.msra.mxu1 %v4883_v8  ;;  %4789 = vmatprep.subr.bf16.mxu0 %v5556_v0  ;;  %v4598_v16 = vld [vmem:[%s10613_s0 + $0x228] sm:$0xff]  ;;  %v4793_v17 = vpack.c.bf16 %v414_v14, %v413_v13  ;;  %v416_v20 = vld [vmem:[%s10613_s0 + $0x38] sm:$0xff]  ;;  %v4599_v21 = vld [vmem:[%s10613_s0 + $0x230] sm:$0xff] }
   0x6   :  { %4885 = vmatprep.subr.bf16.mxu1 %v5556_v0  ;;  %v4889_v18 = vpack.c.bf16 %v4598_v16, %v4597_v15  ;;  %v4600_v22 = vld [vmem:[%s10613_s0 + $0x238] sm:$0xff]  ;;  %v4796_v23 = vpack.c.bf16 %v416_v20, %v415_v19  ;;  %v417_v25 = vld [vmem:[%s10613_s0 + $0x40] sm:$0xff]  ;;  %v418_v26 = vld [vmem:[%s10613_s0 + $0x48] sm:$0xff]  ;;  %5365 = vset.pattern.permute.xlu1 %v5557_v3 }
   0x7   :  { %v4892_v24 = vpack.c.bf16 %v4600_v22, %v4599_v21  ;;  %v4601_v27 = vld [vmem:[%s10613_s0 + $0x240] sm:$0xff]  ;;  %v4602_v28 = vld [vmem:[%s10613_s0 + $0x248] sm:$0xff]  ;;  %v4799_v29 = vpack.c.bf16 %v418_v26, %v417_v25  ;;  %v419_v31 = vld [vmem:[%s10613_s0 + $0x50] sm:$0xff] }
   0x8   :  { %4791 = vmatpush1.bf16.msra.mxu0 %v4790_v11  ;;  %v4895_v30 = vpack.c.bf16 %v4602_v28, %v4601_v27  ;;  %v420_v32 = vld [vmem:[%s10613_s0 + $0x58] sm:$0xff]  ;;  %v4603_v33 = vld [vmem:[%s10613_s0 + $0x250] sm:$0xff]  ;;  %v421_v37 = vld [vmem:[%s10613_s0 + $0x60] sm:$0xff] }
   0x9   :  { %4887 = vmatpush1.bf16.msra.mxu1 %v4886_v12  ;;  %4792 = vmatprep.subr.bf16.mxu0 %v5556_v0  ;;  %v4604_v34 = vld [vmem:[%s10613_s0 + $0x258] sm:$0xff]  ;;  %v4802_v35 = vpack.c.bf16 %v420_v32, %v419_v31  ;;  %v422_v38 = vld [vmem:[%s10613_s0 + $0x68] sm:$0xff]  ;;  %v4605_v39 = vld [vmem:[%s10613_s0 + $0x260] sm:$0xff] }
   0xa   :  { %4888 = vmatprep.subr.bf16.mxu1 %v5556_v0  ;;  %v4898_v36 = vpack.c.bf16 %v4604_v34, %v4603_v33  ;;  %v4606_v40 = vld [vmem:[%s10613_s0 + $0x268] sm:$0xff]  ;;  %v4805_v42 = vpack.c.bf16 %v422_v38, %v421_v37  ;;  %v423_v44 = vld [vmem:[%s10613_s0 + $0x70] sm:$0xff]  ;;  %v424_v45 = vld [vmem:[%s10613_s0 + $0x78] sm:$0xff] }
   0xb   :  { %v25_v41 = vld [vmem:[%s10614_s1 + $0x8] sm:$0xff]  ;;  %v4901_v43 = vpack.c.bf16 %v4606_v40, %v4605_v39  ;;  %v4607_v46 = vld [vmem:[%s10613_s0 + $0x270] sm:$0xff]  ;;  %v4608_v47 = vld [vmem:[%s10613_s0 + $0x278] sm:$0xff]  ;;  %v4808_v48 = vpack.c.bf16 %v424_v45, %v423_v44 }
   0xc   :  { %4794 = vmatpush1.bf16.msra.mxu0 %v4793_v17  ;;  %857 = vmatprep.mubr.f32.mxu0 %v25_v41  ;;  %v4904_v49 = vpack.c.bf16 %v4608_v47, %v4607_v46  ;;  %v425_v50 = vld [vmem:[%s10613_s0 + $0x80] sm:$0xff]  ;;  %v426_v51 = vld [vmem:[%s10613_s0 + $0x88] sm:$0xff]  ;;  %v427_v56 = vld [vmem:[%s10613_s0 + $0x90] sm:$0xff] }
   0xd   :  { %4890 = vmatpush1.bf16.msra.mxu1 %v4889_v18  ;;  %4795 = vmatprep.subr.bf16.mxu0 %v5556_v0  ;;  %v4609_v52 = vld [vmem:[%s10613_s0 + $0x280] sm:$0xff]  ;;  %v4610_v53 = vld [vmem:[%s10613_s0 + $0x288] sm:$0xff]  ;;  %v4811_v54 = vpack.c.bf16 %v426_v51, %v425_v50  ;;  %v428_v57 = vld [vmem:[%s10613_s0 + $0x98] sm:$0xff] }
   0xe   :  { %4891 = vmatprep.subr.bf16.mxu1 %v5556_v0  ;;  %2944 = vmatprep.mubr.f32.mxu1 %v25_v41  ;;  %v4907_v55 = vpack.c.bf16 %v4610_v53, %v4609_v52  ;;  %v4611_v58 = vld [vmem:[%s10613_s0 + $0x290] sm:$0xff]  ;;  %v4612_v59 = vld [vmem:[%s10613_s0 + $0x298] sm:$0xff]  ;;  %v4814_v60 = vpack.c.bf16 %v428_v57, %v427_v56  ;;  %v429_v62 = vld [vmem:[%s10613_s0 + $0xa0] sm:$0xff] }
   0xf   :  { %v4910_v61 = vpack.c.bf16 %v4612_v59, %v4611_v58  ;;  %v430_v63 = vld [vmem:[%s10613_s0 + $0xa8] sm:$0xff]  ;;  %v4613_v1 = vld [vmem:[%s10613_s0 + $0x2a0] sm:$0xff]  ;;  %v431_v6 = vld [vmem:[%s10613_s0 + $0xb0] sm:$0xff] }
  0x10   :  { %4797 = vmatpush1.bf16.msra.mxu0 %v4796_v23  ;;  %v4614_v2 = vld [vmem:[%s10613_s0 + $0x2a8] sm:$0xff]  ;;  %v4817_v4 = vpack.c.bf16 %v430_v63, %v429_v62  ;;  %v432_v7 = vld [vmem:[%s10613_s0 + $0xb8] sm:$0xff]  ;;  %v280_v8 = vld [vmem:[%s10615_s2] sm:$0xff] }
  0x11   :  { %4893 = vmatpush1.bf16.msra.mxu1 %v4892_v24  ;;  %4798 = vmatprep.subr.bf16.mxu0 %v5556_v0  ;;  %v4913_v5 = vpack.c.bf16 %v4614_v2, %v4613_v1  ;;  %v4615_v9 = vld [vmem:[%s10613_s0 + $0x2b0] sm:$0xff]  ;;  %v4616_v10 = vld [vmem:[%s10613_s0 + $0x2b8] sm:$0xff]  ;;  %v281_v12 = vld [vmem:[%s10615_s2 + $0x8] sm:$0xff]  ;;  %v4820_v13 = vpack.c.bf16 %v432_v7, %v431_v6 }
  0x12   :  { %4894 = vmatprep.subr.bf16.mxu1 %v5556_v0  ;;  %475 = vperm.xlu0 %5364, %v280_v8   ;;  %v282_v11 = vld [vmem:[%s10615_s2 + $0x10] sm:$0xff]  ;;  %v283_v14 = vld [vmem:[%s10615_s2 + $0x18] sm:$0xff]  ;;  %v4916_v15 = vpack.c.bf16 %v4616_v10, %v4615_v9  ;;  %v433_v16 = vld [vmem:[%s10613_s0 + $0xc0] sm:$0xff] }
  0x13   :  { %485 = vperm.xlu1 %5365, %v282_v11   ;;  %v434_v17 = vld [vmem:[%s10613_s0 + $0xc8] sm:$0xff]  ;;  %v4617_v18 = vld [vmem:[%s10613_s0 + $0x2c0] sm:$0xff]  ;;  %v435_v24 = vld [vmem:[%s10613_s0 + $0xd0] sm:$0xff] }
  0x14   :  { %4800 = vmatpush1.bf16.msra.mxu0 %v4799_v29  ;;  %v4618_v19 = vld [vmem:[%s10613_s0 + $0x2c8] sm:$0xff]  ;;  %v284_v20 = vld [vmem:[%s10615_s2 + $0x20] sm:$0xff]  ;;  %v4823_v21 = vpack.c.bf16 %v434_v17, %v433_v16  ;;  %v436_v25 = vld [vmem:[%s10613_s0 + $0xd8] sm:$0xff] }
  0x15   :  { %4896 = vmatpush1.bf16.msra.mxu1 %v4895_v30  ;;  %4801 = vmatprep.subr.bf16.mxu0 %v5556_v0  ;;  %v285_v22 = vld [vmem:[%s10615_s2 + $0x28] sm:$0xff]  ;;  %v4919_v23 = vpack.c.bf16 %v4618_v19, %v4617_v18  ;;  %v4619_v26 = vld [vmem:[%s10613_s0 + $0x2d0] sm:$0xff]  ;;  %v4620_v27 = vld [vmem:[%s10613_s0 + $0x2d8] sm:$0xff]  ;;  %v4826_v29 = vpack.c.bf16 %v436_v25, %v435_v24 }
  0x16   :  { %4897 = vmatprep.subr.bf16.mxu1 %v5556_v0  ;;  %480 = vperm.xlu0 %5364, %v281_v12   ;;  %v286_v28 = vld [vmem:[%s10615_s2 + $0x30] sm:$0xff]  ;;  %v287_v30 = vld [vmem:[%s10615_s2 + $0x38] sm:$0xff]  ;;  %v4922_v31 = vpack.c.bf16 %v4620_v27, %v4619_v26  ;;  %v437_v32 = vld [vmem:[%s10613_s0 + $0xe0] sm:$0xff] }
  0x17   :  { %490 = vperm.xlu1 %5365, %v283_v14   ;;  %v438_v33 = vld [vmem:[%s10613_s0 + $0xe8] sm:$0xff]  ;;  %v4621_v34 = vld [vmem:[%s10613_s0 + $0x2e0] sm:$0xff]  ;;  %v439_v40 = vld [vmem:[%s10613_s0 + $0xf0] sm:$0xff] }
  0x18   :  { %4803 = vmatpush1.bf16.msra.mxu0 %v4802_v35  ;;  %v4622_v35 = vld [vmem:[%s10613_s0 + $0x2e8] sm:$0xff]  ;;  %v4829_v37 = vpack.c.bf16 %v438_v33, %v437_v32  ;;  %v440_v41 = vld [vmem:[%s10613_s0 + $0xf8] sm:$0xff]  ;;  %v290_v44 = vld [vmem:[%s10615_s2 + $0x50] sm:$0xff] }
  0x19   :  { %4899 = vmatpush1.bf16.msra.mxu1 %v4898_v36  ;;  %4804 = vmatprep.subr.bf16.mxu0 %v5556_v0  ;;  %v288_v36 = vld [vmem:[%s10615_s2 + $0x40] sm:$0xff]  ;;  %v289_v38 = vld [vmem:[%s10615_s2 + $0x48] sm:$0xff]  ;;  %v4925_v39 = vpack.c.bf16 %v4622_v35, %v4621_v34  ;;  %v4832_v45 = vpack.c.bf16 %v440_v41, %v439_v40  ;;  %v291_v46 = vld [vmem:[%s10615_s2 + $0x58] sm:$0xff] }
  0x1a   :  { %4900 = vmatprep.subr.bf16.mxu1 %v5556_v0  ;;  %495 = vperm.xlu0 %5364, %v284_v20   ;;  %v292_v50 = vld [vmem:[%s10615_s2 + $0x60] sm:$0xff]  ;;  %v293_v53 = vld [vmem:[%s10615_s2 + $0x68] sm:$0xff]  ;;  %v444_v56 = vld [vmem:[%s10613_s0 + $0x118] sm:$0xff] }
  0x1b   :  { %500 = vperm.xlu1 %5365, %v285_v22   ;;  %v24_v51 = vld [vmem:[%s10614_s1] sm:$0xff]  ;;  %v294_v57 = vld [vmem:[%s10615_s2 + $0x70] sm:$0xff]  ;;  %v295_v59 = vld [vmem:[%s10615_s2 + $0x78] sm:$0xff] }
  0x1c   :  { %4806 = vmatpush1.bf16.msra.mxu0 %v4805_v42  ;;  %v4623_v42 = vld [vmem:[%s10613_s0 + $0x2f0] sm:$0xff]  ;;  %v28_v58 = vld [vmem:[%s10614_s1 + $0x20] sm:$0xff]  ;;  %v446_v63 = vld [vmem:[%s10613_s0 + $0x128] sm:$0xff] }
  0x1d   :  { %4902 = vmatpush1.bf16.msra.mxu1 %v4901_v43  ;;  %4807 = vmatprep.subr.bf16.mxu0 %v5556_v0  ;;  %v4624_v43 = vld [vmem:[%s10613_s0 + $0x2f8] sm:$0xff]  ;;  %v445_v62 = vld [vmem:[%s10613_s0 + $0x120] sm:$0xff]  ;;  %v297_v3 = vld [vmem:[%s10615_s2 + $0x88] sm:$0xff] }
  0x1e   :  { %4903 = vmatprep.subr.bf16.mxu1 %v5556_v0  ;;  %505 = vperm.xlu0 %5364, %v286_v28   ;;  %v4928_v47 = vpack.c.bf16 %v4624_v43, %v4623_v42  ;;  %v296_v1 = vld [vmem:[%s10615_s2 + $0x80] sm:$0xff]  ;;  %v447_v6 = vld [vmem:[%s10613_s0 + $0x130] sm:$0xff]  ;;  %v448_v7 = vld [vmem:[%s10613_s0 + $0x138] sm:$0xff] }
  0x1f   :  { %510 = vperm.xlu1 %5365, %v287_v30   ;;  %v32_v2 = vld [vmem:[%s10614_s1 + $0x40] sm:$0xff]  ;;  %v298_v8 = vld [vmem:[%s10615_s2 + $0x90] sm:$0xff]  ;;  %v299_v10 = vld [vmem:[%s10615_s2 + $0x98] sm:$0xff]  ;;  %v4844_v12 = vpack.c.bf16 %v448_v7, %v447_v6 }
  0x20   :  { %4809 = vmatpush1.bf16.msra.mxu0 %v4808_v48  ;;  %v441_v48 = vld [vmem:[%s10613_s0 + $0x100] sm:$0xff]  ;;  %v41_v11 = vld [vmem:[%s10614_s1 + $0x88] sm:$0xff]  ;;  %v451_v20 = vld [vmem:[%s10613_s0 + $0x150] sm:$0xff] }
  0x21   :  { %4905 = vmatpush1.bf16.msra.mxu1 %v4904_v49  ;;  %4810 = vmatprep.subr.bf16.mxu0 %v5556_v0  ;;  %v442_v49 = vld [vmem:[%s10613_s0 + $0x108] sm:$0xff]  ;;  %v36_v9 = vld [vmem:[%s10614_s1 + $0x60] sm:$0xff]  ;;  %v302_v22 = vld [vmem:[%s10615_s2 + $0xb0] sm:$0xff] }
  0x22   :  { %4906 = vmatprep.subr.bf16.mxu1 %v5556_v0  ;;  %515 = vperm.xlu0 %5364, %v288_v36   ;;  %v4835_v52 = vpack.c.bf16 %v442_v49, %v441_v48  ;;  %v450_v14 = vld [vmem:[%s10613_s0 + $0x148] sm:$0xff]  ;;  %v40_v16 = vld [vmem:[%s10614_s1 + $0x80] sm:$0xff]  ;;  %v303_v26 = vld [vmem:[%s10615_s2 + $0xb8] sm:$0xff] }
  0x23   :  { %520 = vperm.xlu1 %5365, %v289_v38   ;;  %v301_v17 = vld [vmem:[%s10615_s2 + $0xa8] sm:$0xff]  ;;  %v44_v25 = vld [vmem:[%s10614_s1 + $0xa0] sm:$0xff]  ;;  %v455_v36 = vld [vmem:[%s10613_s0 + $0x170] sm:$0xff] }
  0x24   :  { %4812 = vmatpush1.bf16.msra.mxu0 %v4811_v54  ;;  %v29_v54 = vld [vmem:[%s10614_s1 + $0x28] sm:$0xff]  ;;  %v48_v32 = vld [vmem:[%s10614_s1 + $0xc0] sm:$0xff]  ;;  %v306_v40 = vld [vmem:[%s10615_s2 + $0xd0] sm:$0xff] }
  0x25   :  { %4908 = vmatpush1.bf16.msra.mxu1 %v4907_v55  ;;  %4813 = vmatprep.subr.bf16.mxu0 %v5556_v0  ;;  %v443_v55 = vld [vmem:[%s10613_s0 + $0x110] sm:$0xff]  ;;  %v45_v18 = vld [vmem:[%s10614_s1 + $0xa8] sm:$0xff]  ;;  %v304_v33 = vld [vmem:[%s10615_s2 + $0xc0] sm:$0xff] }
  0x26   :  { %4909 = vmatprep.subr.bf16.mxu1 %v5556_v0  ;;  %525 = vperm.xlu0 %5364, %v290_v44   ;;  %v4626_v24 = vld [vmem:[%s10613_s0 + $0x308] sm:$0xff]  ;;  %v457_v43 = vld [vmem:[%s10613_s0 + $0x180] sm:$0xff] }
  0x27   :  { %530 = vperm.xlu1 %5365, %v291_v46   ;;  %v49_v27 = vld [vmem:[%s10614_s1 + $0xc8] sm:$0xff]  ;;  %v56_v46 = vld [vmem:[%s10614_s1 + $0x100] sm:$0xff] }
  0x28   :  { %4815 = vmatpush1.bf16.msra.mxu0 %v4814_v60  ;;  %v33_v60 = vld [vmem:[%s10614_s1 + $0x48] sm:$0xff] }
  0x29   :  { %4911 = vmatpush1.bf16.msra.mxu1 %v4910_v61  ;;  %4816 = vmatprep.subr.bf16.mxu0 %v5556_v0  ;;  %v4838_v61 = vpack.c.bf16 %v444_v56, %v443_v55  ;;  %v454_v30 = vld [vmem:[%s10613_s0 + $0x168] sm:$0xff]  ;;  %v4627_v55 = vld [vmem:[%s10613_s0 + $0x310] sm:$0xff]  ;;  %v4628_v56 = vld [vmem:[%s10613_s0 + $0x318] sm:$0xff] }
  0x2a   :  { %4912 = vmatprep.subr.bf16.mxu1 %v5556_v0  ;;  %535 = vperm.xlu0 %5364, %v292_v50   ;;  %v53_v34 = vld [vmem:[%s10614_s1 + $0xe8] sm:$0xff]  ;;  %v459_v50 = vld [vmem:[%s10613_s0 + $0x190] sm:$0xff] }
  0x2b   :  { %540 = vperm.xlu1 %5365, %v293_v53   ;;  %v305_v38 = vld [vmem:[%s10615_s2 + $0xc8] sm:$0xff] }
  0x2c   :  { %4818 = vmatpush1.bf16.msra.mxu0 %v4817_v4  ;;  %v37_v4 = vld [vmem:[%s10614_s1 + $0x68] sm:$0xff] }
  0x2d   :  { %4914 = vmatpush1.bf16.msra.mxu1 %v4913_v5  ;;  %4819 = vmatprep.subr.bf16.mxu0 %v5556_v0  ;;  %v4841_v5 = vpack.c.bf16 %v446_v63, %v445_v62  ;;  %v57_v41 = vld [vmem:[%s10614_s1 + $0x108] sm:$0xff]  ;;  %v312_v63 = vld [vmem:[%s10615_s2 + $0x100] sm:$0xff] }
  0x2e   :  { %4915 = vmatprep.subr.bf16.mxu1 %v5556_v0  ;;  %545 = vperm.xlu0 %5364, %v294_v57   ;;  %v458_v44 = vld [vmem:[%s10613_s0 + $0x188] sm:$0xff] }
  0x2f   :  { %550 = vperm.xlu1 %5365, %v295_v59   ;;  %v61_v48 = vld [vmem:[%s10614_s1 + $0x128] sm:$0xff]  ;;  %v4859_v49 = vpack.c.bf16 %v458_v44, %v457_v43  ;;  %v311_v59 = vld [vmem:[%s10615_s2 + $0xf8] sm:$0xff] }
  0x30   :  { %4821 = vmatpush1.bf16.msra.mxu0 %v4820_v13  ;;  %v449_v13 = vld [vmem:[%s10613_s0 + $0x140] sm:$0xff]  ;;  %v309_v53 = vld [vmem:[%s10615_s2 + $0xe8] sm:$0xff]  ;;  %v327_v44 = vld [vmem:[%s10615_s2 + $0x178] sm:$0xff] }
  0x31   :  { %4917 = vmatpush1.bf16.msra.mxu1 %v4916_v15  ;;  %4822 = vmatprep.subr.bf16.mxu0 %v5556_v0  ;;  %v300_v15 = vld [vmem:[%s10615_s2 + $0xa0] sm:$0xff]  ;;  %v4847_v19 = vpack.c.bf16 %v450_v14, %v449_v13  ;;  %v65_v57 = vld [vmem:[%s10614_s1 + $0x148] sm:$0xff] }
  0x32   :  { %4918 = vmatprep.subr.bf16.mxu1 %v5556_v0  ;;  %555 = vperm.xlu0 %5364, %v296_v1   ;;  %v69_v62 = vld [vmem:[%s10614_s1 + $0x168] sm:$0xff]  ;;  %v316_v14 = vld [vmem:[%s10615_s2 + $0x120] sm:$0xff] }
  0x33   :  { %560 = vperm.xlu1 %5365, %v297_v3   ;;  %v313_v1 = vld [vmem:[%s10615_s2 + $0x108] sm:$0xff] }
  0x34   :  { %4824 = vmatpush1.bf16.msra.mxu0 %v4823_v21  ;;  %v452_v21 = vld [vmem:[%s10613_s0 + $0x158] sm:$0xff]  ;;  %v462_v3 = vld [vmem:[%s10613_s0 + $0x1a8] sm:$0xff] }
  0x35   :  { %4920 = vmatpush1.bf16.msra.mxu1 %v4919_v23  ;;  %4825 = vmatprep.subr.bf16.mxu0 %v5556_v0  ;;  %v4625_v23 = vld [vmem:[%s10613_s0 + $0x300] sm:$0xff]  ;;  %v4850_v28 = vpack.c.bf16 %v452_v21, %v451_v20  ;;  %v4630_v6 = vld [vmem:[%s10613_s0 + $0x328] sm:$0xff]  ;;  %v318_v20 = vld [vmem:[%s10615_s2 + $0x130] sm:$0xff] }
  0x36   :  { %4921 = vmatprep.subr.bf16.mxu1 %v5556_v0  ;;  %565 = vperm.xlu0 %5364, %v298_v8   ;;  %v73_v7 = vld [vmem:[%s10614_s1 + $0x188] sm:$0xff]  ;;  %v314_v8 = vld [vmem:[%s10615_s2 + $0x110] sm:$0xff] }
  0x37   :  { %570 = vperm.xlu1 %5365, %v299_v10   ;;  %v315_v10 = vld [vmem:[%s10615_s2 + $0x118] sm:$0xff]  ;;  %v77_v13 = vld [vmem:[%s10614_s1 + $0x1a8] sm:$0xff] }
  0x38   :  { %4827 = vmatpush1.bf16.msra.mxu0 %v4826_v29  ;;  %v453_v29 = vld [vmem:[%s10613_s0 + $0x160] sm:$0xff] }
  0x39   :  { %4923 = vmatpush1.bf16.msra.mxu1 %v4922_v31  ;;  %4828 = vmatprep.subr.bf16.mxu0 %v5556_v0  ;;  %v4931_v31 = vpack.c.bf16 %v4626_v24, %v4625_v23  ;;  %v4853_v35 = vpack.c.bf16 %v454_v30, %v453_v29  ;;  %v80_v23 = vld [vmem:[%s10614_s1 + $0x1c0] sm:$0xff]  ;;  %v85_v24 = vld [vmem:[%s10614_s1 + $0x1e8] sm:$0xff]  ;;  %v4632_v29 = vld [vmem:[%s10613_s0 + $0x338] sm:$0xff] }
  0x3a   :  { %4924 = vmatprep.subr.bf16.mxu1 %v5556_v0  ;;  %575 = vperm.xlu0 %5364, %v300_v15   ;;  %v317_v15 = vld [vmem:[%s10615_s2 + $0x128] sm:$0xff] }
  0x3b   :  { %580 = vperm.xlu1 %5365, %v301_v17   ;;  %v463_v17 = vld [vmem:[%s10613_s0 + $0x1b0] sm:$0xff]  ;;  %v89_v30 = vld [vmem:[%s10614_s1 + $0x208] sm:$0xff] }
  0x3c   :  { %4830 = vmatpush1.bf16.msra.mxu0 %v4829_v37  ;;  %v456_v37 = vld [vmem:[%s10613_s0 + $0x178] sm:$0xff] }
  0x3d   :  { %4926 = vmatpush1.bf16.msra.mxu1 %v4925_v39  ;;  %4831 = vmatprep.subr.bf16.mxu0 %v5556_v0  ;;  %v52_v39 = vld [vmem:[%s10614_s1 + $0xe0] sm:$0xff]  ;;  %v4856_v42 = vpack.c.bf16 %v456_v37, %v455_v36  ;;  %v325_v37 = vld [vmem:[%s10615_s2 + $0x168] sm:$0xff] }
  0x3e   :  { %4927 = vmatprep.subr.bf16.mxu1 %v5556_v0  ;;  %585 = vperm.xlu0 %5364, %v302_v22   ;;  %v319_v22 = vld [vmem:[%s10615_s2 + $0x138] sm:$0xff]  ;;  %v324_v36 = vld [vmem:[%s10615_s2 + $0x160] sm:$0xff] }
  0x3f   :  { %590 = vperm.xlu1 %5365, %v303_v26   ;;  %v321_v26 = vld [vmem:[%s10615_s2 + $0x148] sm:$0xff] }
  0x40   :  { %4833 = vmatpush1.bf16.msra.mxu0 %v4832_v45  ;;  %v307_v45 = vld [vmem:[%s10615_s2 + $0xd8] sm:$0xff] }
  0x41   :  { %4929 = vmatpush1.bf16.msra.mxu1 %v4928_v47  ;;  %4834 = vmatprep.subr.bf16.mxu0 %v5556_v0  ;;  %v308_v47 = vld [vmem:[%s10615_s2 + $0xe0] sm:$0xff] }
  0x42   :  { %4930 = vmatprep.subr.bf16.mxu1 %v5556_v0  ;;  %595 = vperm.xlu0 %5364, %v304_v33   ;;  %v323_v33 = vld [vmem:[%s10615_s2 + $0x158] sm:$0xff] }
  0x43   :  { %858 = vmatmul.mubr.f32.vlgmr.msra.gmra.mrb[0].mxu0 %v24_v51  ;;  %600 = vperm.xlu1 %5365, %v305_v38   ;;  %v92_v38 = vld [vmem:[%s10614_s1 + $0x220] sm:$0xff] }
  0x44   :  { %2945 = vmatmul.mubr.f32.vlgmr.msra.gmra.mrb[0].mxu1 %v24_v51  ;;  %4836 = vmatpush1.bf16.msra.mxu0 %v4835_v52  ;;  %v460_v51 = vld [vmem:[%s10613_s0 + $0x198] sm:$0xff]  ;;  %v60_v52 = vld [vmem:[%s10614_s1 + $0x120] sm:$0xff] }
  0x45   :  { %862 = vmatprep.mubr.f32.mxu0 %v29_v54  ;;  %2949 = vmatprep.mubr.f32.mxu1 %v29_v54  ;;  %v310_v54 = vld [vmem:[%s10615_s2 + $0xf0] sm:$0xff] }
  0x46   :  { %4837 = vmatprep.subr.bf16.mxu0 %v5556_v0  ;;  %4932 = vmatpush1.bf16.msra.mxu1 %v4931_v31 }
  0x47   :  { %863 = vmatmul.mubr.f32.gmra.mrb[2].mxu0 %v28_v58  ;;  %605 = vperm.xlu0 %5364, %v306_v40   ;;  %v466_v40 = vld [vmem:[%s10613_s0 + $0x1c8] sm:$0xff] }
  0x48   :  { %2950 = vmatmul.mubr.f32.gmra.mrb[2].mxu1 %v28_v58  ;;  %867 = vmatprep.mubr.f32.mxu0 %v33_v60  ;;  %v4862_v58 = vpack.c.bf16 %v460_v51, %v459_v50  ;;  %v4633_v50 = vld [vmem:[%s10613_s0 + $0x340] sm:$0xff]  ;;  %v4634_v51 = vld [vmem:[%s10613_s0 + $0x348] sm:$0xff] }
  0x49   :  { %2954 = vmatprep.mubr.f32.mxu1 %v33_v60  ;;  %4839 = vmatpush1.bf16.msra.mxu0 %v4838_v61  ;;  %v4934_v60 = vpack.c.bf16 %v4628_v56, %v4627_v55  ;;  %v64_v61 = vld [vmem:[%s10614_s1 + $0x140] sm:$0xff]  ;;  %v331_v55 = vld [vmem:[%s10615_s2 + $0x198] sm:$0xff] }
  0x4a   :  { %4840 = vmatprep.subr.bf16.mxu0 %v5556_v0  ;;  %610 = vperm.xlu1 %5365, %v307_v45   ;;  %v96_v45 = vld [vmem:[%s10614_s1 + $0x240] sm:$0xff] }
  0x4b   :  { %868 = vmatmul.mubr.f32.gmra.mrb[4].mxu0 %v32_v2  ;;  %615 = vperm.xlu0 %5364, %v308_v47   ;;  %v328_v47 = vld [vmem:[%s10615_s2 + $0x180] sm:$0xff] }
  0x4c   :  { %2955 = vmatmul.mubr.f32.gmra.mrb[4].mxu1 %v32_v2  ;;  %872 = vmatprep.mubr.f32.mxu0 %v37_v4  ;;  %v461_v2 = vld [vmem:[%s10613_s0 + $0x1a0] sm:$0xff] }
  0x4d   :  { %2959 = vmatprep.mubr.f32.mxu1 %v37_v4  ;;  %4842 = vmatpush1.bf16.msra.mxu0 %v4841_v5  ;;  %v68_v4 = vld [vmem:[%s10614_s1 + $0x160] sm:$0xff] }
  0x4e   :  { %4843 = vmatprep.subr.bf16.mxu0 %v5556_v0  ;;  %620 = vperm.xlu1 %5365, %v309_v53   ;;  %v4629_v5 = vld [vmem:[%s10613_s0 + $0x320] sm:$0xff]  ;;  %v4943_v53 = vpack.c.bf16 %v4634_v51, %v4633_v50  ;;  %v4647_v50 = vld [vmem:[%s10613_s0 + $0x3b0] sm:$0xff]  ;;  %v4648_v51 = vld [vmem:[%s10613_s0 + $0x3b8] sm:$0xff] }
  0x4f   :  { %873 = vmatmul.mubr.f32.gmra.mrb[6].mxu0 %v36_v9  ;;  %625 = vperm.xlu0 %5364, %v310_v54   ;;  %v330_v54 = vld [vmem:[%s10615_s2 + $0x190] sm:$0xff]  ;;  %v104_v56 = vld [vmem:[%s10614_s1 + $0x280] sm:$0xff] }
  0x50   :  { %2960 = vmatmul.mubr.f32.gmra.mrb[6].mxu1 %v36_v9  ;;  %877 = vmatprep.mubr.f32.mxu0 %v41_v11  ;;  %v4865_v9 = vpack.c.bf16 %v462_v3, %v461_v2  ;;  %v4635_v3 = vld [vmem:[%s10613_s0 + $0x350] sm:$0xff] }
  0x51   :  { %2964 = vmatprep.mubr.f32.mxu1 %v41_v11  ;;  %4845 = vmatpush1.bf16.msra.mxu0 %v4844_v12  ;;  %v4937_v11 = vpack.c.bf16 %v4630_v6, %v4629_v5  ;;  %v72_v12 = vld [vmem:[%s10614_s1 + $0x180] sm:$0xff]  ;;  %v335_v5 = vld [vmem:[%s10615_s2 + $0x1b8] sm:$0xff] }
  0x52   :  { %4846 = vmatprep.subr.bf16.mxu0 %v5556_v0  ;;  %4933 = vmatprep.subr.bf16.mxu1 %v5556_v0 }
  0x53   :  { %878 = vmatmul.mubr.f32.gmra.mrb[8].mxu0 %v40_v16  ;;  %630 = vperm.xlu1 %5365, %v311_v59   ;;  %v333_v59 = vld [vmem:[%s10615_s2 + $0x1a8] sm:$0xff] }
  0x54   :  { %2965 = vmatmul.mubr.f32.gmra.mrb[8].mxu1 %v40_v16  ;;  %882 = vmatprep.mubr.f32.mxu0 %v45_v18  ;;  %v76_v16 = vld [vmem:[%s10614_s1 + $0x1a0] sm:$0xff] }
  0x55   :  { %2969 = vmatprep.mubr.f32.mxu1 %v45_v18  ;;  %4848 = vmatpush1.bf16.msra.mxu0 %v4847_v19  ;;  %v464_v18 = vld [vmem:[%s10613_s0 + $0x1b8] sm:$0xff]  ;;  %v81_v19 = vld [vmem:[%s10614_s1 + $0x1c8] sm:$0xff] }
  0x56   :  { %4849 = vmatprep.subr.bf16.mxu0 %v5556_v0  ;;  %4935 = vmatpush1.bf16.msra.mxu1 %v4934_v60  ;;  %v4868_v21 = vpack.c.bf16 %v464_v18, %v463_v17  ;;  %v108_v60 = vld [vmem:[%s10614_s1 + $0x2a0] sm:$0xff]  ;;  %v4639_v17 = vld [vmem:[%s10613_s0 + $0x370] sm:$0xff]  ;;  %v4640_v18 = vld [vmem:[%s10613_s0 + $0x378] sm:$0xff] }
  0x57   :  { %883 = vmatmul.mubr.f32.gmra.mrb[10].mxu0 %v44_v25  ;;  %635 = vperm.xlu0 %5364, %v312_v63   ;;  %v113_v63 = vld [vmem:[%s10614_s1 + $0x2c8] sm:$0xff] }
  0x58   :  { %2970 = vmatmul.mubr.f32.gmra.mrb[10].mxu1 %v44_v25  ;;  %887 = vmatprep.mubr.f32.mxu0 %v49_v27  ;;  %v320_v25 = vld [vmem:[%s10615_s2 + $0x140] sm:$0xff] }
  0x59   :  { %2974 = vmatprep.mubr.f32.mxu1 %v49_v27  ;;  %4851 = vmatpush1.bf16.msra.mxu0 %v4850_v28  ;;  %v84_v27 = vld [vmem:[%s10614_s1 + $0x1e0] sm:$0xff]  ;;  %v4631_v28 = vld [vmem:[%s10613_s0 + $0x330] sm:$0xff] }
  0x5a   :  { %4852 = vmatprep.subr.bf16.mxu0 %v5556_v0  ;;  %640 = vperm.xlu1 %5365, %v313_v1   ;;  %v4940_v31 = vpack.c.bf16 %v4632_v29, %v4631_v28  ;;  %v334_v1 = vld [vmem:[%s10615_s2 + $0x1b0] sm:$0xff]  ;;  %v470_v28 = vld [vmem:[%s10613_s0 + $0x1e8] sm:$0xff] }
  0x5b   :  { %888 = vmatmul.mubr.f32.gmra.mrb[12].mxu0 %v48_v32  ;;  %4936 = vmatprep.subr.bf16.mxu1 %v5556_v0  ;;  %v4642_v29 = vld [vmem:[%s10613_s0 + $0x388] sm:$0xff] }
  0x5c   :  { %2975 = vmatmul.mubr.f32.gmra.mrb[12].mxu1 %v48_v32  ;;  %892 = vmatprep.mubr.f32.mxu0 %v53_v34  ;;  %v322_v32 = vld [vmem:[%s10615_s2 + $0x150] sm:$0xff] }
  0x5d   :  { %2979 = vmatprep.mubr.f32.mxu1 %v53_v34  ;;  %4854 = vmatpush1.bf16.msra.mxu0 %v4853_v35  ;;  %v88_v34 = vld [vmem:[%s10614_s1 + $0x200] sm:$0xff]  ;;  %v93_v35 = vld [vmem:[%s10614_s1 + $0x228] sm:$0xff] }
  0x5e   :  { %4855 = vmatprep.subr.bf16.mxu0 %v5556_v0  ;;  %645 = vperm.xlu0 %5364, %v314_v8   ;;  %v117_v8 = vld [vmem:[%s10614_s1 + $0x2e8] sm:$0xff] }
  0x5f   :  { %893 = vmatmul.mubr.f32.gmra.mrb[14].mxu0 %v52_v39  ;;  %650 = vperm.xlu1 %5365, %v315_v10   ;;  %v4637_v10 = vld [vmem:[%s10613_s0 + $0x360] sm:$0xff] }
  0x60   :  { %2980 = vmatmul.mubr.f32.gmra.mrb[14].mxu1 %v52_v39  ;;  %897 = vmatprep.mubr.f32.mxu0 %v57_v41  ;;  %v465_v39 = vld [vmem:[%s10613_s0 + $0x1c0] sm:$0xff] }
  0x61   :  { %2984 = vmatprep.mubr.f32.mxu1 %v57_v41  ;;  %4857 = vmatpush1.bf16.msra.mxu0 %v4856_v42  ;;  %v97_v41 = vld [vmem:[%s10614_s1 + $0x248] sm:$0xff]  ;;  %v326_v42 = vld [vmem:[%s10615_s2 + $0x170] sm:$0xff]  ;;  %v4871_v43 = vpack.c.bf16 %v466_v40, %v465_v39  ;;  %v344_v39 = vld [vmem:[%s10616_s3] sm:$0xff] }
  0x62   :  { %4858 = vmatprep.subr.bf16.mxu0 %v5556_v0  ;;  %4938 = vmatpush1.bf16.msra.mxu1 %v4937_v11  ;;  %v4638_v11 = vld [vmem:[%s10613_s0 + $0x368] sm:$0xff] }
  0x63   :  { %898 = vmatmul.mubr.f32.gmra.mrb[16].mxu0 %v56_v46  ;;  %655 = vperm.xlu0 %5364, %v316_v14   ;;  %v116_v14 = vld [vmem:[%s10614_s1 + $0x2e0] sm:$0xff]  ;;  %v345_v40 = vld [vmem:[%s10616_s3 + $0x8] sm:$0xff] }
  0x64   :  { %2985 = vmatmul.mubr.f32.gmra.mrb[16].mxu1 %v56_v46  ;;  %902 = vmatprep.mubr.f32.mxu0 %v61_v48  ;;  %v101_v46 = vld [vmem:[%s10614_s1 + $0x268] sm:$0xff] }
  0x65   :  { %2989 = vmatprep.mubr.f32.mxu1 %v61_v48  ;;  %4860 = vmatpush1.bf16.msra.mxu0 %v4859_v49  ;;  %v329_v48 = vld [vmem:[%s10615_s2 + $0x188] sm:$0xff]  ;;  %v100_v49 = vld [vmem:[%s10614_s1 + $0x260] sm:$0xff] }
  0x66   :  { %4861 = vmatprep.subr.bf16.mxu0 %v5556_v0  ;;  %660 = vperm.xlu1 %5365, %v317_v15   ;;  %v121_v15 = vld [vmem:[%s10614_s1 + $0x308] sm:$0xff] }
  0x67   :  { %903 = vmatmul.mubr.f32.gmra.mrb[18].mxu0 %v60_v52  ;;  %4939 = vmatprep.subr.bf16.mxu1 %v5556_v0 }
  0x68   :  { %2990 = vmatmul.mubr.f32.gmra.mrb[18].mxu1 %v60_v52  ;;  %907 = vmatprep.mubr.f32.mxu0 %v65_v57  ;;  %v105_v52 = vld [vmem:[%s10614_s1 + $0x288] sm:$0xff] }
  0x69   :  { %2994 = vmatprep.mubr.f32.mxu1 %v65_v57  ;;  %4863 = vmatpush1.bf16.msra.mxu0 %v4862_v58  ;;  %v109_v57 = vld [vmem:[%s10614_s1 + $0x2a8] sm:$0xff]  ;;  %v332_v58 = vld [vmem:[%s10615_s2 + $0x1a0] sm:$0xff] }
  0x6a   :  { %4864 = vmatprep.subr.bf16.mxu0 %v5556_v0  ;;  %665 = vperm.xlu0 %5364, %v318_v20   ;;  %v4952_v20 = vpack.c.bf16 %v4640_v18, %v4639_v17  ;;  %v157_v17 = vld [vmem:[%s10614_s1 + $0x428] sm:$0xff]  ;;  %v356_v18 = vld [vmem:[%s10616_s3 + $0x60] sm:$0xff] }
  0x6b   :  { %908 = vmatmul.mubr.f32.gmra.mrb[20].mxu0 %v64_v61  ;;  %670 = vperm.xlu1 %5365, %v319_v22   ;;  %v125_v22 = vld [vmem:[%s10614_s1 + $0x328] sm:$0xff] }
  0x6c   :  { %2995 = vmatmul.mubr.f32.gmra.mrb[20].mxu1 %v64_v61  ;;  %912 = vmatprep.mubr.f32.mxu0 %v69_v62  ;;  %v467_v61 = vld [vmem:[%s10613_s0 + $0x1d0] sm:$0xff] }
  0x6d   :  { %2999 = vmatprep.mubr.f32.mxu1 %v69_v62  ;;  %4866 = vmatpush1.bf16.msra.mxu0 %v4865_v9  ;;  %v468_v62 = vld [vmem:[%s10613_s0 + $0x1d8] sm:$0xff]  ;;  %v336_v9 = vld [vmem:[%s10615_s2 + $0x1c0] sm:$0xff] }
  0x6e   :  { %4867 = vmatprep.subr.bf16.mxu0 %v5556_v0  ;;  %675 = vperm.xlu0 %5364, %v320_v25   ;;  %v4874_v2 = vpack.c.bf16 %v468_v62, %v467_v61  ;;  %v341_v25 = vld [vmem:[%s10615_s2 + $0x1e8] sm:$0xff]  ;;  %v472_v61 = vld [vmem:[%s10613_s0 + $0x1f8] sm:$0xff]  ;;  %v144_v62 = vld [vmem:[%s10614_s1 + $0x3c0] sm:$0xff] }
  0x6f   :  { %913 = vmatmul.mubr.f32.gmra.mrb[22].mxu0 %v68_v4  ;;  %680 = vperm.xlu1 %5365, %v321_v26   ;;  %v4641_v26 = vld [vmem:[%s10613_s0 + $0x380] sm:$0xff] }
  0x70   :  { %3000 = vmatmul.mubr.f32.gmra.mrb[22].mxu1 %v68_v4  ;;  %917 = vmatprep.mubr.f32.mxu0 %v73_v7  ;;  %v4636_v4 = vld [vmem:[%s10613_s0 + $0x358] sm:$0xff] }
  0x71   :  { %3004 = vmatprep.mubr.f32.mxu1 %v73_v7  ;;  %4869 = vmatpush1.bf16.msra.mxu0 %v4868_v21  ;;  %v4946_v6 = vpack.c.bf16 %v4636_v4, %v4635_v3  ;;  %v112_v7 = vld [vmem:[%s10614_s1 + $0x2c0] sm:$0xff] }
  0x72   :  { %4870 = vmatprep.subr.bf16.mxu0 %v5556_v0  ;;  %4941 = vmatpush1.bf16.msra.mxu1 %v4940_v31  ;;  %v120_v21 = vld [vmem:[%s10614_s1 + $0x300] sm:$0xff]  ;;  %v342_v31 = vld [vmem:[%s10615_s2 + $0x1f0] sm:$0xff] }
  0x73   :  { %918 = vmatmul.mubr.f32.gmra.mrb[24].mxu0 %v72_v12  ;;  %685 = vperm.xlu0 %5364, %v322_v32   ;;  %v352_v3 = vld [vmem:[%s10616_s3 + $0x40] sm:$0xff] }
  0x74   :  { %3005 = vmatmul.mubr.f32.gmra.mrb[24].mxu1 %v72_v12  ;;  %922 = vmatprep.mubr.f32.mxu0 %v77_v13  ;;  %v337_v12 = vld [vmem:[%s10615_s2 + $0x1c8] sm:$0xff] }
  0x75   :  { %3009 = vmatprep.mubr.f32.mxu1 %v77_v13  ;;  %690 = vperm.xlu1 %5365, %v323_v33   ;;  %v4949_v13 = vpack.c.bf16 %v4638_v11, %v4637_v10  ;;  %v343_v33 = vld [vmem:[%s10615_s2 + $0x1f8] sm:$0xff]  ;;  %v153_v10 = vld [vmem:[%s10614_s1 + $0x408] sm:$0xff]  ;;  %v354_v11 = vld [vmem:[%s10616_s3 + $0x50] sm:$0xff] }
  0x76   :  { %4942 = vmatprep.subr.bf16.mxu1 %v5556_v0  ;;  %4872 = vmatpush1.bf16.msra.mxu0 %v4871_v43  ;;  %v4645_v43 = vld [vmem:[%s10613_s0 + $0x3a0] sm:$0xff] }
  0x77   :  { %923 = vmatmul.mubr.f32.gmra.mrb[26].mxu0 %v76_v16  ;;  %695 = vperm.xlu0 %5364, %v324_v36   ;;  %v4643_v36 = vld [vmem:[%s10613_s0 + $0x390] sm:$0xff] }
  0x78   :  { %3010 = vmatmul.mubr.f32.gmra.mrb[26].mxu1 %v76_v16  ;;  %927 = vmatprep.mubr.f32.mxu0 %v81_v19  ;;  %v338_v16 = vld [vmem:[%s10615_s2 + $0x1d0] sm:$0xff] }
  0x79   :  { %3014 = vmatprep.mubr.f32.mxu1 %v81_v19  ;;  %700 = vperm.xlu1 %5365, %v325_v37   ;;  %v339_v19 = vld [vmem:[%s10615_s2 + $0x1d8] sm:$0xff] }
  0x7a   :  { %4873 = vmatprep.subr.bf16.mxu0 %v5556_v0  ;;  %4944 = vmatpush1.bf16.msra.mxu1 %v4943_v53  ;;  %v4644_v37 = vld [vmem:[%s10613_s0 + $0x398] sm:$0xff]  ;;  %v348_v53 = vld [vmem:[%s10616_s3 + $0x20] sm:$0xff] }
  0x7b   :  { %928 = vmatmul.mubr.f32.gmra.mrb[28].mxu0 %v80_v23  ;;  %705 = vperm.xlu0 %5364, %v326_v42   ;;  %v132_v42 = vld [vmem:[%s10614_s1 + $0x360] sm:$0xff] }
  0x7c   :  { %3015 = vmatmul.mubr.f32.gmra.mrb[28].mxu1 %v80_v23  ;;  %932 = vmatprep.mubr.f32.mxu0 %v85_v24  ;;  %v340_v23 = vld [vmem:[%s10615_s2 + $0x1e0] sm:$0xff] }
  0x7d   :  { %3019 = vmatprep.mubr.f32.mxu1 %v85_v24  ;;  %710 = vperm.xlu1 %5365, %v327_v44   ;;  %v124_v24 = vld [vmem:[%s10614_s1 + $0x320] sm:$0xff]  ;;  %v4646_v44 = vld [vmem:[%s10613_s0 + $0x3a8] sm:$0xff] }
  0x7e   :  { %4945 = vmatprep.subr.bf16.mxu1 %v5556_v0  ;;  %4875 = vmatpush1.bf16.msra.mxu0 %v4874_v2  ;;  %v149_v2 = vld [vmem:[%s10614_s1 + $0x3e8] sm:$0xff] }
  0x7f   :  { %933 = vmatmul.mubr.f32.gmra.mrb[30].mxu0 %v84_v27  ;;  %715 = vperm.xlu0 %5364, %v328_v47   ;;  %v347_v47 = vld [vmem:[%s10616_s3 + $0x18] sm:$0xff] }
  0x80   :  { %3020 = vmatmul.mubr.f32.gmra.mrb[30].mxu1 %v84_v27  ;;  %937 = vmatprep.mubr.f32.mxu0 %v89_v30  ;;  %v469_v27 = vld [vmem:[%s10613_s0 + $0x1e0] sm:$0xff] }
  0x81   :  { %3024 = vmatprep.mubr.f32.mxu1 %v89_v30  ;;  %720 = vperm.xlu1 %5365, %v329_v48   ;;  %v129_v30 = vld [vmem:[%s10614_s1 + $0x348] sm:$0xff]  ;;  %v4877_v32 = vpack.c.bf16 %v470_v28, %v469_v27  ;;  %v4961_v48 = vpack.c.bf16 %v4646_v44, %v4645_v43  ;;  %v160_v28 = vld [vmem:[%s10614_s1 + $0x440] sm:$0xff]  ;;  %v366_v43 = vld [vmem:[%s10616_s3 + $0xb0] sm:$0xff] }
  0x82   :  { %4947 = vmatpush1.bf16.msra.mxu1 %v4946_v6  ;;  %4876 = vmatprep.subr.bf16.mxu0 %v5556_v0  ;;  %v367_v44 = vld [vmem:[%s10616_s3 + $0xb8] sm:$0xff] }
  0x83   :  { %938 = vmatmul.mubr.f32.gmra.mrb[32].mxu0 %v88_v34  ;;  %725 = vperm.xlu0 %5364, %v330_v54   ;;  %v349_v54 = vld [vmem:[%s10616_s3 + $0x28] sm:$0xff] }
  0x84   :  { %3025 = vmatmul.mubr.f32.gmra.mrb[32].mxu1 %v88_v34  ;;  %942 = vmatprep.mubr.f32.mxu0 %v93_v35  ;;  %v4955_v34 = vpack.c.bf16 %v4642_v29, %v4641_v26  ;;  %v359_v26 = vld [vmem:[%s10616_s3 + $0x78] sm:$0xff]  ;;  %v165_v29 = vld [vmem:[%s10614_s1 + $0x468] sm:$0xff] }
  0x85   :  { %3029 = vmatprep.mubr.f32.mxu1 %v93_v35  ;;  %730 = vperm.xlu1 %5365, %v331_v55   ;;  %v128_v35 = vld [vmem:[%s10614_s1 + $0x340] sm:$0xff]  ;;  %v4964_v55 = vpack.c.bf16 %v4648_v51, %v4647_v50 }
  0x86   :  { %4948 = vmatprep.subr.bf16.mxu1 %v5556_v0  ;;  %4878 = vmatpush1.bf16.msra.mxu0 %v4877_v32  ;;  %v164_v32 = vld [vmem:[%s10614_s1 + $0x460] sm:$0xff] }
  0x87   :  { %943 = vmatmul.mubr.f32.gmra.mrb[34].mxu0 %v92_v38  ;;  %735 = vperm.xlu0 %5364, %v332_v58   ;;  %v350_v58 = vld [vmem:[%s10616_s3 + $0x30] sm:$0xff]  ;;  %v180_v50 = vld [vmem:[%s10614_s1 + $0x4e0] sm:$0xff] }
  0x88   :  { %3030 = vmatmul.mubr.f32.gmra.mrb[34].mxu1 %v92_v38  ;;  %947 = vmatprep.mubr.f32.mxu0 %v97_v41  ;;  %v133_v38 = vld [vmem:[%s10614_s1 + $0x368] sm:$0xff] }
  0x89   :  { %3034 = vmatprep.mubr.f32.mxu1 %v97_v41  ;;  %740 = vperm.xlu1 %5365, %v333_v59   ;;  %v4958_v41 = vpack.c.bf16 %v4644_v37, %v4643_v36  ;;  %v351_v59 = vld [vmem:[%s10616_s3 + $0x38] sm:$0xff]  ;;  %v173_v36 = vld [vmem:[%s10614_s1 + $0x4a8] sm:$0xff]  ;;  %v364_v37 = vld [vmem:[%s10616_s3 + $0xa0] sm:$0xff] }
  0x8a   :  { %4950 = vmatpush1.bf16.msra.mxu1 %v4949_v13  ;;  %4879 = vmatprep.subr.bf16.mxu0 %v5556_v0 }
  0x8b   :  { %948 = vmatmul.mubr.f32.gmra.mrb[36].mxu0 %v96_v45  ;;  %745 = vperm.xlu0 %5364, %v334_v1   ;;  %v4650_v1 = vld [vmem:[%s10613_s0 + $0x3c8] sm:$0xff] }
  0x8c   :  { %3035 = vmatmul.mubr.f32.gmra.mrb[36].mxu1 %v96_v45  ;;  %952 = vmatprep.mubr.f32.mxu0 %v101_v46  ;;  %v137_v45 = vld [vmem:[%s10614_s1 + $0x388] sm:$0xff] }
  0x8d   :  { %3039 = vmatprep.mubr.f32.mxu1 %v101_v46  ;;  %750 = vperm.xlu1 %5365, %v335_v5   ;;  %v346_v46 = vld [vmem:[%s10616_s3 + $0x10] sm:$0xff]  ;;  %v353_v5 = vld [vmem:[%s10616_s3 + $0x48] sm:$0xff] }
  0x8e   :  { %4951 = vmatprep.subr.bf16.mxu1 %v5556_v0 }
  0x8f   :  { %953 = vmatmul.mubr.f32.gmra.mrb[38].mxu0 %v100_v49  ;;  %755 = vperm.xlu0 %5364, %v336_v9   ;;  %v4652_v9 = vld [vmem:[%s10613_s0 + $0x3d8] sm:$0xff] }
  0x90   :  { %3040 = vmatmul.mubr.f32.gmra.mrb[38].mxu1 %v100_v49  ;;  %957 = vmatprep.mubr.f32.mxu0 %v105_v52  ;;  %v136_v49 = vld [vmem:[%s10614_s1 + $0x380] sm:$0xff] }
  0x91   :  { %3044 = vmatprep.mubr.f32.mxu1 %v105_v52  ;;  %760 = vperm.xlu1 %5365, %v337_v12   ;;  %v141_v52 = vld [vmem:[%s10614_s1 + $0x3a8] sm:$0xff]  ;;  %v355_v12 = vld [vmem:[%s10616_s3 + $0x58] sm:$0xff] }
  0x92   :  { %4953 = vmatpush1.bf16.msra.mxu1 %v4952_v20 }
  0x93   :  { %958 = vmatmul.mubr.f32.gmra.mrb[40].mxu0 %v104_v56  ;;  %765 = vperm.xlu0 %5364, %v338_v16   ;;  %v4654_v16 = vld [vmem:[%s10613_s0 + $0x3e8] sm:$0xff] }
  0x94   :  { %3045 = vmatmul.mubr.f32.gmra.mrb[40].mxu1 %v104_v56  ;;  %962 = vmatprep.mubr.f32.mxu0 %v109_v57  ;;  %v140_v56 = vld [vmem:[%s10614_s1 + $0x3a0] sm:$0xff] }
  0x95   :  { %3049 = vmatprep.mubr.f32.mxu1 %v109_v57  ;;  %770 = vperm.xlu1 %5365, %v339_v19   ;;  %v145_v57 = vld [vmem:[%s10614_s1 + $0x3c8] sm:$0xff] }
  0x96   :  { %4954 = vmatprep.subr.bf16.mxu1 %v5556_v0  ;;  %v357_v19 = vld [vmem:[%s10616_s3 + $0x68] sm:$0xff] }
  0x97   :  { %963 = vmatmul.mubr.f32.gmra.mrb[42].mxu0 %v108_v60  ;;  %775 = vperm.xlu0 %5364, %v340_v23   ;;  %v4656_v23 = vld [vmem:[%s10613_s0 + $0x3f8] sm:$0xff] }
  0x98   :  { %3050 = vmatmul.mubr.f32.gmra.mrb[42].mxu1 %v108_v60  ;;  %967 = vmatprep.mubr.f32.mxu0 %v113_v63  ;;  %v471_v60 = vld [vmem:[%s10613_s0 + $0x1f0] sm:$0xff] }
  0x99   :  { %3054 = vmatprep.mubr.f32.mxu1 %v113_v63  ;;  %780 = vperm.xlu1 %5365, %v341_v25   ;;  %v4649_v63 = vld [vmem:[%s10613_s0 + $0x3c0] sm:$0xff]  ;;  %v4880_v4 = vpack.c.bf16 %v472_v61, %v471_v60  ;;  %v358_v25 = vld [vmem:[%s10616_s3 + $0x70] sm:$0xff]  ;;  %v373_v60 = vld [vmem:[%s10616_s3 + $0xe8] sm:$0xff] }
  0x9a   :  { %4956 = vmatpush1.bf16.msra.mxu1 %v4955_v34  ;;  %v4967_v6 = vpack.c.bf16 %v4650_v1, %v4649_v63  ;;  %v363_v34 = vld [vmem:[%s10616_s3 + $0x98] sm:$0xff]  ;;  %v188_v61 = vld [vmem:[%s10614_s1 + $0x520] sm:$0xff]  ;;  %v374_v63 = vld [vmem:[%s10616_s3 + $0xf0] sm:$0xff] }
  0x9b   :  { %968 = vmatmul.mubr.f32.gmra.mrb[44].mxu0 %v112_v7  ;;  %785 = vperm.xlu0 %5364, %v342_v31   ;;  %v361_v31 = vld [vmem:[%s10616_s3 + $0x88] sm:$0xff] }
  0x9c   :  { %3055 = vmatmul.mubr.f32.gmra.mrb[44].mxu1 %v112_v7  ;;  %972 = vmatprep.mubr.f32.mxu0 %v117_v8  ;;  %v148_v7 = vld [vmem:[%s10614_s1 + $0x3e0] sm:$0xff] }
  0x9d   :  { %3059 = vmatprep.mubr.f32.mxu1 %v117_v8  ;;  %790 = vperm.xlu1 %5365, %v343_v33   ;;  %v4651_v8 = vld [vmem:[%s10613_s0 + $0x3d0] sm:$0xff]  ;;  %v169_v33 = vld [vmem:[%s10614_s1 + $0x488] sm:$0xff] }
  0x9e   :  { %4957 = vmatprep.subr.bf16.mxu1 %v5556_v0  ;;  %4881 = vmatpush1.bf16.msra.mxu0 %v4880_v4  ;;  %v4970_v13 = vpack.c.bf16 %v4652_v9, %v4651_v8  ;;  %v196_v8 = vld [vmem:[%s10614_s1 + $0x560] sm:$0xff]  ;;  %v201_v9 = vld [vmem:[%s10614_s1 + $0x588] sm:$0xff] }
  0x9f   :  { %973 = vmatmul.mubr.f32.gmra.mrb[46].mxu0 %v116_v14  ;;  %1629 = vperm.xlu0 %5364, %v344_v39   ;;  %v172_v39 = vld [vmem:[%s10614_s1 + $0x4a0] sm:$0xff] }
  0xa0   :  { %3060 = vmatmul.mubr.f32.gmra.mrb[46].mxu1 %v116_v14  ;;  %977 = vmatprep.mubr.f32.mxu0 %v121_v15  ;;  %v152_v14 = vld [vmem:[%s10614_s1 + $0x400] sm:$0xff] }
  0xa1   :  { %3064 = vmatprep.mubr.f32.mxu1 %v121_v15  ;;  %1634 = vperm.xlu1 %5365, %v345_v40   ;;  %v4653_v15 = vld [vmem:[%s10613_s0 + $0x3e0] sm:$0xff]  ;;  %v177_v40 = vld [vmem:[%s10614_s1 + $0x4c8] sm:$0xff] }
  0xa2   :  { %4959 = vmatpush1.bf16.msra.mxu1 %v4958_v41  ;;  %v4973_v20 = vpack.c.bf16 %v4654_v16, %v4653_v15  ;;  %v6535_v41 = vpop.permute.xlu0 %475  ;;  %v205_v15 = vld [vmem:[%s10614_s1 + $0x5a8] sm:$0xff]  ;;  %v380_v16 = vld [vmem:[%s10616_s3 + $0x120] sm:$0xff] }
  0xa3   :  { %978 = vmatmul.mubr.f32.gmra.mrb[48].mxu0 %v120_v21  ;;  %1639 = vperm.xlu0 %5364, %v346_v46   ;;  %v181_v46 = vld [vmem:[%s10614_s1 + $0x4e8] sm:$0xff] }
  0xa4   :  { %3065 = vmatmul.mubr.f32.gmra.mrb[48].mxu1 %v120_v21  ;;  %982 = vmatprep.mubr.f32.mxu0 %v125_v22  ;;  %v156_v21 = vld [vmem:[%s10614_s1 + $0x420] sm:$0xff] }
  0xa5   :  { %3069 = vmatprep.mubr.f32.mxu1 %v125_v22  ;;  %1644 = vperm.xlu1 %5365, %v347_v47   ;;  %v4655_v22 = vld [vmem:[%s10613_s0 + $0x3f0] sm:$0xff]  ;;  %v368_v47 = vld [vmem:[%s10616_s3 + $0xc0] sm:$0xff] }
  0xa6   :  { %4960 = vmatprep.subr.bf16.mxu1 %v5556_v0  ;;  %v4976_v27 = vpack.c.bf16 %v4656_v23, %v4655_v22  ;;  %v382_v22 = vld [vmem:[%s10616_s3 + $0x130] sm:$0xff]  ;;  %v383_v23 = vld [vmem:[%s10616_s3 + $0x138] sm:$0xff] }
  0xa7   :  { %983 = vmatmul.mubr.f32.gmra.mrb[50].mxu0 %v124_v24  ;;  %4962 = vmatpush1.bf16.msra.mxu1 %v4961_v48  ;;  %v6554_v48 = vpop.permute.xlu0 %480 }
  0xa8   :  { %3070 = vmatmul.mubr.f32.gmra.mrb[50].mxu1 %v124_v24  ;;  %987 = vmatprep.mubr.f32.mxu0 %v129_v30  ;;  %v161_v24 = vld [vmem:[%s10614_s1 + $0x448] sm:$0xff] }
  0xa9   :  { %3074 = vmatprep.mubr.f32.mxu1 %v129_v30  ;;  %1649 = vperm.xlu0 %5364, %v348_v53   ;;  %v360_v30 = vld [vmem:[%s10616_s3 + $0x80] sm:$0xff]  ;;  %v370_v53 = vld [vmem:[%s10616_s3 + $0xd0] sm:$0xff] }
  0xaa   :  { %1654 = vperm.xlu1 %5365, %v349_v54   ;;  %4963 = vmatprep.subr.bf16.mxu1 %v5556_v0  ;;  %v371_v54 = vld [vmem:[%s10616_s3 + $0xd8] sm:$0xff] }
  0xab   :  { %988 = vmatmul.mubr.f32.gmra.mrb[52].mxu0 %v128_v35  ;;  %4965 = vmatpush1.bf16.msra.mxu1 %v4964_v55  ;;  %v184_v55 = vld [vmem:[%s10614_s1 + $0x500] sm:$0xff] }
  0xac   :  { %3075 = vmatmul.mubr.f32.gmra.mrb[52].mxu1 %v128_v35  ;;  %992 = vmatprep.mubr.f32.mxu0 %v133_v38  ;;  %v168_v35 = vld [vmem:[%s10614_s1 + $0x480] sm:$0xff] }
  0xad   :  { %3079 = vmatprep.mubr.f32.mxu1 %v133_v38  ;;  %1659 = vperm.xlu0 %5364, %v350_v58   ;;  %v365_v38 = vld [vmem:[%s10616_s3 + $0xa8] sm:$0xff] }
  0xae   :  { %1664 = vperm.xlu1 %5365, %v351_v59   ;;  %4966 = vmatprep.subr.bf16.mxu1 %v5556_v0  ;;  %v372_v59 = vld [vmem:[%s10616_s3 + $0xe0] sm:$0xff] }
  0xaf   :  { %993 = vmatmul.mubr.f32.gmra.mrb[54].mxu0 %v132_v42  ;;  %4968 = vmatpush1.bf16.msra.mxu1 %v4967_v6  ;;  %v376_v6 = vld [vmem:[%s10616_s3 + $0x100] sm:$0xff] }
  0xb0   :  { %3080 = vmatmul.mubr.f32.gmra.mrb[54].mxu1 %v132_v42  ;;  %997 = vmatprep.mubr.f32.mxu0 %v137_v45  ;;  %v6537_v42 = vpop.permute.xlu1 %485 }
  0xb1   :  { %3084 = vmatprep.mubr.f32.mxu1 %v137_v45  ;;  %1669 = vperm.xlu0 %5364, %v352_v3   ;;  %v176_v45 = vld [vmem:[%s10614_s1 + $0x4c0] sm:$0xff] }
  0xb2   :  { %1674 = vperm.xlu1 %5365, %v353_v5   ;;  %4969 = vmatprep.subr.bf16.mxu1 %v5556_v0  ;;  %v192_v3 = vld [vmem:[%s10614_s1 + $0x540] sm:$0xff]  ;;  %v197_v5 = vld [vmem:[%s10614_s1 + $0x568] sm:$0xff] }
  0xb3   :  { %998 = vmatmul.mubr.f32.gmra.mrb[56].mxu0 %v136_v49  ;;  %4971 = vmatpush1.bf16.msra.mxu1 %v4970_v13  ;;  %v379_v13 = vld [vmem:[%s10616_s3 + $0x118] sm:$0xff] }
  0xb4   :  { %3085 = vmatmul.mubr.f32.gmra.mrb[56].mxu1 %v136_v49  ;;  %1002 = vmatprep.mubr.f32.mxu0 %v141_v52  ;;  %v369_v49 = vld [vmem:[%s10616_s3 + $0xc8] sm:$0xff]  ;;  %v6562_v51 = vpop.permute.xlu1 %490 }
  0xb5   :  { %3089 = vmatprep.mubr.f32.mxu1 %v141_v52  ;;  %1679 = vperm.xlu0 %5364, %v354_v11   ;;  %v185_v52 = vld [vmem:[%s10614_s1 + $0x508] sm:$0xff] }
  0xb6   :  { %1684 = vperm.xlu1 %5365, %v355_v12   ;;  %4972 = vmatprep.subr.bf16.mxu1 %v5556_v0  ;;  %v378_v12 = vld [vmem:[%s10616_s3 + $0x110] sm:$0xff] }
  0xb7   :  { %1003 = vmatmul.mubr.f32.gmra.mrb[58].mxu0 %v140_v56  ;;  %4974 = vmatpush1.bf16.msra.mxu1 %v4973_v20 }
  0xb8   :  { %3090 = vmatmul.mubr.f32.gmra.mrb[58].mxu1 %v140_v56  ;;  %1007 = vmatprep.mubr.f32.mxu0 %v145_v57  ;;  %v189_v56 = vld [vmem:[%s10614_s1 + $0x528] sm:$0xff]  ;;  %v6581_v58 = vpop.permute.xlu1 %500 }
  0xb9   :  { %3094 = vmatprep.mubr.f32.mxu1 %v145_v57  ;;  %1689 = vperm.xlu0 %5364, %v356_v18   ;;  %v6579_v57 = vpop.permute.xlu0 %495  ;;  %v381_v18 = vld [vmem:[%s10616_s3 + $0x128] sm:$0xff] }
  0xba   :  { %1694 = vperm.xlu1 %5365, %v357_v19   ;;  %4975 = vmatprep.subr.bf16.mxu1 %v5556_v0  ;;  %v362_v0 = vld [vmem:[%s10616_s3 + $0x90] sm:$0xff]  ;;  %v204_v19 = vld [vmem:[%s10614_s1 + $0x5a0] sm:$0xff] }
  0xbb   :  { %1008 = vmatmul.mubr.f32.gmra.mrb[60].mxu0 %v144_v62  ;;  %4977 = vmatpush1.bf16.msra.mxu1 %v4976_v27 }
  0xbc   :  { %3095 = vmatmul.mubr.f32.gmra.mrb[60].mxu1 %v144_v62  ;;  %1012 = vmatprep.mubr.f32.mxu0 %v149_v2  ;;  %v193_v62 = vld [vmem:[%s10614_s1 + $0x548] sm:$0xff]  ;;  %v6606_v4 = vpop.permute.xlu1 %510 }
  0xbd   :  { %3099 = vmatprep.mubr.f32.mxu1 %v149_v2  ;;  %1699 = vperm.xlu0 %5364, %v358_v25   ;;  %v6598_v1 = vpop.permute.xlu0 %505  ;;  %v375_v2 = vld [vmem:[%s10616_s3 + $0xf8] sm:$0xff]  ;;  %v213_v25 = vld [vmem:[%s10614_s1 + $0x5e8] sm:$0xff] }
  0xbe   :  { %1704 = vperm.xlu1 %5365, %v359_v26  }
  0xbf   :  { %1013 = vmatmul.mubr.f32.gmra.mrb[62].mxu0 %v148_v7 }
  0xc0   :  { %3100 = vmatmul.mubr.f32.gmra.mrb[62].mxu1 %v148_v7  ;;  %1017 = vmatprep.mubr.f32.mxu0 %v153_v10  ;;  %v377_v7 = vld [vmem:[%s10616_s3 + $0x108] sm:$0xff]  ;;  %v6625_v11 = vpop.permute.xlu1 %520 }
  0xc1   :  { %3104 = vmatprep.mubr.f32.mxu1 %v153_v10  ;;  %1709 = vperm.xlu0 %5364, %v360_v30   ;;  %v6623_v10 = vpop.permute.xlu0 %515  ;;  %v212_v30 = vld [vmem:[%s10614_s1 + $0x5e0] sm:$0xff] }
  0xc2   :  { %1714 = vperm.xlu1 %5365, %v361_v31   ;;  %v217_v31 = vld [vmem:[%s10614_s1 + $0x608] sm:$0xff] }
  0xc3   :  { %1018 = vmatmul.mubr.f32.gmra.mrb[64].mxu0 %v152_v14 }
  0xc4   :  { %3105 = vmatmul.mubr.f32.gmra.mrb[64].mxu1 %v152_v14  ;;  %1022 = vmatprep.mubr.f32.mxu0 %v157_v17  ;;  %v200_v14 = vld [vmem:[%s10614_s1 + $0x580] sm:$0xff]  ;;  %v6650_v20 = vpop.permute.xlu1 %530 }
  0xc5   :  { %3109 = vmatprep.mubr.f32.mxu1 %v157_v17  ;;  %1719 = vperm.xlu0 %5364, %v362_v0   ;;  %v6642_v17 = vpop.permute.xlu0 %525  ;;  %v387_v0 = vld [vmem:[%s10616_s3 + $0x158] sm:$0xff] }
  0xc6   :  { %1724 = vperm.xlu1 %5365, %v363_v34   ;;  %v216_v34 = vld [vmem:[%s10614_s1 + $0x600] sm:$0xff] }
  0xc7   :  { %1023 = vmatmul.mubr.f32.gmra.mrb[66].mxu0 %v156_v21 }
  0xc8   :  { %3110 = vmatmul.mubr.f32.gmra.mrb[66].mxu1 %v156_v21  ;;  %1027 = vmatprep.mubr.f32.mxu0 %v161_v24  ;;  %v209_v21 = vld [vmem:[%s10614_s1 + $0x5c8] sm:$0xff]  ;;  %v6669_v27 = vpop.permute.xlu1 %540 }
  0xc9   :  { %3114 = vmatprep.mubr.f32.mxu1 %v161_v24  ;;  %1729 = vperm.xlu0 %5364, %v364_v37   ;;  %v208_v24 = vld [vmem:[%s10614_s1 + $0x5c0] sm:$0xff]  ;;  %v6667_v26 = vpop.permute.xlu0 %535 }
  0xca   :  { %1734 = vperm.xlu1 %5365, %v365_v38   ;;  %v388_v37 = vld [vmem:[%s10616_s3 + $0x160] sm:$0xff]  ;;  %v389_v38 = vld [vmem:[%s10616_s3 + $0x168] sm:$0xff] }
  0xcb   :  { %1028 = vmatmul.mubr.f32.gmra.mrb[68].mxu0 %v160_v28 }
  0xcc   :  { %3115 = vmatmul.mubr.f32.gmra.mrb[68].mxu1 %v160_v28  ;;  %1032 = vmatprep.mubr.f32.mxu0 %v165_v29  ;;  %v384_v28 = vld [vmem:[%s10616_s3 + $0x140] sm:$0xff] }
  0xcd   :  { %3119 = vmatprep.mubr.f32.mxu1 %v165_v29  ;;  %1739 = vperm.xlu0 %5364, %v366_v43   ;;  %v385_v29 = vld [vmem:[%s10616_s3 + $0x148] sm:$0xff] }
  0xce   :  { %1744 = vperm.xlu1 %5365, %v367_v44  }
  0xcf   :  { %1033 = vmatmul.mubr.f32.gmra.mrb[70].mxu0 %v164_v32 }
  0xd0   :  { %3120 = vmatmul.mubr.f32.gmra.mrb[70].mxu1 %v164_v32  ;;  %1037 = vmatprep.mubr.f32.mxu0 %v169_v33  ;;  %v386_v32 = vld [vmem:[%s10616_s3 + $0x150] sm:$0xff] }
  0xd1   :  { %3124 = vmatprep.mubr.f32.mxu1 %v169_v33  ;;  %1749 = vperm.xlu0 %5364, %v368_v47   ;;  %v6686_v33 = vpop.permute.xlu0 %545  ;;  %v224_v47 = vld [vmem:[%s10614_s1 + $0x640] sm:$0xff] }
  0xd2   :  { %1754 = vperm.xlu1 %5365, %v369_v49   ;;  %v229_v49 = vld [vmem:[%s10614_s1 + $0x668] sm:$0xff] }
  0xd3   :  { %1038 = vmatmul.mubr.f32.gmra.mrb[72].mxu0 %v168_v35 }
  0xd4   :  { %3125 = vmatmul.mubr.f32.gmra.mrb[72].mxu1 %v168_v35  ;;  %1042 = vmatprep.mubr.f32.mxu0 %v173_v36  ;;  %v6694_v35 = vpop.permute.xlu1 %550 }
  0xd5   :  { %3129 = vmatprep.mubr.f32.mxu1 %v173_v36  ;;  %1759 = vperm.xlu0 %5364, %v370_v53   ;;  %v221_v36 = vld [vmem:[%s10614_s1 + $0x628] sm:$0xff]  ;;  %v6711_v43 = vpop.permute.xlu0 %555 }
  0xd6   :  { %1764 = vperm.xlu1 %5365, %v371_v54   ;;  %v393_v53 = vld [vmem:[%s10616_s3 + $0x188] sm:$0xff]  ;;  %v228_v54 = vld [vmem:[%s10614_s1 + $0x660] sm:$0xff] }
  0xd7   :  { %1043 = vmatmul.mubr.f32.gmra.mrb[74].mxu0 %v172_v39 }
  0xd8   :  { %3130 = vmatmul.mubr.f32.gmra.mrb[74].mxu1 %v172_v39  ;;  %1047 = vmatprep.mubr.f32.mxu0 %v177_v40  ;;  %v220_v39 = vld [vmem:[%s10614_s1 + $0x620] sm:$0xff]  ;;  %v6713_v44 = vpop.permute.xlu1 %560 }
  0xd9   :  { %3134 = vmatprep.mubr.f32.mxu1 %v177_v40  ;;  %1769 = vperm.xlu0 %5364, %v372_v59   ;;  %v225_v40 = vld [vmem:[%s10614_s1 + $0x648] sm:$0xff]  ;;  %v394_v59 = vld [vmem:[%s10616_s3 + $0x190] sm:$0xff] }
  0xda   :  { %1774 = vperm.xlu1 %5365, %v373_v60   ;;  %v395_v60 = vld [vmem:[%s10616_s3 + $0x198] sm:$0xff] }
  0xdb   :  { %1048 = vmatmul.mubr.f32.gmra.mrb[76].mxu0 %v176_v45 }
  0xdc   :  { %3135 = vmatmul.mubr.f32.gmra.mrb[76].mxu1 %v176_v45  ;;  %1052 = vmatprep.mubr.f32.mxu0 %v181_v46  ;;  %v390_v45 = vld [vmem:[%s10616_s3 + $0x170] sm:$0xff] }
  0xdd   :  { %3139 = vmatprep.mubr.f32.mxu1 %v181_v46  ;;  %1779 = vperm.xlu0 %5364, %v374_v63   ;;  %v391_v46 = vld [vmem:[%s10616_s3 + $0x178] sm:$0xff] }
  0xde   :  { %1784 = vperm.xlu1 %5365, %v375_v2  }
  0xdf   :  { %1053 = vmatmul.mubr.f32.gmra.mrb[78].mxu0 %v180_v50 }
  0xe0   :  { %3140 = vmatmul.mubr.f32.gmra.mrb[78].mxu1 %v180_v50  ;;  %1057 = vmatprep.mubr.f32.mxu0 %v185_v52  ;;  %v392_v50 = vld [vmem:[%s10616_s3 + $0x180] sm:$0xff] }
  0xe1   :  { %3144 = vmatprep.mubr.f32.mxu1 %v185_v52  ;;  %1789 = vperm.xlu0 %5364, %v376_v6   ;;  %v6730_v52 = vpop.permute.xlu0 %565  ;;  %v236_v6 = vld [vmem:[%s10614_s1 + $0x6a0] sm:$0xff] }
  0xe2   :  { %1794 = vperm.xlu1 %5365, %v377_v7   ;;  %v241_v7 = vld [vmem:[%s10614_s1 + $0x6c8] sm:$0xff] }
  0xe3   :  { %1058 = vmatmul.mubr.f32.gmra.mrb[80].mxu0 %v184_v55 }
  0xe4   :  { %3145 = vmatmul.mubr.f32.gmra.mrb[80].mxu1 %v184_v55  ;;  %1062 = vmatprep.mubr.f32.mxu0 %v189_v56  ;;  %v6738_v55 = vpop.permute.xlu1 %570 }
  0xe5   :  { %3149 = vmatprep.mubr.f32.mxu1 %v189_v56  ;;  %1799 = vperm.xlu0 %5364, %v378_v12   ;;  %v233_v56 = vld [vmem:[%s10614_s1 + $0x688] sm:$0xff]  ;;  %v6755_v63 = vpop.permute.xlu0 %575  ;;  %v399_v12 = vld [vmem:[%s10616_s3 + $0x1b8] sm:$0xff] }
  0xe6   :  { %1804 = vperm.xlu1 %5365, %v379_v13   ;;  %v240_v13 = vld [vmem:[%s10614_s1 + $0x6c0] sm:$0xff] }
  0xe7   :  { %1063 = vmatmul.mubr.f32.gmra.mrb[82].mxu0 %v188_v61 }
  0xe8   :  { %3150 = vmatmul.mubr.f32.gmra.mrb[82].mxu1 %v188_v61  ;;  %1067 = vmatprep.mubr.f32.mxu0 %v193_v62  ;;  %v232_v61 = vld [vmem:[%s10614_s1 + $0x680] sm:$0xff]  ;;  %v6757_v2 = vpop.permute.xlu1 %580 }
  0xe9   :  { %3154 = vmatprep.mubr.f32.mxu1 %v193_v62  ;;  %1809 = vperm.xlu0 %5364, %v380_v16   ;;  %v237_v62 = vld [vmem:[%s10614_s1 + $0x6a8] sm:$0xff]  ;;  %v400_v16 = vld [vmem:[%s10616_s3 + $0x1c0] sm:$0xff] }
  0xea   :  { %1814 = vperm.xlu1 %5365, %v381_v18   ;;  %v401_v18 = vld [vmem:[%s10616_s3 + $0x1c8] sm:$0xff] }
  0xeb   :  { %1068 = vmatmul.mubr.f32.gmra.mrb[84].mxu0 %v192_v3 }
  0xec   :  { %3155 = vmatmul.mubr.f32.gmra.mrb[84].mxu1 %v192_v3  ;;  %1072 = vmatprep.mubr.f32.mxu0 %v197_v5  ;;  %v396_v3 = vld [vmem:[%s10616_s3 + $0x1a0] sm:$0xff] }
  0xed   :  { %3159 = vmatprep.mubr.f32.mxu1 %v197_v5  ;;  %1819 = vperm.xlu0 %5364, %v382_v22   ;;  %v397_v5 = vld [vmem:[%s10616_s3 + $0x1a8] sm:$0xff] }
  0xee   :  { %1824 = vperm.xlu1 %5365, %v383_v23  }
  0xef   :  { %1073 = vmatmul.mubr.f32.gmra.mrb[86].mxu0 %v196_v8 }
  0xf0   :  { %3160 = vmatmul.mubr.f32.gmra.mrb[86].mxu1 %v196_v8  ;;  %1077 = vmatprep.mubr.f32.mxu0 %v201_v9  ;;  %v398_v8 = vld [vmem:[%s10616_s3 + $0x1b0] sm:$0xff] }
  0xf1   :  { %3164 = vmatprep.mubr.f32.mxu1 %v201_v9  ;;  %1829 = vperm.xlu0 %5364, %v384_v28   ;;  %v6774_v9 = vpop.permute.xlu0 %585  ;;  %v248_v28 = vld [vmem:[%s10614_s1 + $0x700] sm:$0xff] }
  0xf2   :  { %1834 = vperm.xlu1 %5365, %v385_v29   ;;  %v253_v29 = vld [vmem:[%s10614_s1 + $0x728] sm:$0xff] }
  0xf3   :  { %1078 = vmatmul.mubr.f32.gmra.mrb[88].mxu0 %v200_v14 }
  0xf4   :  { %3165 = vmatmul.mubr.f32.gmra.mrb[88].mxu1 %v200_v14  ;;  %1082 = vmatprep.mubr.f32.mxu0 %v205_v15  ;;  %v6782_v14 = vpop.permute.xlu1 %590 }
  0xf5   :  { %3169 = vmatprep.mubr.f32.mxu1 %v205_v15  ;;  %1839 = vperm.xlu0 %5364, %v386_v32   ;;  %v245_v15 = vld [vmem:[%s10614_s1 + $0x6e8] sm:$0xff]  ;;  %v6799_v22 = vpop.permute.xlu0 %595 }
  0xf6   :  { %1844 = vperm.xlu1 %5365, %v387_v0   ;;  %v405_v32 = vld [vmem:[%s10616_s3 + $0x1e8] sm:$0xff]  ;;  %v252_v0 = vld [vmem:[%s10614_s1 + $0x720] sm:$0xff] }
  0xf7   :  { %1083 = vmatmul.mubr.f32.gmra.mrb[90].mxu0 %v204_v19 }
  0xf8   :  { %3170 = vmatmul.mubr.f32.gmra.mrb[90].mxu1 %v204_v19  ;;  %1087 = vmatprep.mubr.f32.mxu0 %v209_v21  ;;  %v244_v19 = vld [vmem:[%s10614_s1 + $0x6e0] sm:$0xff]  ;;  %v6801_v23 = vpop.permute.xlu1 %600 }
  0xf9   :  { %3174 = vmatprep.mubr.f32.mxu1 %v209_v21  ;;  %1849 = vperm.xlu0 %5364, %v388_v37   ;;  %v249_v21 = vld [vmem:[%s10614_s1 + $0x708] sm:$0xff]  ;;  %v406_v37 = vld [vmem:[%s10616_s3 + $0x1f0] sm:$0xff] }
  0xfa   :  { %1854 = vperm.xlu1 %5365, %v389_v38   ;;  %v407_v38 = vld [vmem:[%s10616_s3 + $0x1f8] sm:$0xff] }
  0xfb   :  { %1088 = vmatmul.mubr.f32.gmra.mrb[92].mxu0 %v208_v24 }
  0xfc   :  { %3175 = vmatmul.mubr.f32.gmra.mrb[92].mxu1 %v208_v24  ;;  %1092 = vmatprep.mubr.f32.mxu0 %v213_v25  ;;  %v402_v24 = vld [vmem:[%s10616_s3 + $0x1d0] sm:$0xff] }
  0xfd   :  { %3179 = vmatprep.mubr.f32.mxu1 %v213_v25  ;;  %1859 = vperm.xlu0 %5364, %v390_v45   ;;  %v403_v25 = vld [vmem:[%s10616_s3 + $0x1d8] sm:$0xff] }
  0xfe   :  { %1864 = vperm.xlu1 %5365, %v391_v46  }
  0xff   :  { %1093 = vmatmul.mubr.f32.gmra.mrb[94].mxu0 %v212_v30 }
 0x100   :  { %3180 = vmatmul.mubr.f32.gmra.mrb[94].mxu1 %v212_v30  ;;  %1097 = vmatprep.mubr.f32.mxu0 %v217_v31  ;;  %v404_v30 = vld [vmem:[%s10616_s3 + $0x1e0] sm:$0xff] }
 0x101   :  { %3184 = vmatprep.mubr.f32.mxu1 %v217_v31  ;;  %1869 = vperm.xlu0 %5364, %v392_v50   ;;  %v6818_v31 = vpop.permute.xlu0 %605  ;;  %v264_v50 = vld [vmem:[%s10614_s1 + $0x780] sm:$0xff] }
 0x102   :  { %1874 = vperm.xlu1 %5365, %v393_v53   ;;  %v269_v53 = vld [vmem:[%s10614_s1 + $0x7a8] sm:$0xff] }
 0x103   :  { %1098 = vmatmul.mubr.f32.gmra.mrb[96].mxu0 %v216_v34 }
 0x104   :  { %3185 = vmatmul.mubr.f32.gmra.mrb[96].mxu1 %v216_v34  ;;  %1102 = vmatprep.mubr.f32.mxu0 %v221_v36  ;;  %v6826_v34 = vpop.permute.xlu1 %610 }
 0x105   :  { %3189 = vmatprep.mubr.f32.mxu1 %v221_v36  ;;  %1879 = vperm.xlu0 %5364, %v394_v59   ;;  %v257_v36 = vld [vmem:[%s10614_s1 + $0x748] sm:$0xff]  ;;  %v6843_v45 = vpop.permute.xlu0 %615  ;;  %v272_v59 = vld [vmem:[%s10614_s1 + $0x7c0] sm:$0xff] }
 0x106   :  { %1884 = vperm.xlu1 %5365, %v395_v60   ;;  %v277_v60 = vld [vmem:[%s10614_s1 + $0x7e8] sm:$0xff] }
 0x107   :  { %1103 = vmatmul.mubr.f32.gmra.mrb[98].mxu0 %v220_v39 }
 0x108   :  { %3190 = vmatmul.mubr.f32.gmra.mrb[98].mxu1 %v220_v39  ;;  %1107 = vmatprep.mubr.f32.mxu0 %v225_v40  ;;  %v256_v39 = vld [vmem:[%s10614_s1 + $0x740] sm:$0xff]  ;;  %v6845_v46 = vpop.permute.xlu1 %620 }
 0x109   :  { %3194 = vmatprep.mubr.f32.mxu1 %v225_v40  ;;  %1889 = vperm.xlu0 %5364, %v396_v3   ;;  %v261_v40 = vld [vmem:[%s10614_s1 + $0x768] sm:$0xff]  ;;  %v26_v3 = vld [vmem:[%s10614_s1 + $0x10] sm:$0xff] }
 0x10a   :  { %1894 = vperm.xlu1 %5365, %v397_v5   ;;  %v31_v5 = vld [vmem:[%s10614_s1 + $0x38] sm:$0xff] }
 0x10b   :  { %1108 = vmatmul.mubr.f32.gmra.mrb[100].mxu0 %v224_v47 }
 0x10c   :  { %3195 = vmatmul.mubr.f32.gmra.mrb[100].mxu1 %v224_v47  ;;  %1112 = vmatprep.mubr.f32.mxu0 %v229_v49  ;;  %v260_v47 = vld [vmem:[%s10614_s1 + $0x760] sm:$0xff] }
 0x10d   :  { %3199 = vmatprep.mubr.f32.mxu1 %v229_v49  ;;  %1899 = vperm.xlu0 %5364, %v398_v8   ;;  %v265_v49 = vld [vmem:[%s10614_s1 + $0x788] sm:$0xff]  ;;  %v34_v8 = vld [vmem:[%s10614_s1 + $0x50] sm:$0xff] }
 0x10e   :  { %1904 = vperm.xlu1 %5365, %v399_v12   ;;  %v39_v12 = vld [vmem:[%s10614_s1 + $0x78] sm:$0xff] }
 0x10f   :  { %1113 = vmatmul.mubr.f32.gmra.mrb[102].mxu0 %v228_v54 }
 0x110   :  { %3200 = vmatmul.mubr.f32.gmra.mrb[102].mxu1 %v228_v54  ;;  %1117 = vmatprep.mubr.f32.mxu0 %v233_v56  ;;  %v268_v54 = vld [vmem:[%s10614_s1 + $0x7a0] sm:$0xff] }
 0x111   :  { %3204 = vmatprep.mubr.f32.mxu1 %v233_v56  ;;  %1909 = vperm.xlu0 %5364, %v400_v16   ;;  %v273_v56 = vld [vmem:[%s10614_s1 + $0x7c8] sm:$0xff]  ;;  %v42_v16 = vld [vmem:[%s10614_s1 + $0x90] sm:$0xff] }
 0x112   :  { %1914 = vperm.xlu1 %5365, %v401_v18   ;;  %v47_v18 = vld [vmem:[%s10614_s1 + $0xb8] sm:$0xff] }
 0x113   :  { %1118 = vmatmul.mubr.f32.gmra.mrb[104].mxu0 %v232_v61 }
 0x114   :  { %3205 = vmatmul.mubr.f32.gmra.mrb[104].mxu1 %v232_v61  ;;  %1122 = vmatprep.mubr.f32.mxu0 %v237_v62  ;;  %v276_v61 = vld [vmem:[%s10614_s1 + $0x7e0] sm:$0xff] }
 0x115   :  { %3209 = vmatprep.mubr.f32.mxu1 %v237_v62  ;;  %1919 = vperm.xlu0 %5364, %v402_v24   ;;  %v27_v62 = vld [vmem:[%s10614_s1 + $0x18] sm:$0xff]  ;;  %v50_v24 = vld [vmem:[%s10614_s1 + $0xd0] sm:$0xff] }
 0x116   :  { %1924 = vperm.xlu1 %5365, %v403_v25   ;;  %v55_v25 = vld [vmem:[%s10614_s1 + $0xf8] sm:$0xff] }
 0x117   :  { %1123 = vmatmul.mubr.f32.gmra.mrb[106].mxu0 %v236_v6 }
 0x118   :  { %3210 = vmatmul.mubr.f32.gmra.mrb[106].mxu1 %v236_v6  ;;  %1127 = vmatprep.mubr.f32.mxu0 %v241_v7  ;;  %v30_v6 = vld [vmem:[%s10614_s1 + $0x30] sm:$0xff] }
 0x119   :  { %3214 = vmatprep.mubr.f32.mxu1 %v241_v7  ;;  %1929 = vperm.xlu0 %5364, %v404_v30   ;;  %v35_v7 = vld [vmem:[%s10614_s1 + $0x58] sm:$0xff]  ;;  %v58_v30 = vld [vmem:[%s10614_s1 + $0x110] sm:$0xff] }
 0x11a   :  { %1934 = vperm.xlu1 %5365, %v405_v32   ;;  %v63_v32 = vld [vmem:[%s10614_s1 + $0x138] sm:$0xff] }
 0x11b   :  { %1128 = vmatmul.mubr.f32.gmra.mrb[108].mxu0 %v240_v13 }
 0x11c   :  { %3215 = vmatmul.mubr.f32.gmra.mrb[108].mxu1 %v240_v13  ;;  %1132 = vmatprep.mubr.f32.mxu0 %v245_v15  ;;  %v38_v13 = vld [vmem:[%s10614_s1 + $0x70] sm:$0xff] }
 0x11d   :  { %3219 = vmatprep.mubr.f32.mxu1 %v245_v15  ;;  %1939 = vperm.xlu0 %5364, %v406_v37   ;;  %v43_v15 = vld [vmem:[%s10614_s1 + $0x98] sm:$0xff]  ;;  %v66_v37 = vld [vmem:[%s10614_s1 + $0x150] sm:$0xff] }
 0x11e   :  { %1944 = vperm.xlu1 %5365, %v407_v38   ;;  %v71_v38 = vld [vmem:[%s10614_s1 + $0x178] sm:$0xff] }
 0x11f   :  { %1133 = vmatmul.mubr.f32.gmra.mrb[110].mxu0 %v244_v19 }
 0x120   :  { %3220 = vmatmul.mubr.f32.gmra.mrb[110].mxu1 %v244_v19  ;;  %1137 = vmatprep.mubr.f32.mxu0 %v249_v21  ;;  %v46_v19 = vld [vmem:[%s10614_s1 + $0xb0] sm:$0xff] }
 0x121   :  { %3224 = vmatprep.mubr.f32.mxu1 %v249_v21  ;;  %v51_v21 = vld [vmem:[%s10614_s1 + $0xd8] sm:$0xff] }
 0x123   :  { %1138 = vmatmul.mubr.f32.gmra.mrb[112].mxu0 %v248_v28 }
 0x124   :  { %3225 = vmatmul.mubr.f32.gmra.mrb[112].mxu1 %v248_v28  ;;  %1142 = vmatprep.mubr.f32.mxu0 %v253_v29  ;;  %v54_v28 = vld [vmem:[%s10614_s1 + $0xf0] sm:$0xff] }
 0x125   :  { %3229 = vmatprep.mubr.f32.mxu1 %v253_v29  ;;  %v59_v29 = vld [vmem:[%s10614_s1 + $0x118] sm:$0xff] }
 0x127   :  { %1143 = vmatmul.mubr.f32.gmra.mrb[114].mxu0 %v252_v0 }
 0x128   :  { %3230 = vmatmul.mubr.f32.gmra.mrb[114].mxu1 %v252_v0  ;;  %1147 = vmatprep.mubr.f32.mxu0 %v257_v36  ;;  %v62_v0 = vld [vmem:[%s10614_s1 + $0x130] sm:$0xff] }
 0x129   :  { %3234 = vmatprep.mubr.f32.mxu1 %v257_v36  ;;  %v67_v36 = vld [vmem:[%s10614_s1 + $0x158] sm:$0xff] }
 0x12b   :  { %1148 = vmatmul.mubr.f32.gmra.mrb[116].mxu0 %v256_v39 }
 0x12c   :  { %3235 = vmatmul.mubr.f32.gmra.mrb[116].mxu1 %v256_v39  ;;  %1152 = vmatprep.mubr.f32.mxu0 %v261_v40  ;;  %v70_v39 = vld [vmem:[%s10614_s1 + $0x170] sm:$0xff] }
 0x12d   :  { %3239 = vmatprep.mubr.f32.mxu1 %v261_v40  ;;  %v75_v40 = vld [vmem:[%s10614_s1 + $0x198] sm:$0xff] }
 0x12f   :  { %1153 = vmatmul.mubr.f32.gmra.mrb[118].mxu0 %v260_v47 }
 0x130   :  { %3240 = vmatmul.mubr.f32.gmra.mrb[118].mxu1 %v260_v47  ;;  %1157 = vmatprep.mubr.f32.mxu0 %v265_v49  ;;  %v74_v47 = vld [vmem:[%s10614_s1 + $0x190] sm:$0xff] }
 0x131   :  { %3244 = vmatprep.mubr.f32.mxu1 %v265_v49  ;;  %v79_v49 = vld [vmem:[%s10614_s1 + $0x1b8] sm:$0xff] }
 0x133   :  { %1158 = vmatmul.mubr.f32.gmra.mrb[120].mxu0 %v264_v50 }
 0x134   :  { %3245 = vmatmul.mubr.f32.gmra.mrb[120].mxu1 %v264_v50  ;;  %1162 = vmatprep.mubr.f32.mxu0 %v269_v53  ;;  %v78_v50 = vld [vmem:[%s10614_s1 + $0x1b0] sm:$0xff] }
 0x135   :  { %3249 = vmatprep.mubr.f32.mxu1 %v269_v53  ;;  %v83_v53 = vld [vmem:[%s10614_s1 + $0x1d8] sm:$0xff] }
 0x137   :  { %1163 = vmatmul.mubr.f32.gmra.mrb[122].mxu0 %v268_v54 }
 0x138   :  { %3250 = vmatmul.mubr.f32.gmra.mrb[122].mxu1 %v268_v54  ;;  %1167 = vmatprep.mubr.f32.mxu0 %v273_v56  ;;  %v82_v54 = vld [vmem:[%s10614_s1 + $0x1d0] sm:$0xff] }
 0x139   :  { %3254 = vmatprep.mubr.f32.mxu1 %v273_v56  ;;  %v87_v56 = vld [vmem:[%s10614_s1 + $0x1f8] sm:$0xff] }
 0x13b   :  { %1168 = vmatmul.mubr.f32.gmra.mrb[124].mxu0 %v272_v59 }
 0x13c   :  { %3255 = vmatmul.mubr.f32.gmra.mrb[124].mxu1 %v272_v59  ;;  %1172 = vmatprep.mubr.f32.mxu0 %v277_v60  ;;  %v86_v59 = vld [vmem:[%s10614_s1 + $0x1f0] sm:$0xff] }
 0x13d   :  { %3259 = vmatprep.mubr.f32.mxu1 %v277_v60  ;;  %v91_v60 = vld [vmem:[%s10614_s1 + $0x218] sm:$0xff] }
 0x13f   :  { %1173 = vmatmul.mubr.f32.gmra.mrb[126].mxu0 %v276_v61 }
 0x140   :  { %3260 = vmatmul.mubr.f32.gmra.mrb[126].mxu1 %v276_v61  ;;  %1242 = vmatprep.mubr.f32.mxu0 %v27_v62  ;;  %v90_v61 = vld [vmem:[%s10614_s1 + $0x210] sm:$0xff] }
 0x141   :  { %3329 = vmatprep.mubr.f32.mxu1 %v27_v62  ;;  %v95_v62 = vld [vmem:[%s10614_s1 + $0x238] sm:$0xff] }
 0x143   :  { %1243 = vmatmul.mubr.f32.vlgmr.msra.gmra.mrb[0].mxu0 %v26_v3 }
 0x144   :  { %3330 = vmatmul.mubr.f32.vlgmr.msra.gmra.mrb[0].mxu1 %v26_v3  ;;  %1247 = vmatprep.mubr.f32.mxu0 %v31_v5  ;;  %v94_v3 = vld [vmem:[%s10614_s1 + $0x230] sm:$0xff] }
 0x145   :  { %3334 = vmatprep.mubr.f32.mxu1 %v31_v5  ;;  %v99_v5 = vld [vmem:[%s10614_s1 + $0x258] sm:$0xff] }
 0x147   :  { %1248 = vmatmul.mubr.f32.gmra.mrb[2].mxu0 %v30_v6 }
 0x148   :  { %3335 = vmatmul.mubr.f32.gmra.mrb[2].mxu1 %v30_v6  ;;  %1252 = vmatprep.mubr.f32.mxu0 %v35_v7  ;;  %v98_v6 = vld [vmem:[%s10614_s1 + $0x250] sm:$0xff] }
 0x149   :  { %3339 = vmatprep.mubr.f32.mxu1 %v35_v7  ;;  %v103_v7 = vld [vmem:[%s10614_s1 + $0x278] sm:$0xff] }
 0x14b   :  { %1253 = vmatmul.mubr.f32.gmra.mrb[4].mxu0 %v34_v8 }
 0x14c   :  { %3340 = vmatmul.mubr.f32.gmra.mrb[4].mxu1 %v34_v8  ;;  %1257 = vmatprep.mubr.f32.mxu0 %v39_v12  ;;  %v102_v8 = vld [vmem:[%s10614_s1 + $0x270] sm:$0xff] }
 0x14d   :  { %3344 = vmatprep.mubr.f32.mxu1 %v39_v12  ;;  %v107_v12 = vld [vmem:[%s10614_s1 + $0x298] sm:$0xff] }
 0x14f   :  { %1258 = vmatmul.mubr.f32.gmra.mrb[6].mxu0 %v38_v13 }
 0x150   :  { %3345 = vmatmul.mubr.f32.gmra.mrb[6].mxu1 %v38_v13  ;;  %1262 = vmatprep.mubr.f32.mxu0 %v43_v15  ;;  %v106_v13 = vld [vmem:[%s10614_s1 + $0x290] sm:$0xff] }
 0x151   :  { %3349 = vmatprep.mubr.f32.mxu1 %v43_v15  ;;  %v111_v15 = vld [vmem:[%s10614_s1 + $0x2b8] sm:$0xff] }
 0x153   :  { %1263 = vmatmul.mubr.f32.gmra.mrb[8].mxu0 %v42_v16 }
 0x154   :  { %3350 = vmatmul.mubr.f32.gmra.mrb[8].mxu1 %v42_v16  ;;  %1267 = vmatprep.mubr.f32.mxu0 %v47_v18  ;;  %v110_v16 = vld [vmem:[%s10614_s1 + $0x2b0] sm:$0xff] }
 0x155   :  { %3354 = vmatprep.mubr.f32.mxu1 %v47_v18  ;;  %v115_v18 = vld [vmem:[%s10614_s1 + $0x2d8] sm:$0xff] }
 0x157   :  { %1268 = vmatmul.mubr.f32.gmra.mrb[10].mxu0 %v46_v19 }
 0x158   :  { %3355 = vmatmul.mubr.f32.gmra.mrb[10].mxu1 %v46_v19  ;;  %1272 = vmatprep.mubr.f32.mxu0 %v51_v21  ;;  %v114_v19 = vld [vmem:[%s10614_s1 + $0x2d0] sm:$0xff] }
 0x159   :  { %3359 = vmatprep.mubr.f32.mxu1 %v51_v21  ;;  %v119_v21 = vld [vmem:[%s10614_s1 + $0x2f8] sm:$0xff] }
 0x15b   :  { %1273 = vmatmul.mubr.f32.gmra.mrb[12].mxu0 %v50_v24 }
 0x15c   :  { %3360 = vmatmul.mubr.f32.gmra.mrb[12].mxu1 %v50_v24  ;;  %1277 = vmatprep.mubr.f32.mxu0 %v55_v25  ;;  %v118_v24 = vld [vmem:[%s10614_s1 + $0x2f0] sm:$0xff] }
 0x15d   :  { %3364 = vmatprep.mubr.f32.mxu1 %v55_v25  ;;  %v123_v25 = vld [vmem:[%s10614_s1 + $0x318] sm:$0xff] }
 0x15f   :  { %1278 = vmatmul.mubr.f32.gmra.mrb[14].mxu0 %v54_v28 }
 0x160   :  { %3365 = vmatmul.mubr.f32.gmra.mrb[14].mxu1 %v54_v28  ;;  %1282 = vmatprep.mubr.f32.mxu0 %v59_v29  ;;  %v122_v28 = vld [vmem:[%s10614_s1 + $0x310] sm:$0xff] }
 0x161   :  { %3369 = vmatprep.mubr.f32.mxu1 %v59_v29  ;;  %v127_v29 = vld [vmem:[%s10614_s1 + $0x338] sm:$0xff] }
 0x163   :  { %1283 = vmatmul.mubr.f32.gmra.mrb[16].mxu0 %v58_v30 }
 0x164   :  { %3370 = vmatmul.mubr.f32.gmra.mrb[16].mxu1 %v58_v30  ;;  %1287 = vmatprep.mubr.f32.mxu0 %v63_v32  ;;  %v126_v30 = vld [vmem:[%s10614_s1 + $0x330] sm:$0xff] }
 0x165   :  { %3374 = vmatprep.mubr.f32.mxu1 %v63_v32  ;;  %v131_v32 = vld [vmem:[%s10614_s1 + $0x358] sm:$0xff] }
 0x167   :  { %1288 = vmatmul.mubr.f32.gmra.mrb[18].mxu0 %v62_v0 }
 0x168   :  { %3375 = vmatmul.mubr.f32.gmra.mrb[18].mxu1 %v62_v0  ;;  %1292 = vmatprep.mubr.f32.mxu0 %v67_v36  ;;  %v130_v0 = vld [vmem:[%s10614_s1 + $0x350] sm:$0xff] }
 0x169   :  { %3379 = vmatprep.mubr.f32.mxu1 %v67_v36  ;;  %v135_v36 = vld [vmem:[%s10614_s1 + $0x378] sm:$0xff] }
 0x16b   :  { %1293 = vmatmul.mubr.f32.gmra.mrb[20].mxu0 %v66_v37 }
 0x16c   :  { %3380 = vmatmul.mubr.f32.gmra.mrb[20].mxu1 %v66_v37  ;;  %1297 = vmatprep.mubr.f32.mxu0 %v71_v38  ;;  %v134_v37 = vld [vmem:[%s10614_s1 + $0x370] sm:$0xff] }
 0x16d   :  { %3384 = vmatprep.mubr.f32.mxu1 %v71_v38  ;;  %v139_v38 = vld [vmem:[%s10614_s1 + $0x398] sm:$0xff] }
 0x16f   :  { %1298 = vmatmul.mubr.f32.gmra.mrb[22].mxu0 %v70_v39 }
 0x170   :  { %3385 = vmatmul.mubr.f32.gmra.mrb[22].mxu1 %v70_v39  ;;  %1302 = vmatprep.mubr.f32.mxu0 %v75_v40  ;;  %v138_v39 = vld [vmem:[%s10614_s1 + $0x390] sm:$0xff] }
 0x171   :  { %3389 = vmatprep.mubr.f32.mxu1 %v75_v40  ;;  %v143_v40 = vld [vmem:[%s10614_s1 + $0x3b8] sm:$0xff] }
 0x173   :  { %1303 = vmatmul.mubr.f32.gmra.mrb[24].mxu0 %v74_v47 }
 0x174   :  { %3390 = vmatmul.mubr.f32.gmra.mrb[24].mxu1 %v74_v47  ;;  %1307 = vmatprep.mubr.f32.mxu0 %v79_v49  ;;  %v142_v47 = vld [vmem:[%s10614_s1 + $0x3b0] sm:$0xff] }
 0x175   :  { %3394 = vmatprep.mubr.f32.mxu1 %v79_v49  ;;  %v147_v49 = vld [vmem:[%s10614_s1 + $0x3d8] sm:$0xff] }
 0x177   :  { %1308 = vmatmul.mubr.f32.gmra.mrb[26].mxu0 %v78_v50 }
 0x178   :  { %3395 = vmatmul.mubr.f32.gmra.mrb[26].mxu1 %v78_v50  ;;  %1312 = vmatprep.mubr.f32.mxu0 %v83_v53  ;;  %v7057_v50 = vpop.permute.xlu0 %625 }
 0x179   :  { %3399 = vmatprep.mubr.f32.mxu1 %v83_v53  ;;  %v7059_v53 = vpop.permute.xlu1 %630 }
 0x17b   :  { %1313 = vmatmul.mubr.f32.gmra.mrb[28].mxu0 %v82_v54 }
 0x17c   :  { %3400 = vmatmul.mubr.f32.gmra.mrb[28].mxu1 %v82_v54  ;;  %1317 = vmatprep.mubr.f32.mxu0 %v87_v56  ;;  %v146_v54 = vld [vmem:[%s10614_s1 + $0x3d0] sm:$0xff] }
 0x17d   :  { %3404 = vmatprep.mubr.f32.mxu1 %v87_v56  ;;  %v151_v56 = vld [vmem:[%s10614_s1 + $0x3f8] sm:$0xff] }
 0x17f   :  { %1318 = vmatmul.mubr.f32.gmra.mrb[30].mxu0 %v86_v59 }
 0x180   :  { %3405 = vmatmul.mubr.f32.gmra.mrb[30].mxu1 %v86_v59  ;;  %1322 = vmatprep.mubr.f32.mxu0 %v91_v60  ;;  %v7067_v59 = vpop.permute.xlu0 %635 }
 0x181   :  { %3409 = vmatprep.mubr.f32.mxu1 %v91_v60  ;;  %v150_v60 = vld [vmem:[%s10614_s1 + $0x3f0] sm:$0xff] }
 0x183   :  { %1323 = vmatmul.mubr.f32.gmra.mrb[32].mxu0 %v90_v61 }
 0x184   :  { %3410 = vmatmul.mubr.f32.gmra.mrb[32].mxu1 %v90_v61  ;;  %1327 = vmatprep.mubr.f32.mxu0 %v95_v62  ;;  %v155_v61 = vld [vmem:[%s10614_s1 + $0x418] sm:$0xff] }
 0x185   :  { %3414 = vmatprep.mubr.f32.mxu1 %v95_v62  ;;  %v7075_v62 = vpop.permute.xlu1 %640 }
 0x187   :  { %1328 = vmatmul.mubr.f32.gmra.mrb[34].mxu0 %v94_v3 }
 0x188   :  { %3415 = vmatmul.mubr.f32.gmra.mrb[34].mxu1 %v94_v3  ;;  %1332 = vmatprep.mubr.f32.mxu0 %v99_v5  ;;  %v154_v3 = vld [vmem:[%s10614_s1 + $0x410] sm:$0xff] }
 0x189   :  { %3419 = vmatprep.mubr.f32.mxu1 %v99_v5  ;;  %v159_v5 = vld [vmem:[%s10614_s1 + $0x438] sm:$0xff] }
 0x18b   :  { %1333 = vmatmul.mubr.f32.gmra.mrb[36].mxu0 %v98_v6 }
 0x18c   :  { %3420 = vmatmul.mubr.f32.gmra.mrb[36].mxu1 %v98_v6  ;;  %1337 = vmatprep.mubr.f32.mxu0 %v103_v7  ;;  %v7083_v6 = vpop.permute.xlu0 %645 }
 0x18d   :  { %3424 = vmatprep.mubr.f32.mxu1 %v103_v7  ;;  %v7085_v7 = vpop.permute.xlu1 %650 }
 0x18f   :  { %1338 = vmatmul.mubr.f32.gmra.mrb[38].mxu0 %v102_v8 }
 0x190   :  { %3425 = vmatmul.mubr.f32.gmra.mrb[38].mxu1 %v102_v8  ;;  %1342 = vmatprep.mubr.f32.mxu0 %v107_v12  ;;  %v158_v8 = vld [vmem:[%s10614_s1 + $0x430] sm:$0xff] }
 0x191   :  { %3429 = vmatprep.mubr.f32.mxu1 %v107_v12  ;;  %v163_v12 = vld [vmem:[%s10614_s1 + $0x458] sm:$0xff] }
 0x193   :  { %1343 = vmatmul.mubr.f32.gmra.mrb[40].mxu0 %v106_v13 }
 0x194   :  { %3430 = vmatmul.mubr.f32.gmra.mrb[40].mxu1 %v106_v13  ;;  %1347 = vmatprep.mubr.f32.mxu0 %v111_v15  ;;  %v7093_v13 = vpop.permute.xlu0 %655 }
 0x195   :  { %3434 = vmatprep.mubr.f32.mxu1 %v111_v15  ;;  %v162_v15 = vld [vmem:[%s10614_s1 + $0x450] sm:$0xff] }
 0x197   :  { %1348 = vmatmul.mubr.f32.gmra.mrb[42].mxu0 %v110_v16 }
 0x198   :  { %3435 = vmatmul.mubr.f32.gmra.mrb[42].mxu1 %v110_v16  ;;  %1352 = vmatprep.mubr.f32.mxu0 %v115_v18  ;;  %v167_v16 = vld [vmem:[%s10614_s1 + $0x478] sm:$0xff] }
 0x199   :  { %3439 = vmatprep.mubr.f32.mxu1 %v115_v18  ;;  %v7101_v18 = vpop.permute.xlu1 %660 }
 0x19b   :  { %1353 = vmatmul.mubr.f32.gmra.mrb[44].mxu0 %v114_v19 }
 0x19c   :  { %3440 = vmatmul.mubr.f32.gmra.mrb[44].mxu1 %v114_v19  ;;  %1357 = vmatprep.mubr.f32.mxu0 %v119_v21  ;;  %v166_v19 = vld [vmem:[%s10614_s1 + $0x470] sm:$0xff] }
 0x19d   :  { %3444 = vmatprep.mubr.f32.mxu1 %v119_v21  ;;  %v171_v21 = vld [vmem:[%s10614_s1 + $0x498] sm:$0xff] }
 0x19f   :  { %1358 = vmatmul.mubr.f32.gmra.mrb[46].mxu0 %v118_v24 }
 0x1a0   :  { %3445 = vmatmul.mubr.f32.gmra.mrb[46].mxu1 %v118_v24  ;;  %1362 = vmatprep.mubr.f32.mxu0 %v123_v25  ;;  %v7109_v24 = vpop.permute.xlu0 %665 }
 0x1a1   :  { %3449 = vmatprep.mubr.f32.mxu1 %v123_v25  ;;  %v7111_v25 = vpop.permute.xlu1 %670 }
 0x1a3   :  { %1363 = vmatmul.mubr.f32.gmra.mrb[48].mxu0 %v122_v28 }
 0x1a4   :  { %3450 = vmatmul.mubr.f32.gmra.mrb[48].mxu1 %v122_v28  ;;  %1367 = vmatprep.mubr.f32.mxu0 %v127_v29  ;;  %v170_v28 = vld [vmem:[%s10614_s1 + $0x490] sm:$0xff] }
 0x1a5   :  { %3454 = vmatprep.mubr.f32.mxu1 %v127_v29  ;;  %v175_v29 = vld [vmem:[%s10614_s1 + $0x4b8] sm:$0xff] }
 0x1a7   :  { %1368 = vmatmul.mubr.f32.gmra.mrb[50].mxu0 %v126_v30 }
 0x1a8   :  { %3455 = vmatmul.mubr.f32.gmra.mrb[50].mxu1 %v126_v30  ;;  %1372 = vmatprep.mubr.f32.mxu0 %v131_v32  ;;  %v7119_v30 = vpop.permute.xlu0 %675 }
 0x1a9   :  { %3459 = vmatprep.mubr.f32.mxu1 %v131_v32  ;;  %v174_v32 = vld [vmem:[%s10614_s1 + $0x4b0] sm:$0xff] }
 0x1ab   :  { %1373 = vmatmul.mubr.f32.gmra.mrb[52].mxu0 %v130_v0 }
 0x1ac   :  { %3460 = vmatmul.mubr.f32.gmra.mrb[52].mxu1 %v130_v0  ;;  %1377 = vmatprep.mubr.f32.mxu0 %v135_v36  ;;  %v179_v0 = vld [vmem:[%s10614_s1 + $0x4d8] sm:$0xff] }
 0x1ad   :  { %3464 = vmatprep.mubr.f32.mxu1 %v135_v36  ;;  %v7127_v36 = vpop.permute.xlu1 %680 }
 0x1af   :  { %1378 = vmatmul.mubr.f32.gmra.mrb[54].mxu0 %v134_v37 }
 0x1b0   :  { %3465 = vmatmul.mubr.f32.gmra.mrb[54].mxu1 %v134_v37  ;;  %1382 = vmatprep.mubr.f32.mxu0 %v139_v38  ;;  %v178_v37 = vld [vmem:[%s10614_s1 + $0x4d0] sm:$0xff] }
 0x1b1   :  { %3469 = vmatprep.mubr.f32.mxu1 %v139_v38  ;;  %v183_v38 = vld [vmem:[%s10614_s1 + $0x4f8] sm:$0xff] }
 0x1b3   :  { %1383 = vmatmul.mubr.f32.gmra.mrb[56].mxu0 %v138_v39 }
 0x1b4   :  { %3470 = vmatmul.mubr.f32.gmra.mrb[56].mxu1 %v138_v39  ;;  %1387 = vmatprep.mubr.f32.mxu0 %v143_v40  ;;  %v7135_v39 = vpop.permute.xlu0 %685 }
 0x1b5   :  { %3474 = vmatprep.mubr.f32.mxu1 %v143_v40  ;;  %v7137_v40 = vpop.permute.xlu1 %690 }
 0x1b7   :  { %1388 = vmatmul.mubr.f32.gmra.mrb[58].mxu0 %v142_v47 }
 0x1b8   :  { %3475 = vmatmul.mubr.f32.gmra.mrb[58].mxu1 %v142_v47  ;;  %1392 = vmatprep.mubr.f32.mxu0 %v147_v49  ;;  %v182_v47 = vld [vmem:[%s10614_s1 + $0x4f0] sm:$0xff] }
 0x1b9   :  { %3479 = vmatprep.mubr.f32.mxu1 %v147_v49  ;;  %v187_v49 = vld [vmem:[%s10614_s1 + $0x518] sm:$0xff] }
 0x1bb   :  { %1393 = vmatmul.mubr.f32.gmra.mrb[60].mxu0 %v146_v54 }
 0x1bc   :  { %3480 = vmatmul.mubr.f32.gmra.mrb[60].mxu1 %v146_v54  ;;  %1397 = vmatprep.mubr.f32.mxu0 %v151_v56  ;;  %v7145_v54 = vpop.permute.xlu0 %695 }
 0x1bd   :  { %3484 = vmatprep.mubr.f32.mxu1 %v151_v56  ;;  %v186_v56 = vld [vmem:[%s10614_s1 + $0x510] sm:$0xff] }
 0x1bf   :  { %1398 = vmatmul.mubr.f32.gmra.mrb[62].mxu0 %v150_v60 }
 0x1c0   :  { %3485 = vmatmul.mubr.f32.gmra.mrb[62].mxu1 %v150_v60  ;;  %1402 = vmatprep.mubr.f32.mxu0 %v155_v61  ;;  %v191_v60 = vld [vmem:[%s10614_s1 + $0x538] sm:$0xff] }
 0x1c1   :  { %3489 = vmatprep.mubr.f32.mxu1 %v155_v61  ;;  %v7153_v61 = vpop.permute.xlu1 %700 }
 0x1c2   :  { %10758 = vst [vmem:[#allocation3_spill] sm:$0xff] %v7153_v61 }
 0x1c3   :  { %1403 = vmatmul.mubr.f32.gmra.mrb[64].mxu0 %v154_v3 }
 0x1c4   :  { %3490 = vmatmul.mubr.f32.gmra.mrb[64].mxu1 %v154_v3  ;;  %1407 = vmatprep.mubr.f32.mxu0 %v159_v5  ;;  %v190_v3 = vld [vmem:[%s10614_s1 + $0x530] sm:$0xff] }
 0x1c5   :  { %3494 = vmatprep.mubr.f32.mxu1 %v159_v5  ;;  %v195_v5 = vld [vmem:[%s10614_s1 + $0x558] sm:$0xff] }
 0x1c7   :  { %1408 = vmatmul.mubr.f32.gmra.mrb[66].mxu0 %v158_v8 }
 0x1c8   :  { %3495 = vmatmul.mubr.f32.gmra.mrb[66].mxu1 %v158_v8  ;;  %1412 = vmatprep.mubr.f32.mxu0 %v163_v12  ;;  %v7161_v8 = vpop.permute.xlu0 %705 }
 0x1c9   :  { %3499 = vmatprep.mubr.f32.mxu1 %v163_v12  ;;  %10759 = vst [vmem:[#allocation4_spill] sm:$0xff] %v7161_v8  ;;  %v7163_v12 = vpop.permute.xlu1 %710 }
 0x1ca   :  { %10760 = vst [vmem:[#allocation5_spill] sm:$0xff] %v7163_v12 }
 0x1cb   :  { %1413 = vmatmul.mubr.f32.gmra.mrb[68].mxu0 %v162_v15 }
 0x1cc   :  { %3500 = vmatmul.mubr.f32.gmra.mrb[68].mxu1 %v162_v15  ;;  %1417 = vmatprep.mubr.f32.mxu0 %v167_v16  ;;  %v194_v15 = vld [vmem:[%s10614_s1 + $0x550] sm:$0xff] }
 0x1cd   :  { %3504 = vmatprep.mubr.f32.mxu1 %v167_v16  ;;  %v199_v16 = vld [vmem:[%s10614_s1 + $0x578] sm:$0xff] }
 0x1cf   :  { %1418 = vmatmul.mubr.f32.gmra.mrb[70].mxu0 %v166_v19 }
 0x1d0   :  { %3505 = vmatmul.mubr.f32.gmra.mrb[70].mxu1 %v166_v19  ;;  %1422 = vmatprep.mubr.f32.mxu0 %v171_v21  ;;  %v7171_v19 = vpop.permute.xlu0 %715 }
 0x1d1   :  { %3509 = vmatprep.mubr.f32.mxu1 %v171_v21  ;;  %10761 = vst [vmem:[#allocation6_spill] sm:$0xff] %v7171_v19  ;;  %v198_v21 = vld [vmem:[%s10614_s1 + $0x570] sm:$0xff] }
 0x1d3   :  { %1423 = vmatmul.mubr.f32.gmra.mrb[72].mxu0 %v170_v28 }
 0x1d4   :  { %3510 = vmatmul.mubr.f32.gmra.mrb[72].mxu1 %v170_v28  ;;  %1427 = vmatprep.mubr.f32.mxu0 %v175_v29  ;;  %v203_v28 = vld [vmem:[%s10614_s1 + $0x598] sm:$0xff] }
 0x1d5   :  { %3514 = vmatprep.mubr.f32.mxu1 %v175_v29  ;;  %v7179_v29 = vpop.permute.xlu1 %720 }
 0x1d6   :  { %10762 = vst [vmem:[#allocation7_spill] sm:$0xff] %v7179_v29 }
 0x1d7   :  { %1428 = vmatmul.mubr.f32.gmra.mrb[74].mxu0 %v174_v32 }
 0x1d8   :  { %3515 = vmatmul.mubr.f32.gmra.mrb[74].mxu1 %v174_v32  ;;  %1432 = vmatprep.mubr.f32.mxu0 %v179_v0  ;;  %v202_v32 = vld [vmem:[%s10614_s1 + $0x590] sm:$0xff] }
 0x1d9   :  { %3519 = vmatprep.mubr.f32.mxu1 %v179_v0  ;;  %v207_v0 = vld [vmem:[%s10614_s1 + $0x5b8] sm:$0xff] }
 0x1db   :  { %1433 = vmatmul.mubr.f32.gmra.mrb[76].mxu0 %v178_v37 }
 0x1dc   :  { %3520 = vmatmul.mubr.f32.gmra.mrb[76].mxu1 %v178_v37  ;;  %1437 = vmatprep.mubr.f32.mxu0 %v183_v38  ;;  %v7187_v37 = vpop.permute.xlu0 %725 }
 0x1dd   :  { %3524 = vmatprep.mubr.f32.mxu1 %v183_v38  ;;  %10763 = vst [vmem:[#allocation8_spill] sm:$0xff] %v7187_v37  ;;  %v7189_v38 = vpop.permute.xlu1 %730 }
 0x1de   :  { %10764 = vst [vmem:[#allocation9_spill] sm:$0xff] %v7189_v38 }
 0x1df   :  { %1438 = vmatmul.mubr.f32.gmra.mrb[78].mxu0 %v182_v47 }
 0x1e0   :  { %3525 = vmatmul.mubr.f32.gmra.mrb[78].mxu1 %v182_v47  ;;  %1442 = vmatprep.mubr.f32.mxu0 %v187_v49  ;;  %v206_v47 = vld [vmem:[%s10614_s1 + $0x5b0] sm:$0xff] }
 0x1e1   :  { %3529 = vmatprep.mubr.f32.mxu1 %v187_v49  ;;  %v211_v49 = vld [vmem:[%s10614_s1 + $0x5d8] sm:$0xff] }
 0x1e3   :  { %1443 = vmatmul.mubr.f32.gmra.mrb[80].mxu0 %v186_v56 }
 0x1e4   :  { %3530 = vmatmul.mubr.f32.gmra.mrb[80].mxu1 %v186_v56  ;;  %1447 = vmatprep.mubr.f32.mxu0 %v191_v60  ;;  %v7197_v56 = vpop.permute.xlu0 %735 }
 0x1e5   :  { %3534 = vmatprep.mubr.f32.mxu1 %v191_v60  ;;  %10765 = vst [vmem:[#allocation10_spill] sm:$0xff] %v7197_v56  ;;  %v210_v60 = vld [vmem:[%s10614_s1 + $0x5d0] sm:$0xff] }
 0x1e7   :  { %1448 = vmatmul.mubr.f32.gmra.mrb[82].mxu0 %v190_v3 }
 0x1e8   :  { %3535 = vmatmul.mubr.f32.gmra.mrb[82].mxu1 %v190_v3  ;;  %1452 = vmatprep.mubr.f32.mxu0 %v195_v5  ;;  %v215_v3 = vld [vmem:[%s10614_s1 + $0x5f8] sm:$0xff] }
 0x1e9   :  { %3539 = vmatprep.mubr.f32.mxu1 %v195_v5  ;;  %v7205_v5 = vpop.permute.xlu1 %740 }
 0x1ea   :  { %10766 = vst [vmem:[#allocation11_spill] sm:$0xff] %v7205_v5 }
 0x1eb   :  { %1453 = vmatmul.mubr.f32.gmra.mrb[84].mxu0 %v194_v15 }
 0x1ec   :  { %3540 = vmatmul.mubr.f32.gmra.mrb[84].mxu1 %v194_v15  ;;  %1457 = vmatprep.mubr.f32.mxu0 %v199_v16  ;;  %v214_v15 = vld [vmem:[%s10614_s1 + $0x5f0] sm:$0xff] }
 0x1ed   :  { %3544 = vmatprep.mubr.f32.mxu1 %v199_v16  ;;  %v219_v16 = vld [vmem:[%s10614_s1 + $0x618] sm:$0xff] }
 0x1ef   :  { %1458 = vmatmul.mubr.f32.gmra.mrb[86].mxu0 %v198_v21 }
 0x1f0   :  { %3545 = vmatmul.mubr.f32.gmra.mrb[86].mxu1 %v198_v21  ;;  %1462 = vmatprep.mubr.f32.mxu0 %v203_v28  ;;  %v7213_v21 = vpop.permute.xlu0 %745 }
 0x1f1   :  { %3549 = vmatprep.mubr.f32.mxu1 %v203_v28  ;;  %10767 = vst [vmem:[#allocation12_spill] sm:$0xff] %v7213_v21  ;;  %v7215_v28 = vpop.permute.xlu1 %750 }
 0x1f2   :  { %10768 = vst [vmem:[#allocation13_spill] sm:$0xff] %v7215_v28 }
 0x1f3   :  { %1463 = vmatmul.mubr.f32.gmra.mrb[88].mxu0 %v202_v32 }
 0x1f4   :  { %3550 = vmatmul.mubr.f32.gmra.mrb[88].mxu1 %v202_v32  ;;  %1467 = vmatprep.mubr.f32.mxu0 %v207_v0  ;;  %v218_v32 = vld [vmem:[%s10614_s1 + $0x610] sm:$0xff] }
 0x1f5   :  { %3554 = vmatprep.mubr.f32.mxu1 %v207_v0  ;;  %v223_v0 = vld [vmem:[%s10614_s1 + $0x638] sm:$0xff] }
 0x1f7   :  { %1468 = vmatmul.mubr.f32.gmra.mrb[90].mxu0 %v206_v47 }
 0x1f8   :  { %3555 = vmatmul.mubr.f32.gmra.mrb[90].mxu1 %v206_v47  ;;  %1472 = vmatprep.mubr.f32.mxu0 %v211_v49  ;;  %v7223_v47 = vpop.permute.xlu0 %755 }
 0x1f9   :  { %3559 = vmatprep.mubr.f32.mxu1 %v211_v49  ;;  %10769 = vst [vmem:[#allocation14_spill] sm:$0xff] %v7223_v47  ;;  %v222_v49 = vld [vmem:[%s10614_s1 + $0x630] sm:$0xff] }
 0x1fb   :  { %1473 = vmatmul.mubr.f32.gmra.mrb[92].mxu0 %v210_v60 }
 0x1fc   :  { %3560 = vmatmul.mubr.f32.gmra.mrb[92].mxu1 %v210_v60  ;;  %1477 = vmatprep.mubr.f32.mxu0 %v215_v3  ;;  %v227_v60 = vld [vmem:[%s10614_s1 + $0x658] sm:$0xff] }
 0x1fd   :  { %3564 = vmatprep.mubr.f32.mxu1 %v215_v3  ;;  %v7231_v3 = vpop.permute.xlu1 %760 }
 0x1fe   :  { %10770 = vst [vmem:[#allocation15_spill] sm:$0xff] %v7231_v3 }
 0x1ff   :  { %1478 = vmatmul.mubr.f32.gmra.mrb[94].mxu0 %v214_v15 }
 0x200   :  { %3565 = vmatmul.mubr.f32.gmra.mrb[94].mxu1 %v214_v15  ;;  %1482 = vmatprep.mubr.f32.mxu0 %v219_v16  ;;  %v226_v15 = vld [vmem:[%s10614_s1 + $0x650] sm:$0xff] }
 0x201   :  { %3569 = vmatprep.mubr.f32.mxu1 %v219_v16  ;;  %v231_v16 = vld [vmem:[%s10614_s1 + $0x678] sm:$0xff] }
 0x203   :  { %1483 = vmatmul.mubr.f32.gmra.mrb[96].mxu0 %v218_v32 }
 0x204   :  { %3570 = vmatmul.mubr.f32.gmra.mrb[96].mxu1 %v218_v32  ;;  %1487 = vmatprep.mubr.f32.mxu0 %v223_v0  ;;  %v7239_v32 = vpop.permute.xlu0 %765 }
 0x205   :  { %3574 = vmatprep.mubr.f32.mxu1 %v223_v0  ;;  %10771 = vst [vmem:[#allocation16_spill] sm:$0xff] %v7239_v32  ;;  %v7241_v0 = vpop.permute.xlu1 %770 }
 0x206   :  { %10772 = vst [vmem:[#allocation17_spill] sm:$0xff] %v7241_v0  ;;  %v234_v0 = vld [vmem:[%s10614_s1 + $0x690] sm:$0xff] }
 0x207   :  { %1488 = vmatmul.mubr.f32.gmra.mrb[98].mxu0 %v222_v49 }
 0x208   :  { %3575 = vmatmul.mubr.f32.gmra.mrb[98].mxu1 %v222_v49  ;;  %1492 = vmatprep.mubr.f32.mxu0 %v227_v60  ;;  %v230_v49 = vld [vmem:[%s10614_s1 + $0x670] sm:$0xff]  ;;  %v7249_v3 = vpop.permute.xlu0 %775 }
 0x209   :  { %3579 = vmatprep.mubr.f32.mxu1 %v227_v60  ;;  %v235_v60 = vld [vmem:[%s10614_s1 + $0x698] sm:$0xff]  ;;  %10773 = vst [vmem:[#allocation18_spill] sm:$0xff] %v7249_v3  ;;  %v7257_v32 = vpop.permute.xlu1 %780 }
 0x20a   :  { %10774 = vst [vmem:[#allocation19_spill] sm:$0xff] %v7257_v32 }
 0x20b   :  { %1493 = vmatmul.mubr.f32.gmra.mrb[100].mxu0 %v226_v15 }
 0x20c   :  { %3580 = vmatmul.mubr.f32.gmra.mrb[100].mxu1 %v226_v15  ;;  %1497 = vmatprep.mubr.f32.mxu0 %v231_v16  ;;  %v239_v15 = vld [vmem:[%s10614_s1 + $0x6b8] sm:$0xff]  ;;  %v7265_v3 = vpop.permute.xlu0 %785 }
 0x20d   :  { %3584 = vmatprep.mubr.f32.mxu1 %v231_v16  ;;  %v238_v16 = vld [vmem:[%s10614_s1 + $0x6b0] sm:$0xff]  ;;  %10775 = vst [vmem:[#allocation20_spill] sm:$0xff] %v7265_v3  ;;  %v7268_v32 = vpop.permute.xlu1 %790 }
 0x20e   :  { %10776 = vst [vmem:[#allocation21_spill] sm:$0xff] %v7268_v32 }
 0x20f   :  { %1498 = vmatmul.mubr.f32.gmra.mrb[102].mxu0 %v230_v49 }
 0x210   :  { %3585 = vmatmul.mubr.f32.gmra.mrb[102].mxu1 %v230_v49  ;;  %1502 = vmatprep.mubr.f32.mxu0 %v235_v60  ;;  %v243_v49 = vld [vmem:[%s10614_s1 + $0x6d8] sm:$0xff] }
 0x211   :  { %3589 = vmatprep.mubr.f32.mxu1 %v235_v60 }
 0x213   :  { %1503 = vmatmul.mubr.f32.gmra.mrb[104].mxu0 %v234_v0 }
 0x214   :  { %3590 = vmatmul.mubr.f32.gmra.mrb[104].mxu1 %v234_v0  ;;  %1507 = vmatprep.mubr.f32.mxu0 %v239_v15 }
 0x215   :  { %3594 = vmatprep.mubr.f32.mxu1 %v239_v15  ;;  %v242_v15 = vld [vmem:[%s10614_s1 + $0x6d0] sm:$0xff] }
 0x216   :  { %v1244_v60 = vpop.f32.mrb[0].mxu0 }
 0x217   :  { %v4978_v47 = vadd.f32 %v1244_v60, %v6535_v41  ;;  %v3331_v28 = vpop.f32.mrb[0].mxu1  ;;  %v1246_v21 = vpop.f32.mrb[1].mxu0  ;;  %1508 = vmatmul.mubr.f32.gmra.mrb[106].mxu0 %v238_v16  ;;  %v247_v60 = vld [vmem:[%s10614_s1 + $0x6f8] sm:$0xff] }
 0x218   :  { %v5042_v0 = vadd.f32 %v3331_v28, %v6535_v41  ;;  %v3333_v5 = vpop.f32.mrb[1].mxu1  ;;  %3595 = vmatmul.mubr.f32.gmra.mrb[106].mxu1 %v238_v16  ;;  %1512 = vmatprep.mubr.f32.mxu0 %v243_v49  ;;  %v1630_v41 = vpop.permute.xlu0 %1629 }
 0x219   :  { %v1563_v56 = vmax.f32 %v4978_v47, 0.0  ;;  %3599 = vmatprep.mubr.f32.mxu1 %v243_v49  ;;  %v246_v47 = vld [vmem:[%s10614_s1 + $0x6f0] sm:$0xff] }
 0x21a   :  { %v3650_v3 = vmax.f32 %v5042_v0, 0.0  ;;  %v1249_v21 = vpop.f32.mrb[2].mxu0  ;;  %v251_v0 = vld [vmem:[%s10614_s1 + $0x718] sm:$0xff] }
 0x21b   :  { %v4979_v38 = vadd.f32 %v1249_v21, %v6554_v48  ;;  %v3336_v32 = vpop.f32.mrb[2].mxu1  ;;  %v1251_v37 = vpop.f32.mrb[3].mxu0  ;;  %1513 = vmatmul.mubr.f32.gmra.mrb[108].mxu0 %v242_v15  ;;  %v1947_v16 = vmul.f32 %v1630_v41, %v1563_v56 }
 0x21c   :  { %v5043_v5 = vadd.f32 %v3336_v32, %v6554_v48  ;;  %v3338_v28 = vpop.f32.mrb[3].mxu1  ;;  %3600 = vmatmul.mubr.f32.gmra.mrb[108].mxu1 %v242_v15  ;;  %1517 = vmatprep.mubr.f32.mxu0 %v247_v60  ;;  %v1635_v37 = vpop.permute.xlu1 %1634  ;;  %v3714_v21 = vmul.f32 %v3650_v3, %v1630_v41 }
 0x21d   :  { %v1564_v49 = vmax.f32 %v4979_v38, 0.0  ;;  %3604 = vmatprep.mubr.f32.mxu1 %v247_v60  ;;  %v250_v60 = vld [vmem:[%s10614_s1 + $0x710] sm:$0xff]  ;;  %v2012_v3 = vsel %vm2011_vm0, %v1947_v16, 0.0 }
 0x21e   :  { %v3651_v29 = vmax.f32 %v5043_v5, 0.0  ;;  %v1254_v19 = vpop.f32.mrb[4].mxu0 }
 0x21f   :  { %v1948_v48 = vmul.f32 %v1635_v37, %v1564_v49  ;;  %v4980_v32 = vadd.f32 %v1254_v19, %v6537_v42  ;;  %v3341_v15 = vpop.f32.mrb[4].mxu1  ;;  %v1256_v28 = vpop.f32.mrb[5].mxu0  ;;  %1518 = vmatmul.mubr.f32.gmra.mrb[110].mxu0 %v246_v47  ;;  %v255_v19 = vld [vmem:[%s10614_s1 + $0x738] sm:$0xff] }
 0x220   :  { %v3715_v12 = vmul.f32 %v3651_v29, %v1635_v37  ;;  %v5044_v56 = vadd.f32 %v3341_v15, %v6537_v42  ;;  %v3343_v38 = vpop.f32.mrb[5].mxu1  ;;  %3605 = vmatmul.mubr.f32.gmra.mrb[110].mxu1 %v246_v47  ;;  %1522 = vmatprep.mubr.f32.mxu0 %v251_v0  ;;  %v1640_v29 = vpop.permute.xlu0 %1639  ;;  %v3778_v42 = vsel %vm2011_vm0, %v3714_v21, 0.0  ;;  %v254_v21 = vld [vmem:[%s10614_s1 + $0x730] sm:$0xff] }
 0x221   :  { %v2013_v41 = vsel %vm2011_vm0, %v1948_v48, 0.0  ;;  %v1565_v5 = vmax.f32 %v4980_v32, 0.0  ;;  %3609 = vmatprep.mubr.f32.mxu1 %v251_v0 }
 0x222   :  { %v2014_v49 = vadd.f32 %v2013_v41, %v2012_v3  ;;  %v3779_v47 = vsel %vm2011_vm0, %v3715_v12, 0.0  ;;  %v3652_v37 = vmax.f32 %v5044_v56, 0.0  ;;  %v1259_v15 = vpop.f32.mrb[6].mxu0  ;;  %v259_v3 = vld [vmem:[%s10614_s1 + $0x758] sm:$0xff]  ;;  %v1645_v41 = vpop.permute.xlu1 %1644 }
 0x223   :  { %v3780_v28 = vadd.f32 %v3779_v47, %v3778_v42  ;;  %v1949_v38 = vmul.f32 %v1640_v29, %v1565_v5  ;;  %v4981_v16 = vadd.f32 %v1259_v15, %v6562_v51  ;;  %v3346_v8 = vpop.f32.mrb[6].mxu1  ;;  %v1261_v48 = vpop.f32.mrb[7].mxu0  ;;  %1523 = vmatmul.mubr.f32.gmra.mrb[112].mxu0 %v250_v60 }
 0x224   :  { %v3716_v0 = vmul.f32 %v3652_v37, %v1640_v29  ;;  %v5045_v32 = vadd.f32 %v3346_v8, %v6562_v51  ;;  %v3348_v61 = vpop.f32.mrb[7].mxu1  ;;  %3610 = vmatmul.mubr.f32.gmra.mrb[112].mxu1 %v250_v60  ;;  %1527 = vmatprep.mubr.f32.mxu0 %v255_v19 }
 0x225   :  { %v2015_v12 = vsel %vm2011_vm0, %v1949_v38, 0.0  ;;  %v1566_v56 = vmax.f32 %v4981_v16, 0.0  ;;  %3614 = vmatprep.mubr.f32.mxu1 %v255_v19 }
 0x226   :  { %v2016_v5 = vadd.f32 %v2015_v12, %v2014_v49  ;;  %v3781_v29 = vsel %vm2011_vm0, %v3716_v0, 0.0  ;;  %v3653_v51 = vmax.f32 %v5045_v32, 0.0  ;;  %v1264_v61 = vpop.f32.mrb[8].mxu0  ;;  %v258_v49 = vld [vmem:[%s10614_s1 + $0x750] sm:$0xff]  ;;  %v1650_v0 = vpop.permute.xlu0 %1649 }
 0x227   :  { %v3782_v8 = vadd.f32 %v3781_v29, %v3780_v28  ;;  %v1950_v60 = vmul.f32 %v1645_v41, %v1566_v56  ;;  %v4982_v42 = vadd.f32 %v1264_v61, %v6579_v57  ;;  %v3351_v47 = vpop.f32.mrb[8].mxu1  ;;  %v1266_v37 = vpop.f32.mrb[9].mxu0  ;;  %1528 = vmatmul.mubr.f32.gmra.mrb[114].mxu0 %v254_v21  ;;  %v263_v28 = vld [vmem:[%s10614_s1 + $0x778] sm:$0xff] }
 0x228   :  { %v3717_v15 = vmul.f32 %v3653_v51, %v1645_v41  ;;  %v5046_v19 = vadd.f32 %v3351_v47, %v6579_v57  ;;  %v3353_v38 = vpop.f32.mrb[9].mxu1  ;;  %3615 = vmatmul.mubr.f32.gmra.mrb[114].mxu1 %v254_v21  ;;  %1532 = vmatprep.mubr.f32.mxu0 %v259_v3 }
 0x229   :  { %v2017_v16 = vsel %vm2011_vm0, %v1950_v60, 0.0  ;;  %v1567_v48 = vmax.f32 %v4982_v42, 0.0  ;;  %3619 = vmatprep.mubr.f32.mxu1 %v259_v3 }
 0x22a   :  { %v2018_v32 = vadd.f32 %v2017_v16, %v2016_v5  ;;  %v3783_v12 = vsel %vm2011_vm0, %v3717_v15, 0.0  ;;  %v3654_v57 = vmax.f32 %v5046_v19, 0.0  ;;  %v1269_v56 = vpop.f32.mrb[10].mxu0  ;;  %v262_v5 = vld [vmem:[%s10614_s1 + $0x770] sm:$0xff]  ;;  %v1655_v15 = vpop.permute.xlu1 %1654 }
 0x22b   :  { %v3784_v21 = vadd.f32 %v3783_v12, %v3782_v8  ;;  %v1951_v41 = vmul.f32 %v1650_v0, %v1567_v48  ;;  %v4983_v29 = vadd.f32 %v1269_v56, %v6581_v58  ;;  %v3356_v51 = vpop.f32.mrb[10].mxu1  ;;  %v1271_v61 = vpop.f32.mrb[11].mxu0  ;;  %1533 = vmatmul.mubr.f32.gmra.mrb[116].mxu0 %v258_v49  ;;  %v267_v8 = vld [vmem:[%s10614_s1 + $0x798] sm:$0xff] }
 0x22c   :  { %v3718_v60 = vmul.f32 %v3654_v57, %v1650_v0  ;;  %v5047_v3 = vadd.f32 %v3356_v51, %v6581_v58  ;;  %v3358_v42 = vpop.f32.mrb[11].mxu1  ;;  %3620 = vmatmul.mubr.f32.gmra.mrb[116].mxu1 %v258_v49  ;;  %1537 = vmatprep.mubr.f32.mxu0 %v263_v28  ;;  %v1660_v61 = vpop.permute.xlu0 %1659 }
 0x22d   :  { %v2019_v47 = vsel %vm2011_vm0, %v1951_v41, 0.0  ;;  %v1568_v37 = vmax.f32 %v4983_v29, 0.0  ;;  %3624 = vmatprep.mubr.f32.mxu1 %v263_v28 }
 0x22e   :  { %v2020_v19 = vadd.f32 %v2019_v47, %v2018_v32  ;;  %v3785_v38 = vsel %vm2011_vm0, %v3718_v60, 0.0  ;;  %v3655_v58 = vmax.f32 %v5047_v3, 0.0  ;;  %v1274_v16 = vpop.f32.mrb[12].mxu0  ;;  %v266_v32 = vld [vmem:[%s10614_s1 + $0x790] sm:$0xff] }
 0x22f   :  { %v3786_v49 = vadd.f32 %v3785_v38, %v3784_v21  ;;  %v1952_v48 = vmul.f32 %v1655_v15, %v1568_v37  ;;  %v4984_v0 = vadd.f32 %v1274_v16, %v6598_v1  ;;  %v3361_v12 = vpop.f32.mrb[12].mxu1  ;;  %v1276_v57 = vpop.f32.mrb[13].mxu0  ;;  %1538 = vmatmul.mubr.f32.gmra.mrb[118].mxu0 %v262_v5  ;;  %v271_v21 = vld [vmem:[%s10614_s1 + $0x7b8] sm:$0xff] }
 0x230   :  { %v3719_v56 = vmul.f32 %v3655_v58, %v1655_v15  ;;  %v5048_v28 = vadd.f32 %v3361_v12, %v6598_v1  ;;  %v3363_v41 = vpop.f32.mrb[13].mxu1  ;;  %3625 = vmatmul.mubr.f32.gmra.mrb[118].mxu1 %v262_v5  ;;  %1542 = vmatprep.mubr.f32.mxu0 %v267_v8  ;;  %v1665_v12 = vpop.permute.xlu1 %1664 }
 0x231   :  { %v2021_v29 = vsel %vm2011_vm0, %v1952_v48, 0.0  ;;  %v1569_v51 = vmax.f32 %v4984_v0, 0.0  ;;  %3629 = vmatprep.mubr.f32.mxu1 %v267_v8 }
 0x232   :  { %v2022_v60 = vadd.f32 %v2021_v29, %v2020_v19  ;;  %v3787_v3 = vsel %vm2011_vm0, %v3719_v56, 0.0  ;;  %v3656_v1 = vmax.f32 %v5048_v28, 0.0  ;;  %v1279_v42 = vpop.f32.mrb[14].mxu0  ;;  %v270_v19 = vld [vmem:[%s10614_s1 + $0x7b0] sm:$0xff] }
 0x233   :  { %v3788_v5 = vadd.f32 %v3787_v3, %v3786_v49  ;;  %v1953_v47 = vmul.f32 %v1660_v61, %v1569_v51  ;;  %v4985_v37 = vadd.f32 %v1279_v42, %v6606_v4  ;;  %v3366_v15 = vpop.f32.mrb[14].mxu1  ;;  %v1281_v38 = vpop.f32.mrb[15].mxu0  ;;  %1543 = vmatmul.mubr.f32.gmra.mrb[120].mxu0 %v266_v32  ;;  %v275_v49 = vld [vmem:[%s10614_s1 + $0x7d8] sm:$0xff] }
 0x234   :  { %v3720_v58 = vmul.f32 %v3656_v1, %v1660_v61  ;;  %v5049_v8 = vadd.f32 %v3366_v15, %v6606_v4  ;;  %v3368_v16 = vpop.f32.mrb[15].mxu1  ;;  %3630 = vmatmul.mubr.f32.gmra.mrb[120].mxu1 %v266_v32  ;;  %1547 = vmatprep.mubr.f32.mxu0 %v271_v21 }
 0x235   :  { %v2023_v48 = vsel %vm2011_vm0, %v1953_v47, 0.0  ;;  %v1570_v0 = vmax.f32 %v4985_v37, 0.0  ;;  %3634 = vmatprep.mubr.f32.mxu1 %v271_v21  ;;  %v1670_v37 = vpop.permute.xlu0 %1669 }
 0x236   :  { %v2024_v57 = vadd.f32 %v2023_v48, %v2022_v60  ;;  %v3789_v56 = vsel %vm2011_vm0, %v3720_v58, 0.0  ;;  %v3657_v4 = vmax.f32 %v5049_v8, 0.0  ;;  %v1284_v28 = vpop.f32.mrb[16].mxu0  ;;  %v274_v60 = vld [vmem:[%s10614_s1 + $0x7d0] sm:$0xff] }
 0x237   :  { %v3790_v41 = vadd.f32 %v3789_v56, %v3788_v5  ;;  %v1954_v32 = vmul.f32 %v1665_v12, %v1570_v0  ;;  %v4986_v29 = vadd.f32 %v1284_v28, %v6623_v10  ;;  %v3371_v51 = vpop.f32.mrb[16].mxu1  ;;  %v1286_v61 = vpop.f32.mrb[17].mxu0  ;;  %1548 = vmatmul.mubr.f32.gmra.mrb[122].mxu0 %v270_v19  ;;  %v279_v5 = vld [vmem:[%s10614_s1 + $0x7f8] sm:$0xff] }
 0x238   :  { %v3721_v3 = vmul.f32 %v3657_v4, %v1665_v12  ;;  %v5050_v21 = vadd.f32 %v3371_v51, %v6623_v10  ;;  %v3373_v1 = vpop.f32.mrb[17].mxu1  ;;  %3635 = vmatmul.mubr.f32.gmra.mrb[122].mxu1 %v270_v19  ;;  %1552 = vmatprep.mubr.f32.mxu0 %v275_v49 }
 0x239   :  { %v2025_v42 = vsel %vm2011_vm0, %v1954_v32, 0.0  ;;  %v1571_v47 = vmax.f32 %v4986_v29, 0.0  ;;  %3639 = vmatprep.mubr.f32.mxu1 %v275_v49 }
 0x23a   :  { %v2026_v15 = vadd.f32 %v2025_v42, %v2024_v57  ;;  %v3791_v38 = vsel %vm2011_vm0, %v3721_v3, 0.0  ;;  %v3658_v10 = vmax.f32 %v5050_v21, 0.0  ;;  %v1289_v58 = vpop.f32.mrb[18].mxu0  ;;  %v278_v57 = vld [vmem:[%s10614_s1 + $0x7f0] sm:$0xff] }
 0x23b   :  { %v3792_v8 = vadd.f32 %v3791_v38, %v3790_v41  ;;  %v1955_v16 = vmul.f32 %v1670_v37, %v1571_v47  ;;  %v4987_v19 = vadd.f32 %v1289_v58, %v6625_v11  ;;  %v3376_v48 = vpop.f32.mrb[18].mxu1  ;;  %v1291_v0 = vpop.f32.mrb[19].mxu0  ;;  %1553 = vmatmul.mubr.f32.gmra.mrb[124].mxu0 %v274_v60 }
 0x23c   :  { %v3722_v12 = vmul.f32 %v3658_v10, %v1670_v37  ;;  %v5051_v49 = vadd.f32 %v3376_v48, %v6625_v11  ;;  %v3378_v56 = vpop.f32.mrb[19].mxu1  ;;  %3640 = vmatmul.mubr.f32.gmra.mrb[124].mxu1 %v274_v60  ;;  %1557 = vmatprep.mubr.f32.mxu0 %v279_v5  ;;  %v1675_v41 = vpop.permute.xlu1 %1674 }
 0x23d   :  { %v2027_v4 = vsel %vm2011_vm0, %v1955_v16, 0.0  ;;  %v1572_v28 = vmax.f32 %v4987_v19, 0.0  ;;  %3644 = vmatprep.mubr.f32.mxu1 %v279_v5 }
 0x23e   :  { %v2028_v32 = vadd.f32 %v2027_v4, %v2026_v15  ;;  %v3793_v29 = vsel %vm2011_vm0, %v3722_v12, 0.0  ;;  %v3659_v51 = vmax.f32 %v5051_v49, 0.0  ;;  %v1294_v61 = vpop.f32.mrb[20].mxu0  ;;  %v1680_v15 = vpop.permute.xlu0 %1679 }
 0x23f   :  { %v3794_v3 = vadd.f32 %v3793_v29, %v3792_v8  ;;  %v1956_v21 = vmul.f32 %v1675_v41, %v1572_v28  ;;  %v4988_v11 = vadd.f32 %v1294_v61, %v6642_v17  ;;  %v3381_v1 = vpop.f32.mrb[20].mxu1  ;;  %v1296_v60 = vpop.f32.mrb[21].mxu0  ;;  %1558 = vmatmul.mubr.f32.gmra.mrb[126].mxu0 %v278_v57 }
 0x240   :  { %v3723_v42 = vmul.f32 %v3659_v51, %v1675_v41  ;;  %v5052_v47 = vadd.f32 %v3381_v1, %v6642_v17  ;;  %v3383_v37 = vpop.f32.mrb[21].mxu1  ;;  %3645 = vmatmul.mubr.f32.gmra.mrb[126].mxu1 %v278_v57  ;;  %v1685_v41 = vpop.permute.xlu1 %1684 }
 0x241   :  { %v2029_v5 = vsel %vm2011_vm0, %v1956_v21, 0.0  ;;  %v1573_v38 = vmax.f32 %v4988_v11, 0.0 }
 0x242   :  { %v2030_v10 = vadd.f32 %v2029_v5, %v2028_v32  ;;  %v3795_v58 = vsel %vm2011_vm0, %v3723_v42, 0.0  ;;  %v3660_v16 = vmax.f32 %v5052_v47, 0.0  ;;  %v1299_v8 = vpop.f32.mrb[22].mxu0 }
 0x243   :  { %v3796_v19 = vadd.f32 %v3795_v58, %v3794_v3  ;;  %v1957_v48 = vmul.f32 %v1680_v15, %v1573_v38  ;;  %v4989_v0 = vadd.f32 %v1299_v8, %v6650_v20  ;;  %v3386_v12 = vpop.f32.mrb[22].mxu1  ;;  %v1301_v49 = vpop.f32.mrb[23].mxu0 }
 0x244   :  { %v3724_v56 = vmul.f32 %v3660_v16, %v1680_v15  ;;  %v5053_v17 = vadd.f32 %v3386_v12, %v6650_v20  ;;  %v3388_v4 = vpop.f32.mrb[23].mxu1  ;;  %v1690_v38 = vpop.permute.xlu0 %1689 }
 0x245   :  { %v2031_v57 = vsel %vm2011_vm0, %v1957_v48, 0.0  ;;  %v1574_v28 = vmax.f32 %v4989_v0, 0.0 }
 0x246   :  { %v2032_v29 = vadd.f32 %v2031_v57, %v2030_v10  ;;  %v3797_v32 = vsel %vm2011_vm0, %v3724_v56, 0.0  ;;  %v3661_v51 = vmax.f32 %v5053_v17, 0.0  ;;  %v1304_v61 = vpop.f32.mrb[24].mxu0  ;;  %v1695_v57 = vpop.permute.xlu1 %1694 }
 0x247   :  { %v3798_v21 = vadd.f32 %v3797_v32, %v3796_v19  ;;  %v1958_v3 = vmul.f32 %v1685_v41, %v1574_v28  ;;  %v4990_v11 = vadd.f32 %v1304_v61, %v6667_v26  ;;  %v3391_v1 = vpop.f32.mrb[24].mxu1  ;;  %v1306_v60 = vpop.f32.mrb[25].mxu0 }
 0x248   :  { %v3725_v42 = vmul.f32 %v3661_v51, %v1685_v41  ;;  %v5054_v47 = vadd.f32 %v3391_v1, %v6667_v26  ;;  %v3393_v20 = vpop.f32.mrb[25].mxu1 }
 0x249   :  { %v2033_v37 = vsel %vm2011_vm0, %v1958_v3, 0.0  ;;  %v1575_v5 = vmax.f32 %v4990_v11, 0.0  ;;  %v1700_v20 = vpop.permute.xlu0 %1699 }
 0x24a   :  { %v2034_v15 = vadd.f32 %v2033_v37, %v2032_v29  ;;  %v3799_v10 = vsel %vm2011_vm0, %v3725_v42, 0.0  ;;  %v3662_v58 = vmax.f32 %v5054_v47, 0.0  ;;  %v1309_v16 = vpop.f32.mrb[26].mxu0 }
 0x24b   :  { %v3800_v8 = vadd.f32 %v3799_v10, %v3798_v21  ;;  %v1959_v19 = vmul.f32 %v1690_v38, %v1575_v5  ;;  %v4991_v48 = vadd.f32 %v1309_v16, %v6669_v27  ;;  %v3396_v0 = vpop.f32.mrb[26].mxu1  ;;  %v1311_v12 = vpop.f32.mrb[27].mxu0 }
 0x24c   :  { %v3726_v49 = vmul.f32 %v3662_v58, %v1690_v38  ;;  %v5055_v56 = vadd.f32 %v3396_v0, %v6669_v27  ;;  %v3398_v26 = vpop.f32.mrb[27].mxu1 }
 0x24d   :  { %v2035_v17 = vsel %vm2011_vm0, %v1959_v19, 0.0  ;;  %v1576_v4 = vmax.f32 %v4991_v48, 0.0 }
 0x24e   :  { %v2036_v28 = vadd.f32 %v2035_v17, %v2034_v15  ;;  %v3801_v41 = vsel %vm2011_vm0, %v3726_v49, 0.0  ;;  %v3663_v29 = vmax.f32 %v5055_v56, 0.0  ;;  %v1314_v32 = vpop.f32.mrb[28].mxu0  ;;  %v1705_v56 = vpop.permute.xlu1 %1704 }
 0x24f   :  { %v3802_v51 = vadd.f32 %v3801_v41, %v3800_v8  ;;  %v1960_v61 = vmul.f32 %v1695_v57, %v1576_v4  ;;  %v4992_v21 = vadd.f32 %v1314_v32, %v6686_v33  ;;  %v3401_v3 = vpop.f32.mrb[28].mxu1  ;;  %v1316_v11 = vpop.f32.mrb[29].mxu0 }
 0x250   :  { %v3727_v1 = vmul.f32 %v3663_v29, %v1695_v57  ;;  %v5056_v60 = vadd.f32 %v3401_v3, %v6686_v33  ;;  %v3403_v27 = vpop.f32.mrb[29].mxu1 }
 0x251   :  { %v2037_v42 = vsel %vm2011_vm0, %v1960_v61, 0.0  ;;  %v1577_v47 = vmax.f32 %v4992_v21, 0.0 }
 0x252   :  { %v2038_v37 = vadd.f32 %v2037_v42, %v2036_v28  ;;  %v3803_v5 = vsel %vm2011_vm0, %v3727_v1, 0.0  ;;  %v3664_v38 = vmax.f32 %v5056_v60, 0.0  ;;  %v1319_v15 = vpop.f32.mrb[30].mxu0  ;;  %v1710_v1 = vpop.permute.xlu0 %1709 }
 0x253   :  { %v3804_v10 = vadd.f32 %v3803_v5, %v3802_v51  ;;  %v1961_v58 = vmul.f32 %v1700_v20, %v1577_v47  ;;  %v4993_v16 = vadd.f32 %v1319_v15, %v6694_v35  ;;  %v3406_v8 = vpop.f32.mrb[30].mxu1  ;;  %v1321_v19 = vpop.f32.mrb[31].mxu0 }
 0x254   :  { %v3728_v48 = vmul.f32 %v3664_v38, %v1700_v20  ;;  %v5057_v0 = vadd.f32 %v3406_v8, %v6694_v35  ;;  %v3408_v33 = vpop.f32.mrb[31].mxu1  ;;  %v1715_v19 = vpop.permute.xlu1 %1714 }
 0x255   :  { %v2039_v12 = vsel %vm2011_vm0, %v1961_v58, 0.0  ;;  %v1578_v49 = vmax.f32 %v4993_v16, 0.0 }
 0x256   :  { %v2040_v26 = vadd.f32 %v2039_v12, %v2038_v37  ;;  %v3805_v17 = vsel %vm2011_vm0, %v3728_v48, 0.0  ;;  %v3665_v4 = vmax.f32 %v5057_v0, 0.0  ;;  %v1324_v57 = vpop.f32.mrb[32].mxu0 }
 0x257   :  { %v3806_v28 = vadd.f32 %v3805_v17, %v3804_v10  ;;  %v1962_v41 = vmul.f32 %v1705_v56, %v1578_v49  ;;  %v4994_v29 = vadd.f32 %v1324_v57, %v6711_v43  ;;  %v3411_v32 = vpop.f32.mrb[32].mxu1  ;;  %v1326_v51 = vpop.f32.mrb[33].mxu0 }
 0x258   :  { %v3729_v61 = vmul.f32 %v3665_v4, %v1705_v56  ;;  %v5058_v21 = vadd.f32 %v3411_v32, %v6711_v43  ;;  %v3413_v35 = vpop.f32.mrb[33].mxu1  ;;  %v1720_v32 = vpop.permute.xlu0 %1719 }
 0x259   :  { %v2041_v3 = vsel %vm2011_vm0, %v1962_v41, 0.0  ;;  %v1579_v11 = vmax.f32 %v4994_v29, 0.0 }
 0x25a   :  { %v2042_v60 = vadd.f32 %v2041_v3, %v2040_v26  ;;  %v3807_v27 = vsel %vm2011_vm0, %v3729_v61, 0.0  ;;  %v3666_v42 = vmax.f32 %v5058_v21, 0.0  ;;  %v1329_v47 = vpop.f32.mrb[34].mxu0 }
 0x25b   :  { %v3808_v20 = vadd.f32 %v3807_v27, %v3806_v28  ;;  %v1963_v37 = vmul.f32 %v1710_v1, %v1579_v11  ;;  %v4995_v5 = vadd.f32 %v1329_v47, %v6713_v44  ;;  %v3416_v38 = vpop.f32.mrb[34].mxu1  ;;  %v1331_v15 = vpop.f32.mrb[35].mxu0 }
 0x25c   :  { %v3730_v10 = vmul.f32 %v3666_v42, %v1710_v1  ;;  %v5059_v58 = vadd.f32 %v3416_v38, %v6713_v44  ;;  %v3418_v43 = vpop.f32.mrb[35].mxu1 }
 0x25d   :  { %v2043_v16 = vsel %vm2011_vm0, %v1963_v37, 0.0  ;;  %v1580_v8 = vmax.f32 %v4995_v5, 0.0  ;;  %v1725_v5 = vpop.permute.xlu1 %1724 }
 0x25e   :  { %v2044_v48 = vadd.f32 %v2043_v16, %v2042_v60  ;;  %v3809_v0 = vsel %vm2011_vm0, %v3730_v10, 0.0  ;;  %v3667_v33 = vmax.f32 %v5059_v58, 0.0  ;;  %v1334_v12 = vpop.f32.mrb[36].mxu0 }
 0x25f   :  { %v3810_v49 = vadd.f32 %v3809_v0, %v3808_v20  ;;  %v1964_v56 = vmul.f32 %v1715_v19, %v1580_v8  ;;  %v4996_v26 = vadd.f32 %v1334_v12, %v6730_v52  ;;  %v3421_v17 = vpop.f32.mrb[36].mxu1  ;;  %v1336_v4 = vpop.f32.mrb[37].mxu0 }
 0x260   :  { %v3731_v57 = vmul.f32 %v3667_v33, %v1715_v19  ;;  %v5060_v28 = vadd.f32 %v3421_v17, %v6730_v52  ;;  %v3423_v44 = vpop.f32.mrb[37].mxu1 }
 0x261   :  { %v2045_v41 = vsel %vm2011_vm0, %v1964_v56, 0.0  ;;  %v1581_v29 = vmax.f32 %v4996_v26, 0.0  ;;  %v1730_v56 = vpop.permute.xlu0 %1729 }
 0x262   :  { %v2046_v51 = vadd.f32 %v2045_v41, %v2044_v48  ;;  %v3811_v61 = vsel %vm2011_vm0, %v3731_v57, 0.0  ;;  %v3668_v21 = vmax.f32 %v5060_v28, 0.0  ;;  %v1339_v35 = vpop.f32.mrb[38].mxu0 }
 0x263   :  { %v3812_v3 = vadd.f32 %v3811_v61, %v3810_v49  ;;  %v1965_v11 = vmul.f32 %v1720_v32, %v1581_v29  ;;  %v4997_v1 = vadd.f32 %v1339_v35, %v6738_v55  ;;  %v3426_v60 = vpop.f32.mrb[38].mxu1  ;;  %v1341_v27 = vpop.f32.mrb[39].mxu0 }
 0x264   :  { %v3732_v42 = vmul.f32 %v3668_v21, %v1720_v32  ;;  %v5061_v47 = vadd.f32 %v3426_v60, %v6738_v55  ;;  %v3428_v52 = vpop.f32.mrb[39].mxu1 }
 0x265   :  { %v2047_v20 = vsel %vm2011_vm0, %v1965_v11, 0.0  ;;  %v1582_v37 = vmax.f32 %v4997_v1, 0.0 }
 0x266   :  { %v2048_v38 = vadd.f32 %v2047_v20, %v2046_v51  ;;  %v3813_v15 = vsel %vm2011_vm0, %v3732_v42, 0.0  ;;  %v3669_v10 = vmax.f32 %v5061_v47, 0.0  ;;  %v1344_v58 = vpop.f32.mrb[40].mxu0 }
 0x267   :  { %v3814_v43 = vadd.f32 %v3813_v15, %v3812_v3  ;;  %v1966_v16 = vmul.f32 %v1725_v5, %v1582_v37  ;;  %v4998_v8 = vadd.f32 %v1344_v58, %v6755_v63  ;;  %v3431_v19 = vpop.f32.mrb[40].mxu1  ;;  %v1346_v48 = vpop.f32.mrb[41].mxu0 }
 0x268   :  { %v3733_v0 = vmul.f32 %v3669_v10, %v1725_v5  ;;  %v5062_v33 = vadd.f32 %v3431_v19, %v6755_v63  ;;  %v3433_v55 = vpop.f32.mrb[41].mxu1  ;;  %v1735_v3 = vpop.permute.xlu1 %1734 }
 0x269   :  { %v2049_v12 = vsel %vm2011_vm0, %v1966_v16, 0.0  ;;  %v1583_v49 = vmax.f32 %v4998_v8, 0.0  ;;  %v1740_v58 = vpop.permute.xlu0 %1739 }
 0x26a   :  { %v2050_v26 = vadd.f32 %v2049_v12, %v2048_v38  ;;  %v3815_v17 = vsel %vm2011_vm0, %v3733_v0, 0.0  ;;  %v3670_v4 = vmax.f32 %v5062_v33, 0.0  ;;  %v1349_v57 = vpop.f32.mrb[42].mxu0 }
 0x26b   :  { %v3816_v28 = vadd.f32 %v3815_v17, %v3814_v43  ;;  %v1967_v44 = vmul.f32 %v1730_v56, %v1583_v49  ;;  %v4999_v41 = vadd.f32 %v1349_v57, %v6757_v2  ;;  %v3436_v29 = vpop.f32.mrb[42].mxu1  ;;  %v1351_v32 = vpop.f32.mrb[43].mxu0 }
 0x26c   :  { %v3734_v51 = vmul.f32 %v3670_v4, %v1730_v56  ;;  %v5063_v61 = vadd.f32 %v3436_v29, %v6757_v2  ;;  %v3438_v63 = vpop.f32.mrb[43].mxu1  ;;  %v1745_v4 = vpop.permute.xlu1 %1744 }
 0x26d   :  { %v2051_v21 = vsel %vm2011_vm0, %v1967_v44, 0.0  ;;  %v1584_v35 = vmax.f32 %v4999_v41, 0.0 }
 0x26e   :  { %v2052_v11 = vadd.f32 %v2051_v21, %v2050_v26  ;;  %v3817_v1 = vsel %vm2011_vm0, %v3734_v51, 0.0  ;;  %v3671_v60 = vmax.f32 %v5063_v61, 0.0  ;;  %v1354_v27 = vpop.f32.mrb[44].mxu0 }
 0x26f   :  { %v3818_v42 = vadd.f32 %v3817_v1, %v3816_v28  ;;  %v1968_v47 = vmul.f32 %v1735_v3, %v1584_v35  ;;  %v5000_v52 = vadd.f32 %v1354_v27, %v6774_v9  ;;  %v3441_v20 = vpop.f32.mrb[44].mxu1  ;;  %v1356_v37 = vpop.f32.mrb[45].mxu0 }
 0x270   :  { %v3735_v5 = vmul.f32 %v3671_v60, %v1735_v3  ;;  %v5064_v38 = vadd.f32 %v3441_v20, %v6774_v9  ;;  %v3443_v2 = vpop.f32.mrb[45].mxu1  ;;  %v1750_v1 = vpop.permute.xlu0 %1749 }
 0x271   :  { %v2053_v15 = vsel %vm2011_vm0, %v1968_v47, 0.0  ;;  %v1585_v10 = vmax.f32 %v5000_v52, 0.0 }
 0x272   :  { %v2054_v43 = vadd.f32 %v2053_v15, %v2052_v11  ;;  %v3819_v16 = vsel %vm2011_vm0, %v3735_v5, 0.0  ;;  %v3672_v8 = vmax.f32 %v5064_v38, 0.0  ;;  %v1359_v19 = vpop.f32.mrb[46].mxu0 }
 0x273   :  { %v3820_v48 = vadd.f32 %v3819_v16, %v3818_v42  ;;  %v1969_v0 = vmul.f32 %v1740_v58, %v1585_v10  ;;  %v5001_v33 = vadd.f32 %v1359_v19, %v6782_v14  ;;  %v3446_v55 = vpop.f32.mrb[46].mxu1  ;;  %v1361_v12 = vpop.f32.mrb[47].mxu0 }
 0x274   :  { %v3736_v49 = vmul.f32 %v3672_v8, %v1740_v58  ;;  %v5065_v56 = vadd.f32 %v3446_v55, %v6782_v14  ;;  %v3448_v9 = vpop.f32.mrb[47].mxu1 }
 0x275   :  { %v2055_v26 = vsel %vm2011_vm0, %v1969_v0, 0.0  ;;  %v1586_v17 = vmax.f32 %v5001_v33, 0.0 }
 0x276   :  { %v2056_v57 = vadd.f32 %v2055_v26, %v2054_v43  ;;  %v3821_v28 = vsel %vm2011_vm0, %v3736_v49, 0.0  ;;  %v3673_v44 = vmax.f32 %v5065_v56, 0.0  ;;  %v1364_v41 = vpop.f32.mrb[48].mxu0  ;;  %v1755_v43 = vpop.permute.xlu1 %1754 }
 0x277   :  { %v3822_v29 = vadd.f32 %v3821_v28, %v3820_v48  ;;  %v1970_v32 = vmul.f32 %v1745_v4, %v1586_v17  ;;  %v5002_v51 = vadd.f32 %v1364_v41, %v6799_v22  ;;  %v3451_v61 = vpop.f32.mrb[48].mxu1  ;;  %v1366_v63 = vpop.f32.mrb[49].mxu0 }
 0x278   :  { %v3737_v21 = vmul.f32 %v3673_v44, %v1745_v4  ;;  %v5066_v35 = vadd.f32 %v3451_v61, %v6799_v22  ;;  %v3453_v14 = vpop.f32.mrb[49].mxu1  ;;  %v1760_v4 = vpop.permute.xlu0 %1759 }
 0x279   :  { %v2057_v3 = vsel %vm2011_vm0, %v1970_v32, 0.0  ;;  %v1587_v11 = vmax.f32 %v5002_v51, 0.0 }
 0x27a   :  { %v2058_v60 = vadd.f32 %v2057_v3, %v2056_v57  ;;  %v3823_v27 = vsel %vm2011_vm0, %v3737_v21, 0.0  ;;  %v3674_v42 = vmax.f32 %v5066_v35, 0.0  ;;  %v1369_v47 = vpop.f32.mrb[50].mxu0 }
 0x27b   :  { %v3824_v52 = vadd.f32 %v3823_v27, %v3822_v29  ;;  %v1971_v20 = vmul.f32 %v1750_v1, %v1587_v11  ;;  %v5003_v37 = vadd.f32 %v1369_v47, %v6801_v23  ;;  %v3456_v5 = vpop.f32.mrb[50].mxu1  ;;  %v1371_v38 = vpop.f32.mrb[51].mxu0 }
 0x27c   :  { %v3738_v2 = vmul.f32 %v3674_v42, %v1750_v1  ;;  %v5067_v15 = vadd.f32 %v3456_v5, %v6801_v23  ;;  %v3458_v22 = vpop.f32.mrb[51].mxu1  ;;  %v1765_v11 = vpop.permute.xlu1 %1764 }
 0x27d   :  { %v2059_v10 = vsel %vm2011_vm0, %v1971_v20, 0.0  ;;  %v1588_v58 = vmax.f32 %v5003_v37, 0.0 }
 0x27e   :  { %v2060_v16 = vadd.f32 %v2059_v10, %v2058_v60  ;;  %v3825_v8 = vsel %vm2011_vm0, %v3738_v2, 0.0  ;;  %v3675_v19 = vmax.f32 %v5067_v15, 0.0  ;;  %v1374_v48 = vpop.f32.mrb[52].mxu0  ;;  %v1770_v10 = vpop.permute.xlu0 %1769 }
 0x27f   :  { %v3826_v0 = vadd.f32 %v3825_v8, %v3824_v52  ;;  %v1972_v33 = vmul.f32 %v1755_v43, %v1588_v58  ;;  %v5004_v55 = vadd.f32 %v1374_v48, %v6818_v31  ;;  %v3461_v12 = vpop.f32.mrb[52].mxu1  ;;  %v1376_v49 = vpop.f32.mrb[53].mxu0 }
 0x280   :  { %v3739_v56 = vmul.f32 %v3675_v19, %v1755_v43  ;;  %v5068_v9 = vadd.f32 %v3461_v12, %v6818_v31  ;;  %v3463_v23 = vpop.f32.mrb[53].mxu1 }
 0x281   :  { %v2061_v26 = vsel %vm2011_vm0, %v1972_v33, 0.0  ;;  %v1589_v17 = vmax.f32 %v5004_v55, 0.0  ;;  %v1775_v23 = vpop.permute.xlu1 %1774 }
 0x282   :  { %v2062_v57 = vadd.f32 %v2061_v26, %v2060_v16  ;;  %v3827_v28 = vsel %vm2011_vm0, %v3739_v56, 0.0  ;;  %v3676_v44 = vmax.f32 %v5068_v9, 0.0  ;;  %v1379_v41 = vpop.f32.mrb[54].mxu0 }
 0x283   :  { %v3828_v29 = vadd.f32 %v3827_v28, %v3826_v0  ;;  %v1973_v32 = vmul.f32 %v1760_v4, %v1589_v17  ;;  %v5005_v51 = vadd.f32 %v1379_v41, %v6826_v34  ;;  %v3466_v61 = vpop.f32.mrb[54].mxu1  ;;  %v1381_v63 = vpop.f32.mrb[55].mxu0 }
 0x284   :  { %v3740_v21 = vmul.f32 %v3676_v44, %v1760_v4  ;;  %v5069_v35 = vadd.f32 %v3466_v61, %v6826_v34  ;;  %v3468_v31 = vpop.f32.mrb[55].mxu1 }
 0x285   :  { %v2063_v14 = vsel %vm2011_vm0, %v1973_v32, 0.0  ;;  %v1590_v3 = vmax.f32 %v5005_v51, 0.0 }
 0x286   :  { %v2064_v1 = vadd.f32 %v2063_v14, %v2062_v57  ;;  %v3829_v60 = vsel %vm2011_vm0, %v3740_v21, 0.0  ;;  %v3677_v27 = vmax.f32 %v5069_v35, 0.0  ;;  %v1384_v42 = vpop.f32.mrb[56].mxu0  ;;  %v1780_v35 = vpop.permute.xlu0 %1779 }
 0x287   :  { %v3830_v47 = vadd.f32 %v3829_v60, %v3828_v29  ;;  %v1974_v52 = vmul.f32 %v1765_v11, %v1590_v3  ;;  %v5006_v20 = vadd.f32 %v1384_v42, %v6843_v45  ;;  %v3471_v37 = vpop.f32.mrb[56].mxu1  ;;  %v1386_v5 = vpop.f32.mrb[57].mxu0 }
 0x288   :  { %v3741_v38 = vmul.f32 %v3677_v27, %v1765_v11  ;;  %v5070_v2 = vadd.f32 %v3471_v37, %v6843_v45  ;;  %v3473_v34 = vpop.f32.mrb[57].mxu1 }
 0x289   :  { %v2065_v15 = vsel %vm2011_vm0, %v1974_v52, 0.0  ;;  %v1591_v22 = vmax.f32 %v5006_v20, 0.0 }
 0x28a   :  { %v2066_v58 = vadd.f32 %v2065_v15, %v2064_v1  ;;  %v3831_v43 = vsel %vm2011_vm0, %v3741_v38, 0.0  ;;  %v3678_v16 = vmax.f32 %v5070_v2, 0.0  ;;  %v1389_v8 = vpop.f32.mrb[58].mxu0  ;;  %v1785_v38 = vpop.permute.xlu1 %1784 }
 0x28b   :  { %v3832_v19 = vadd.f32 %v3831_v43, %v3830_v47  ;;  %v1975_v48 = vmul.f32 %v1770_v10, %v1591_v22  ;;  %v5007_v0 = vadd.f32 %v1389_v8, %v6845_v46  ;;  %v3476_v33 = vpop.f32.mrb[58].mxu1  ;;  %v1391_v55 = vpop.f32.mrb[59].mxu0 }
 0x28c   :  { %v3742_v12 = vmul.f32 %v3678_v16, %v1770_v10  ;;  %v5071_v49 = vadd.f32 %v3476_v33, %v6845_v46  ;;  %v3478_v45 = vpop.f32.mrb[59].mxu1  ;;  %v1790_v55 = vpop.permute.xlu0 %1789 }
 0x28d   :  { %v2067_v56 = vsel %vm2011_vm0, %v1975_v48, 0.0  ;;  %v1592_v9 = vmax.f32 %v5007_v0, 0.0 }
 0x28e   :  { %v2068_v26 = vadd.f32 %v2067_v56, %v2066_v58  ;;  %v3833_v17 = vsel %vm2011_vm0, %v3742_v12, 0.0  ;;  %v3679_v4 = vmax.f32 %v5071_v49, 0.0  ;;  %v1394_v57 = vpop.f32.mrb[60].mxu0 }
 0x28f   :  { %v3834_v28 = vadd.f32 %v3833_v17, %v3832_v19  ;;  %v1976_v44 = vmul.f32 %v1775_v23, %v1592_v9  ;;  %v5008_v41 = vadd.f32 %v1394_v57, %v7057_v50  ;;  %v3481_v29 = vpop.f32.mrb[60].mxu1  ;;  %v1396_v32 = vpop.f32.mrb[61].mxu0 }
 0x290   :  { %v3743_v51 = vmul.f32 %v3679_v4, %v1775_v23  ;;  %v5072_v61 = vadd.f32 %v3481_v29, %v7057_v50  ;;  %v3483_v46 = vpop.f32.mrb[61].mxu1  ;;  %v1795_v29 = vpop.permute.xlu1 %1794 }
 0x291   :  { %v2069_v63 = vsel %vm2011_vm0, %v1976_v44, 0.0  ;;  %v1593_v21 = vmax.f32 %v5008_v41, 0.0 }
 0x292   :  { %v2070_v31 = vadd.f32 %v2069_v63, %v2068_v26  ;;  %v3835_v14 = vsel %vm2011_vm0, %v3743_v51, 0.0  ;;  %v3680_v3 = vmax.f32 %v5072_v61, 0.0  ;;  %v1399_v11 = vpop.f32.mrb[62].mxu0 }
 0x293   :  { %v3836_v1 = vadd.f32 %v3835_v14, %v3834_v28  ;;  %v1977_v60 = vmul.f32 %v1780_v35, %v1593_v21  ;;  %v5009_v27 = vadd.f32 %v1399_v11, %v7059_v53  ;;  %v3486_v42 = vpop.f32.mrb[62].mxu1  ;;  %v1401_v47 = vpop.f32.mrb[63].mxu0 }
 0x294   :  { %v3744_v52 = vmul.f32 %v3680_v3, %v1780_v35  ;;  %v5073_v20 = vadd.f32 %v3486_v42, %v7059_v53  ;;  %v3488_v50 = vpop.f32.mrb[63].mxu1 }
 0x295   :  { %v2071_v37 = vsel %vm2011_vm0, %v1977_v60, 0.0  ;;  %v1594_v5 = vmax.f32 %v5009_v27, 0.0  ;;  %v5383_v27 = vld [vmem:[%s10613_s0 + $0x8] sm:$0xff] }
 0x296   :  { %v2072_v2 = vadd.f32 %v2071_v37, %v2070_v31  ;;  %v3837_v34 = vsel %vm2011_vm0, %v3744_v52, 0.0  ;;  %v3681_v15 = vmax.f32 %v5073_v20, 0.0  ;;  %v1404_v22 = vpop.f32.mrb[64].mxu0  ;;  %v2159_v42 = vmul.f32 %v5383_v27, %v5383_v27  ;;  %v1800_v20 = vpop.permute.xlu0 %1799 }
 0x297   :  { %v3838_v10 = vadd.f32 %v3837_v34, %v3836_v1  ;;  %v1978_v58 = vmul.f32 %v1785_v38, %v1594_v5  ;;  %v5010_v43 = vadd.f32 %v1404_v22, %v7067_v59  ;;  %v3491_v16 = vpop.f32.mrb[64].mxu1  ;;  %v1406_v8 = vpop.f32.mrb[65].mxu0  ;;  %v5382_v1 = vld [vmem:[%s10613_s0] sm:$0xff] }
 0x298   :  { %v3745_v19 = vmul.f32 %v3681_v15, %v1785_v38  ;;  %v5074_v48 = vadd.f32 %v3491_v16, %v7067_v59  ;;  %v3493_v53 = vpop.f32.mrb[65].mxu1  ;;  %v2158_v60 = vmul.f32 %v5382_v1, %v5382_v1 }
 0x299   :  { %v2073_v0 = vsel %vm2011_vm0, %v1978_v58, 0.0  ;;  %v1595_v33 = vmax.f32 %v5010_v43, 0.0 }
 0x29a   :  { %v2074_v12 = vadd.f32 %v2073_v0, %v2072_v2  ;;  %v3839_v49 = vsel %vm2011_vm0, %v3745_v19, 0.0  ;;  %v3682_v45 = vmax.f32 %v5074_v48, 0.0  ;;  %v1409_v56 = vpop.f32.mrb[66].mxu0  ;;  %v2222_v19 = vsel %vm2011_vm0, %v2158_v60, 0.0 }
 0x29b   :  { %v3840_v9 = vadd.f32 %v3839_v49, %v3838_v10  ;;  %v1979_v23 = vmul.f32 %v1790_v55, %v1595_v33  ;;  %v5011_v26 = vadd.f32 %v1409_v56, %v7075_v62  ;;  %v3496_v17 = vpop.f32.mrb[66].mxu1  ;;  %v1411_v4 = vpop.f32.mrb[67].mxu0  ;;  %v5384_v10 = vld [vmem:[%s10613_s0 + $0x10] sm:$0xff]  ;;  %v2223_v48 = vsel %vm2011_vm0, %v2159_v42, 0.0  ;;  %v5386_v42 = vld [vmem:[%s10613_s0 + $0x20] sm:$0xff] }
 0x29c   :  { %v3746_v57 = vmul.f32 %v3682_v45, %v1790_v55  ;;  %v5075_v28 = vadd.f32 %v3496_v17, %v7075_v62  ;;  %v3498_v59 = vpop.f32.mrb[67].mxu1  ;;  %v2160_v58 = vmul.f32 %v5384_v10, %v5384_v10  ;;  %v1805_v33 = vpop.permute.xlu1 %1804  ;;  %v2224_v17 = vadd.f32 %v2223_v48, %v2222_v19 }
 0x29d   :  { %v2075_v44 = vsel %vm2011_vm0, %v1979_v23, 0.0  ;;  %v1596_v41 = vmax.f32 %v5011_v26, 0.0  ;;  %v5385_v59 = vld [vmem:[%s10613_s0 + $0x18] sm:$0xff] }
 0x29e   :  { %v2076_v32 = vadd.f32 %v2075_v44, %v2074_v12  ;;  %v3841_v51 = vsel %vm2011_vm0, %v3746_v57, 0.0  ;;  %v3683_v61 = vmax.f32 %v5075_v28, 0.0  ;;  %v1414_v46 = vpop.f32.mrb[68].mxu0  ;;  %v2161_v44 = vmul.f32 %v5385_v59, %v5385_v59  ;;  %v5388_v59 = vld [vmem:[%s10613_s0 + $0x30] sm:$0xff] }
 0x29f   :  { %v3842_v63 = vadd.f32 %v3841_v51, %v3840_v9  ;;  %v1980_v21 = vmul.f32 %v1795_v29, %v1596_v41  ;;  %v5012_v35 = vadd.f32 %v1414_v46, %v7083_v6  ;;  %v3501_v31 = vpop.f32.mrb[68].mxu1  ;;  %v1416_v14 = vpop.f32.mrb[69].mxu0  ;;  %v2225_v41 = vsel %vm2011_vm0, %v2160_v58, 0.0 }
 0x2a0   :  { %v3747_v3 = vmul.f32 %v3683_v61, %v1795_v29  ;;  %v5076_v11 = vadd.f32 %v3501_v31, %v7083_v6  ;;  %v3503_v62 = vpop.f32.mrb[69].mxu1  ;;  %v1810_v51 = vpop.permute.xlu0 %1809  ;;  %v2227_v27 = vsel %vm2011_vm0, %v2161_v44, 0.0  ;;  %v2164_v44 = vmul.f32 %v5388_v59, %v5388_v59 }
 0x2a1   :  { %v2077_v47 = vsel %vm2011_vm0, %v1980_v21, 0.0  ;;  %v1597_v52 = vmax.f32 %v5012_v35, 0.0 }
 0x2a2   :  { %v2078_v50 = vadd.f32 %v2077_v47, %v2076_v32  ;;  %v3843_v37 = vsel %vm2011_vm0, %v3747_v3, 0.0  ;;  %v3684_v5 = vmax.f32 %v5076_v11, 0.0  ;;  %v1419_v6 = vpop.f32.mrb[70].mxu0  ;;  %v2226_v11 = vadd.f32 %v2225_v41, %v2224_v17 }
 0x2a3   :  { %v3844_v38 = vadd.f32 %v3843_v37, %v3842_v63  ;;  %v1981_v2 = vmul.f32 %v1800_v20, %v1597_v52  ;;  %v5013_v34 = vadd.f32 %v1419_v6, %v7085_v7  ;;  %v3506_v15 = vpop.f32.mrb[70].mxu1  ;;  %v1421_v22 = vpop.f32.mrb[71].mxu0  ;;  %v2162_v47 = vmul.f32 %v5386_v42, %v5386_v42 }
 0x2a4   :  { %v3748_v43 = vmul.f32 %v3684_v5, %v1800_v20  ;;  %v5077_v16 = vadd.f32 %v3506_v15, %v7085_v7  ;;  %v3508_v8 = vpop.f32.mrb[71].mxu1  ;;  %v2228_v10 = vadd.f32 %v2227_v27, %v2226_v11  ;;  %v5390_v27 = vld [vmem:[%s10613_s0 + $0x38] sm:$0xff] }
 0x2a5   :  { %v2079_v53 = vsel %vm2011_vm0, %v1981_v2, 0.0  ;;  %v1598_v0 = vmax.f32 %v5013_v34, 0.0  ;;  %v5387_v8 = vld [vmem:[%s10613_s0 + $0x28] sm:$0xff]  ;;  %v2229_v48 = vsel %vm2011_vm0, %v2162_v47, 0.0  ;;  %v2165_v42 = vmul.f32 %v5390_v27, %v5390_v27 }
 0x2a6   :  { %v2080_v55 = vadd.f32 %v2079_v53, %v2078_v50  ;;  %v3845_v12 = vsel %vm2011_vm0, %v3748_v43, 0.0  ;;  %v3685_v49 = vmax.f32 %v5077_v16, 0.0  ;;  %v1424_v45 = vpop.f32.mrb[72].mxu0  ;;  %v1815_v50 = vpop.permute.xlu1 %1814  ;;  %v2163_v19 = vmul.f32 %v5387_v8, %v5387_v8 }
 0x2a7   :  { %v3846_v56 = vadd.f32 %v3845_v12, %v3844_v38  ;;  %v1982_v9 = vmul.f32 %v1805_v33, %v1598_v0  ;;  %v5014_v23 = vadd.f32 %v1424_v45, %v7093_v13  ;;  %v3511_v26 = vpop.f32.mrb[72].mxu1  ;;  %v1426_v7 = vpop.f32.mrb[73].mxu0  ;;  %v2233_v47 = vsel %vm2011_vm0, %v2164_v44, 0.0 }
 0x2a8   :  { %v3749_v4 = vmul.f32 %v3685_v49, %v1805_v33  ;;  %v5078_v57 = vadd.f32 %v3511_v26, %v7093_v13  ;;  %v3513_v28 = vpop.f32.mrb[73].mxu1  ;;  %v1820_v33 = vpop.permute.xlu0 %1819  ;;  %v2230_v7 = vadd.f32 %v2229_v48, %v2228_v10  ;;  %v2235_v48 = vsel %vm2011_vm0, %v2165_v42, 0.0 }
 0x2a9   :  { %v2081_v29 = vsel %vm2011_vm0, %v1982_v9, 0.0  ;;  %v1599_v32 = vmax.f32 %v5014_v23, 0.0  ;;  %v2231_v28 = vsel %vm2011_vm0, %v2163_v19, 0.0 }
 0x2aa   :  { %v2082_v61 = vadd.f32 %v2081_v29, %v2080_v55  ;;  %v3847_v46 = vsel %vm2011_vm0, %v3749_v4, 0.0  ;;  %v3686_v63 = vmax.f32 %v5078_v57, 0.0  ;;  %v1429_v21 = vpop.f32.mrb[74].mxu0  ;;  %v2232_v11 = vadd.f32 %v2231_v28, %v2230_v7  ;;  %v5394_v28 = vld [vmem:[%s10613_s0 + $0x218] sm:$0xff] }
 0x2ab   :  { %v3848_v35 = vadd.f32 %v3847_v46, %v3846_v56  ;;  %v1983_v31 = vmul.f32 %v1810_v51, %v1599_v32  ;;  %v5015_v13 = vadd.f32 %v1429_v21, %v7101_v18  ;;  %v3516_v14 = vpop.f32.mrb[74].mxu1  ;;  %v1431_v3 = vpop.f32.mrb[75].mxu0  ;;  %v3926_v59 = vmul.f32 %v5394_v28, %v5394_v28 }
 0x2ac   :  { %v3750_v62 = vmul.f32 %v3686_v63, %v1810_v51  ;;  %v5079_v1 = vadd.f32 %v3516_v14, %v7101_v18  ;;  %v3518_v60 = vpop.f32.mrb[75].mxu1  ;;  %v1825_v32 = vpop.permute.xlu1 %1824  ;;  %v5389_v14 = vld [vmem:[%s10613_s0 + $0x200] sm:$0xff] }
 0x2ad   :  { %v2083_v52 = vsel %vm2011_vm0, %v1983_v31, 0.0  ;;  %v1600_v20 = vmax.f32 %v5015_v13, 0.0  ;;  %v3923_v3 = vmul.f32 %v5389_v14, %v5389_v14  ;;  %v3992_v42 = vsel %vm2011_vm0, %v3926_v59, 0.0 }
 0x2ae   :  { %v2084_v37 = vadd.f32 %v2083_v52, %v2082_v61  ;;  %v3849_v5 = vsel %vm2011_vm0, %v3750_v62, 0.0  ;;  %v3687_v6 = vmax.f32 %v5079_v1, 0.0  ;;  %v1434_v38 = vpop.f32.mrb[76].mxu0 }
 0x2af   :  { %v3850_v2 = vadd.f32 %v3849_v5, %v3848_v35  ;;  %v1984_v34 = vmul.f32 %v1815_v50, %v1600_v20  ;;  %v5016_v18 = vadd.f32 %v1434_v38, %v7109_v24  ;;  %v3521_v15 = vpop.f32.mrb[76].mxu1  ;;  %v1436_v22 = vpop.f32.mrb[77].mxu0 }
 0x2b0   :  { %v3751_v58 = vmul.f32 %v3687_v6, %v1815_v50  ;;  %v5080_v43 = vadd.f32 %v3521_v15, %v7109_v24  ;;  %v3523_v16 = vpop.f32.mrb[77].mxu1  ;;  %v5391_v50 = vld [vmem:[%s10613_s0 + $0x208] sm:$0xff]  ;;  %v1830_v5 = vpop.permute.xlu0 %1829 }
 0x2b1   :  { %v2085_v53 = vsel %vm2011_vm0, %v1984_v34, 0.0  ;;  %v1601_v0 = vmax.f32 %v5016_v18, 0.0 }
 0x2b2   :  { %v2086_v55 = vadd.f32 %v2085_v53, %v2084_v37  ;;  %v3851_v12 = vsel %vm2011_vm0, %v3751_v58, 0.0  ;;  %v3688_v49 = vmax.f32 %v5080_v43, 0.0  ;;  %v1439_v45 = vpop.f32.mrb[78].mxu0  ;;  %v3924_v37 = vmul.f32 %v5391_v50, %v5391_v50  ;;  %v5392_v53 = vld [vmem:[%s10613_s0 + $0x40] sm:$0xff] }
 0x2b3   :  { %v3852_v56 = vadd.f32 %v3851_v12, %v3850_v2  ;;  %v1985_v9 = vmul.f32 %v1820_v33, %v1601_v0  ;;  %v5017_v24 = vadd.f32 %v1439_v45, %v7111_v25  ;;  %v3526_v23 = vpop.f32.mrb[78].mxu1  ;;  %v1441_v26 = vpop.f32.mrb[79].mxu0  ;;  %v3987_v58 = vsel %vm2011_vm0, %v3923_v3, 0.0 }
 0x2b4   :  { %v3752_v17 = vmul.f32 %v3688_v49, %v1820_v33  ;;  %v5081_v4 = vadd.f32 %v3526_v23, %v7111_v25  ;;  %v3528_v57 = vpop.f32.mrb[79].mxu1  ;;  %v2234_v43 = vadd.f32 %v2233_v47, %v2232_v11  ;;  %v2166_v0 = vmul.f32 %v5392_v53, %v5392_v53  ;;  %v1835_v49 = vpop.permute.xlu1 %1834  ;;  %v5398_v53 = vld [vmem:[%s10613_s0 + $0x228] sm:$0xff] }
 0x2b5   :  { %v2087_v41 = vsel %vm2011_vm0, %v1985_v9, 0.0  ;;  %v1602_v29 = vmax.f32 %v5017_v24, 0.0  ;;  %v3988_v12 = vsel %vm2011_vm0, %v3924_v37, 0.0 }
 0x2b6   :  { %v2088_v51 = vadd.f32 %v2087_v41, %v2086_v55  ;;  %v3853_v61 = vsel %vm2011_vm0, %v3752_v17, 0.0  ;;  %v3689_v46 = vmax.f32 %v5081_v4, 0.0  ;;  %v1444_v63 = vpop.f32.mrb[80].mxu0  ;;  %v2236_v44 = vadd.f32 %v2235_v48, %v2234_v43 }
 0x2b7   :  { %v3854_v21 = vadd.f32 %v3853_v61, %v3852_v56  ;;  %v1986_v35 = vmul.f32 %v1825_v32, %v1602_v29  ;;  %v5018_v25 = vadd.f32 %v1444_v63, %v7119_v30  ;;  %v3531_v31 = vpop.f32.mrb[80].mxu1  ;;  %v1446_v13 = vpop.f32.mrb[81].mxu0 }
 0x2b8   :  { %v3753_v62 = vmul.f32 %v3689_v46, %v1825_v32  ;;  %v5082_v1 = vadd.f32 %v3531_v31, %v7119_v30  ;;  %v3533_v60 = vpop.f32.mrb[81].mxu1  ;;  %v2237_v46 = vsel %vm2011_vm0, %v2166_v0, 0.0  ;;  %v3928_v0 = vmul.f32 %v5398_v53, %v5398_v53 }
 0x2b9   :  { %v2089_v52 = vsel %vm2011_vm0, %v1986_v35, 0.0  ;;  %v1603_v20 = vmax.f32 %v5018_v25, 0.0  ;;  %v3989_v35 = vadd.f32 %v3988_v12, %v3987_v58  ;;  %v1840_v25 = vpop.permute.xlu0 %1839  ;;  %v2238_v47 = vadd.f32 %v2237_v46, %v2236_v44  ;;  %v10777_v44 = vld [vmem:[#allocation3_spill] sm:$0xff] }
 0x2ba   :  { %v2090_v6 = vadd.f32 %v2089_v52, %v2088_v51  ;;  %v3855_v30 = vsel %vm2011_vm0, %v3753_v62, 0.0  ;;  %v3690_v38 = vmax.f32 %v5082_v1, 0.0  ;;  %v1449_v2 = vpop.f32.mrb[82].mxu0  ;;  %v5395_v51 = vld [vmem:[%s10613_s0 + $0x48] sm:$0xff] }
 0x2bb   :  { %v3856_v34 = vadd.f32 %v3855_v30, %v3854_v21  ;;  %v1987_v18 = vmul.f32 %v1830_v5, %v1603_v20  ;;  %v5019_v15 = vadd.f32 %v1449_v2, %v7127_v36  ;;  %v3536_v22 = vpop.f32.mrb[82].mxu1  ;;  %v1451_v10 = vpop.f32.mrb[83].mxu0  ;;  %v2167_v61 = vmul.f32 %v5395_v51, %v5395_v51 }
 0x2bc   :  { %v3754_v16 = vmul.f32 %v3690_v38, %v1830_v5  ;;  %v5083_v8 = vadd.f32 %v3536_v22, %v7127_v36  ;;  %v3538_v19 = vpop.f32.mrb[83].mxu1  ;;  %v5393_v36 = vld [vmem:[%s10613_s0 + $0x210] sm:$0xff]  ;;  %v3996_v51 = vsel %vm2011_vm0, %v3928_v0, 0.0 }
 0x2bd   :  { %v2091_v33 = vsel %vm2011_vm0, %v1987_v18, 0.0  ;;  %v1604_v55 = vmax.f32 %v5019_v15, 0.0  ;;  %v3925_v23 = vmul.f32 %v5393_v36, %v5393_v36  ;;  %v2239_v37 = vsel %vm2011_vm0, %v2167_v61, 0.0  ;;  %v5396_v5 = vld [vmem:[%s10613_s0 + $0x50] sm:$0xff] }
 0x2be   :  { %v2092_v45 = vadd.f32 %v2091_v33, %v2090_v6  ;;  %v3857_v56 = vsel %vm2011_vm0, %v3754_v16, 0.0  ;;  %v3691_v9 = vmax.f32 %v5083_v8, 0.0  ;;  %v1454_v24 = vpop.f32.mrb[84].mxu0  ;;  %v2168_v6 = vmul.f32 %v5396_v5, %v5396_v5 }
 0x2bf   :  { %v3858_v26 = vadd.f32 %v3857_v56, %v3856_v34  ;;  %v1988_v7 = vmul.f32 %v1835_v49, %v1604_v55  ;;  %v5020_v17 = vadd.f32 %v1454_v24, %v7135_v39  ;;  %v3541_v4 = vpop.f32.mrb[84].mxu1  ;;  %v1456_v57 = vpop.f32.mrb[85].mxu0  ;;  %v2240_v33 = vadd.f32 %v2239_v37, %v2238_v47 }
 0x2c0   :  { %v3755_v41 = vmul.f32 %v3691_v9, %v1835_v49  ;;  %v5084_v29 = vadd.f32 %v3541_v4, %v7135_v39  ;;  %v3543_v32 = vpop.f32.mrb[85].mxu1  ;;  %v3990_v39 = vsel %vm2011_vm0, %v3925_v23, 0.0  ;;  %v1845_v34 = vpop.permute.xlu1 %1844  ;;  %v2241_v9 = vsel %vm2011_vm0, %v2168_v6, 0.0  ;;  %v5402_v6 = vld [vmem:[%s10613_s0 + $0x238] sm:$0xff] }
 0x2c1   :  { %v2093_v63 = vsel %vm2011_vm0, %v1988_v7, 0.0  ;;  %v1605_v21 = vmax.f32 %v5020_v17, 0.0  ;;  %v3991_v2 = vadd.f32 %v3990_v39, %v3989_v35  ;;  %v2242_v61 = vadd.f32 %v2241_v9, %v2240_v33 }
 0x2c2   :  { %v2094_v31 = vadd.f32 %v2093_v63, %v2092_v45  ;;  %v3859_v13 = vsel %vm2011_vm0, %v3755_v41, 0.0  ;;  %v3692_v14 = vmax.f32 %v5084_v29, 0.0  ;;  %v1459_v3 = vpop.f32.mrb[86].mxu0  ;;  %v5399_v45 = vld [vmem:[%s10613_s0 + $0x58] sm:$0xff] }
 0x2c3   :  { %v3860_v11 = vadd.f32 %v3859_v13, %v3858_v26  ;;  %v1989_v62 = vmul.f32 %v1840_v25, %v1605_v21  ;;  %v5021_v1 = vadd.f32 %v1459_v3, %v7137_v40  ;;  %v3546_v60 = vpop.f32.mrb[86].mxu1  ;;  %v1461_v27 = vpop.f32.mrb[87].mxu0  ;;  %v2169_v56 = vmul.f32 %v5399_v45, %v5399_v45 }
 0x2c4   :  { %v3756_v52 = vmul.f32 %v3692_v14, %v1840_v25  ;;  %v5085_v20 = vadd.f32 %v3546_v60, %v7137_v40  ;;  %v3548_v50 = vpop.f32.mrb[87].mxu1  ;;  %v5397_v40 = vld [vmem:[%s10613_s0 + $0x220] sm:$0xff]  ;;  %v3993_v23 = vadd.f32 %v3992_v42, %v3991_v2  ;;  %v1850_v26 = vpop.permute.xlu0 %1849  ;;  %v5401_v27 = vld [vmem:[%s10613_s0 + $0x230] sm:$0xff] }
 0x2c5   :  { %v2095_v30 = vsel %vm2011_vm0, %v1989_v62, 0.0  ;;  %v1606_v38 = vmax.f32 %v5021_v1, 0.0  ;;  %v3927_v58 = vmul.f32 %v5397_v40, %v5397_v40  ;;  %v2243_v35 = vsel %vm2011_vm0, %v2169_v56, 0.0  ;;  %v5400_v25 = vld [vmem:[%s10613_s0 + $0x60] sm:$0xff]  ;;  %v1855_v39 = vpop.permute.xlu1 %1854 }
 0x2c6   :  { %v2096_v18 = vadd.f32 %v2095_v30, %v2094_v31  ;;  %v3861_v15 = vsel %vm2011_vm0, %v3756_v52, 0.0  ;;  %v3693_v22 = vmax.f32 %v5085_v20, 0.0  ;;  %v1464_v10 = vpop.f32.mrb[88].mxu0  ;;  %v2170_v31 = vmul.f32 %v5400_v25, %v5400_v25  ;;  %v10778_v20 = vld [vmem:[#allocation4_spill] sm:$0xff] }
 0x2c7   :  { %v3862_v43 = vadd.f32 %v3861_v15, %v3860_v11  ;;  %v1990_v16 = vmul.f32 %v1845_v34, %v1606_v38  ;;  %v5022_v8 = vadd.f32 %v1464_v10, %v7145_v54  ;;  %v3551_v19 = vpop.f32.mrb[88].mxu1  ;;  %v1466_v48 = vpop.f32.mrb[89].mxu0  ;;  %v3929_v42 = vmul.f32 %v5401_v27, %v5401_v27  ;;  %v5403_v15 = vld [vmem:[%s10613_s0 + $0x68] sm:$0xff] }
 0x2c8   :  { %v3757_v55 = vmul.f32 %v3693_v22, %v1845_v34  ;;  %v5086_v12 = vadd.f32 %v3551_v19, %v7145_v54  ;;  %v3553_v49 = vpop.f32.mrb[89].mxu1  ;;  %v3994_v54 = vsel %vm2011_vm0, %v3927_v58, 0.0  ;;  %v3930_v30 = vmul.f32 %v5402_v6, %v5402_v6 }
 0x2c9   :  { %v2097_v24 = vsel %vm2011_vm0, %v1990_v16, 0.0  ;;  %v1607_v36 = vmax.f32 %v5022_v8, 0.0  ;;  %v3995_v3 = vadd.f32 %v3994_v54, %v3993_v23  ;;  %v2244_v38 = vadd.f32 %v2243_v35, %v2242_v61  ;;  %v1860_v16 = vpop.permute.xlu0 %1859 }
 0x2ca   :  { %v2098_v7 = vadd.f32 %v2097_v24, %v2096_v18  ;;  %v3863_v17 = vsel %vm2011_vm0, %v3757_v55, 0.0  ;;  %v3694_v4 = vmax.f32 %v5086_v12, 0.0  ;;  %v1469_v57 = vpop.f32.mrb[90].mxu0  ;;  %v2171_v22 = vmul.f32 %v5403_v15, %v5403_v15  ;;  %v10779_v12 = vld [vmem:[#allocation5_spill] sm:$0xff] }
 0x2cb   :  { %v3864_v28 = vadd.f32 %v3863_v17, %v3862_v43  ;;  %v1991_v59 = vmul.f32 %v1850_v26, %v1607_v36  ;;  %v5023_v41 = vadd.f32 %v1469_v57, %v10777_v44  ;;  %v3556_v29 = vpop.f32.mrb[90].mxu1  ;;  %v1471_v32 = vpop.f32.mrb[91].mxu0  ;;  %v2245_v10 = vsel %vm2011_vm0, %v2170_v31, 0.0  ;;  %v5404_v17 = vld [vmem:[%s10613_s0 + $0x70] sm:$0xff] }
 0x2cc   :  { %v3758_v46 = vmul.f32 %v3694_v4, %v1850_v26  ;;  %v5087_v63 = vadd.f32 %v3556_v29, %v10777_v44  ;;  %v3558_v21 = vpop.f32.mrb[91].mxu1  ;;  %v3997_v43 = vadd.f32 %v3996_v51, %v3995_v3  ;;  %v3998_v0 = vsel %vm2011_vm0, %v3929_v42, 0.0  ;;  %v5405_v51 = vld [vmem:[%s10613_s0 + $0x240] sm:$0xff] }
 0x2cd   :  { %v2099_v13 = vsel %vm2011_vm0, %v1991_v59, 0.0  ;;  %v1608_v14 = vmax.f32 %v5023_v41, 0.0  ;;  %v4000_v9 = vsel %vm2011_vm0, %v3930_v30, 0.0  ;;  %v2246_v24 = vadd.f32 %v2245_v10, %v2244_v38  ;;  %v1865_v59 = vpop.permute.xlu1 %1864  ;;  %v10780_v21 = vld [vmem:[#allocation6_spill] sm:$0xff] }
 0x2ce   :  { %v2100_v11 = vadd.f32 %v2099_v13, %v2098_v7  ;;  %v3865_v62 = vsel %vm2011_vm0, %v3758_v46, 0.0  ;;  %v3695_v1 = vmax.f32 %v5087_v63, 0.0  ;;  %v1474_v60 = vpop.f32.mrb[92].mxu0  ;;  %v2247_v7 = vsel %vm2011_vm0, %v2171_v22, 0.0  ;;  %v5406_v13 = vld [vmem:[%s10613_s0 + $0x248] sm:$0xff] }
 0x2cf   :  { %v3866_v47 = vadd.f32 %v3865_v62, %v3864_v28  ;;  %v1992_v52 = vmul.f32 %v1855_v39, %v1608_v14  ;;  %v5024_v50 = vadd.f32 %v1474_v60, %v10778_v20  ;;  %v3561_v37 = vpop.f32.mrb[92].mxu1  ;;  %v1476_v5 = vpop.f32.mrb[93].mxu0  ;;  %v2172_v4 = vmul.f32 %v5404_v17, %v5404_v17 }
 0x2d0   :  { %v3759_v2 = vmul.f32 %v3695_v1, %v1855_v39  ;;  %v5088_v34 = vadd.f32 %v3561_v37, %v10778_v20  ;;  %v3563_v18 = vpop.f32.mrb[93].mxu1  ;;  %v3999_v28 = vadd.f32 %v3998_v0, %v3997_v43  ;;  %v3931_v61 = vmul.f32 %v5405_v51, %v5405_v51  ;;  %v5407_v1 = vld [vmem:[%s10613_s0 + $0x78] sm:$0xff]  ;;  %v1870_v20 = vpop.permute.xlu0 %1869 }
 0x2d1   :  { %v2101_v40 = vsel %vm2011_vm0, %v1992_v52, 0.0  ;;  %v1609_v58 = vmax.f32 %v5024_v50, 0.0  ;;  %v3932_v14 = vmul.f32 %v5406_v13, %v5406_v13  ;;  %v2248_v3 = vadd.f32 %v2247_v7, %v2246_v24 }
 0x2d2   :  { %v2102_v8 = vadd.f32 %v2101_v40, %v2100_v11  ;;  %v3867_v19 = vsel %vm2011_vm0, %v3759_v2, 0.0  ;;  %v3696_v48 = vmax.f32 %v5088_v34, 0.0  ;;  %v1479_v53 = vpop.f32.mrb[94].mxu0  ;;  %v2173_v60 = vmul.f32 %v5407_v1, %v5407_v1  ;;  %v10781_v34 = vld [vmem:[#allocation7_spill] sm:$0xff] }
 0x2d3   :  { %v3868_v33 = vadd.f32 %v3867_v19, %v3866_v47  ;;  %v1993_v55 = vmul.f32 %v1860_v16, %v1609_v58  ;;  %v5025_v49 = vadd.f32 %v1479_v53, %v10779_v12  ;;  %v3566_v45 = vpop.f32.mrb[94].mxu1  ;;  %v1481_v56 = vpop.f32.mrb[95].mxu0  ;;  %v2249_v27 = vsel %vm2011_vm0, %v2172_v4, 0.0  ;;  %v5408_v19 = vld [vmem:[%s10613_s0 + $0x80] sm:$0xff] }
 0x2d4   :  { %v3760_v36 = vmul.f32 %v3696_v48, %v1860_v16  ;;  %v5089_v23 = vadd.f32 %v3566_v45, %v10779_v12  ;;  %v3568_v26 = vpop.f32.mrb[95].mxu1  ;;  %v4001_v52 = vadd.f32 %v4000_v9, %v3999_v28  ;;  %v4002_v30 = vsel %vm2011_vm0, %v3931_v61, 0.0  ;;  %v5409_v9 = vld [vmem:[%s10613_s0 + $0x250] sm:$0xff] }
 0x2d5   :  { %v2103_v57 = vsel %vm2011_vm0, %v1993_v55, 0.0  ;;  %v1610_v54 = vmax.f32 %v5025_v49, 0.0  ;;  %v4004_v10 = vsel %vm2011_vm0, %v3932_v14, 0.0  ;;  %v2250_v40 = vadd.f32 %v2249_v27, %v2248_v3  ;;  %v1875_v55 = vpop.permute.xlu1 %1874  ;;  %v10782_v26 = vld [vmem:[#allocation8_spill] sm:$0xff] }
 0x2d6   :  { %v2104_v44 = vadd.f32 %v2103_v57, %v2102_v8  ;;  %v3869_v41 = vsel %vm2011_vm0, %v3760_v36, 0.0  ;;  %v3697_v29 = vmax.f32 %v5089_v23, 0.0  ;;  %v1484_v32 = vpop.f32.mrb[96].mxu0  ;;  %v2251_v8 = vsel %vm2011_vm0, %v2173_v60, 0.0  ;;  %v5410_v57 = vld [vmem:[%s10613_s0 + $0x258] sm:$0xff] }
 0x2d7   :  { %v3870_v46 = vadd.f32 %v3869_v41, %v3868_v33  ;;  %v1994_v63 = vmul.f32 %v1865_v59, %v1610_v54  ;;  %v5026_v35 = vadd.f32 %v1484_v32, %v10780_v21  ;;  %v3571_v25 = vpop.f32.mrb[96].mxu1  ;;  %v1486_v31 = vpop.f32.mrb[97].mxu0  ;;  %v2174_v48 = vmul.f32 %v5408_v19, %v5408_v19 }
 0x2d8   :  { %v3761_v39 = vmul.f32 %v3697_v29, %v1865_v59  ;;  %v5090_v11 = vadd.f32 %v3571_v25, %v10780_v21  ;;  %v3573_v62 = vpop.f32.mrb[97].mxu1  ;;  %v4003_v33 = vadd.f32 %v4002_v30, %v4001_v52  ;;  %v3933_v24 = vmul.f32 %v5409_v9, %v5409_v9  ;;  %v5411_v29 = vld [vmem:[%s10613_s0 + $0x88] sm:$0xff]  ;;  %v1880_v21 = vpop.permute.xlu0 %1879 }
 0x2d9   :  { %v2105_v42 = vsel %vm2011_vm0, %v1994_v63, 0.0  ;;  %v1611_v47 = vmax.f32 %v5026_v35, 0.0  ;;  %v3934_v54 = vmul.f32 %v5410_v57, %v5410_v57  ;;  %v2252_v28 = vadd.f32 %v2251_v8, %v2250_v40 }
 0x2da   :  { %v2106_v50 = vadd.f32 %v2105_v42, %v2104_v44  ;;  %v3871_v37 = vsel %vm2011_vm0, %v3761_v39, 0.0  ;;  %v3698_v5 = vmax.f32 %v5090_v11, 0.0  ;;  %v1489_v6 = vpop.f32.mrb[98].mxu0  ;;  %v2175_v32 = vmul.f32 %v5411_v29, %v5411_v29  ;;  %v10783_v11 = vld [vmem:[#allocation9_spill] sm:$0xff] }
 0x2db   :  { %v3872_v38 = vadd.f32 %v3871_v37, %v3870_v46  ;;  %v1995_v2 = vmul.f32 %v1870_v20, %v1611_v47  ;;  %v5027_v18 = vadd.f32 %v1489_v6, %v10781_v34  ;;  %v3576_v15 = vpop.f32.mrb[98].mxu1  ;;  %v1491_v22 = vpop.f32.mrb[99].mxu0  ;;  %v2253_v51 = vsel %vm2011_vm0, %v2174_v48, 0.0  ;;  %v5412_v37 = vld [vmem:[%s10613_s0 + $0x90] sm:$0xff] }
 0x2dc   :  { %v3762_v58 = vmul.f32 %v3698_v5, %v1870_v20  ;;  %v5091_v43 = vadd.f32 %v3576_v15, %v10781_v34  ;;  %v3578_v16 = vpop.f32.mrb[99].mxu1  ;;  %v4005_v63 = vadd.f32 %v4004_v10, %v4003_v33  ;;  %v4006_v14 = vsel %vm2011_vm0, %v3933_v24, 0.0  ;;  %v5413_v10 = vld [vmem:[%s10613_s0 + $0x260] sm:$0xff] }
 0x2dd   :  { %v2107_v53 = vsel %vm2011_vm0, %v1995_v2, 0.0  ;;  %v1612_v0 = vmax.f32 %v5027_v18, 0.0  ;;  %v4008_v27 = vsel %vm2011_vm0, %v3934_v54, 0.0  ;;  %v2254_v42 = vadd.f32 %v2253_v51, %v2252_v28  ;;  %v1885_v2 = vpop.permute.xlu1 %1884  ;;  %v10784_v16 = vld [vmem:[#allocation10_spill] sm:$0xff] }
 0x2de   :  { %v2108_v12 = vadd.f32 %v2107_v53, %v2106_v50  ;;  %v3873_v49 = vsel %vm2011_vm0, %v3762_v58, 0.0  ;;  %v3699_v45 = vmax.f32 %v5091_v43, 0.0  ;;  %v1494_v56 = vpop.f32.mrb[100].mxu0  ;;  %v2255_v50 = vsel %vm2011_vm0, %v2175_v32, 0.0  ;;  %v5414_v53 = vld [vmem:[%s10613_s0 + $0x268] sm:$0xff] }
 0x2df   :  { %v3874_v36 = vadd.f32 %v3873_v49, %v3872_v38  ;;  %v1996_v23 = vmul.f32 %v1875_v55, %v1612_v0  ;;  %v5028_v7 = vadd.f32 %v1494_v56, %v10782_v26  ;;  %v3581_v17 = vpop.f32.mrb[100].mxu1  ;;  %v1496_v4 = vpop.f32.mrb[101].mxu0  ;;  %v2176_v5 = vmul.f32 %v5412_v37, %v5412_v37 }
 0x2e0   :  { %v3763_v59 = vmul.f32 %v3699_v45, %v1875_v55  ;;  %v5092_v44 = vadd.f32 %v3581_v17, %v10782_v26  ;;  %v3583_v41 = vpop.f32.mrb[101].mxu1  ;;  %v4007_v38 = vadd.f32 %v4006_v14, %v4005_v63  ;;  %v3935_v40 = vmul.f32 %v5413_v10, %v5413_v10  ;;  %v5415_v45 = vld [vmem:[%s10613_s0 + $0x98] sm:$0xff]  ;;  %v1890_v26 = vpop.permute.xlu0 %1889 }
 0x2e1   :  { %v2109_v61 = vsel %vm2011_vm0, %v1996_v23, 0.0  ;;  %v1613_v46 = vmax.f32 %v5028_v7, 0.0  ;;  %v3936_v0 = vmul.f32 %v5414_v53, %v5414_v53  ;;  %v2256_v33 = vadd.f32 %v2255_v50, %v2254_v42 }
 0x2e2   :  { %v2110_v35 = vadd.f32 %v2109_v61, %v2108_v12  ;;  %v3875_v25 = vsel %vm2011_vm0, %v3763_v59, 0.0  ;;  %v3700_v31 = vmax.f32 %v5092_v44, 0.0  ;;  %v1499_v13 = vpop.f32.mrb[102].mxu0  ;;  %v2177_v56 = vmul.f32 %v5415_v45, %v5415_v45  ;;  %v10785_v44 = vld [vmem:[#allocation11_spill] sm:$0xff] }
 0x2e3   :  { %v3876_v3 = vadd.f32 %v3875_v25, %v3874_v36  ;;  %v1997_v39 = vmul.f32 %v1880_v21, %v1613_v46  ;;  %v5029_v62 = vadd.f32 %v1499_v13, %v10783_v11  ;;  %v3586_v1 = vpop.f32.mrb[102].mxu1  ;;  %v1501_v60 = vpop.f32.mrb[103].mxu0  ;;  %v2257_v9 = vsel %vm2011_vm0, %v2176_v5, 0.0  ;;  %v5416_v25 = vld [vmem:[%s10613_s0 + $0xa0] sm:$0xff] }
 0x2e4   :  { %v3764_v47 = vmul.f32 %v3700_v31, %v1880_v21  ;;  %v5093_v52 = vadd.f32 %v3586_v1, %v10783_v11  ;;  %v3588_v20 = vpop.f32.mrb[103].mxu1  ;;  %v4009_v23 = vadd.f32 %v4008_v27, %v4007_v38  ;;  %v4010_v54 = vsel %vm2011_vm0, %v3935_v40, 0.0  ;;  %v5417_v27 = vld [vmem:[%s10613_s0 + $0x270] sm:$0xff] }
 0x2e5   :  { %v2111_v6 = vsel %vm2011_vm0, %v1997_v39, 0.0  ;;  %v1614_v30 = vmax.f32 %v5029_v62, 0.0  ;;  %v4012_v51 = vsel %vm2011_vm0, %v3936_v0, 0.0  ;;  %v2258_v61 = vadd.f32 %v2257_v9, %v2256_v33  ;;  %v1895_v39 = vpop.permute.xlu1 %1894  ;;  %v10786_v20 = vld [vmem:[#allocation12_spill] sm:$0xff] }
 0x2e6   :  { %v2112_v34 = vadd.f32 %v2111_v6, %v2110_v35  ;;  %v3877_v18 = vsel %vm2011_vm0, %v3764_v47, 0.0  ;;  %v3701_v15 = vmax.f32 %v5093_v52, 0.0  ;;  %v1504_v22 = vpop.f32.mrb[104].mxu0  ;;  %v2259_v35 = vsel %vm2011_vm0, %v2177_v56, 0.0  ;;  %v5418_v6 = vld [vmem:[%s10613_s0 + $0x278] sm:$0xff] }
 0x2e7   :  { %v3878_v58 = vadd.f32 %v3877_v18, %v3876_v3  ;;  %v1998_v43 = vmul.f32 %v1885_v2, %v1614_v30  ;;  %v5030_v8 = vadd.f32 %v1504_v22, %v10784_v16  ;;  %v3591_v19 = vpop.f32.mrb[104].mxu1  ;;  %v1506_v48 = vpop.f32.mrb[105].mxu0  ;;  %v2178_v31 = vmul.f32 %v5416_v25, %v5416_v25 }
 0x2e8   :  { %v3765_v55 = vmul.f32 %v3701_v15, %v1885_v2  ;;  %v5094_v12 = vadd.f32 %v3591_v19, %v10784_v16  ;;  %v3593_v49 = vpop.f32.mrb[105].mxu1  ;;  %v4011_v3 = vadd.f32 %v4010_v54, %v4009_v23  ;;  %v3937_v42 = vmul.f32 %v5417_v27, %v5417_v27  ;;  %v5419_v15 = vld [vmem:[%s10613_s0 + $0xa8] sm:$0xff]  ;;  %v1900_v16 = vpop.permute.xlu0 %1899 }
 0x2e9   :  { %v2113_v24 = vsel %vm2011_vm0, %v1998_v43, 0.0  ;;  %v1615_v36 = vmax.f32 %v5030_v8, 0.0  ;;  %v3938_v30 = vmul.f32 %v5418_v6, %v5418_v6  ;;  %v2260_v38 = vadd.f32 %v2259_v35, %v2258_v61 }
 0x2ea   :  { %v2114_v7 = vadd.f32 %v2113_v24, %v2112_v34  ;;  %v3879_v17 = vsel %vm2011_vm0, %v3765_v55, 0.0  ;;  %v3702_v4 = vmax.f32 %v5094_v12, 0.0  ;;  %v1509_v57 = vpop.f32.mrb[106].mxu0  ;;  %v2179_v22 = vmul.f32 %v5419_v15, %v5419_v15  ;;  %v10787_v12 = vld [vmem:[#allocation13_spill] sm:$0xff] }
 0x2eb   :  { %v3880_v28 = vadd.f32 %v3879_v17, %v3878_v58  ;;  %v1999_v59 = vmul.f32 %v1890_v26, %v1615_v36  ;;  %v5031_v41 = vadd.f32 %v1509_v57, %v10785_v44  ;;  %v3596_v29 = vpop.f32.mrb[106].mxu1  ;;  %v1511_v32 = vpop.f32.mrb[107].mxu0  ;;  %v2261_v10 = vsel %vm2011_vm0, %v2178_v31, 0.0  ;;  %v5420_v17 = vld [vmem:[%s10613_s0 + $0xb0] sm:$0xff] }
 0x2ec   :  { %v3766_v46 = vmul.f32 %v3702_v4, %v1890_v26  ;;  %v5095_v63 = vadd.f32 %v3596_v29, %v10785_v44  ;;  %v3598_v21 = vpop.f32.mrb[107].mxu1  ;;  %v4013_v43 = vadd.f32 %v4012_v51, %v4011_v3  ;;  %v4014_v0 = vsel %vm2011_vm0, %v3937_v42, 0.0  ;;  %v5421_v51 = vld [vmem:[%s10613_s0 + $0x280] sm:$0xff] }
 0x2ed   :  { %v2115_v13 = vsel %vm2011_vm0, %v1999_v59, 0.0  ;;  %v1616_v14 = vmax.f32 %v5031_v41, 0.0  ;;  %v4016_v9 = vsel %vm2011_vm0, %v3938_v30, 0.0  ;;  %v2262_v24 = vadd.f32 %v2261_v10, %v2260_v38  ;;  %v1905_v59 = vpop.permute.xlu1 %1904  ;;  %v10788_v21 = vld [vmem:[#allocation14_spill] sm:$0xff] }
 0x2ee   :  { %v2116_v11 = vadd.f32 %v2115_v13, %v2114_v7  ;;  %v3881_v62 = vsel %vm2011_vm0, %v3766_v46, 0.0  ;;  %v3703_v1 = vmax.f32 %v5095_v63, 0.0  ;;  %v1514_v60 = vpop.f32.mrb[108].mxu0  ;;  %v2263_v7 = vsel %vm2011_vm0, %v2179_v22, 0.0  ;;  %v5422_v13 = vld [vmem:[%s10613_s0 + $0x288] sm:$0xff] }
 0x2ef   :  { %v3882_v47 = vadd.f32 %v3881_v62, %v3880_v28  ;;  %v2000_v52 = vmul.f32 %v1895_v39, %v1616_v14  ;;  %v5032_v50 = vadd.f32 %v1514_v60, %v10786_v20  ;;  %v3601_v37 = vpop.f32.mrb[108].mxu1  ;;  %v1516_v5 = vpop.f32.mrb[109].mxu0  ;;  %v2180_v4 = vmul.f32 %v5420_v17, %v5420_v17 }
 0x2f0   :  { %v3767_v2 = vmul.f32 %v3703_v1, %v1895_v39  ;;  %v5096_v34 = vadd.f32 %v3601_v37, %v10786_v20  ;;  %v3603_v18 = vpop.f32.mrb[109].mxu1  ;;  %v4015_v28 = vadd.f32 %v4014_v0, %v4013_v43  ;;  %v3939_v61 = vmul.f32 %v5421_v51, %v5421_v51  ;;  %v7714_v1 = vld [vmem:[%s10613_s0 + $0xb8] sm:$0xff]  ;;  %v1910_v20 = vpop.permute.xlu0 %1909 }
 0x2f1   :  { %v2117_v40 = vsel %vm2011_vm0, %v2000_v52, 0.0  ;;  %v1617_v58 = vmax.f32 %v5032_v50, 0.0  ;;  %v3940_v14 = vmul.f32 %v5422_v13, %v5422_v13  ;;  %v2264_v3 = vadd.f32 %v2263_v7, %v2262_v24 }
 0x2f2   :  { %v2118_v8 = vadd.f32 %v2117_v40, %v2116_v11  ;;  %v3883_v19 = vsel %vm2011_vm0, %v3767_v2, 0.0  ;;  %v3704_v48 = vmax.f32 %v5096_v34, 0.0  ;;  %v1519_v53 = vpop.f32.mrb[110].mxu0  ;;  %v2181_v60 = vmul.f32 %v7714_v1, %v7714_v1  ;;  %v10789_v34 = vld [vmem:[#allocation15_spill] sm:$0xff] }
 0x2f3   :  { %v3884_v33 = vadd.f32 %v3883_v19, %v3882_v47  ;;  %v2001_v55 = vmul.f32 %v1900_v16, %v1617_v58  ;;  %v5033_v49 = vadd.f32 %v1519_v53, %v10787_v12  ;;  %v3606_v45 = vpop.f32.mrb[110].mxu1  ;;  %v1521_v56 = vpop.f32.mrb[111].mxu0  ;;  %v2265_v27 = vsel %vm2011_vm0, %v2180_v4, 0.0  ;;  %v7729_v19 = vld [vmem:[%s10613_s0 + $0xc0] sm:$0xff] }
 0x2f4   :  { %v3768_v36 = vmul.f32 %v3704_v48, %v1900_v16  ;;  %v5097_v23 = vadd.f32 %v3606_v45, %v10787_v12  ;;  %v3608_v26 = vpop.f32.mrb[111].mxu1  ;;  %v4017_v52 = vadd.f32 %v4016_v9, %v4015_v28  ;;  %v4018_v30 = vsel %vm2011_vm0, %v3939_v61, 0.0  ;;  %v5425_v9 = vld [vmem:[%s10613_s0 + $0x290] sm:$0xff] }
 0x2f5   :  { %v2119_v57 = vsel %vm2011_vm0, %v2001_v55, 0.0  ;;  %v1618_v54 = vmax.f32 %v5033_v49, 0.0  ;;  %v4020_v10 = vsel %vm2011_vm0, %v3940_v14, 0.0  ;;  %v2266_v40 = vadd.f32 %v2265_v27, %v2264_v3  ;;  %v1915_v55 = vpop.permute.xlu1 %1914  ;;  %v10790_v26 = vld [vmem:[#allocation16_spill] sm:$0xff] }
 0x2f6   :  { %v2120_v44 = vadd.f32 %v2119_v57, %v2118_v8  ;;  %v3885_v41 = vsel %vm2011_vm0, %v3768_v36, 0.0  ;;  %v3705_v29 = vmax.f32 %v5097_v23, 0.0  ;;  %v1524_v32 = vpop.f32.mrb[112].mxu0  ;;  %v2267_v8 = vsel %vm2011_vm0, %v2181_v60, 0.0  ;;  %v5426_v57 = vld [vmem:[%s10613_s0 + $0x298] sm:$0xff] }
 0x2f7   :  { %v3886_v46 = vadd.f32 %v3885_v41, %v3884_v33  ;;  %v2002_v63 = vmul.f32 %v1905_v59, %v1618_v54  ;;  %v5034_v35 = vadd.f32 %v1524_v32, %v10788_v21  ;;  %v3611_v25 = vpop.f32.mrb[112].mxu1  ;;  %v1526_v31 = vpop.f32.mrb[113].mxu0  ;;  %v2182_v48 = vmul.f32 %v7729_v19, %v7729_v19 }
 0x2f8   :  { %v3769_v39 = vmul.f32 %v3705_v29, %v1905_v59  ;;  %v5098_v11 = vadd.f32 %v3611_v25, %v10788_v21  ;;  %v3613_v62 = vpop.f32.mrb[113].mxu1  ;;  %v4019_v33 = vadd.f32 %v4018_v30, %v4017_v52  ;;  %v3941_v24 = vmul.f32 %v5425_v9, %v5425_v9  ;;  %v7746_v29 = vld [vmem:[%s10613_s0 + $0xc8] sm:$0xff]  ;;  %v1920_v21 = vpop.permute.xlu0 %1919  ;;  %v7778_v9 = vld [vmem:[%s10613_s0 + $0xd8] sm:$0xff] }
 0x2f9   :  { %v2121_v42 = vsel %vm2011_vm0, %v2002_v63, 0.0  ;;  %v1619_v47 = vmax.f32 %v5034_v35, 0.0  ;;  %v3942_v54 = vmul.f32 %v5426_v57, %v5426_v57  ;;  %v2268_v28 = vadd.f32 %v2267_v8, %v2266_v40  ;;  %v5429_v40 = vld [vmem:[%s10613_s0 + $0x2a0] sm:$0xff]  ;;  %v10792_v8 = vld [vmem:[#allocation18_spill] sm:$0xff] }
 0x2fa   :  { %v2122_v50 = vadd.f32 %v2121_v42, %v2120_v44  ;;  %v3887_v37 = vsel %vm2011_vm0, %v3769_v39, 0.0  ;;  %v3706_v5 = vmax.f32 %v5098_v11, 0.0  ;;  %v1529_v6 = vpop.f32.mrb[114].mxu0  ;;  %v2183_v32 = vmul.f32 %v7746_v29, %v7746_v29  ;;  %v10791_v11 = vld [vmem:[#allocation17_spill] sm:$0xff] }
 0x2fb   :  { %v3888_v38 = vadd.f32 %v3887_v37, %v3886_v46  ;;  %v2003_v2 = vmul.f32 %v1910_v20, %v1619_v47  ;;  %v5035_v18 = vadd.f32 %v1529_v6, %v10789_v34  ;;  %v3616_v15 = vpop.f32.mrb[114].mxu1  ;;  %v1531_v22 = vpop.f32.mrb[115].mxu0  ;;  %v2269_v51 = vsel %vm2011_vm0, %v2182_v48, 0.0 }
 0x2fc   :  { %v3770_v58 = vmul.f32 %v3706_v5, %v1910_v20  ;;  %v5099_v43 = vadd.f32 %v3616_v15, %v10789_v34  ;;  %v3618_v16 = vpop.f32.mrb[115].mxu1  ;;  %v4021_v63 = vadd.f32 %v4020_v10, %v4019_v33  ;;  %v4022_v14 = vsel %vm2011_vm0, %v3941_v24, 0.0  ;;  %v7761_v5 = vld [vmem:[%s10613_s0 + $0xd0] sm:$0xff]  ;;  %v1925_v34 = vpop.permute.xlu1 %1924  ;;  %v5430_v33 = vld [vmem:[%s10613_s0 + $0x2a8] sm:$0xff] }
 0x2fd   :  { %v2123_v53 = vsel %vm2011_vm0, %v2003_v2, 0.0  ;;  %v1620_v0 = vmax.f32 %v5035_v18, 0.0  ;;  %v4024_v42 = vsel %vm2011_vm0, %v3942_v54, 0.0  ;;  %v2270_v47 = vadd.f32 %v2269_v51, %v2268_v28 }
 0x2fe   :  { %v2124_v12 = vadd.f32 %v2123_v53, %v2122_v50  ;;  %v3889_v49 = vsel %vm2011_vm0, %v3770_v58, 0.0  ;;  %v3707_v45 = vmax.f32 %v5099_v43, 0.0  ;;  %v1534_v56 = vpop.f32.mrb[116].mxu0  ;;  %v2271_v37 = vsel %vm2011_vm0, %v2183_v32, 0.0  ;;  %v10793_v32 = vld [vmem:[#allocation19_spill] sm:$0xff] }
 0x2ff   :  { %v3890_v36 = vadd.f32 %v3889_v49, %v3888_v38  ;;  %v2004_v23 = vmul.f32 %v1915_v55, %v1620_v0  ;;  %v5036_v7 = vadd.f32 %v1534_v56, %v10790_v26  ;;  %v3621_v17 = vpop.f32.mrb[116].mxu1  ;;  %v1536_v4 = vpop.f32.mrb[117].mxu0  ;;  %v2184_v6 = vmul.f32 %v7761_v5, %v7761_v5 }
 0x300   :  { %v3771_v59 = vmul.f32 %v3707_v45, %v1915_v55  ;;  %v5100_v44 = vadd.f32 %v3621_v17, %v10790_v26  ;;  %v3623_v41 = vpop.f32.mrb[117].mxu1  ;;  %v4023_v2 = vadd.f32 %v4022_v14, %v4021_v63  ;;  %v3943_v58 = vmul.f32 %v5429_v40, %v5429_v40  ;;  %v1930_v17 = vpop.permute.xlu0 %1929  ;;  %v7793_v14 = vld [vmem:[%s10613_s0 + $0xe0] sm:$0xff] }
 0x301   :  { %v2125_v61 = vsel %vm2011_vm0, %v2004_v23, 0.0  ;;  %v1621_v46 = vmax.f32 %v5036_v7, 0.0  ;;  %v3944_v55 = vmul.f32 %v5430_v33, %v5430_v33  ;;  %v2185_v24 = vmul.f32 %v7778_v9, %v7778_v9 }
 0x302   :  { %v2126_v35 = vadd.f32 %v2125_v61, %v2124_v12  ;;  %v3891_v25 = vsel %vm2011_vm0, %v3771_v59, 0.0  ;;  %v3708_v31 = vmax.f32 %v5100_v44, 0.0  ;;  %v1539_v13 = vpop.f32.mrb[118].mxu0  ;;  %v2272_v12 = vadd.f32 %v2271_v37, %v2270_v47 }
 0x303   :  { %v3892_v3 = vadd.f32 %v3891_v25, %v3890_v36  ;;  %v2005_v39 = vmul.f32 %v1920_v21, %v1621_v46  ;;  %v5037_v62 = vadd.f32 %v1539_v13, %v10791_v11  ;;  %v3626_v60 = vpop.f32.mrb[118].mxu1  ;;  %v1541_v27 = vpop.f32.mrb[119].mxu0  ;;  %v2273_v36 = vsel %vm2011_vm0, %v2184_v6, 0.0 }
 0x304   :  { %v3772_v52 = vmul.f32 %v3708_v31, %v1920_v21  ;;  %v5101_v20 = vadd.f32 %v3626_v60, %v10791_v11  ;;  %v3628_v50 = vpop.f32.mrb[119].mxu1  ;;  %v4025_v7 = vadd.f32 %v4024_v42, %v4023_v2  ;;  %v4026_v59 = vsel %vm2011_vm0, %v3943_v58, 0.0  ;;  %v1935_v60 = vpop.permute.xlu1 %1934 }
 0x305   :  { %v2127_v30 = vsel %vm2011_vm0, %v2005_v39, 0.0  ;;  %v1622_v38 = vmax.f32 %v5037_v62, 0.0  ;;  %v4028_v63 = vsel %vm2011_vm0, %v3944_v55, 0.0  ;;  %v2274_v21 = vadd.f32 %v2273_v36, %v2272_v12  ;;  %v1940_v33 = vpop.permute.xlu0 %1939 }
 0x306   :  { %v2128_v18 = vadd.f32 %v2127_v30, %v2126_v35  ;;  %v3893_v15 = vsel %vm2011_vm0, %v3772_v52, 0.0  ;;  %v3709_v22 = vmax.f32 %v5101_v20, 0.0  ;;  %v1544_v10 = vpop.f32.mrb[120].mxu0  ;;  %v2275_v13 = vsel %vm2011_vm0, %v2185_v24, 0.0  ;;  %v7802_v20 = vld [vmem:[%s10613_s0 + $0x2b0] sm:$0xff]  ;;  %v10795_v30 = vld [vmem:[#allocation20_spill] sm:$0xff] }
 0x307   :  { %v3894_v43 = vadd.f32 %v3893_v15, %v3892_v3  ;;  %v2006_v16 = vmul.f32 %v1925_v34, %v1622_v38  ;;  %v5038_v48 = vadd.f32 %v1544_v10, %v10792_v8  ;;  %v3631_v53 = vpop.f32.mrb[120].mxu1  ;;  %v1546_v0 = vpop.f32.mrb[121].mxu0  ;;  %v2186_v3 = vmul.f32 %v7793_v14, %v7793_v14  ;;  %10794 = vst [vmem:[#allocation3_spill] sm:$0xff] %v7802_v20 }
 0x308   :  { %v3773_v49 = vmul.f32 %v3709_v22, %v1925_v34  ;;  %v5102_v45 = vadd.f32 %v3631_v53, %v10792_v8  ;;  %v3633_v56 = vpop.f32.mrb[121].mxu1  ;;  %v4027_v62 = vadd.f32 %v4026_v59, %v4025_v7  ;;  %v3945_v50 = vmul.f32 %v7802_v20, %v7802_v20  ;;  %v5526_v20 = vld [vmem:[%s10613_s0 + $0x98] sm:$0xff] }
 0x309   :  { %v2129_v23 = vsel %vm2011_vm0, %v2006_v16, 0.0  ;;  %v1623_v26 = vmax.f32 %v5038_v48, 0.0  ;;  %v2276_v22 = vadd.f32 %v2275_v13, %v2274_v21  ;;  %v2277_v8 = vsel %vm2011_vm0, %v2186_v3, 0.0 }
 0x30a   :  { %v2130_v4 = vadd.f32 %v2129_v23, %v2128_v18  ;;  %v3895_v57 = vsel %vm2011_vm0, %v3773_v49, 0.0  ;;  %v3710_v54 = vmax.f32 %v5102_v45, 0.0  ;;  %v1549_v28 = vpop.f32.mrb[122].mxu0  ;;  %v5434_v18 = vld [vmem:[%s10613_s0 + $0x2b8] sm:$0xff]  ;;  %v4029_v0 = vadd.f32 %v4028_v63, %v4027_v62  ;;  %v10796_v23 = vld [vmem:[#allocation21_spill] sm:$0xff] }
 0x30b   :  { %v3896_v44 = vadd.f32 %v3895_v57, %v3894_v43  ;;  %v2007_v41 = vmul.f32 %v1930_v17, %v1623_v26  ;;  %v5039_v51 = vadd.f32 %v1549_v28, %v10793_v32  ;;  %v3636_v61 = vpop.f32.mrb[122].mxu1  ;;  %v1551_v46 = vpop.f32.mrb[123].mxu0  ;;  %v3946_v15 = vmul.f32 %v5434_v18, %v5434_v18  ;;  %v7814_v43 = vld [vmem:[%s10613_s0 + $0xe8] sm:$0xff] }
 0x30c   :  { %v3774_v35 = vmul.f32 %v3710_v54, %v1930_v17  ;;  %v5103_v25 = vadd.f32 %v3636_v61, %v10793_v32  ;;  %v3638_v31 = vpop.f32.mrb[123].mxu1  ;;  %v2187_v16 = vmul.f32 %v7814_v43, %v7814_v43  ;;  %v4030_v56 = vsel %vm2011_vm0, %v3945_v50, 0.0  ;;  %v1945_v46 = vpop.permute.xlu1 %1944 }
 0x30d   :  { %v2131_v39 = vsel %vm2011_vm0, %v2007_v41, 0.0  ;;  %v1624_v11 = vmax.f32 %v5039_v51, 0.0  ;;  %v4031_v61 = vadd.f32 %v4030_v56, %v4029_v0  ;;  %v7838_v31 = vld [vmem:[%s10613_s0 + $0x2c0] sm:$0xff] }
 0x30e   :  { %v2132_v27 = vadd.f32 %v2131_v39, %v2130_v4  ;;  %v3897_v42 = vsel %vm2011_vm0, %v3774_v35, 0.0  ;;  %v3711_v47 = vmax.f32 %v5103_v25, 0.0  ;;  %v1554_v52 = vpop.f32.mrb[124].mxu0  ;;  %v2278_v4 = vadd.f32 %v2277_v8, %v2276_v22  ;;  %10797 = vst [vmem:[#allocation4_spill] sm:$0xff] %v7838_v31  ;;  %v7864_v22 = vld [vmem:[%s10613_s0 + $0x100] sm:$0xff] }
 0x30f   :  { %v3898_v37 = vadd.f32 %v3897_v42, %v3896_v44  ;;  %v2008_v6 = vmul.f32 %v1935_v60, %v1624_v11  ;;  %v5040_v38 = vadd.f32 %v1554_v52, %v10795_v30  ;;  %v3641_v2 = vpop.f32.mrb[124].mxu1  ;;  %v1556_v34 = vpop.f32.mrb[125].mxu0  ;;  %v2279_v59 = vsel %vm2011_vm0, %v2187_v16, 0.0  ;;  %v7828_v44 = vld [vmem:[%s10613_s0 + $0xf0] sm:$0xff] }
 0x310   :  { %v3775_v10 = vmul.f32 %v3711_v47, %v1935_v60  ;;  %v5104_v40 = vadd.f32 %v3641_v2, %v10795_v30  ;;  %v3643_v58 = vpop.f32.mrb[125].mxu1  ;;  %v2188_v41 = vmul.f32 %v7828_v44, %v7828_v44  ;;  %v4032_v25 = vsel %vm2011_vm0, %v3946_v15, 0.0  ;;  %v7845_v60 = vld [vmem:[%s10613_s0 + $0xf8] sm:$0xff] }
 0x311   :  { %v2133_v48 = vsel %vm2011_vm0, %v2008_v6, 0.0  ;;  %v1625_v53 = vmax.f32 %v5040_v38, 0.0  ;;  %v3947_v13 = vmul.f32 %v7838_v31, %v7838_v31  ;;  %v2280_v11 = vadd.f32 %v2279_v59, %v2278_v4  ;;  %v7855_v6 = vld [vmem:[%s10613_s0 + $0x2c8] sm:$0xff]  ;;  %v5525_v31 = vld [vmem:[%s10613_s0 + $0x60] sm:$0xff] }
 0x312   :  { %v2134_v55 = vadd.f32 %v2133_v48, %v2132_v27  ;;  %v3899_v12 = vsel %vm2011_vm0, %v3775_v10, 0.0  ;;  %v3712_v49 = vmax.f32 %v5104_v40, 0.0  ;;  %v1559_v45 = vpop.f32.mrb[126].mxu0  ;;  %v2189_v27 = vmul.f32 %v7845_v60, %v7845_v60  ;;  %10798 = vst [vmem:[#allocation5_spill] sm:$0xff] %v7855_v6  ;;  %v7872_v48 = vld [vmem:[%s10613_s0 + $0x2d0] sm:$0xff] }
 0x313   :  { %v3900_v24 = vadd.f32 %v3899_v12, %v3898_v37  ;;  %v2009_v36 = vmul.f32 %v1940_v33, %v1625_v53  ;;  %v5041_v26 = vadd.f32 %v1559_v45, %v10796_v23  ;;  %v3646_v7 = vpop.f32.mrb[126].mxu1  ;;  %v1561_v17 = vpop.f32.mrb[127].mxu0  ;;  %v2281_v42 = vsel %vm2011_vm0, %v2188_v41, 0.0  ;;  %10799 = vst [vmem:[#allocation6_spill] sm:$0xff] %v7872_v48  ;;  %v7879_v12 = vld [vmem:[%s10613_s0 + $0x108] sm:$0xff] }
 0x314   :  { %v3776_v57 = vmul.f32 %v3712_v49, %v1940_v33  ;;  %v5105_v54 = vadd.f32 %v3646_v7, %v10796_v23  ;;  %v3648_v28 = vpop.f32.mrb[127].mxu1  ;;  %v4033_v52 = vadd.f32 %v4032_v25, %v4031_v61  ;;  %v3948_v30 = vmul.f32 %v7855_v6, %v7855_v6  ;;  %v7887_v23 = vld [vmem:[%s10613_s0 + $0x2d8] sm:$0xff] }
 0x315   :  { %v2135_v32 = vsel %vm2011_vm0, %v2009_v36, 0.0  ;;  %v1626_v51 = vmax.f32 %v5041_v26, 0.0  ;;  %v4034_v38 = vsel %vm2011_vm0, %v3947_v13, 0.0  ;;  %v2282_v34 = vadd.f32 %v2281_v42, %v2280_v11  ;;  %10800 = vst [vmem:[#allocation7_spill] sm:$0xff] %v7887_v23  ;;  %v7896_v28 = vld [vmem:[%s10613_s0 + $0x110] sm:$0xff] }
 0x316   :  { %v2136_v63 = vadd.f32 %v2135_v32, %v2134_v55  ;;  %v3901_v21 = vsel %vm2011_vm0, %v3776_v57, 0.0  ;;  %v3713_v35 = vmax.f32 %v5105_v54, 0.0  ;;  %v2283_v15 = vsel %vm2011_vm0, %v2189_v27, 0.0 }
 0x317   :  { %v3902_v3 = vadd.f32 %v3901_v21, %v3900_v24  ;;  %v2010_v39 = vmul.f32 %v1945_v46, %v1626_v51  ;;  %v2190_v10 = vmul.f32 %v7864_v22, %v7864_v22  ;;  %v4035_v58 = vadd.f32 %v4034_v38, %v4033_v52 }
 0x318   :  { %v3777_v62 = vmul.f32 %v3713_v35, %v1945_v46  ;;  %v4036_v8 = vsel %vm2011_vm0, %v3948_v30, 0.0  ;;  %v3949_v53 = vmul.f32 %v7872_v48, %v7872_v48  ;;  %v2284_v33 = vadd.f32 %v2283_v15, %v2282_v34 }
 0x319   :  { %v2137_v47 = vsel %vm2011_vm0, %v2010_v39, 0.0  ;;  %v2191_v49 = vmul.f32 %v7879_v12, %v7879_v12  ;;  %v2285_v45 = vsel %vm2011_vm0, %v2190_v10, 0.0  ;;  %v4037_v24 = vadd.f32 %v4036_v8, %v4035_v58  ;;  %v7947_v10 = vld [vmem:[%s10613_s0 + $0x2f0] sm:$0xff] }
 0x31a   :  { %v2138_v50 = vadd.f32 %v2137_v47, %v2136_v63  ;;  %v3903_v37 = vsel %vm2011_vm0, %v3777_v62, 0.0  ;;  %v3950_v26 = vmul.f32 %v7887_v23, %v7887_v23  ;;  %v4038_v7 = vsel %vm2011_vm0, %v3949_v53, 0.0  ;;  %v7907_v63 = vld [vmem:[%s10613_s0 + $0x2e0] sm:$0xff]  ;;  %v7928_v47 = vld [vmem:[%s10613_s0 + $0x2e8] sm:$0xff]  ;;  %10803 = vst [vmem:[#allocation10_spill] sm:$0xff] %v7947_v10 }
 0x31b   :  { %v3904_v2 = vadd.f32 %v3903_v37, %v3902_v3  ;;  %v2286_v4 = vadd.f32 %v2285_v45, %v2284_v33  ;;  %v2287_v54 = vsel %vm2011_vm0, %v2191_v49, 0.0  ;;  %v2192_v59 = vmul.f32 %v7896_v28, %v7896_v28  ;;  %10801 = vst [vmem:[#allocation8_spill] sm:$0xff] %v7907_v63  ;;  %v7916_v3 = vld [vmem:[%s10613_s0 + $0x118] sm:$0xff]  ;;  %10802 = vst [vmem:[#allocation9_spill] sm:$0xff] %v7928_v47 }
 0x31c   :  { %v2139_v18 = vrot.slane %v2138_v50, 4  ;;  %v2145_v41 = vstv %s10617_s4  ;;  %v4039_v51 = vadd.f32 %v4038_v7, %v4037_v24  ;;  %v4040_v46 = vsel %vm2011_vm0, %v3950_v26, 0.0  ;;  %v7962_v33 = vld [vmem:[%s10613_s0 + $0x2f8] sm:$0xff]  ;;  %v7971_v24 = vld [vmem:[%s10613_s0 + $0x130] sm:$0xff] }
 0x31d   :  { %v3905_v40 = vrot.slane %v3904_v2, 4  ;;  %v3951_v21 = vmul.f32 %v7907_v63, %v7907_v63  ;;  %v2288_v25 = vadd.f32 %v2287_v54, %v2286_v4  ;;  %v2193_v39 = vmul.f32 %v7916_v3, %v7916_v3  ;;  %10804 = vst [vmem:[#allocation11_spill] sm:$0xff] %v7962_v33  ;;  %v7986_v54 = vld [vmem:[%s10613_s0 + $0x138] sm:$0xff] }
 0x31e   :  { %v2140_v16 = vadd.f32 %v2139_v18, %v2138_v50  ;;  %v2289_v11 = vsel %vm2011_vm0, %v2192_v59, 0.0  ;;  %v4041_v27 = vadd.f32 %v4040_v46, %v4039_v51  ;;  %v3952_v52 = vmul.f32 %v7928_v47, %v7928_v47  ;;  %v7994_v51 = vld [vmem:[%s10613_s0 + $0x308] sm:$0xff]  ;;  %v8355_v47 = vld [vmem:[%s10613_s0 + $0x1f0] sm:$0xff] }
 0x31f   :  { %v3906_v0 = vadd.f32 %v3905_v40, %v3904_v2  ;;  %v4042_v50 = vsel %vm2011_vm0, %v3951_v21, 0.0  ;;  %v2290_v30 = vadd.f32 %v2289_v11, %v2288_v25  ;;  %v2291_v38 = vsel %vm2011_vm0, %v2193_v39, 0.0  ;;  %v7939_v2 = vld [vmem:[%s10613_s0 + $0x120] sm:$0xff]  ;;  %10806 = vst [vmem:[#allocation13_spill] sm:$0xff] %v7994_v51 }
 0x320   :  { %v2141_v55 = vrot.slane %v2140_v16, 2  ;;  %v2194_v34 = vmul.f32 %v7939_v2, %v7939_v2  ;;  %v4043_v18 = vadd.f32 %v4042_v50, %v4041_v27  ;;  %v4044_v15 = vsel %vm2011_vm0, %v3952_v52, 0.0  ;;  %v8003_v25 = vld [vmem:[%s10613_s0 + $0x140] sm:$0xff] }
 0x321   :  { %v3907_v56 = vrot.slane %v3906_v0, 2  ;;  %v3953_v40 = vmul.f32 %v7947_v10, %v7947_v10  ;;  %v2292_v58 = vadd.f32 %v2291_v38, %v2290_v30  ;;  %v2197_v59 = vmul.f32 %v7986_v54, %v7986_v54 }
 0x322   :  { %v2142_v36 = vadd.f32 %v2141_v55, %v2140_v16  ;;  %v7954_v16 = vld [vmem:[%s10613_s0 + $0x128] sm:$0xff]  ;;  %v2293_v53 = vsel %vm2011_vm0, %v2194_v34, 0.0  ;;  %v3954_v55 = vmul.f32 %v7962_v33, %v7962_v33  ;;  %v2198_v39 = vmul.f32 %v8003_v25, %v8003_v25  ;;  %v8323_v33 = vld [vmem:[%s10613_s0 + $0x1e0] sm:$0xff] }
 0x323   :  { %v3908_v17 = vadd.f32 %v3907_v56, %v3906_v0  ;;  %v2195_v8 = vmul.f32 %v7954_v16, %v7954_v16  ;;  %v4045_v0 = vadd.f32 %v4044_v15, %v4043_v18  ;;  %v4046_v49 = vsel %vm2011_vm0, %v3953_v40, 0.0  ;;  %v8026_v18 = vld [vmem:[%s10613_s0 + $0x318] sm:$0xff] }
 0x324   :  { %v2143_v57 = vrot.slane %v2142_v36, 1  ;;  %v2294_v45 = vadd.f32 %v2293_v53, %v2292_v58  ;;  %v4048_v7 = vsel %vm2011_vm0, %v3954_v55, 0.0  ;;  %v2301_v38 = vsel %vm2011_vm0, %v2198_v39, 0.0  ;;  %10808 = vst [vmem:[#allocation15_spill] sm:$0xff] %v8026_v18  ;;  %v8035_v53 = vld [vmem:[%s10613_s0 + $0x150] sm:$0xff] }
 0x325   :  { %v3909_v32 = vrot.slane %v3908_v17, 1  ;;  %v2295_v56 = vsel %vm2011_vm0, %v2195_v8, 0.0  ;;  %v4047_v26 = vadd.f32 %v4046_v49, %v4045_v0  ;;  %v3958_v15 = vmul.f32 %v8026_v18, %v8026_v18  ;;  %v8259_v18 = vld [vmem:[%s10613_s0 + $0x1c0] sm:$0xff] }
 0x326   :  { %v2144_v61 = vadd.f32 %v2143_v57, %v2142_v36  ;;  %v2196_v36 = vmul.f32 %v7971_v24, %v7971_v24  ;;  %v2296_v57 = vadd.f32 %v2295_v56, %v2294_v45  ;;  %v2200_v0 = vmul.f32 %v8035_v53, %v8035_v53  ;;  %v8043_v45 = vld [vmem:[%s10613_s0 + $0x320] sm:$0xff] }
 0x327   :  { %v3910_v35 = vadd.f32 %v3909_v32, %v3908_v17  ;;  %v7979_v17 = vld [vmem:[%s10613_s0 + $0x300] sm:$0xff]  ;;  %v4049_v32 = vadd.f32 %v4048_v7, %v4047_v26  ;;  %v4056_v49 = vsel %vm2011_vm0, %v3958_v15, 0.0  ;;  %10809 = vst [vmem:[#allocation16_spill] sm:$0xff] %v8043_v45  ;;  %v3959_v56 = vmul.f32 %v8043_v45, %v8043_v45  ;;  %v8050_v26 = vld [vmem:[%s10613_s0 + $0x158] sm:$0xff] }
 0x328   :  { %v7911_v13 = vadd.f32 %v2145_v41, %v2144_v61  ;;  %10805 = vst [vmem:[#allocation12_spill] sm:$0xff] %v7979_v17  ;;  %v3955_v4 = vmul.f32 %v7979_v17, %v7979_v17  ;;  %v3956_v61 = vmul.f32 %v7994_v51, %v7994_v51  ;;  %v2201_v7 = vmul.f32 %v8050_v26, %v8050_v26  ;;  %v8291_v51 = vld [vmem:[%s10613_s0 + $0x1d0] sm:$0xff] }
 0x329   :  { %v7921_v62 = vadd.f32 %v3910_v35, %v2145_v41  ;;  %v2297_v41 = vsel %vm2011_vm0, %v2196_v36, 0.0  ;;  %v2299_v35 = vsel %vm2011_vm0, %v2197_v59, 0.0  ;;  %v8058_v59 = vld [vmem:[%s10613_s0 + $0x328] sm:$0xff] }
 0x32a   :  { %v2147_v42 = vsel %vm2011_vm0, %v7911_v13, -inf  ;;  %v4050_v46 = vsel %vm2011_vm0, %v3955_v4, 0.0  ;;  %v2298_v21 = vadd.f32 %v2297_v41, %v2296_v57  ;;  %v4052_v27 = vsel %vm2011_vm0, %v3956_v61, 0.0  ;;  %10810 = vst [vmem:[#allocation17_spill] sm:$0xff] %v8058_v59 }
 0x32b   :  { %v3912_v37 = vsel %vm2011_vm0, %v7921_v62, -inf  ;;  %2148 = vmax.xlane.f32.xlu0 %v2147_v42  ;;  %v4051_v11 = vadd.f32 %v4050_v46, %v4049_v32  ;;  %v8011_v42 = vld [vmem:[%s10613_s0 + $0x310] sm:$0xff]  ;;  %v2305_v4 = vsel %vm2011_vm0, %v2200_v0, 0.0  ;;  %v3960_v41 = vmul.f32 %v8058_v59, %v8058_v59 }
 0x32c   :  { %3913 = vmax.xlane.f32.xlu1 %v3912_v37  ;;  %10807 = vst [vmem:[#allocation14_spill] sm:$0xff] %v8011_v42  ;;  %v3957_v52 = vmul.f32 %v8011_v42, %v8011_v42  ;;  %v2300_v50 = vadd.f32 %v2299_v35, %v2298_v21  ;;  %v8018_v37 = vld [vmem:[%s10613_s0 + $0x148] sm:$0xff]  ;;  %v4058_v32 = vsel %vm2011_vm0, %v3959_v56, 0.0  ;;  %v2307_v46 = vsel %vm2011_vm0, %v2201_v7, 0.0  ;;  %v8067_v21 = vld [vmem:[%s10613_s0 + $0x160] sm:$0xff]  ;;  %v8227_v59 = vld [vmem:[%s10613_s0 + $0x1b0] sm:$0xff] }
 0x32d   :  { %v2199_v30 = vmul.f32 %v8018_v37, %v8018_v37  ;;  %v4053_v34 = vadd.f32 %v4052_v27, %v4051_v11  ;;  %v2202_v35 = vmul.f32 %v8067_v21, %v8067_v21  ;;  %v4060_v11 = vsel %vm2011_vm0, %v3960_v41, 0.0  ;;  %v8075_v27 = vld [vmem:[%s10613_s0 + $0x330] sm:$0xff] }
 0x32e   :  { %v4054_v40 = vsel %vm2011_vm0, %v3957_v52, 0.0  ;;  %v2302_v58 = vadd.f32 %v2301_v38, %v2300_v50  ;;  %10811 = vst [vmem:[#allocation18_spill] sm:$0xff] %v8075_v27  ;;  %v3961_v52 = vmul.f32 %v8075_v27, %v8075_v27 }
 0x32f   :  { %v2303_v8 = vsel %vm2011_vm0, %v2199_v30, 0.0  ;;  %v4055_v55 = vadd.f32 %v4054_v40, %v4053_v34  ;;  %v8082_v30 = vld [vmem:[%s10613_s0 + $0x168] sm:$0xff]  ;;  %v2309_v34 = vsel %vm2011_vm0, %v2202_v35, 0.0  ;;  %v8090_v40 = vld [vmem:[%s10613_s0 + $0x338] sm:$0xff] }
 0x330   :  { %v2304_v36 = vadd.f32 %v2303_v8, %v2302_v58  ;;  %v2203_v38 = vmul.f32 %v8082_v30, %v8082_v30  ;;  %10812 = vst [vmem:[#allocation19_spill] sm:$0xff] %v8090_v40  ;;  %v3962_v58 = vmul.f32 %v8090_v40, %v8090_v40  ;;  %v4062_v8 = vsel %vm2011_vm0, %v3961_v52, 0.0  ;;  %v8195_v40 = vld [vmem:[%s10613_s0 + $0x1a0] sm:$0xff] }
 0x331   :  { %v4057_v57 = vadd.f32 %v4056_v49, %v4055_v55  ;;  %v8099_v49 = vld [vmem:[%s10613_s0 + $0x170] sm:$0xff] }
 0x332   :  { %v2306_v61 = vadd.f32 %v2305_v4, %v2304_v36  ;;  %v2311_v55 = vsel %vm2011_vm0, %v2203_v38, 0.0  ;;  %v2204_v56 = vmul.f32 %v8099_v49, %v8099_v49  ;;  %v4064_v7 = vsel %vm2011_vm0, %v3962_v58, 0.0  ;;  %v8107_v4 = vld [vmem:[%s10613_s0 + $0x340] sm:$0xff] }
 0x333   :  { %v4059_v39 = vadd.f32 %v4058_v32, %v4057_v57  ;;  %10813 = vst [vmem:[#allocation20_spill] sm:$0xff] %v8107_v4  ;;  %v3963_v57 = vmul.f32 %v8107_v4, %v8107_v4  ;;  %v8114_v32 = vld [vmem:[%s10613_s0 + $0x178] sm:$0xff] }
 0x334   :  { %v2308_v50 = vadd.f32 %v2307_v46, %v2306_v61  ;;  %v2205_v61 = vmul.f32 %v8114_v32, %v8114_v32  ;;  %v2313_v46 = vsel %vm2011_vm0, %v2204_v56, 0.0 }
 0x335   :  { %v4061_v15 = vadd.f32 %v4060_v11, %v4059_v39  ;;  %v8122_v39 = vld [vmem:[%s10613_s0 + $0x348] sm:$0xff]  ;;  %v4066_v52 = vsel %vm2011_vm0, %v3963_v57, 0.0 }
 0x336   :  { %v2310_v0 = vadd.f32 %v2309_v34, %v2308_v50  ;;  %10814 = vst [vmem:[#allocation21_spill] sm:$0xff] %v8122_v39  ;;  %v3964_v11 = vmul.f32 %v8122_v39, %v8122_v39  ;;  %v2315_v38 = vsel %vm2011_vm0, %v2205_v61, 0.0  ;;  %v8131_v34 = vld [vmem:[%s10613_s0 + $0x180] sm:$0xff]  ;;  %v8154_v61 = vld [vmem:[%s10613_s0 + $0x358] sm:$0xff] }
 0x337   :  { %v4063_v36 = vadd.f32 %v4062_v8, %v4061_v15  ;;  %v2206_v15 = vmul.f32 %v8131_v34, %v8131_v34  ;;  %10816 = vst [vmem:[#allocation23_spill] sm:$0xff] %v8154_v61 }
 0x338   :  { %v2312_v41 = vadd.f32 %v2311_v55, %v2310_v0  ;;  %v4068_v8 = vsel %vm2011_vm0, %v3964_v11, 0.0  ;;  %v8139_v0 = vld [vmem:[%s10613_s0 + $0x350] sm:$0xff] }
 0x339   :  { %v4065_v35 = vadd.f32 %v4064_v7, %v4063_v36  ;;  %10815 = vst [vmem:[#allocation22_spill] sm:$0xff] %v8139_v0  ;;  %v3965_v55 = vmul.f32 %v8139_v0, %v8139_v0  ;;  %v8146_v36 = vld [vmem:[%s10613_s0 + $0x188] sm:$0xff]  ;;  %v2317_v57 = vsel %vm2011_vm0, %v2206_v15, 0.0 }
 0x33a   :  { %v2314_v50 = vadd.f32 %v2313_v46, %v2312_v41  ;;  %v2207_v7 = vmul.f32 %v8146_v36, %v8146_v36  ;;  %v3966_v46 = vmul.f32 %v8154_v61, %v8154_v61 }
 0x33b   :  { %v4067_v58 = vadd.f32 %v4066_v52, %v4065_v35  ;;  %v4070_v35 = vsel %vm2011_vm0, %v3965_v55, 0.0 }
 0x33c   :  { %v2316_v56 = vadd.f32 %v2315_v38, %v2314_v50  ;;  %v2319_v52 = vsel %vm2011_vm0, %v2207_v7, 0.0  ;;  %v8163_v50 = vld [vmem:[%s10613_s0 + $0x190] sm:$0xff]  ;;  %v8178_v7 = vld [vmem:[%s10613_s0 + $0x198] sm:$0xff] }
 0x33d   :  { %v4069_v41 = vadd.f32 %v4068_v8, %v4067_v58  ;;  %v2208_v38 = vmul.f32 %v8163_v50, %v8163_v50  ;;  %v4072_v58 = vsel %vm2011_vm0, %v3966_v46, 0.0  ;;  %v8171_v8 = vld [vmem:[%s10613_s0 + $0x360] sm:$0xff] }
 0x33e   :  { %v2318_v11 = vadd.f32 %v2317_v57, %v2316_v56  ;;  %10817 = vst [vmem:[#allocation24_spill] sm:$0xff] %v8171_v8  ;;  %v3967_v55 = vmul.f32 %v8171_v8, %v8171_v8  ;;  %v2209_v57 = vmul.f32 %v8178_v7, %v8178_v7 }
 0x33f   :  { %v4071_v15 = vadd.f32 %v4070_v35, %v4069_v41  ;;  %v2321_v41 = vsel %vm2011_vm0, %v2208_v38, 0.0  ;;  %v8186_v35 = vld [vmem:[%s10613_s0 + $0x368] sm:$0xff]  ;;  %v2210_v38 = vmul.f32 %v8195_v40, %v8195_v40 }
 0x340   :  { %v2320_v56 = vadd.f32 %v2319_v52, %v2318_v11  ;;  %10818 = vst [vmem:[#allocation25_spill] sm:$0xff] %v8186_v35  ;;  %v3968_v61 = vmul.f32 %v8186_v35, %v8186_v35  ;;  %v4074_v11 = vsel %vm2011_vm0, %v3967_v55, 0.0  ;;  %v2323_v39 = vsel %vm2011_vm0, %v2209_v57, 0.0  ;;  %v8203_v35 = vld [vmem:[%s10613_s0 + $0x370] sm:$0xff]  ;;  %v8210_v57 = vld [vmem:[%s10613_s0 + $0x1a8] sm:$0xff] }
 0x341   :  { %v4073_v46 = vadd.f32 %v4072_v58, %v4071_v15  ;;  %10819 = vst [vmem:[#allocation26_spill] sm:$0xff] %v8203_v35  ;;  %v3969_v55 = vmul.f32 %v8203_v35, %v8203_v35 }
 0x342   :  { %v2322_v52 = vadd.f32 %v2321_v41, %v2320_v56  ;;  %v4076_v58 = vsel %vm2011_vm0, %v3968_v61, 0.0  ;;  %v2211_v41 = vmul.f32 %v8210_v57, %v8210_v57 }
 0x343   :  { %v4075_v15 = vadd.f32 %v4074_v11, %v4073_v46  ;;  %v2325_v46 = vsel %vm2011_vm0, %v2210_v38, 0.0  ;;  %v8218_v11 = vld [vmem:[%s10613_s0 + $0x378] sm:$0xff]  ;;  %v2212_v38 = vmul.f32 %v8227_v59, %v8227_v59 }
 0x344   :  { %v2324_v56 = vadd.f32 %v2323_v39, %v2322_v52  ;;  %10820 = vst [vmem:[#allocation27_spill] sm:$0xff] %v8218_v11  ;;  %v3970_v35 = vmul.f32 %v8218_v11, %v8218_v11  ;;  %v4078_v39 = vsel %vm2011_vm0, %v3969_v55, 0.0  ;;  %v2327_v8 = vsel %vm2011_vm0, %v2211_v41, 0.0  ;;  %v8235_v11 = vld [vmem:[%s10613_s0 + $0x380] sm:$0xff]  ;;  %v8242_v41 = vld [vmem:[%s10613_s0 + $0x1b8] sm:$0xff] }
 0x345   :  { %v4077_v61 = vadd.f32 %v4076_v58, %v4075_v15  ;;  %10821 = vst [vmem:[#allocation28_spill] sm:$0xff] %v8235_v11  ;;  %v3971_v55 = vmul.f32 %v8235_v11, %v8235_v11 }
 0x346   :  { %v2326_v52 = vadd.f32 %v2325_v46, %v2324_v56  ;;  %v4080_v58 = vsel %vm2011_vm0, %v3970_v35, 0.0  ;;  %v2213_v46 = vmul.f32 %v8242_v41, %v8242_v41 }
 0x347   :  { %v4079_v15 = vadd.f32 %v4078_v39, %v4077_v61  ;;  %v2329_v61 = vsel %vm2011_vm0, %v2212_v38, 0.0  ;;  %v8250_v39 = vld [vmem:[%s10613_s0 + $0x388] sm:$0xff]  ;;  %v2214_v38 = vmul.f32 %v8259_v18, %v8259_v18 }
 0x348   :  { %v2328_v56 = vadd.f32 %v2327_v8, %v2326_v52  ;;  %10822 = vst [vmem:[#allocation29_spill] sm:$0xff] %v8250_v39  ;;  %v3972_v11 = vmul.f32 %v8250_v39, %v8250_v39  ;;  %v4082_v8 = vsel %vm2011_vm0, %v3971_v55, 0.0  ;;  %v2331_v0 = vsel %vm2011_vm0, %v2213_v46, 0.0  ;;  %v8267_v39 = vld [vmem:[%s10613_s0 + $0x390] sm:$0xff]  ;;  %v8274_v46 = vld [vmem:[%s10613_s0 + $0x1c8] sm:$0xff] }
 0x349   :  { %v4081_v35 = vadd.f32 %v4080_v58, %v4079_v15  ;;  %10823 = vst [vmem:[#allocation30_spill] sm:$0xff] %v8267_v39  ;;  %v3973_v55 = vmul.f32 %v8267_v39, %v8267_v39 }
 0x34a   :  { %v2330_v52 = vadd.f32 %v2329_v61, %v2328_v56  ;;  %v4084_v58 = vsel %vm2011_vm0, %v3972_v11, 0.0  ;;  %v2215_v61 = vmul.f32 %v8274_v46, %v8274_v46 }
 0x34b   :  { %v4083_v15 = vadd.f32 %v4082_v8, %v4081_v35  ;;  %v2333_v35 = vsel %vm2011_vm0, %v2214_v38, 0.0  ;;  %v8282_v8 = vld [vmem:[%s10613_s0 + $0x398] sm:$0xff]  ;;  %v2216_v38 = vmul.f32 %v8291_v51, %v8291_v51 }
 0x34c   :  { %v2332_v56 = vadd.f32 %v2331_v0, %v2330_v52  ;;  %10824 = vst [vmem:[#allocation31_spill] sm:$0xff] %v8282_v8  ;;  %v3974_v39 = vmul.f32 %v8282_v8, %v8282_v8  ;;  %v4086_v0 = vsel %vm2011_vm0, %v3973_v55, 0.0  ;;  %v2335_v4 = vsel %vm2011_vm0, %v2215_v61, 0.0  ;;  %v8299_v8 = vld [vmem:[%s10613_s0 + $0x3a0] sm:$0xff]  ;;  %v8306_v61 = vld [vmem:[%s10613_s0 + $0x1d8] sm:$0xff] }
 0x34d   :  { %v4085_v11 = vadd.f32 %v4084_v58, %v4083_v15  ;;  %10825 = vst [vmem:[#allocation32_spill] sm:$0xff] %v8299_v8  ;;  %v3975_v55 = vmul.f32 %v8299_v8, %v8299_v8 }
 0x34e   :  { %v2334_v52 = vadd.f32 %v2333_v35, %v2332_v56  ;;  %v4088_v58 = vsel %vm2011_vm0, %v3974_v39, 0.0  ;;  %v2217_v35 = vmul.f32 %v8306_v61, %v8306_v61 }
 0x34f   :  { %v4087_v15 = vadd.f32 %v4086_v0, %v4085_v11  ;;  %v2337_v11 = vsel %vm2011_vm0, %v2216_v38, 0.0  ;;  %v8314_v0 = vld [vmem:[%s10613_s0 + $0x3a8] sm:$0xff]  ;;  %v2218_v38 = vmul.f32 %v8323_v33, %v8323_v33 }
 0x350   :  { %v2336_v56 = vadd.f32 %v2335_v4, %v2334_v52  ;;  %10826 = vst [vmem:[#allocation33_spill] sm:$0xff] %v8314_v0  ;;  %v3976_v8 = vmul.f32 %v8314_v0, %v8314_v0  ;;  %v4090_v4 = vsel %vm2011_vm0, %v3975_v55, 0.0  ;;  %v2339_v27 = vsel %vm2011_vm0, %v2217_v35, 0.0  ;;  %v8331_v0 = vld [vmem:[%s10613_s0 + $0x3b0] sm:$0xff]  ;;  %v8338_v35 = vld [vmem:[%s10613_s0 + $0x1e8] sm:$0xff] }
 0x351   :  { %v4089_v39 = vadd.f32 %v4088_v58, %v4087_v15  ;;  %10827 = vst [vmem:[#allocation34_spill] sm:$0xff] %v8331_v0  ;;  %v3977_v55 = vmul.f32 %v8331_v0, %v8331_v0 }
 0x352   :  { %v2338_v52 = vadd.f32 %v2337_v11, %v2336_v56  ;;  %v4092_v58 = vsel %vm2011_vm0, %v3976_v8, 0.0  ;;  %v2219_v11 = vmul.f32 %v8338_v35, %v8338_v35 }
 0x353   :  { %v4091_v15 = vadd.f32 %v4090_v4, %v4089_v39  ;;  %v2341_v39 = vsel %vm2011_vm0, %v2218_v38, 0.0  ;;  %v8346_v4 = vld [vmem:[%s10613_s0 + $0x3b8] sm:$0xff]  ;;  %v2220_v38 = vmul.f32 %v8355_v47, %v8355_v47 }
 0x354   :  { %v2340_v56 = vadd.f32 %v2339_v27, %v2338_v52  ;;  %10828 = vst [vmem:[#allocation35_spill] sm:$0xff] %v8346_v4  ;;  %v3978_v0 = vmul.f32 %v8346_v4, %v8346_v4  ;;  %v4094_v27 = vsel %vm2011_vm0, %v3977_v55, 0.0  ;;  %v2343_v45 = vsel %vm2011_vm0, %v2219_v11, 0.0  ;;  %v8363_v4 = vld [vmem:[%s10613_s0 + $0x3c0] sm:$0xff]  ;;  %v8370_v11 = vld [vmem:[%s10613_s0 + $0x1f8] sm:$0xff] }
 0x355   :  { %v4093_v8 = vadd.f32 %v4092_v58, %v4091_v15  ;;  %10829 = vst [vmem:[#allocation36_spill] sm:$0xff] %v8363_v4  ;;  %v3979_v55 = vmul.f32 %v8363_v4, %v8363_v4  ;;  %10830 = vst [vmem:[#allocation37_spill] sm:$0xff] %v8370_v11 }
 0x356   :  { %v2342_v52 = vadd.f32 %v2341_v39, %v2340_v56  ;;  %v4096_v58 = vsel %vm2011_vm0, %v3978_v0, 0.0  ;;  %v2221_v39 = vmul.f32 %v8370_v11, %v8370_v11 }
 0x357   :  { %v4095_v15 = vadd.f32 %v4094_v27, %v4093_v8  ;;  %v2345_v8 = vsel %vm2011_vm0, %v2220_v38, 0.0  ;;  %v8378_v27 = vld [vmem:[%s10613_s0 + $0x3c8] sm:$0xff]  ;;  %v8388_v38 = vld [vmem:[%s10613_s0 + $0x3d0] sm:$0xff] }
 0x358   :  { %v2344_v56 = vadd.f32 %v2343_v45, %v2342_v52  ;;  %10831 = vst [vmem:[#allocation38_spill] sm:$0xff] %v8378_v27  ;;  %v3980_v4 = vmul.f32 %v8378_v27, %v8378_v27  ;;  %v4098_v45 = vsel %vm2011_vm0, %v3979_v55, 0.0  ;;  %v2347_v42 = vsel %vm2011_vm0, %v2221_v39, 0.0  ;;  %10832 = vst [vmem:[#allocation39_spill] sm:$0xff] %v8388_v38  ;;  %v8395_v55 = vld [vmem:[%s10613_s0 + $0x3d8] sm:$0xff]  ;;  %v8420_v27 = vld [vmem:[%s10613_s0 + $0x3f0] sm:$0xff] }
 0x359   :  { %v4097_v0 = vadd.f32 %v4096_v58, %v4095_v15  ;;  %v3981_v15 = vmul.f32 %v8388_v38, %v8388_v38  ;;  %10833 = vst [vmem:[#allocation40_spill] sm:$0xff] %v8395_v55  ;;  %10836 = vst [vmem:[#allocation43_spill] sm:$0xff] %v8420_v27 }
 0x35a   :  { %v2346_v52 = vadd.f32 %v2345_v8, %v2344_v56  ;;  %v4100_v17 = vsel %vm2011_vm0, %v3980_v4, 0.0  ;;  %v3982_v56 = vmul.f32 %v8395_v55, %v8395_v55 }
 0x35b   :  { %v4099_v23 = vadd.f32 %v4098_v45, %v4097_v0  ;;  %v4102_v4 = vsel %vm2011_vm0, %v3981_v15, 0.0  ;;  %v8404_v45 = vld [vmem:[%s10613_s0 + $0x3e0] sm:$0xff] }
 0x35c   :  { %v2348_v58 = vadd.f32 %v2347_v42, %v2346_v52  ;;  %v4104_v0 = vsel %vm2011_vm0, %v3982_v56, 0.0  ;;  %10834 = vst [vmem:[#allocation41_spill] sm:$0xff] %v8404_v45  ;;  %v8411_v52 = vld [vmem:[%s10613_s0 + $0x3e8] sm:$0xff] }
 0x35d   :  { %v4101_v6 = vadd.f32 %v4100_v17, %v4099_v23  ;;  %v3983_v23 = vmul.f32 %v8404_v45, %v8404_v45  ;;  %10835 = vst [vmem:[#allocation42_spill] sm:$0xff] %v8411_v52 }
 0x35e   :  { %v2349_v39 = vrot.slane %v2348_v58, 4 }
 0x35f   :  { %v4103_v8 = vadd.f32 %v4102_v4, %v4101_v6  ;;  %v3984_v6 = vmul.f32 %v8411_v52, %v8411_v52  ;;  %v4106_v15 = vsel %vm2011_vm0, %v3983_v23, 0.0 }
 0x360   :  { %v2350_v17 = vadd.f32 %v2349_v39, %v2348_v58  ;;  %v3985_v58 = vmul.f32 %v8420_v27, %v8420_v27 }
 0x361   :  { %v4105_v42 = vadd.f32 %v4104_v0, %v4103_v8  ;;  %v4108_v55 = vsel %vm2011_vm0, %v3984_v6, 0.0  ;;  %v8427_v0 = vld [vmem:[%s10613_s0 + $0x3f8] sm:$0xff] }
 0x362   :  { %v2351_v56 = vrot.slane %v2350_v17, 2  ;;  %10837 = vst [vmem:[#allocation44_spill] sm:$0xff] %v8427_v0  ;;  %v3986_v23 = vmul.f32 %v8427_v0, %v8427_v0 }
 0x363   :  { %v4107_v4 = vadd.f32 %v4106_v15, %v4105_v42  ;;  %v4110_v42 = vsel %vm2011_vm0, %v3985_v58, 0.0 }
 0x364   :  { %v2352_v39 = vadd.f32 %v2351_v56, %v2350_v17  ;;  %v4112_v52 = vsel %vm2011_vm0, %v3986_v23, 0.0 }
 0x365   :  { %v4109_v8 = vadd.f32 %v4108_v55, %v4107_v4 }
 0x366   :  { %v2353_v6 = vrot.slane %v2352_v39, 1 }
 0x367   :  { %v4111_v15 = vadd.f32 %v4110_v42, %v4109_v8 }
 0x368   :  { %v2354_v45 = vadd.f32 %v2353_v6, %v2352_v39 }
 0x369   :  { %v4113_v55 = vadd.f32 %v4112_v52, %v4111_v15 }
 0x36a   :  { %5366 = vrsqrt.f32 %v2354_v45  ;;  %vm2357_vm1 = vcmp.eq.f32.partialorder %v2354_v45, inf  ;;  %vm2359_vm2 = vcmp.eq.f32.partialorder %v2354_v45, 0.0 }
 0x36b   :  { %v4114_v63 = vrot.slane %v4113_v55, 4 }
 0x36d   :  { %v4115_v0 = vadd.f32 %v4114_v63, %v4113_v55  ;;  %v5511_v55 = vld [vmem:[%s10613_s0] sm:$0xff] }
 0x36f   :  { %v4116_v48 = vrot.slane %v4115_v0, 2 }
 0x374   :  { %v5367_v58 = vpop.eup %5366 }
 0x3b8   :  { %v2149_v38 = vpop.xlane.xlu0 %2148 }
 0x3b9   :  { %v3914_v10 = vpop.xlane.xlu1 %3913  ;;  %v2150_v17 = vsub.f32 %v7911_v13, %v2149_v38  ;;  %v2356_v13 = vmul.f32 %v5367_v58, %v2354_v45 }
 0x3ba   :  { %v3915_v56 = vsub.f32 %v7921_v62, %v3914_v10  ;;  %v4117_v62 = vadd.f32 %v4116_v48, %v4115_v0  ;;  %v2360_v10 = vand.u32 2147483648, %v2354_v45 }
 0x3bb   :  { %v2151_v4 = vmul.f32 1.442695, %v2150_v17  ;;  %v2358_v52 = vsel %vm2357_vm1, %v2354_v45, %v2356_v13  ;;  %v5510_v45 = vld [vmem:[%s10613_s0 + $0x10] sm:$0xff] }
 0x3bc   :  { %v3916_v27 = vmul.f32 1.442695, %v3915_v56  ;;  %v4118_v63 = vrot.slane %v4117_v62, 1 }
 0x3bd   :  { %5368 = vpow2.f32 %v2151_v4  ;;  %v5512_v4 = vld [vmem:[%s10613_s0 + $0x20] sm:$0xff] }
 0x3be   :  { %5370 = vpow2.f32 %v3916_v27  ;;  %v2361_v27 = vsel %vm2359_vm2, %v2360_v10, %v2358_v52  ;;  %v8443_v42 = vadd.f32 %v4118_v63, %v4117_v62  ;;  %v5514_v62 = vld [vmem:[%s10613_s0 + $0x38] sm:$0xff]  ;;  %v5516_v63 = vld [vmem:[%s10613_s0 + $0x48] sm:$0xff] }
 0x3bf   :  { %v2362_v6 = vadd.f32 1e-06, %v2361_v27 }
 0x3c0   :  { %5372 = vrsqrt.f32 %v8443_v42  ;;  %vm4122_vm3 = vcmp.eq.f32.partialorder %v8443_v42, inf  ;;  %vm4124_vm4 = vcmp.eq.f32.partialorder %v8443_v42, 0.0  ;;  %v4125_v11 = vand.u32 2147483648, %v8443_v42 }
 0x3c1   :  { %5374 = vrcp.f32 %v2362_v6  ;;  %v5517_v6 = vld [vmem:[%s10613_s0 + $0x28] sm:$0xff] }
 0x3c7   :  { %v8435_v8 = vpop.eup %5368 }
 0x3c8   :  { %10838 = vst [vmem:[#allocation45_spill] sm:$0xff] %v8435_v8  ;;  %v2153_v39 = vsel %vm2011_vm0, %v8435_v8, 0.0  ;;  %v8439_v23 = vpop.eup %5370  ;;  %v5524_v8 = vld [vmem:[%s10613_s0 + $0x88] sm:$0xff] }
 0x3c9   :  { %10839 = vst [vmem:[#allocation46_spill] sm:$0xff] %v8439_v23  ;;  %2154 = vadd.xlane.f32.xlu1 %v2153_v39  ;;  %v3918_v38 = vsel %vm2011_vm0, %v8439_v23, 0.0  ;;  %v5513_v39 = vld [vmem:[%s10613_s0 + $0x8] sm:$0xff]  ;;  %v5523_v23 = vld [vmem:[%s10613_s0 + $0x50] sm:$0xff] }
 0x3ca   :  { %v5373_v15 = vpop.eup %5372 }
 0x3cb   :  { %v8446_v17 = vpop.eup %5374  ;;  %v4121_v48 = vmul.f32 %v5373_v15, %v8443_v42 }
 0x3cc   :  { %v8454_v0 = vmul.f32 %v5510_v45, %v8446_v17  ;;  %v8460_v56 = vmul.f32 %v5511_v55, %v8446_v17  ;;  %v8466_v58 = vmul.f32 %v5512_v4, %v8446_v17  ;;  %v8472_v13 = vmul.f32 %v5513_v39, %v8446_v17  ;;  %v5518_v45 = vld [vmem:[%s10613_s0 + $0x58] sm:$0xff]  ;;  %v5519_v4 = vld [vmem:[%s10613_s0 + $0x30] sm:$0xff] }
 0x3cd   :  { %3919 = vadd.xlane.f32.xlu1 %v3918_v38  ;;  %v8478_v10 = vmul.f32 %v5514_v62, %v8446_v17  ;;  %v5515_v38 = vld [vmem:[%s10613_s0 + $0x18] sm:$0xff]  ;;  %v8490_v27 = vmul.f32 %v5516_v63, %v8446_v17  ;;  %v8496_v15 = vmul.f32 %v5517_v6, %v8446_v17  ;;  %v8502_v55 = vmul.f32 %v5518_v45, %v8446_v17  ;;  %v5520_v62 = vld [vmem:[%s10613_s0 + $0x68] sm:$0xff]  ;;  %v5521_v63 = vld [vmem:[%s10613_s0 + $0x40] sm:$0xff] }
 0x3ce   :  { %v8484_v52 = vmul.f32 %v5515_v38, %v8446_v17  ;;  %v8508_v39 = vmul.f32 %v5519_v4, %v8446_v17  ;;  %v8514_v38 = vmul.f32 %v5520_v62, %v8446_v17  ;;  %v8520_v6 = vmul.f32 %v5521_v63, %v8446_v17  ;;  %v5522_v45 = vld [vmem:[%s10613_s0 + $0x78] sm:$0xff]  ;;  %2751 = vst.msk [vmem:[%s10618_s6 + $0x10] sm:$0xff] %vm2011_vm0, %v8454_v0 }
 0x3cf   :  { %v8526_v4 = vmul.f32 %v5522_v45, %v8446_v17  ;;  %v8532_v62 = vmul.f32 %v5523_v23, %v8446_v17  ;;  %v8538_v63 = vmul.f32 %v5524_v8, %v8446_v17  ;;  %v8544_v45 = vmul.f32 %v5525_v31, %v8446_v17  ;;  %2749 = vst.msk [vmem:[%s10618_s6] sm:$0xff] %vm2011_vm0, %v8460_v56  ;;  %v5527_v31 = vld [vmem:[%s10613_s0 + $0x70] sm:$0xff] }
 0x3d0   :  { %10840 = vst [vmem:[#allocation47_spill] sm:$0xff] %v8520_v6  ;;  %v8550_v23 = vmul.f32 %v5526_v20, %v8446_v17  ;;  %2753 = vst.msk [vmem:[%s10618_s6 + $0x20] sm:$0xff] %vm2011_vm0, %v8466_v58  ;;  %v4123_v20 = vsel %vm4122_vm3, %v8443_v42, %v4121_v48  ;;  %v8646_v8 = vmul.f32 %v5527_v31, %v8446_v17  ;;  %v5529_v48 = vld [vmem:[%s10613_s0 + $0x80] sm:$0xff]  ;;  %v5530_v31 = vld [vmem:[%s10613_s0 + $0x90] sm:$0xff] }
 0x3d1   :  { %10841 = vst [vmem:[#allocation48_spill] sm:$0xff] %v8526_v4  ;;  %10842 = vst [vmem:[#allocation49_spill] sm:$0xff] %v8532_v62  ;;  %v8742_v42 = vmul.f32 %v7845_v60, %v8446_v17  ;;  %v8806_v60 = vmul.f32 %v7954_v16, %v8446_v17  ;;  %v8826_v16 = vmul.f32 %v7939_v2, %v8446_v17 }
 0x3d2   :  { %10843 = vst [vmem:[#allocation50_spill] sm:$0xff] %v8538_v63  ;;  %10844 = vst [vmem:[#allocation51_spill] sm:$0xff] %v8544_v45  ;;  %v8878_v2 = vmul.f32 %v8082_v30, %v8446_v17  ;;  %v8898_v30 = vmul.f32 %v8067_v21, %v8446_v17  ;;  %v8950_v21 = vmul.f32 %v8227_v59, %v8446_v17 }
 0x3d3   :  { %10845 = vst [vmem:[#allocation52_spill] sm:$0xff] %v8550_v23  ;;  %2750 = vst.msk [vmem:[%s10618_s6 + $0x8] sm:$0xff] %vm2011_vm0, %v8472_v13  ;;  %v8970_v59 = vmul.f32 %v8178_v7, %v8446_v17  ;;  %v9034_v7 = vmul.f32 %v8306_v61, %v8446_v17 }
 0x3d4   :  { %2756 = vst.msk [vmem:[%s10618_s6 + $0x38] sm:$0xff] %vm2011_vm0, %v8478_v10  ;;  %2752 = vst.msk [vmem:[%s10618_s6 + $0x18] sm:$0xff] %vm2011_vm0, %v8484_v52 }
 0x3d5   :  { %2758 = vst.msk [vmem:[%s10618_s6 + $0x48] sm:$0xff] %vm2011_vm0, %v8490_v27  ;;  %2754 = vst.msk [vmem:[%s10618_s6 + $0x28] sm:$0xff] %vm2011_vm0, %v8496_v15 }
 0x3d6   :  { %2760 = vst.msk [vmem:[%s10618_s6 + $0x58] sm:$0xff] %vm2011_vm0, %v8502_v55  ;;  %2755 = vst.msk [vmem:[%s10618_s6 + $0x30] sm:$0xff] %vm2011_vm0, %v8508_v39 }
 0x3d7   :  { %2762 = vst.msk [vmem:[%s10618_s6 + $0x68] sm:$0xff] %vm2011_vm0, %v8514_v38  ;;  %2757 = vst.msk [vmem:[%s10618_s6 + $0x40] sm:$0xff] %vm2011_vm0, %v8520_v6 }
 0x3d8   :  { %2764 = vst.msk [vmem:[%s10618_s6 + $0x78] sm:$0xff] %vm2011_vm0, %v8526_v4  ;;  %2759 = vst.msk [vmem:[%s10618_s6 + $0x50] sm:$0xff] %vm2011_vm0, %v8532_v62  ;;  %v8662_v62 = vmul.f32 %v7714_v1, %v8446_v17  ;;  %v8668_v4 = vmul.f32 %v5530_v31, %v8446_v17  ;;  %v8697_v1 = vmul.f32 %v7778_v9, %v8446_v17  ;;  %v5532_v9 = vld [vmem:[%s10613_s0 + $0xb0] sm:$0xff] }
 0x3d9   :  { %2766 = vst.msk [vmem:[%s10618_s6 + $0x88] sm:$0xff] %vm2011_vm0, %v8538_v63  ;;  %2761 = vst.msk [vmem:[%s10618_s6 + $0x60] sm:$0xff] %vm2011_vm0, %v8544_v45  ;;  %v5528_v45 = vld [vmem:[%s10613_s0 + $0xa8] sm:$0xff]  ;;  %v8730_v31 = vmul.f32 %v5532_v9, %v8446_v17  ;;  %v8750_v9 = vmul.f32 %v7879_v12, %v8446_v17  ;;  %v8810_v12 = vmul.f32 %v7864_v22, %v8446_v17 }
 0x3da   :  { %2768 = vst.msk [vmem:[%s10618_s6 + $0x98] sm:$0xff] %vm2011_vm0, %v8550_v23  ;;  %v8652_v63 = vmul.f32 %v5528_v45, %v8446_v17  ;;  %v8658_v23 = vmul.f32 %v5529_v48, %v8446_v17  ;;  %v8672_v45 = vmul.f32 %v7746_v29, %v8446_v17  ;;  %v5531_v48 = vld [vmem:[%s10613_s0 + $0xa0] sm:$0xff]  ;;  %2763 = vst.msk [vmem:[%s10618_s6 + $0x70] sm:$0xff] %vm2011_vm0, %v8646_v8 }
 0x3db   :  { %v8678_v6 = vmul.f32 %v5531_v48, %v8446_v17  ;;  %2772 = vst.msk [vmem:[%s10618_s6 + $0xb8] sm:$0xff] %vm2011_vm0, %v8662_v62  ;;  %2767 = vst.msk [vmem:[%s10618_s6 + $0x90] sm:$0xff] %vm2011_vm0, %v8668_v4  ;;  %v4126_v29 = vsel %vm4124_vm4, %v4125_v11, %v4123_v20  ;;  %v8734_v48 = vmul.f32 %v7814_v43, %v8446_v17 }
 0x3dc   :  { %2770 = vst.msk [vmem:[%s10618_s6 + $0xa8] sm:$0xff] %vm2011_vm0, %v8652_v63  ;;  %2765 = vst.msk [vmem:[%s10618_s6 + $0x80] sm:$0xff] %vm2011_vm0, %v8658_v23  ;;  %v8738_v11 = vmul.f32 %v7729_v19, %v8446_v17  ;;  %v8746_v20 = vmul.f32 %v7761_v5, %v8446_v17  ;;  %v8754_v43 = vmul.f32 %v7793_v14, %v8446_v17  ;;  %v4127_v5 = vadd.f32 1e-06, %v4126_v29 }
 0x3dd   :  { %2774 = vst.msk [vmem:[%s10618_s6 + $0xc8] sm:$0xff] %vm2011_vm0, %v8672_v45  ;;  %2769 = vst.msk [vmem:[%s10618_s6 + $0xa0] sm:$0xff] %vm2011_vm0, %v8678_v6  ;;  %v8773_v19 = vmul.f32 %v7916_v3, %v8446_v17  ;;  %v8802_v14 = vmul.f32 %v7828_v44, %v8446_v17  ;;  %v8814_v3 = vmul.f32 %v7986_v54, %v8446_v17 }
 0x3de   :  { %2776 = vst.msk [vmem:[%s10618_s6 + $0xd8] sm:$0xff] %vm2011_vm0, %v8697_v1  ;;  %2771 = vst.msk [vmem:[%s10618_s6 + $0xb0] sm:$0xff] %vm2011_vm0, %v8730_v31  ;;  %v8818_v29 = vmul.f32 %v7896_v28, %v8446_v17  ;;  %v8822_v44 = vmul.f32 %v8018_v37, %v8446_v17  ;;  %v8845_v22 = vmul.f32 %v8050_v26, %v8446_v17  ;;  %5376 = vrcp.f32 %v4127_v5 }
 0x3df   :  { %2778 = vst.msk [vmem:[%s10618_s6 + $0xe8] sm:$0xff] %vm2011_vm0, %v8734_v48  ;;  %2773 = vst.msk [vmem:[%s10618_s6 + $0xc0] sm:$0xff] %vm2011_vm0, %v8738_v11  ;;  %v8874_v28 = vmul.f32 %v7971_v24, %v8446_v17  ;;  %v8882_v54 = vmul.f32 %v8003_v25, %v8446_v17  ;;  %v8886_v37 = vmul.f32 %v8114_v32, %v8446_v17 }
 0x3e0   :  { %2780 = vst.msk [vmem:[%s10618_s6 + $0xf8] sm:$0xff] %vm2011_vm0, %v8742_v42  ;;  %2775 = vst.msk [vmem:[%s10618_s6 + $0xd0] sm:$0xff] %vm2011_vm0, %v8746_v20  ;;  %v8890_v26 = vmul.f32 %v8035_v53, %v8446_v17  ;;  %v8894_v24 = vmul.f32 %v8163_v50, %v8446_v17  ;;  %v8917_v25 = vmul.f32 %v8195_v40, %v8446_v17 }
 0x3e1   :  { %2782 = vst.msk [vmem:[%s10618_s6 + $0x108] sm:$0xff] %vm2011_vm0, %v8750_v9  ;;  %2777 = vst.msk [vmem:[%s10618_s6 + $0xe0] sm:$0xff] %vm2011_vm0, %v8754_v43  ;;  %v8946_v53 = vmul.f32 %v8099_v49, %v8446_v17  ;;  %v8954_v40 = vmul.f32 %v8131_v34, %v8446_v17  ;;  %v8958_v32 = vmul.f32 %v8259_v18, %v8446_v17 }
 0x3e2   :  { %2784 = vst.msk [vmem:[%s10618_s6 + $0x118] sm:$0xff] %vm2011_vm0, %v8773_v19  ;;  %2779 = vst.msk [vmem:[%s10618_s6 + $0xf0] sm:$0xff] %vm2011_vm0, %v8802_v14  ;;  %v8962_v50 = vmul.f32 %v8146_v36, %v8446_v17  ;;  %v8966_v49 = vmul.f32 %v8291_v51, %v8446_v17  ;;  %v8989_v51 = vmul.f32 %v8323_v33, %v8446_v17 }
 0x3e3   :  { %2786 = vst.msk [vmem:[%s10618_s6 + $0x128] sm:$0xff] %vm2011_vm0, %v8806_v60  ;;  %2781 = vst.msk [vmem:[%s10618_s6 + $0x100] sm:$0xff] %vm2011_vm0, %v8810_v12  ;;  %v9018_v33 = vmul.f32 %v8210_v57, %v8446_v17  ;;  %v9022_v18 = vmul.f32 %v8355_v47, %v8446_v17  ;;  %v9026_v34 = vmul.f32 %v8242_v41, %v8446_v17  ;;  %v10851_v47 = vld [vmem:[#allocation37_spill] sm:$0xff] }
 0x3e4   :  { %2788 = vst.msk [vmem:[%s10618_s6 + $0x138] sm:$0xff] %vm2011_vm0, %v8814_v3  ;;  %2783 = vst.msk [vmem:[%s10618_s6 + $0x110] sm:$0xff] %vm2011_vm0, %v8818_v29  ;;  %v9030_v36 = vmul.f32 %v8274_v46, %v8446_v17  ;;  %v9038_v57 = vmul.f32 %v8338_v35, %v8446_v17  ;;  %v9074_v41 = vmul.f32 %v10851_v47, %v8446_v17  ;;  %v5533_v46 = vld [vmem:[%s10613_s0 + $0x200] sm:$0xff]  ;;  %v5534_v35 = vld [vmem:[%s10613_s0 + $0x210] sm:$0xff] }
 0x3e5   :  { %2790 = vst.msk [vmem:[%s10618_s6 + $0x148] sm:$0xff] %vm2011_vm0, %v8822_v44  ;;  %2785 = vst.msk [vmem:[%s10618_s6 + $0x120] sm:$0xff] %vm2011_vm0, %v8826_v16  ;;  %v5535_v17 = vld [vmem:[%s10613_s0 + $0x220] sm:$0xff] }
 0x3e6   :  { %2792 = vst.msk [vmem:[%s10618_s6 + $0x158] sm:$0xff] %vm2011_vm0, %v8845_v22  ;;  %2787 = vst.msk [vmem:[%s10618_s6 + $0x130] sm:$0xff] %vm2011_vm0, %v8874_v28 }
 0x3e7   :  { %2794 = vst.msk [vmem:[%s10618_s6 + $0x168] sm:$0xff] %vm2011_vm0, %v8878_v2  ;;  %2789 = vst.msk [vmem:[%s10618_s6 + $0x140] sm:$0xff] %vm2011_vm0, %v8882_v54 }
 0x3e8   :  { %2796 = vst.msk [vmem:[%s10618_s6 + $0x178] sm:$0xff] %vm2011_vm0, %v8886_v37  ;;  %2791 = vst.msk [vmem:[%s10618_s6 + $0x150] sm:$0xff] %vm2011_vm0, %v8890_v26  ;;  %v9040_v5 = vpop.eup %5376 }
 0x3e9   :  { %2799 = vst.msk [vmem:[%s10618_s6 + $0x190] sm:$0xff] %vm2011_vm0, %v8894_v24  ;;  %2793 = vst.msk [vmem:[%s10618_s6 + $0x160] sm:$0xff] %vm2011_vm0, %v8898_v30  ;;  %v9080_v61 = vmul.f32 %v5533_v46, %v9040_v5  ;;  %v9107_v47 = vmul.f32 %v5535_v17, %v9040_v5  ;;  %v5536_v46 = vld [vmem:[%s10613_s0 + $0x230] sm:$0xff] }
 0x3ea   :  { %2801 = vst.msk [vmem:[%s10618_s6 + $0x1a0] sm:$0xff] %vm2011_vm0, %v8917_v25  ;;  %2795 = vst.msk [vmem:[%s10618_s6 + $0x170] sm:$0xff] %vm2011_vm0, %v8946_v53 }
 0x3eb   :  { %2803 = vst.msk [vmem:[%s10618_s6 + $0x1b0] sm:$0xff] %vm2011_vm0, %v8950_v21  ;;  %2797 = vst.msk [vmem:[%s10618_s6 + $0x180] sm:$0xff] %vm2011_vm0, %v8954_v40 }
 0x3ec   :  { %2805 = vst.msk [vmem:[%s10618_s6 + $0x1c0] sm:$0xff] %vm2011_vm0, %v8958_v32  ;;  %2798 = vst.msk [vmem:[%s10618_s6 + $0x188] sm:$0xff] %vm2011_vm0, %v8962_v50 }
 0x3ed   :  { %2807 = vst.msk [vmem:[%s10618_s6 + $0x1d0] sm:$0xff] %vm2011_vm0, %v8966_v49  ;;  %2800 = vst.msk [vmem:[%s10618_s6 + $0x198] sm:$0xff] %vm2011_vm0, %v8970_v59 }
 0x3ee   :  { %2809 = vst.msk [vmem:[%s10618_s6 + $0x1e0] sm:$0xff] %vm2011_vm0, %v8989_v51  ;;  %10846 = vst [vmem:[#allocation53_spill] sm:$0xff] %v9022_v18 }
 0x3ef   :  { %10847 = vst [vmem:[#allocation54_spill] sm:$0xff] %v9026_v34  ;;  %10848 = vst [vmem:[#allocation55_spill] sm:$0xff] %v9030_v36 }
 0x3f0   :  { %10849 = vst [vmem:[#allocation56_spill] sm:$0xff] %v9034_v7  ;;  %10850 = vst [vmem:[#allocation57_spill] sm:$0xff] %v9038_v57 }
 0x3f1   :  { %2802 = vst.msk [vmem:[%s10618_s6 + $0x1a8] sm:$0xff] %vm2011_vm0, %v9018_v33  ;;  %2811 = vst.msk [vmem:[%s10618_s6 + $0x1f0] sm:$0xff] %vm2011_vm0, %v9022_v18  ;;  %v5542_v18 = vld [vmem:[%s10613_s0 + $0x260] sm:$0xff] }
 0x3f2   :  { %2804 = vst.msk [vmem:[%s10618_s6 + $0x1b8] sm:$0xff] %vm2011_vm0, %v9026_v34  ;;  %2806 = vst.msk [vmem:[%s10618_s6 + $0x1c8] sm:$0xff] %vm2011_vm0, %v9030_v36  ;;  %v5540_v36 = vld [vmem:[%s10613_s0 + $0x250] sm:$0xff]  ;;  %v5541_v34 = vld [vmem:[%s10613_s0 + $0x228] sm:$0xff] }
 0x3f3   :  { %2808 = vst.msk [vmem:[%s10618_s6 + $0x1d8] sm:$0xff] %vm2011_vm0, %v9034_v7  ;;  %2810 = vst.msk [vmem:[%s10618_s6 + $0x1e8] sm:$0xff] %vm2011_vm0, %v9038_v57  ;;  %v9086_v7 = vmul.f32 %v5534_v35, %v9040_v5  ;;  %v9113_v35 = vmul.f32 %v5536_v46, %v9040_v5 }
 0x3f4   :  { %10852 = vst [vmem:[#allocation37_spill] sm:$0xff] %v9074_v41  ;;  %10853 = vst [vmem:[#allocation58_spill] sm:$0xff] %v9080_v61 }
 0x3f5   :  { %10854 = vst [vmem:[#allocation59_spill] sm:$0xff] %v9086_v7  ;;  %2812 = vst.msk [vmem:[%s10618_s6 + $0x1f8] sm:$0xff] %vm2011_vm0, %v9074_v41  ;;  %v5537_v41 = vld [vmem:[%s10613_s0 + $0x208] sm:$0xff] }
 0x3f6   :  { %4721 = vst.msk [vmem:[%s10618_s6 + $0x200] sm:$0xff] %vm2011_vm0, %v9080_v61  ;;  %4723 = vst.msk [vmem:[%s10618_s6 + $0x210] sm:$0xff] %vm2011_vm0, %v9086_v7  ;;  %v9119_v57 = vmul.f32 %v5537_v41, %v9040_v5  ;;  %v5538_v7 = vld [vmem:[%s10613_s0 + $0x240] sm:$0xff]  ;;  %v5539_v61 = vld [vmem:[%s10613_s0 + $0x218] sm:$0xff]  ;;  %v9137_v41 = vmul.f32 %v5540_v36, %v9040_v5 }
 0x3f7   :  { %10855 = vst [vmem:[#allocation60_spill] sm:$0xff] %v9107_v47  ;;  %10856 = vst [vmem:[#allocation61_spill] sm:$0xff] %v9113_v35  ;;  %v9125_v17 = vmul.f32 %v5538_v7, %v9040_v5  ;;  %v9131_v46 = vmul.f32 %v5539_v61, %v9040_v5  ;;  %v9143_v7 = vmul.f32 %v5541_v34, %v9040_v5  ;;  %v5544_v36 = vld [vmem:[%s10613_s0 + $0x270] sm:$0xff] }
 0x3f8   :  { %10857 = vst [vmem:[#allocation62_spill] sm:$0xff] %v9119_v57  ;;  %10860 = vst [vmem:[#allocation65_spill] sm:$0xff] %v9137_v41  ;;  %v9149_v61 = vmul.f32 %v5542_v18, %v9040_v5  ;;  %v5543_v18 = vld [vmem:[%s10613_s0 + $0x238] sm:$0xff] }
 0x3f9   :  { %10858 = vst [vmem:[#allocation63_spill] sm:$0xff] %v9125_v17  ;;  %10859 = vst [vmem:[#allocation64_spill] sm:$0xff] %v9131_v46  ;;  %v9175_v34 = vmul.f32 %v5543_v18, %v9040_v5 }
 0x3fa   :  { %10861 = vst [vmem:[#allocation66_spill] sm:$0xff] %v9143_v7  ;;  %10862 = vst [vmem:[#allocation67_spill] sm:$0xff] %v9149_v61 }
 0x3fb   :  { %4725 = vst.msk [vmem:[%s10618_s6 + $0x220] sm:$0xff] %vm2011_vm0, %v9107_v47  ;;  %4727 = vst.msk [vmem:[%s10618_s6 + $0x230] sm:$0xff] %vm2011_vm0, %v9113_v35  ;;  %v9181_v35 = vmul.f32 %v5544_v36, %v9040_v5  ;;  %v5546_v47 = vld [vmem:[%s10613_s0 + $0x280] sm:$0xff]  ;;  %v5548_v36 = vld [vmem:[%s10613_s0 + $0x290] sm:$0xff] }
 0x3fc   :  { %4722 = vst.msk [vmem:[%s10618_s6 + $0x208] sm:$0xff] %vm2011_vm0, %v9119_v57  ;;  %4729 = vst.msk [vmem:[%s10618_s6 + $0x240] sm:$0xff] %vm2011_vm0, %v9125_v17  ;;  %v5545_v57 = vld [vmem:[%s10613_s0 + $0x248] sm:$0xff]  ;;  %v9193_v18 = vmul.f32 %v5546_v47, %v9040_v5 }
 0x3fd   :  { %10863 = vst [vmem:[#allocation68_spill] sm:$0xff] %v9175_v34  ;;  %10864 = vst [vmem:[#allocation69_spill] sm:$0xff] %v9181_v35  ;;  %v9187_v17 = vmul.f32 %v5545_v57, %v9040_v5  ;;  %v5547_v57 = vld [vmem:[%s10613_s0 + $0x258] sm:$0xff] }
 0x3fe   :  { %10866 = vst [vmem:[#allocation71_spill] sm:$0xff] %v9193_v18  ;;  %4724 = vst.msk [vmem:[%s10618_s6 + $0x218] sm:$0xff] %vm2011_vm0, %v9131_v46  ;;  %v9219_v47 = vmul.f32 %v5547_v57, %v9040_v5 }
 0x3ff   :  { %10865 = vst [vmem:[#allocation70_spill] sm:$0xff] %v9187_v17  ;;  %4731 = vst.msk [vmem:[%s10618_s6 + $0x250] sm:$0xff] %vm2011_vm0, %v9137_v41  ;;  %v9225_v41 = vmul.f32 %v5548_v36, %v9040_v5  ;;  %v5551_v36 = vld [vmem:[%s10613_s0 + $0x278] sm:$0xff] }
 0x400   :  { %4726 = vst.msk [vmem:[%s10618_s6 + $0x228] sm:$0xff] %vm2011_vm0, %v9143_v7  ;;  %4733 = vst.msk [vmem:[%s10618_s6 + $0x260] sm:$0xff] %vm2011_vm0, %v9149_v61  ;;  %v5549_v7 = vld [vmem:[%s10613_s0 + $0x268] sm:$0xff] }
 0x401   :  { %10867 = vst [vmem:[#allocation72_spill] sm:$0xff] %v9219_v47  ;;  %10868 = vst [vmem:[#allocation73_spill] sm:$0xff] %v9225_v41  ;;  %v9231_v61 = vmul.f32 %v5549_v7, %v9040_v5  ;;  %v5550_v7 = vld [vmem:[%s10613_s0 + $0x2a0] sm:$0xff] }
 0x402   :  { %4728 = vst.msk [vmem:[%s10618_s6 + $0x238] sm:$0xff] %vm2011_vm0, %v9175_v34  ;;  %4735 = vst.msk [vmem:[%s10618_s6 + $0x270] sm:$0xff] %vm2011_vm0, %v9181_v35  ;;  %v9257_v57 = vmul.f32 %v5550_v7, %v9040_v5  ;;  %v9263_v35 = vmul.f32 %v5551_v36, %v9040_v5  ;;  %v10872_v7 = vld [vmem:[#allocation3_spill] sm:$0xff]  ;;  %v5553_v34 = vld [vmem:[%s10613_s0 + $0x298] sm:$0xff] }
 0x403   :  { %10869 = vst [vmem:[#allocation74_spill] sm:$0xff] %v9231_v61  ;;  %4730 = vst.msk [vmem:[%s10618_s6 + $0x248] sm:$0xff] %vm2011_vm0, %v9187_v17  ;;  %v9282_v36 = vmul.f32 %v10872_v7, %v9040_v5  ;;  %v10875_v17 = vld [vmem:[#allocation4_spill] sm:$0xff] }
 0x404   :  { %4737 = vst.msk [vmem:[%s10618_s6 + $0x280] sm:$0xff] %vm2011_vm0, %v9193_v18  ;;  %10870 = vst [vmem:[#allocation75_spill] sm:$0xff] %v9257_v57 }
 0x405   :  { %10871 = vst [vmem:[#allocation76_spill] sm:$0xff] %v9263_v35  ;;  %4732 = vst.msk [vmem:[%s10618_s6 + $0x258] sm:$0xff] %vm2011_vm0, %v9219_v47  ;;  %v5552_v47 = vld [vmem:[%s10613_s0 + $0x288] sm:$0xff] }
 0x406   :  { %4739 = vst.msk [vmem:[%s10618_s6 + $0x290] sm:$0xff] %vm2011_vm0, %v9225_v41  ;;  %4734 = vst.msk [vmem:[%s10618_s6 + $0x268] sm:$0xff] %vm2011_vm0, %v9231_v61  ;;  %v9288_v18 = vmul.f32 %v5552_v47, %v9040_v5  ;;  %v9292_v41 = vmul.f32 %v10875_v17, %v9040_v5  ;;  %v9298_v61 = vmul.f32 %v5553_v34, %v9040_v5  ;;  %v10878_v17 = vld [vmem:[#allocation6_spill] sm:$0xff]  ;;  %v5554_v34 = vld [vmem:[%s10613_s0 + $0x2a8] sm:$0xff] }
 0x407   :  { %10873 = vst [vmem:[#allocation3_spill] sm:$0xff] %v9282_v36  ;;  %4741 = vst.msk [vmem:[%s10618_s6 + $0x2a0] sm:$0xff] %vm2011_vm0, %v9257_v57  ;;  %v9312_v47 = vmul.f32 %v10878_v17, %v9040_v5  ;;  %v9318_v7 = vmul.f32 %v5554_v34, %v9040_v5  ;;  %v10881_v17 = vld [vmem:[#allocation8_spill] sm:$0xff] }
 0x408   :  { %10874 = vst [vmem:[#allocation77_spill] sm:$0xff] %v9288_v18  ;;  %10876 = vst [vmem:[#allocation4_spill] sm:$0xff] %v9292_v41  ;;  %v9352_v34 = vmul.f32 %v10881_v17, %v9040_v5  ;;  %v10890_v17 = vld [vmem:[#allocation7_spill] sm:$0xff] }
 0x409   :  { %10877 = vst [vmem:[#allocation78_spill] sm:$0xff] %v9298_v61  ;;  %4736 = vst.msk [vmem:[%s10618_s6 + $0x278] sm:$0xff] %vm2011_vm0, %v9263_v35  ;;  %v9374_v46 = vmul.f32 %v10890_v17, %v9040_v5  ;;  %v10896_v17 = vld [vmem:[#allocation16_spill] sm:$0xff] }
 0x40a   :  { %10879 = vst [vmem:[#allocation6_spill] sm:$0xff] %v9312_v47  ;;  %10880 = vst [vmem:[#allocation79_spill] sm:$0xff] %v9318_v7 }
 0x40b   :  { %4743 = vst.msk [vmem:[%s10618_s6 + $0x2b0] sm:$0xff] %vm2011_vm0, %v9282_v36  ;;  %4738 = vst.msk [vmem:[%s10618_s6 + $0x288] sm:$0xff] %vm2011_vm0, %v9288_v18  ;;  %v10884_v18 = vld [vmem:[#allocation10_spill] sm:$0xff]  ;;  %v10886_v36 = vld [vmem:[#allocation5_spill] sm:$0xff] }
 0x40c   :  { %4745 = vst.msk [vmem:[%s10618_s6 + $0x2c0] sm:$0xff] %vm2011_vm0, %v9292_v41  ;;  %4740 = vst.msk [vmem:[%s10618_s6 + $0x298] sm:$0xff] %vm2011_vm0, %v9298_v61  ;;  %v5555_v61 = vld [vmem:[%s10613_s0 + $0x2b8] sm:$0xff]  ;;  %v9366_v35 = vmul.f32 %v10886_v36, %v9040_v5  ;;  %v10894_v36 = vld [vmem:[#allocation9_spill] sm:$0xff] }
 0x40d   :  { %4747 = vst.msk [vmem:[%s10618_s6 + $0x2d0] sm:$0xff] %vm2011_vm0, %v9312_v47  ;;  %4742 = vst.msk [vmem:[%s10618_s6 + $0x2a8] sm:$0xff] %vm2011_vm0, %v9318_v7  ;;  %v9358_v41 = vmul.f32 %v5555_v61, %v9040_v5  ;;  %v9362_v47 = vmul.f32 %v10884_v18, %v9040_v5  ;;  %v10888_v7 = vld [vmem:[#allocation12_spill] sm:$0xff]  ;;  %v10892_v61 = vld [vmem:[#allocation14_spill] sm:$0xff] }
 0x40e   :  { %10882 = vst [vmem:[#allocation8_spill] sm:$0xff] %v9352_v34  ;;  %10887 = vst [vmem:[#allocation5_spill] sm:$0xff] %v9366_v35  ;;  %v9370_v57 = vmul.f32 %v10888_v7, %v9040_v5  ;;  %v9388_v18 = vmul.f32 %v10892_v61, %v9040_v5  ;;  %v9392_v7 = vmul.f32 %v10894_v36, %v9040_v5  ;;  %v10898_v36 = vld [vmem:[#allocation11_spill] sm:$0xff] }
 0x40f   :  { %10883 = vst [vmem:[#allocation80_spill] sm:$0xff] %v9358_v41  ;;  %10885 = vst [vmem:[#allocation10_spill] sm:$0xff] %v9362_v47  ;;  %v9426_v61 = vmul.f32 %v10896_v17, %v9040_v5 }
 0x410   :  { %10889 = vst [vmem:[#allocation12_spill] sm:$0xff] %v9370_v57  ;;  %10891 = vst [vmem:[#allocation7_spill] sm:$0xff] %v9374_v46 }
 0x411   :  { %4749 = vst.msk [vmem:[%s10618_s6 + $0x2e0] sm:$0xff] %vm2011_vm0, %v9352_v34  ;;  %4744 = vst.msk [vmem:[%s10618_s6 + $0x2b8] sm:$0xff] %vm2011_vm0, %v9358_v41  ;;  %v10904_v41 = vld [vmem:[#allocation20_spill] sm:$0xff] }
 0x412   :  { %10893 = vst [vmem:[#allocation14_spill] sm:$0xff] %v9388_v18  ;;  %10895 = vst [vmem:[#allocation9_spill] sm:$0xff] %v9392_v7  ;;  %v9442_v34 = vmul.f32 %v10904_v41, %v9040_v5 }
 0x413   :  { %4751 = vst.msk [vmem:[%s10618_s6 + $0x2f0] sm:$0xff] %vm2011_vm0, %v9362_v47  ;;  %4746 = vst.msk [vmem:[%s10618_s6 + $0x2c8] sm:$0xff] %vm2011_vm0, %v9366_v35 }
 0x414   :  { %4753 = vst.msk [vmem:[%s10618_s6 + $0x300] sm:$0xff] %vm2011_vm0, %v9370_v57  ;;  %4748 = vst.msk [vmem:[%s10618_s6 + $0x2d8] sm:$0xff] %vm2011_vm0, %v9374_v46  ;;  %v9430_v57 = vmul.f32 %v10898_v36, %v9040_v5  ;;  %v10900_v46 = vld [vmem:[#allocation18_spill] sm:$0xff]  ;;  %v10912_v36 = vld [vmem:[#allocation24_spill] sm:$0xff] }
 0x415   :  { %4755 = vst.msk [vmem:[%s10618_s6 + $0x310] sm:$0xff] %vm2011_vm0, %v9388_v18  ;;  %4750 = vst.msk [vmem:[%s10618_s6 + $0x2e8] sm:$0xff] %vm2011_vm0, %v9392_v7  ;;  %v9434_v35 = vmul.f32 %v10900_v46, %v9040_v5  ;;  %v10902_v18 = vld [vmem:[#allocation13_spill] sm:$0xff]  ;;  %v10906_v7 = vld [vmem:[#allocation15_spill] sm:$0xff] }
 0x416   :  { %10897 = vst [vmem:[#allocation16_spill] sm:$0xff] %v9426_v61  ;;  %10899 = vst [vmem:[#allocation11_spill] sm:$0xff] %v9430_v57  ;;  %v9438_v47 = vmul.f32 %v10902_v18, %v9040_v5  ;;  %v9446_v17 = vmul.f32 %v10906_v7, %v9040_v5  ;;  %v10908_v46 = vld [vmem:[#allocation22_spill] sm:$0xff]  ;;  %v10910_v18 = vld [vmem:[#allocation17_spill] sm:$0xff] }
 0x417   :  { %10901 = vst [vmem:[#allocation18_spill] sm:$0xff] %v9434_v35  ;;  %10905 = vst [vmem:[#allocation20_spill] sm:$0xff] %v9442_v34  ;;  %v9460_v41 = vmul.f32 %v10908_v46, %v9040_v5  ;;  %v9464_v7 = vmul.f32 %v10910_v18, %v9040_v5  ;;  %v9498_v46 = vmul.f32 %v10912_v36, %v9040_v5  ;;  %v10914_v18 = vld [vmem:[#allocation19_spill] sm:$0xff] }
 0x418   :  { %10903 = vst [vmem:[#allocation13_spill] sm:$0xff] %v9438_v47  ;;  %10907 = vst [vmem:[#allocation15_spill] sm:$0xff] %v9446_v17 }
 0x419   :  { %4757 = vst.msk [vmem:[%s10618_s6 + $0x320] sm:$0xff] %vm2011_vm0, %v9426_v61  ;;  %4752 = vst.msk [vmem:[%s10618_s6 + $0x2f8] sm:$0xff] %vm2011_vm0, %v9430_v57  ;;  %v10920_v57 = vld [vmem:[#allocation28_spill] sm:$0xff] }
 0x41a   :  { %10909 = vst [vmem:[#allocation22_spill] sm:$0xff] %v9460_v41  ;;  %10911 = vst [vmem:[#allocation17_spill] sm:$0xff] %v9464_v7  ;;  %v9514_v61 = vmul.f32 %v10920_v57, %v9040_v5 }
 0x41b   :  { %4759 = vst.msk [vmem:[%s10618_s6 + $0x330] sm:$0xff] %vm2011_vm0, %v9434_v35  ;;  %4754 = vst.msk [vmem:[%s10618_s6 + $0x308] sm:$0xff] %vm2011_vm0, %v9438_v47 }
 0x41c   :  { %4761 = vst.msk [vmem:[%s10618_s6 + $0x340] sm:$0xff] %vm2011_vm0, %v9442_v34  ;;  %4756 = vst.msk [vmem:[%s10618_s6 + $0x318] sm:$0xff] %vm2011_vm0, %v9446_v17  ;;  %v9502_v34 = vmul.f32 %v10914_v18, %v9040_v5  ;;  %v10916_v17 = vld [vmem:[#allocation26_spill] sm:$0xff]  ;;  %v10928_v18 = vld [vmem:[#allocation32_spill] sm:$0xff] }
 0x41d   :  { %4763 = vst.msk [vmem:[%s10618_s6 + $0x350] sm:$0xff] %vm2011_vm0, %v9460_v41  ;;  %4758 = vst.msk [vmem:[%s10618_s6 + $0x328] sm:$0xff] %vm2011_vm0, %v9464_v7  ;;  %v9506_v47 = vmul.f32 %v10916_v17, %v9040_v5  ;;  %v10918_v41 = vld [vmem:[#allocation21_spill] sm:$0xff]  ;;  %v10922_v7 = vld [vmem:[#allocation23_spill] sm:$0xff] }
 0x41e   :  { %10913 = vst [vmem:[#allocation24_spill] sm:$0xff] %v9498_v46  ;;  %10915 = vst [vmem:[#allocation19_spill] sm:$0xff] %v9502_v34  ;;  %v9510_v35 = vmul.f32 %v10918_v41, %v9040_v5  ;;  %v9518_v36 = vmul.f32 %v10922_v7, %v9040_v5  ;;  %v10924_v17 = vld [vmem:[#allocation30_spill] sm:$0xff]  ;;  %v10926_v41 = vld [vmem:[#allocation25_spill] sm:$0xff] }
 0x41f   :  { %10917 = vst [vmem:[#allocation26_spill] sm:$0xff] %v9506_v47  ;;  %10921 = vst [vmem:[#allocation28_spill] sm:$0xff] %v9514_v61  ;;  %v9532_v57 = vmul.f32 %v10924_v17, %v9040_v5  ;;  %v9536_v7 = vmul.f32 %v10926_v41, %v9040_v5  ;;  %v9570_v17 = vmul.f32 %v10928_v18, %v9040_v5  ;;  %v10930_v41 = vld [vmem:[#allocation27_spill] sm:$0xff] }
 0x420   :  { %10919 = vst [vmem:[#allocation21_spill] sm:$0xff] %v9510_v35  ;;  %10923 = vst [vmem:[#allocation23_spill] sm:$0xff] %v9518_v36 }
 0x421   :  { %4765 = vst.msk [vmem:[%s10618_s6 + $0x360] sm:$0xff] %vm2011_vm0, %v9498_v46  ;;  %4760 = vst.msk [vmem:[%s10618_s6 + $0x338] sm:$0xff] %vm2011_vm0, %v9502_v34  ;;  %v10936_v34 = vld [vmem:[#allocation36_spill] sm:$0xff] }
 0x422   :  { %10925 = vst [vmem:[#allocation30_spill] sm:$0xff] %v9532_v57  ;;  %10927 = vst [vmem:[#allocation25_spill] sm:$0xff] %v9536_v7  ;;  %v9586_v46 = vmul.f32 %v10936_v34, %v9040_v5 }
 0x423   :  { %4767 = vst.msk [vmem:[%s10618_s6 + $0x370] sm:$0xff] %vm2011_vm0, %v9506_v47  ;;  %4762 = vst.msk [vmem:[%s10618_s6 + $0x348] sm:$0xff] %vm2011_vm0, %v9510_v35 }
 0x424   :  { %4769 = vst.msk [vmem:[%s10618_s6 + $0x380] sm:$0xff] %vm2011_vm0, %v9514_v61  ;;  %4764 = vst.msk [vmem:[%s10618_s6 + $0x358] sm:$0xff] %vm2011_vm0, %v9518_v36  ;;  %v9574_v61 = vmul.f32 %v10930_v41, %v9040_v5  ;;  %v10932_v36 = vld [vmem:[#allocation34_spill] sm:$0xff]  ;;  %v10944_v41 = vld [vmem:[#allocation41_spill] sm:$0xff] }
 0x425   :  { %4771 = vst.msk [vmem:[%s10618_s6 + $0x390] sm:$0xff] %vm2011_vm0, %v9532_v57  ;;  %4766 = vst.msk [vmem:[%s10618_s6 + $0x368] sm:$0xff] %vm2011_vm0, %v9536_v7  ;;  %v9578_v35 = vmul.f32 %v10932_v36, %v9040_v5  ;;  %v10934_v57 = vld [vmem:[#allocation29_spill] sm:$0xff]  ;;  %v10938_v7 = vld [vmem:[#allocation31_spill] sm:$0xff] }
 0x426   :  { %10929 = vst [vmem:[#allocation32_spill] sm:$0xff] %v9570_v17  ;;  %10931 = vst [vmem:[#allocation27_spill] sm:$0xff] %v9574_v61  ;;  %v9582_v47 = vmul.f32 %v10934_v57, %v9040_v5  ;;  %v9590_v18 = vmul.f32 %v10938_v7, %v9040_v5  ;;  %v10940_v36 = vld [vmem:[#allocation39_spill] sm:$0xff]  ;;  %v10942_v57 = vld [vmem:[#allocation33_spill] sm:$0xff] }
 0x427   :  { %10933 = vst [vmem:[#allocation34_spill] sm:$0xff] %v9578_v35  ;;  %10937 = vst [vmem:[#allocation36_spill] sm:$0xff] %v9586_v46  ;;  %v9604_v34 = vmul.f32 %v10940_v36, %v9040_v5  ;;  %v9608_v7 = vmul.f32 %v10942_v57, %v9040_v5  ;;  %v9642_v36 = vmul.f32 %v10944_v41, %v9040_v5  ;;  %v10945_v57 = vld [vmem:[#allocation35_spill] sm:$0xff] }
 0x428   :  { %10935 = vst [vmem:[#allocation29_spill] sm:$0xff] %v9582_v47  ;;  %10939 = vst [vmem:[#allocation31_spill] sm:$0xff] %v9590_v18 }
 0x429   :  { %4773 = vst.msk [vmem:[%s10618_s6 + $0x3a0] sm:$0xff] %vm2011_vm0, %v9570_v17  ;;  %4768 = vst.msk [vmem:[%s10618_s6 + $0x378] sm:$0xff] %vm2011_vm0, %v9574_v61  ;;  %v10950_v61 = vld [vmem:[#allocation40_spill] sm:$0xff] }
 0x42a   :  { %10941 = vst [vmem:[#allocation39_spill] sm:$0xff] %v9604_v34  ;;  %10943 = vst [vmem:[#allocation33_spill] sm:$0xff] %v9608_v7  ;;  %v9658_v17 = vmul.f32 %v10950_v61, %v9040_v5 }
 0x42b   :  { %4775 = vst.msk [vmem:[%s10618_s6 + $0x3b0] sm:$0xff] %vm2011_vm0, %v9578_v35  ;;  %4770 = vst.msk [vmem:[%s10618_s6 + $0x388] sm:$0xff] %vm2011_vm0, %v9582_v47 }
 0x42c   :  { %4777 = vst.msk [vmem:[%s10618_s6 + $0x3c0] sm:$0xff] %vm2011_vm0, %v9586_v46  ;;  %4772 = vst.msk [vmem:[%s10618_s6 + $0x398] sm:$0xff] %vm2011_vm0, %v9590_v18  ;;  %v9646_v46 = vmul.f32 %v10945_v57, %v9040_v5  ;;  %v10946_v18 = vld [vmem:[#allocation43_spill] sm:$0xff]  ;;  %v10956_v57 = vld [vmem:[#allocation45_spill] sm:$0xff] }
 0x42d   :  { %4779 = vst.msk [vmem:[%s10618_s6 + $0x3d0] sm:$0xff] %vm2011_vm0, %v9604_v34  ;;  %4774 = vst.msk [vmem:[%s10618_s6 + $0x3a8] sm:$0xff] %vm2011_vm0, %v9608_v7  ;;  %v9650_v47 = vmul.f32 %v10946_v18, %v9040_v5  ;;  %v10948_v34 = vld [vmem:[#allocation38_spill] sm:$0xff]  ;;  %v10954_v18 = vld [vmem:[#allocation44_spill] sm:$0xff] }
 0x42e   :  { %v9654_v35 = vmul.f32 %v10948_v34, %v9040_v5  ;;  %10951 = vst [vmem:[#allocation43_spill] sm:$0xff] %v9658_v17  ;;  %v10952_v7 = vld [vmem:[#allocation42_spill] sm:$0xff]  ;;  %4781 = vst.msk [vmem:[%s10618_s6 + $0x3e0] sm:$0xff] %vm2011_vm0, %v9642_v36  ;;  %v9676_v61 = vmul.f32 %v10954_v18, %v9040_v5 }
 0x42f   :  { %10947 = vst [vmem:[#allocation41_spill] sm:$0xff] %v9650_v47  ;;  %v9662_v41 = vmul.f32 %v10952_v7, %v9040_v5  ;;  %4776 = vst.msk [vmem:[%s10618_s6 + $0x3b8] sm:$0xff] %vm2011_vm0, %v9646_v46 }
 0x430   :  { %10949 = vst [vmem:[#allocation35_spill] sm:$0xff] %v9654_v35  ;;  %10955 = vst [vmem:[#allocation40_spill] sm:$0xff] %v9676_v61 }
 0x431   :  { %10953 = vst [vmem:[#allocation38_spill] sm:$0xff] %v9662_v41  ;;  %4783 = vst.msk [vmem:[%s10618_s6 + $0x3f0] sm:$0xff] %vm2011_vm0, %v9650_v47 }
 0x432   :  { %4778 = vst.msk [vmem:[%s10618_s6 + $0x3c8] sm:$0xff] %vm2011_vm0, %v9654_v35  ;;  %4780 = vst.msk [vmem:[%s10618_s6 + $0x3d8] sm:$0xff] %vm2011_vm0, %v9658_v17 }
 0x433   :  { %4782 = vst.msk [vmem:[%s10618_s6 + $0x3e8] sm:$0xff] %vm2011_vm0, %v9662_v41  ;;  %4784 = vst.msk [vmem:[%s10618_s6 + $0x3f8] sm:$0xff] %vm2011_vm0, %v9676_v61 }
 0x456   :  { %v2155_v5 = vpop.xlane.xlu1 %2154 }
 0x457   :  { %5378 = vrcp.f32 %v2155_v5 }
 0x45a   :  { %v3920_v34 = vpop.xlane.xlu1 %3919 }
 0x45b   :  { %5380 = vrcp.f32 %v3920_v34  ;;  %v10957_v34 = vld [vmem:[#allocation46_spill] sm:$0xff] }
 0x461   :  { %v5379_v7 = vpop.eup %5378 }
 0x462   :  { %v9704_v18 = vmul.f32 %v5379_v7, %v10956_v57 }
 0x464   :  { %2814 = vst.msk [vmem:[%s10619_s7] sm:$0x1] %vm2813_vm5, %v9704_v18  ;;  %v2430_v41 = vmul.f32 %v8454_v0, %v9704_v18  ;;  %v2428_v61 = vmul.f32 %v8460_v56, %v9704_v18  ;;  %v2432_v5 = vmul.f32 %v8466_v58, %v9704_v18  ;;  %v2429_v47 = vmul.f32 %v8472_v13, %v9704_v18 }
 0x465   :  { %v5381_v17 = vpop.eup %5380  ;;  %v2435_v58 = vmul.f32 %v8478_v10, %v9704_v18 }
 0x466   :  { %v9717_v35 = vmul.f32 %v5381_v17, %v10957_v34  ;;  %v2498_v7 = vsel %vm2011_vm0, %v2430_v41, 0.0  ;;  %v2492_v57 = vsel %vm2011_vm0, %v2428_v61, 0.0  ;;  %v2504_v0 = vsel %vm2011_vm0, %v2432_v5, 0.0 }
 0x467   :  { %2499 = vadd.xlane.f32.xlu1 %v2498_v7  ;;  %2493 = vadd.xlane.f32.xlu0 %v2492_v57  ;;  %v2495_v56 = vsel %vm2011_vm0, %v2429_v47, 0.0  ;;  %v2431_v17 = vmul.f32 %v8484_v52, %v9704_v18  ;;  %v2513_v13 = vsel %vm2011_vm0, %v2435_v58, 0.0  ;;  %v2437_v61 = vmul.f32 %v8490_v27, %v9704_v18  ;;  %v10958_v57 = vld [vmem:[#allocation47_spill] sm:$0xff] }
 0x468   :  { %4785 = vst.msk [vmem:[%s10619_s7 + $0x1] sm:$0x1] %vm2813_vm5, %v9717_v35  ;;  %v2433_v5 = vmul.f32 %v8496_v15, %v9704_v18  ;;  %v2439_v52 = vmul.f32 %v8502_v55, %v9704_v18  ;;  %v2434_v34 = vmul.f32 %v8508_v39, %v9704_v18  ;;  %v2441_v15 = vmul.f32 %v8514_v38, %v9704_v18  ;;  %v10959_v39 = vld [vmem:[#allocation48_spill] sm:$0xff] }
 0x469   :  { %v2501_v41 = vsel %vm2011_vm0, %v2431_v17, 0.0  ;;  %v2519_v47 = vsel %vm2011_vm0, %v2437_v61, 0.0  ;;  %v2443_v58 = vmul.f32 %v10959_v39, %v9704_v18  ;;  %v10960_v17 = vld [vmem:[#allocation49_spill] sm:$0xff]  ;;  %v10961_v61 = vld [vmem:[#allocation50_spill] sm:$0xff] }
 0x46a   :  { %v2507_v10 = vsel %vm2011_vm0, %v2433_v5, 0.0  ;;  %v2525_v7 = vsel %vm2011_vm0, %v2439_v52, 0.0  ;;  %v2510_v27 = vsel %vm2011_vm0, %v2434_v34, 0.0  ;;  %v2445_v5 = vmul.f32 %v10961_v61, %v9704_v18 }
 0x46b   :  { %2505 = vadd.xlane.f32.xlu1 %v2504_v0  ;;  %2496 = vadd.xlane.f32.xlu0 %v2495_v56  ;;  %v2436_v0 = vmul.f32 %v10958_v57, %v9704_v18  ;;  %v2531_v56 = vsel %vm2011_vm0, %v2441_v15, 0.0  ;;  %v2442_v15 = vmul.f32 %v8646_v8, %v9704_v18  ;;  %v2451_v8 = vmul.f32 %v8662_v62, %v9704_v18 }
 0x46c   :  { %v2543_v52 = vsel %vm2011_vm0, %v2445_v5, 0.0  ;;  %v2450_v61 = vmul.f32 %v8730_v31, %v9704_v18  ;;  %v2459_v31 = vmul.f32 %v8742_v42, %v9704_v18 }
 0x46d   :  { %v2516_v55 = vsel %vm2011_vm0, %v2436_v0, 0.0  ;;  %v2534_v0 = vsel %vm2011_vm0, %v2442_v15, 0.0  ;;  %v2458_v15 = vmul.f32 %v8802_v14, %v9704_v18  ;;  %v2467_v14 = vmul.f32 %v8814_v3, %v9704_v18 }
 0x46f   :  { %2514 = vadd.xlane.f32.xlu1 %v2513_v13  ;;  %2502 = vadd.xlane.f32.xlu0 %v2501_v41  ;;  %v2438_v13 = vmul.f32 %v10960_v17, %v9704_v18  ;;  %v2537_v41 = vsel %vm2011_vm0, %v2443_v58, 0.0  ;;  %v2446_v17 = vmul.f32 %v8668_v4, %v9704_v18  ;;  %v2455_v4 = vmul.f32 %v8697_v1, %v9704_v18 }
 0x471   :  { %v2522_v38 = vsel %vm2011_vm0, %v2438_v13, 0.0  ;;  %v2561_v13 = vsel %vm2011_vm0, %v2451_v8, 0.0  ;;  %v2573_v5 = vsel %vm2011_vm0, %v2455_v4, 0.0 }
 0x473   :  { %2520 = vadd.xlane.f32.xlu1 %v2519_v47  ;;  %2508 = vadd.xlane.f32.xlu0 %v2507_v10  ;;  %v10962_v47 = vld [vmem:[#allocation51_spill] sm:$0xff] }
 0x474   :  { %v2440_v10 = vmul.f32 %v10962_v47, %v9704_v18  ;;  %v2452_v47 = vmul.f32 %v8738_v11, %v9704_v18  ;;  %v2461_v11 = vmul.f32 %v8750_v9, %v9704_v18  ;;  %v2582_v9 = vsel %vm2011_vm0, %v2458_v15, 0.0 }
 0x476   :  { %v2528_v34 = vsel %vm2011_vm0, %v2440_v10, 0.0  ;;  %v2564_v1 = vsel %vm2011_vm0, %v2452_v47, 0.0  ;;  %v2477_v47 = vmul.f32 %v8962_v50, %v9704_v18  ;;  %v2488_v50 = vmul.f32 %v8989_v51, %v9704_v18 }
 0x477   :  { %2526 = vadd.xlane.f32.xlu1 %v2525_v7  ;;  %2511 = vadd.xlane.f32.xlu0 %v2510_v27  ;;  %v10963_v7 = vld [vmem:[#allocation52_spill] sm:$0xff] }
 0x478   :  { %v2447_v27 = vmul.f32 %v10963_v7, %v9704_v18  ;;  %v2456_v7 = vmul.f32 %v8754_v43, %v9704_v18  ;;  %v2465_v43 = vmul.f32 %v8806_v60, %v9704_v18 }
 0x47a   :  { %v2549_v57 = vsel %vm2011_vm0, %v2447_v27, 0.0  ;;  %v2591_v27 = vsel %vm2011_vm0, %v2461_v11, 0.0  ;;  %v2576_v42 = vsel %vm2011_vm0, %v2456_v7, 0.0  ;;  %v10965_v11 = vld [vmem:[#allocation54_spill] sm:$0xff] }
 0x47b   :  { %2532 = vadd.xlane.f32.xlu1 %v2531_v56  ;;  %2517 = vadd.xlane.f32.xlu0 %v2516_v55  ;;  %v2449_v56 = vmul.f32 %v8652_v63, %v9704_v18  ;;  %v2444_v55 = vmul.f32 %v8658_v23, %v9704_v18  ;;  %v2546_v63 = vsel %vm2011_vm0, %v2446_v17, 0.0  ;;  %v2453_v23 = vmul.f32 %v8672_v45, %v9704_v18 }
 0x47c   :  { %v2558_v45 = vsel %vm2011_vm0, %v2450_v61, 0.0  ;;  %v2466_v17 = vmul.f32 %v8874_v28, %v9704_v18  ;;  %v2475_v28 = vmul.f32 %v8886_v37, %v9704_v18  ;;  %v2474_v61 = vmul.f32 %v8946_v53, %v9704_v18 }
 0x47d   :  { %v2555_v39 = vsel %vm2011_vm0, %v2449_v56, 0.0  ;;  %v2540_v58 = vsel %vm2011_vm0, %v2444_v55, 0.0  ;;  %v2603_v56 = vsel %vm2011_vm0, %v2465_v43, 0.0  ;;  %v2462_v55 = vmul.f32 %v8818_v29, %v9704_v18  ;;  %v10968_v43 = vld [vmem:[#allocation56_spill] sm:$0xff] }
 0x47e   :  { %v2471_v29 = vmul.f32 %v8845_v22, %v9704_v18  ;;  %v2484_v53 = vmul.f32 %v8958_v32, %v9704_v18  ;;  %v2483_v7 = vmul.f32 %v10965_v11, %v9704_v18 }
 0x47f   :  { %2538 = vadd.xlane.f32.xlu1 %v2537_v41  ;;  %2523 = vadd.xlane.f32.xlu0 %v2522_v38  ;;  %v2448_v41 = vmul.f32 %v8678_v6, %v9704_v18  ;;  %v2567_v38 = vsel %vm2011_vm0, %v2453_v23, 0.0  ;;  %v2457_v6 = vmul.f32 %v8734_v48, %v9704_v18  ;;  %v2594_v60 = vsel %vm2011_vm0, %v2462_v55, 0.0 }
 0x480   :  { %v2657_v51 = vsel %vm2011_vm0, %v2483_v7, 0.0 }
 0x481   :  { %v2552_v62 = vsel %vm2011_vm0, %v2448_v41, 0.0  ;;  %v2579_v10 = vsel %vm2011_vm0, %v2457_v6, 0.0  ;;  %v2470_v41 = vmul.f32 %v8890_v26, %v9704_v18  ;;  %v2480_v26 = vmul.f32 %v8917_v25, %v9704_v18 }
 0x483   :  { %2544 = vadd.xlane.f32.xlu1 %v2543_v52  ;;  %2529 = vadd.xlane.f32.xlu0 %v2528_v34  ;;  %v2454_v52 = vmul.f32 %v8746_v20, %v9704_v18  ;;  %v2585_v34 = vsel %vm2011_vm0, %v2459_v31, 0.0  ;;  %v2463_v20 = vmul.f32 %v8773_v19, %v9704_v18 }
 0x485   :  { %v2570_v48 = vsel %vm2011_vm0, %v2454_v52, 0.0  ;;  %v2481_v52 = vmul.f32 %v9018_v33, %v9704_v18  ;;  %v10966_v33 = vld [vmem:[#allocation55_spill] sm:$0xff] }
 0x487   :  { %2550 = vadd.xlane.f32.xlu1 %v2549_v57  ;;  %2535 = vadd.xlane.f32.xlu0 %v2534_v0  ;;  %v2597_v57 = vsel %vm2011_vm0, %v2463_v20, 0.0  ;;  %v2460_v0 = vmul.f32 %v8810_v12, %v9704_v18  ;;  %v2469_v12 = vmul.f32 %v8822_v44, %v9704_v18  ;;  %v2606_v44 = vsel %vm2011_vm0, %v2466_v17, 0.0  ;;  %v10967_v20 = vld [vmem:[#allocation58_spill] sm:$0xff] }
 0x488   :  { %v4193_v15 = vmul.f32 %v10967_v20, %v9717_v35 }
 0x489   :  { %v2588_v19 = vsel %vm2011_vm0, %v2460_v0, 0.0  ;;  %v2615_v8 = vsel %vm2011_vm0, %v2469_v12, 0.0  ;;  %v2487_v0 = vmul.f32 %v10968_v43, %v9704_v18  ;;  %v10971_v12 = vld [vmem:[#allocation60_spill] sm:$0xff] }
 0x48b   :  { %2556 = vadd.xlane.f32.xlu1 %v2555_v39  ;;  %2541 = vadd.xlane.f32.xlu0 %v2540_v58  ;;  %v2609_v39 = vsel %vm2011_vm0, %v2467_v14, 0.0  ;;  %v2464_v58 = vmul.f32 %v8826_v16, %v9704_v18  ;;  %v2473_v16 = vmul.f32 %v8878_v2, %v9704_v18  ;;  %v2618_v2 = vsel %vm2011_vm0, %v2470_v41, 0.0 }
 0x48c   :  { %v2669_v14 = vsel %vm2011_vm0, %v2487_v0, 0.0  ;;  %v10986_v0 = vld [vmem:[#allocation74_spill] sm:$0xff] }
 0x48d   :  { %v2600_v3 = vsel %vm2011_vm0, %v2464_v58, 0.0  ;;  %v2627_v23 = vsel %vm2011_vm0, %v2473_v16, 0.0  ;;  %v4197_v58 = vmul.f32 %v10971_v12, %v9717_v35 }
 0x48f   :  { %2562 = vadd.xlane.f32.xlu1 %v2561_v13  ;;  %2547 = vadd.xlane.f32.xlu0 %v2546_v63  ;;  %v2621_v13 = vsel %vm2011_vm0, %v2471_v29, 0.0  ;;  %v2468_v63 = vmul.f32 %v8882_v54, %v9704_v18  ;;  %v2478_v54 = vmul.f32 %v8894_v24, %v9704_v18  ;;  %v2630_v24 = vsel %vm2011_vm0, %v2474_v61, 0.0  ;;  %v10972_v29 = vld [vmem:[#allocation37_spill] sm:$0xff]  ;;  %v10978_v61 = vld [vmem:[#allocation66_spill] sm:$0xff] }
 0x490   :  { %v2491_v17 = vmul.f32 %v10972_v29, %v9704_v18 }
 0x491   :  { %v2612_v22 = vsel %vm2011_vm0, %v2468_v63, 0.0  ;;  %v2642_v4 = vsel %vm2011_vm0, %v2478_v54, 0.0 }
 0x492   :  { %v2681_v16 = vsel %vm2011_vm0, %v2491_v17, 0.0 }
 0x493   :  { %2568 = vadd.xlane.f32.xlu1 %v2567_v38  ;;  %2553 = vadd.xlane.f32.xlu0 %v2552_v62  ;;  %v2633_v38 = vsel %vm2011_vm0, %v2475_v28, 0.0  ;;  %v2472_v62 = vmul.f32 %v8898_v30, %v9704_v18  ;;  %v2482_v30 = vmul.f32 %v8950_v21, %v9704_v18  ;;  %v2639_v21 = vsel %vm2011_vm0, %v2477_v47, 0.0  ;;  %v10975_v28 = vld [vmem:[#allocation63_spill] sm:$0xff]  ;;  %v10980_v47 = vld [vmem:[#allocation68_spill] sm:$0xff] }
 0x494   :  { %v4201_v41 = vmul.f32 %v10975_v28, %v9717_v35 }
 0x495   :  { %v2624_v37 = vsel %vm2011_vm0, %v2472_v62, 0.0  ;;  %v2654_v6 = vsel %vm2011_vm0, %v2482_v30, 0.0  ;;  %v10977_v62 = vld [vmem:[#allocation65_spill] sm:$0xff] }
 0x496   :  { %v4281_v54 = vsel %vm2011_vm0, %v4201_v41, 0.0 }
 0x497   :  { %2574 = vadd.xlane.f32.xlu1 %v2573_v5  ;;  %2559 = vadd.xlane.f32.xlu0 %v2558_v45  ;;  %v2648_v5 = vsel %vm2011_vm0, %v2480_v26, 0.0  ;;  %v2476_v45 = vmul.f32 %v8954_v40, %v9704_v18  ;;  %v2486_v40 = vmul.f32 %v8966_v49, %v9704_v18  ;;  %v2651_v49 = vsel %vm2011_vm0, %v2481_v52, 0.0  ;;  %v10982_v52 = vld [vmem:[#allocation70_spill] sm:$0xff] }
 0x499   :  { %v2636_v25 = vsel %vm2011_vm0, %v2476_v45, 0.0  ;;  %v2666_v31 = vsel %vm2011_vm0, %v2486_v40, 0.0 }
 0x49b   :  { %2580 = vadd.xlane.f32.xlu1 %v2579_v10  ;;  %2565 = vadd.xlane.f32.xlu0 %v2564_v1  ;;  %v2660_v10 = vsel %vm2011_vm0, %v2484_v53, 0.0  ;;  %v2479_v1 = vmul.f32 %v8970_v59, %v9704_v18  ;;  %v10964_v59 = vld [vmem:[#allocation53_spill] sm:$0xff] }
 0x49d   :  { %v2645_v32 = vsel %vm2011_vm0, %v2479_v1, 0.0 }
 0x49f   :  { %2586 = vadd.xlane.f32.xlu1 %v2585_v34  ;;  %2571 = vadd.xlane.f32.xlu0 %v2570_v48  ;;  %v2672_v34 = vsel %vm2011_vm0, %v2488_v50, 0.0  ;;  %v2490_v48 = vmul.f32 %v10964_v59, %v9704_v18 }
 0x4a3   :  { %2592 = vadd.xlane.f32.xlu1 %v2591_v27  ;;  %2577 = vadd.xlane.f32.xlu0 %v2576_v42  ;;  %v2678_v27 = vsel %vm2011_vm0, %v2490_v48, 0.0  ;;  %v2485_v42 = vmul.f32 %v10966_v33, %v9704_v18 }
 0x4a7   :  { %2598 = vadd.xlane.f32.xlu1 %v2597_v57  ;;  %2583 = vadd.xlane.f32.xlu0 %v2582_v9  ;;  %v2663_v57 = vsel %vm2011_vm0, %v2485_v42, 0.0  ;;  %v4257_v9 = vsel %vm2011_vm0, %v4193_v15, 0.0  ;;  %v10985_v42 = vld [vmem:[#allocation73_spill] sm:$0xff] }
 0x4a8   :  { %v4211_v20 = vmul.f32 %v10985_v42, %v9717_v35 }
 0x4aa   :  { %v4311_v43 = vsel %vm2011_vm0, %v4211_v20, 0.0  ;;  %v11000_v20 = vld [vmem:[#allocation7_spill] sm:$0xff] }
 0x4ab   :  { %2604 = vadd.xlane.f32.xlu1 %v2603_v56  ;;  %2589 = vadd.xlane.f32.xlu0 %v2588_v19  ;;  %v10969_v56 = vld [vmem:[#allocation59_spill] sm:$0xff] }
 0x4ac   :  { %v4195_v19 = vmul.f32 %v10969_v56, %v9717_v35  ;;  %v4206_v56 = vmul.f32 %v10986_v0, %v9717_v35 }
 0x4ae   :  { %v4263_v55 = vsel %vm2011_vm0, %v4195_v19, 0.0  ;;  %v10987_v19 = vld [vmem:[#allocation75_spill] sm:$0xff] }
 0x4af   :  { %2610 = vadd.xlane.f32.xlu1 %v2609_v39  ;;  %2595 = vadd.xlane.f32.xlu0 %v2594_v60  ;;  %v10970_v39 = vld [vmem:[#allocation57_spill] sm:$0xff] }
 0x4b0   :  { %v2489_v60 = vmul.f32 %v10970_v39, %v9704_v18 }
 0x4b3   :  { %2616 = vadd.xlane.f32.xlu1 %v2615_v8  ;;  %2601 = vadd.xlane.f32.xlu0 %v2600_v3  ;;  %v2675_v8 = vsel %vm2011_vm0, %v2489_v60, 0.0  ;;  %v4269_v3 = vsel %vm2011_vm0, %v4197_v58, 0.0  ;;  %v4296_v60 = vsel %vm2011_vm0, %v4206_v56, 0.0  ;;  %v10988_v58 = vld [vmem:[#allocation76_spill] sm:$0xff] }
 0x4b7   :  { %2622 = vadd.xlane.f32.xlu1 %v2621_v13  ;;  %2607 = vadd.xlane.f32.xlu0 %v2606_v44  ;;  %v10973_v13 = vld [vmem:[#allocation61_spill] sm:$0xff] }
 0x4b8   :  { %v4199_v44 = vmul.f32 %v10973_v13, %v9717_v35 }
 0x4ba   :  { %v4275_v63 = vsel %vm2011_vm0, %v4199_v44, 0.0 }
 0x4bb   :  { %2628 = vadd.xlane.f32.xlu1 %v2627_v23  ;;  %2613 = vadd.xlane.f32.xlu0 %v2612_v22  ;;  %v10974_v23 = vld [vmem:[#allocation62_spill] sm:$0xff] }
 0x4bc   :  { %v4194_v22 = vmul.f32 %v10974_v23, %v9717_v35 }
 0x4bf   :  { %2634 = vadd.xlane.f32.xlu1 %v2633_v38  ;;  %2619 = vadd.xlane.f32.xlu0 %v2618_v2  ;;  %v10976_v38 = vld [vmem:[#allocation64_spill] sm:$0xff]  ;;  %v4260_v2 = vsel %vm2011_vm0, %v4194_v22, 0.0 }
 0x4c0   :  { %v4196_v18 = vmul.f32 %v10976_v38, %v9717_v35  ;;  %v10991_v22 = vld [vmem:[#allocation4_spill] sm:$0xff] }
 0x4c1   :  { %v4217_v28 = vmul.f32 %v10991_v22, %v9717_v35 }
 0x4c3   :  { %2643 = vadd.xlane.f32.xlu1 %v2642_v4  ;;  %2625 = vadd.xlane.f32.xlu0 %v2624_v37  ;;  %v4203_v4 = vmul.f32 %v10977_v62, %v9717_v35  ;;  %v4266_v37 = vsel %vm2011_vm0, %v4196_v18, 0.0 }
 0x4c5   :  { %v4287_v26 = vsel %vm2011_vm0, %v4203_v4, 0.0  ;;  %v10993_v4 = vld [vmem:[#allocation6_spill] sm:$0xff] }
 0x4c7   :  { %2649 = vadd.xlane.f32.xlu1 %v2648_v5  ;;  %2631 = vadd.xlane.f32.xlu0 %v2630_v24  ;;  %v4198_v5 = vmul.f32 %v10978_v61, %v9717_v35  ;;  %v10979_v24 = vld [vmem:[#allocation67_spill] sm:$0xff] }
 0x4c8   :  { %v4205_v30 = vmul.f32 %v10979_v24, %v9717_v35 }
 0x4ca   :  { %v4293_v53 = vsel %vm2011_vm0, %v4205_v30, 0.0  ;;  %v10994_v30 = vld [vmem:[#allocation79_spill] sm:$0xff] }
 0x4cb   :  { %2655 = vadd.xlane.f32.xlu1 %v2654_v6  ;;  %2637 = vadd.xlane.f32.xlu0 %v2636_v25  ;;  %v4272_v25 = vsel %vm2011_vm0, %v4198_v5, 0.0 }
 0x4cf   :  { %2661 = vadd.xlane.f32.xlu1 %v2660_v10  ;;  %2640 = vadd.xlane.f32.xlu0 %v2639_v21  ;;  %v4200_v10 = vmul.f32 %v10980_v47, %v9717_v35  ;;  %v10981_v21 = vld [vmem:[#allocation69_spill] sm:$0xff] }
 0x4d0   :  { %v4207_v40 = vmul.f32 %v10981_v21, %v9717_v35 }
 0x4d2   :  { %v4299_v50 = vsel %vm2011_vm0, %v4207_v40, 0.0  ;;  %v10996_v40 = vld [vmem:[#allocation80_spill] sm:$0xff] }
 0x4d3   :  { %2667 = vadd.xlane.f32.xlu1 %v2666_v31  ;;  %2646 = vadd.xlane.f32.xlu0 %v2645_v32  ;;  %v4278_v32 = vsel %vm2011_vm0, %v4200_v10, 0.0 }
 0x4d7   :  { %2673 = vadd.xlane.f32.xlu1 %v2672_v34  ;;  %2652 = vadd.xlane.f32.xlu0 %v2651_v49  ;;  %v4202_v34 = vmul.f32 %v10982_v52, %v9717_v35  ;;  %v10983_v49 = vld [vmem:[#allocation71_spill] sm:$0xff] }
 0x4d8   :  { %v4209_v59 = vmul.f32 %v10983_v49, %v9717_v35 }
 0x4d9   :  { %v4284_v7 = vsel %vm2011_vm0, %v4202_v34, 0.0 }
 0x4db   :  { %2679 = vadd.xlane.f32.xlu1 %v2678_v27  ;;  %2658 = vadd.xlane.f32.xlu0 %v2657_v51  ;;  %v4305_v27 = vsel %vm2011_vm0, %v4209_v59, 0.0  ;;  %v10984_v51 = vld [vmem:[#allocation72_spill] sm:$0xff]  ;;  %v10998_v59 = vld [vmem:[#allocation5_spill] sm:$0xff] }
 0x4dc   :  { %v4204_v33 = vmul.f32 %v10984_v51, %v9717_v35 }
 0x4df   :  { %2664 = vadd.xlane.f32.xlu0 %v2663_v57  ;;  %4258 = vadd.xlane.f32.xlu1 %v4257_v9  ;;  %v4290_v9 = vsel %vm2011_vm0, %v4204_v33, 0.0 }
 0x4e3   :  { %2670 = vadd.xlane.f32.xlu0 %v2669_v14  ;;  %4264 = vadd.xlane.f32.xlu1 %v4263_v55  ;;  %v4213_v14 = vmul.f32 %v10987_v19, %v9717_v35 }
 0x4e5   :  { %v4317_v12 = vsel %vm2011_vm0, %v4213_v14, 0.0  ;;  %v11002_v14 = vld [vmem:[#allocation9_spill] sm:$0xff] }
 0x4e7   :  { %2676 = vadd.xlane.f32.xlu0 %v2675_v8  ;;  %4270 = vadd.xlane.f32.xlu1 %v4269_v3  ;;  %v4208_v8 = vmul.f32 %v10988_v58, %v9717_v35  ;;  %v10989_v3 = vld [vmem:[#allocation3_spill] sm:$0xff] }
 0x4e8   :  { %v4215_v29 = vmul.f32 %v10989_v3, %v9717_v35 }
 0x4e9   :  { %v4302_v44 = vsel %vm2011_vm0, %v4208_v8, 0.0 }
 0x4eb   :  { %2682 = vadd.xlane.f32.xlu0 %v2681_v16  ;;  %4276 = vadd.xlane.f32.xlu1 %v4275_v63  ;;  %v4323_v16 = vsel %vm2011_vm0, %v4215_v29, 0.0  ;;  %v10990_v63 = vld [vmem:[#allocation77_spill] sm:$0xff]  ;;  %v11004_v29 = vld [vmem:[#allocation11_spill] sm:$0xff] }
 0x4ec   :  { %v4210_v23 = vmul.f32 %v10990_v63, %v9717_v35 }
 0x4ee   :  { %v4308_v18 = vsel %vm2011_vm0, %v4210_v23, 0.0 }
 0x4ef   :  { %4261 = vadd.xlane.f32.xlu0 %v4260_v2  ;;  %4282 = vadd.xlane.f32.xlu1 %v4281_v54  ;;  %v4329_v2 = vsel %vm2011_vm0, %v4217_v28, 0.0  ;;  %v10992_v54 = vld [vmem:[#allocation78_spill] sm:$0xff]  ;;  %v11006_v28 = vld [vmem:[#allocation13_spill] sm:$0xff] }
 0x4f0   :  { %v4212_v62 = vmul.f32 %v10992_v54, %v9717_v35 }
 0x4f2   :  { %v4314_v5 = vsel %vm2011_vm0, %v4212_v62, 0.0 }
 0x4f3   :  { %4267 = vadd.xlane.f32.xlu0 %v4266_v37  ;;  %4288 = vadd.xlane.f32.xlu1 %v4287_v26  ;;  %v4219_v37 = vmul.f32 %v10993_v4, %v9717_v35 }
 0x4f4   :  { %v2494_v45 = vpop.xlane.xlu0 %2493  ;;  %v2500_v6 = vpop.xlane.xlu1 %2499 }
 0x4f5   :  { %2685 = vst.msk [vmem:[%s10620_s5] sm:$0xff] %vm2684_vm6, %v2494_v45  ;;  %2687 = vst.msk [vmem:[%s10620_s5 + $0x10] sm:$0xff] %vm2684_vm6, %v2500_v6  ;;  %v4335_v24 = vsel %vm2011_vm0, %v4219_v37, 0.0  ;;  %v4214_v45 = vmul.f32 %v10994_v30, %v9717_v35  ;;  %v10995_v6 = vld [vmem:[#allocation8_spill] sm:$0xff]  ;;  %v11008_v37 = vld [vmem:[#allocation15_spill] sm:$0xff] }
 0x4f7   :  { %4273 = vadd.xlane.f32.xlu0 %v4272_v25  ;;  %4294 = vadd.xlane.f32.xlu1 %v4293_v53  ;;  %v4221_v25 = vmul.f32 %v10995_v6, %v9717_v35  ;;  %v4320_v10 = vsel %vm2011_vm0, %v4214_v45, 0.0 }
 0x4f8   :  { %v2497_v1 = vpop.xlane.xlu0 %2496  ;;  %v2506_v31 = vpop.xlane.xlu1 %2505 }
 0x4f9   :  { %2686 = vst.msk [vmem:[%s10620_s5 + $0x8] sm:$0xff] %vm2684_vm6, %v2497_v1  ;;  %2689 = vst.msk [vmem:[%s10620_s5 + $0x20] sm:$0xff] %vm2684_vm6, %v2506_v31  ;;  %v4341_v21 = vsel %vm2011_vm0, %v4221_v25, 0.0  ;;  %v4216_v1 = vmul.f32 %v10996_v40, %v9717_v35  ;;  %v10997_v31 = vld [vmem:[#allocation10_spill] sm:$0xff]  ;;  %v11010_v25 = vld [vmem:[#allocation17_spill] sm:$0xff] }
 0x4fb   :  { %4279 = vadd.xlane.f32.xlu0 %v4278_v32  ;;  %4300 = vadd.xlane.f32.xlu1 %v4299_v50  ;;  %v4223_v32 = vmul.f32 %v10997_v31, %v9717_v35  ;;  %v4326_v34 = vsel %vm2011_vm0, %v4216_v1, 0.0 }
 0x4fc   :  { %v2503_v48 = vpop.xlane.xlu0 %2502  ;;  %v2515_v11 = vpop.xlane.xlu1 %2514 }
 0x4fd   :  { %2688 = vst.msk [vmem:[%s10620_s5 + $0x18] sm:$0xff] %vm2684_vm6, %v2503_v48  ;;  %2692 = vst.msk [vmem:[%s10620_s5 + $0x38] sm:$0xff] %vm2684_vm6, %v2515_v11  ;;  %v4347_v49 = vsel %vm2011_vm0, %v4223_v32, 0.0  ;;  %v4218_v48 = vmul.f32 %v10998_v59, %v9717_v35  ;;  %v10999_v11 = vld [vmem:[#allocation12_spill] sm:$0xff]  ;;  %v11012_v32 = vld [vmem:[#allocation19_spill] sm:$0xff] }
 0x4ff   :  { %4285 = vadd.xlane.f32.xlu0 %v4284_v7  ;;  %4306 = vadd.xlane.f32.xlu1 %v4305_v27  ;;  %v4225_v7 = vmul.f32 %v10999_v11, %v9717_v35  ;;  %v4332_v33 = vsel %vm2011_vm0, %v4218_v48, 0.0 }
 0x500   :  { %v2509_v15 = vpop.xlane.xlu0 %2508  ;;  %v2521_v57 = vpop.xlane.xlu1 %2520 }
 0x501   :  { %2690 = vst.msk [vmem:[%s10620_s5 + $0x28] sm:$0xff] %vm2684_vm6, %v2509_v15  ;;  %2694 = vst.msk [vmem:[%s10620_s5 + $0x48] sm:$0xff] %vm2684_vm6, %v2521_v57  ;;  %v4353_v42 = vsel %vm2011_vm0, %v4225_v7, 0.0  ;;  %v4220_v15 = vmul.f32 %v11000_v20, %v9717_v35  ;;  %v11001_v57 = vld [vmem:[#allocation14_spill] sm:$0xff]  ;;  %v11014_v7 = vld [vmem:[#allocation21_spill] sm:$0xff] }
 0x503   :  { %4291 = vadd.xlane.f32.xlu0 %v4290_v9  ;;  %4312 = vadd.xlane.f32.xlu1 %v4311_v43  ;;  %v4227_v9 = vmul.f32 %v11001_v57, %v9717_v35  ;;  %v4338_v56 = vsel %vm2011_vm0, %v4220_v15, 0.0 }
 0x504   :  { %v2512_v55 = vpop.xlane.xlu0 %2511  ;;  %v2527_v39 = vpop.xlane.xlu1 %2526 }
 0x505   :  { %2691 = vst.msk [vmem:[%s10620_s5 + $0x30] sm:$0xff] %vm2684_vm6, %v2512_v55  ;;  %2696 = vst.msk [vmem:[%s10620_s5 + $0x58] sm:$0xff] %vm2684_vm6, %v2527_v39  ;;  %v4359_v19 = vsel %vm2011_vm0, %v4227_v9, 0.0  ;;  %v4222_v55 = vmul.f32 %v11002_v14, %v9717_v35  ;;  %v11003_v39 = vld [vmem:[#allocation16_spill] sm:$0xff]  ;;  %v11016_v9 = vld [vmem:[#allocation23_spill] sm:$0xff] }
 0x507   :  { %4297 = vadd.xlane.f32.xlu0 %v4296_v60  ;;  %4318 = vadd.xlane.f32.xlu1 %v4317_v12  ;;  %v4229_v60 = vmul.f32 %v11003_v39, %v9717_v35  ;;  %v4344_v8 = vsel %vm2011_vm0, %v4222_v55, 0.0 }
 0x508   :  { %v2518_v17 = vpop.xlane.xlu0 %2517  ;;  %v2533_v13 = vpop.xlane.xlu1 %2532 }
 0x509   :  { %2693 = vst.msk [vmem:[%s10620_s5 + $0x40] sm:$0xff] %vm2684_vm6, %v2518_v17  ;;  %2698 = vst.msk [vmem:[%s10620_s5 + $0x68] sm:$0xff] %vm2684_vm6, %v2533_v13  ;;  %v4365_v3 = vsel %vm2011_vm0, %v4229_v60, 0.0  ;;  %v4224_v17 = vmul.f32 %v11004_v29, %v9717_v35  ;;  %v11005_v13 = vld [vmem:[#allocation18_spill] sm:$0xff]  ;;  %v11018_v60 = vld [vmem:[#allocation25_spill] sm:$0xff] }
 0x50b   :  { %4303 = vadd.xlane.f32.xlu0 %v4302_v44  ;;  %4324 = vadd.xlane.f32.xlu1 %v4323_v16  ;;  %v4231_v44 = vmul.f32 %v11005_v13, %v9717_v35  ;;  %v4350_v23 = vsel %vm2011_vm0, %v4224_v17, 0.0 }
 0x50c   :  { %v2524_v41 = vpop.xlane.xlu0 %2523  ;;  %v2539_v38 = vpop.xlane.xlu1 %2538 }
 0x50d   :  { %2695 = vst.msk [vmem:[%s10620_s5 + $0x50] sm:$0xff] %vm2684_vm6, %v2524_v41  ;;  %2700 = vst.msk [vmem:[%s10620_s5 + $0x78] sm:$0xff] %vm2684_vm6, %v2539_v38  ;;  %v4371_v22 = vsel %vm2011_vm0, %v4231_v44, 0.0  ;;  %v4226_v41 = vmul.f32 %v11006_v28, %v9717_v35  ;;  %v11007_v38 = vld [vmem:[#allocation20_spill] sm:$0xff]  ;;  %v11020_v44 = vld [vmem:[#allocation27_spill] sm:$0xff] }
 0x50f   :  { %4309 = vadd.xlane.f32.xlu0 %v4308_v18  ;;  %4330 = vadd.xlane.f32.xlu1 %v4329_v2  ;;  %v4233_v18 = vmul.f32 %v11007_v38, %v9717_v35  ;;  %v4356_v62 = vsel %vm2011_vm0, %v4226_v41, 0.0 }
 0x510   :  { %v2530_v26 = vpop.xlane.xlu0 %2529  ;;  %v2545_v61 = vpop.xlane.xlu1 %2544 }
 0x511   :  { %2697 = vst.msk [vmem:[%s10620_s5 + $0x60] sm:$0xff] %vm2684_vm6, %v2530_v26  ;;  %2702 = vst.msk [vmem:[%s10620_s5 + $0x88] sm:$0xff] %vm2684_vm6, %v2545_v61  ;;  %v4377_v4 = vsel %vm2011_vm0, %v4233_v18, 0.0  ;;  %v4228_v26 = vmul.f32 %v11008_v37, %v9717_v35  ;;  %v11009_v61 = vld [vmem:[#allocation22_spill] sm:$0xff]  ;;  %v11022_v18 = vld [vmem:[#allocation29_spill] sm:$0xff] }
 0x513   :  { %4315 = vadd.xlane.f32.xlu0 %v4314_v5  ;;  %4336 = vadd.xlane.f32.xlu1 %v4335_v24  ;;  %v4235_v5 = vmul.f32 %v11009_v61, %v9717_v35  ;;  %v4362_v45 = vsel %vm2011_vm0, %v4228_v26, 0.0 }
 0x514   :  { %v2536_v53 = vpop.xlane.xlu0 %2535  ;;  %v2551_v47 = vpop.xlane.xlu1 %2550 }
 0x515   :  { %2699 = vst.msk [vmem:[%s10620_s5 + $0x70] sm:$0xff] %vm2684_vm6, %v2536_v53  ;;  %2704 = vst.msk [vmem:[%s10620_s5 + $0x98] sm:$0xff] %vm2684_vm6, %v2551_v47  ;;  %v4383_v6 = vsel %vm2011_vm0, %v4235_v5, 0.0  ;;  %v4230_v53 = vmul.f32 %v11010_v25, %v9717_v35  ;;  %v11011_v47 = vld [vmem:[#allocation24_spill] sm:$0xff]  ;;  %v11024_v5 = vld [vmem:[#allocation31_spill] sm:$0xff] }
 0x517   :  { %4321 = vadd.xlane.f32.xlu0 %v4320_v10  ;;  %4342 = vadd.xlane.f32.xlu1 %v4341_v21  ;;  %v4237_v10 = vmul.f32 %v11011_v47, %v9717_v35  ;;  %v4368_v1 = vsel %vm2011_vm0, %v4230_v53, 0.0 }
 0x518   :  { %v2542_v50 = vpop.xlane.xlu0 %2541  ;;  %v2557_v52 = vpop.xlane.xlu1 %2556 }
 0x519   :  { %2701 = vst.msk [vmem:[%s10620_s5 + $0x80] sm:$0xff] %vm2684_vm6, %v2542_v50  ;;  %2706 = vst.msk [vmem:[%s10620_s5 + $0xa8] sm:$0xff] %vm2684_vm6, %v2557_v52  ;;  %v4389_v31 = vsel %vm2011_vm0, %v4237_v10, 0.0  ;;  %v4232_v50 = vmul.f32 %v11012_v32, %v9717_v35  ;;  %v11013_v52 = vld [vmem:[#allocation26_spill] sm:$0xff]  ;;  %v11026_v10 = vld [vmem:[#allocation33_spill] sm:$0xff] }
 0x51b   :  { %4327 = vadd.xlane.f32.xlu0 %v4326_v34  ;;  %4348 = vadd.xlane.f32.xlu1 %v4347_v49  ;;  %v4239_v34 = vmul.f32 %v11013_v52, %v9717_v35  ;;  %v4374_v48 = vsel %vm2011_vm0, %v4232_v50, 0.0  ;;  %v11027_v52 = vld [vmem:[#allocation41_spill] sm:$0xff] }
 0x51c   :  { %v2548_v27 = vpop.xlane.xlu0 %2547  ;;  %v2563_v51 = vpop.xlane.xlu1 %2562 }
 0x51d   :  { %2703 = vst.msk [vmem:[%s10620_s5 + $0x90] sm:$0xff] %vm2684_vm6, %v2548_v27  ;;  %2708 = vst.msk [vmem:[%s10620_s5 + $0xb8] sm:$0xff] %vm2684_vm6, %v2563_v51  ;;  %v4395_v11 = vsel %vm2011_vm0, %v4239_v34, 0.0  ;;  %v4234_v27 = vmul.f32 %v11014_v7, %v9717_v35  ;;  %v11015_v51 = vld [vmem:[#allocation28_spill] sm:$0xff]  ;;  %v4255_v34 = vmul.f32 %v11027_v52, %v9717_v35 }
 0x51f   :  { %4333 = vadd.xlane.f32.xlu0 %v4332_v33  ;;  %4354 = vadd.xlane.f32.xlu1 %v4353_v42  ;;  %v4241_v33 = vmul.f32 %v11015_v51, %v9717_v35  ;;  %v4380_v15 = vsel %vm2011_vm0, %v4234_v27, 0.0 }
 0x520   :  { %v2554_v43 = vpop.xlane.xlu0 %2553  ;;  %v2569_v0 = vpop.xlane.xlu1 %2568 }
 0x521   :  { %2705 = vst.msk [vmem:[%s10620_s5 + $0xa0] sm:$0xff] %vm2684_vm6, %v2554_v43  ;;  %2710 = vst.msk [vmem:[%s10620_s5 + $0xc8] sm:$0xff] %vm2684_vm6, %v2569_v0  ;;  %v4401_v57 = vsel %vm2011_vm0, %v4241_v33, 0.0  ;;  %v4236_v43 = vmul.f32 %v11016_v9, %v9717_v35  ;;  %v11017_v0 = vld [vmem:[#allocation30_spill] sm:$0xff] }
 0x523   :  { %4339 = vadd.xlane.f32.xlu0 %v4338_v56  ;;  %4360 = vadd.xlane.f32.xlu1 %v4359_v19  ;;  %v4243_v56 = vmul.f32 %v11017_v0, %v9717_v35  ;;  %v4386_v55 = vsel %vm2011_vm0, %v4236_v43, 0.0  ;;  %v11030_v43 = vld [vmem:[#allocation38_spill] sm:$0xff] }
 0x524   :  { %v2560_v12 = vpop.xlane.xlu0 %2559  ;;  %v2575_v58 = vpop.xlane.xlu1 %2574  ;;  %v4254_v0 = vmul.f32 %v11030_v43, %v9717_v35 }
 0x525   :  { %2707 = vst.msk [vmem:[%s10620_s5 + $0xb0] sm:$0xff] %vm2684_vm6, %v2560_v12  ;;  %2712 = vst.msk [vmem:[%s10620_s5 + $0xd8] sm:$0xff] %vm2684_vm6, %v2575_v58  ;;  %v4407_v39 = vsel %vm2011_vm0, %v4243_v56, 0.0  ;;  %v4238_v12 = vmul.f32 %v11018_v60, %v9717_v35  ;;  %v11019_v58 = vld [vmem:[#allocation32_spill] sm:$0xff] }
 0x527   :  { %4345 = vadd.xlane.f32.xlu0 %v4344_v8  ;;  %4366 = vadd.xlane.f32.xlu1 %v4365_v3  ;;  %v4245_v8 = vmul.f32 %v11019_v58, %v9717_v35  ;;  %v4392_v17 = vsel %vm2011_vm0, %v4238_v12, 0.0 }
 0x528   :  { %v2566_v16 = vpop.xlane.xlu0 %2565  ;;  %v2581_v63 = vpop.xlane.xlu1 %2580 }
 0x529   :  { %2709 = vst.msk [vmem:[%s10620_s5 + $0xc0] sm:$0xff] %vm2684_vm6, %v2566_v16  ;;  %2714 = vst.msk [vmem:[%s10620_s5 + $0xe8] sm:$0xff] %vm2684_vm6, %v2581_v63  ;;  %v4413_v13 = vsel %vm2011_vm0, %v4245_v8, 0.0  ;;  %v4240_v16 = vmul.f32 %v11020_v44, %v9717_v35  ;;  %v11021_v63 = vld [vmem:[#allocation34_spill] sm:$0xff] }
 0x52b   :  { %4351 = vadd.xlane.f32.xlu0 %v4350_v23  ;;  %4372 = vadd.xlane.f32.xlu1 %v4371_v22  ;;  %v4247_v23 = vmul.f32 %v11021_v63, %v9717_v35  ;;  %v4398_v41 = vsel %vm2011_vm0, %v4240_v16, 0.0 }
 0x52c   :  { %v2572_v2 = vpop.xlane.xlu0 %2571  ;;  %v2587_v54 = vpop.xlane.xlu1 %2586 }
 0x52d   :  { %2711 = vst.msk [vmem:[%s10620_s5 + $0xd0] sm:$0xff] %vm2684_vm6, %v2572_v2  ;;  %2716 = vst.msk [vmem:[%s10620_s5 + $0xf8] sm:$0xff] %vm2684_vm6, %v2587_v54  ;;  %v4419_v38 = vsel %vm2011_vm0, %v4247_v23, 0.0  ;;  %v4242_v2 = vmul.f32 %v11022_v18, %v9717_v35  ;;  %v11023_v54 = vld [vmem:[#allocation36_spill] sm:$0xff] }
 0x52f   :  { %4357 = vadd.xlane.f32.xlu0 %v4356_v62  ;;  %4378 = vadd.xlane.f32.xlu1 %v4377_v4  ;;  %v4249_v62 = vmul.f32 %v11023_v54, %v9717_v35  ;;  %v4404_v26 = vsel %vm2011_vm0, %v4242_v2, 0.0 }
 0x530   :  { %v2578_v24 = vpop.xlane.xlu0 %2577  ;;  %v2593_v30 = vpop.xlane.xlu1 %2592 }
 0x531   :  { %2713 = vst.msk [vmem:[%s10620_s5 + $0xe0] sm:$0xff] %vm2684_vm6, %v2578_v24  ;;  %2718 = vst.msk [vmem:[%s10620_s5 + $0x108] sm:$0xff] %vm2684_vm6, %v2593_v30  ;;  %v4425_v61 = vsel %vm2011_vm0, %v4249_v62, 0.0  ;;  %v4244_v24 = vmul.f32 %v11024_v5, %v9717_v35  ;;  %v11025_v30 = vld [vmem:[#allocation39_spill] sm:$0xff] }
 0x533   :  { %4363 = vadd.xlane.f32.xlu0 %v4362_v45  ;;  %4384 = vadd.xlane.f32.xlu1 %v4383_v6  ;;  %v4251_v45 = vmul.f32 %v11025_v30, %v9717_v35  ;;  %v4410_v53 = vsel %vm2011_vm0, %v4244_v24, 0.0 }
 0x534   :  { %v2584_v21 = vpop.xlane.xlu0 %2583  ;;  %v2599_v40 = vpop.xlane.xlu1 %2598 }
 0x535   :  { %2715 = vst.msk [vmem:[%s10620_s5 + $0xf0] sm:$0xff] %vm2684_vm6, %v2584_v21  ;;  %2720 = vst.msk [vmem:[%s10620_s5 + $0x118] sm:$0xff] %vm2684_vm6, %v2599_v40  ;;  %v4431_v47 = vsel %vm2011_vm0, %v4251_v45, 0.0  ;;  %v4246_v21 = vmul.f32 %v11026_v10, %v9717_v35  ;;  %v4253_v40 = vmul.f32 %v9642_v36, %v9717_v35  ;;  %v4248_v36 = vmul.f32 %v9646_v46, %v9717_v35 }
 0x536   :  { %v4443_v46 = vsel %vm2011_vm0, %v4255_v34, 0.0 }
 0x537   :  { %4369 = vadd.xlane.f32.xlu0 %v4368_v1  ;;  %4390 = vadd.xlane.f32.xlu1 %v4389_v31  ;;  %v4416_v32 = vsel %vm2011_vm0, %v4246_v21, 0.0  ;;  %v4437_v50 = vsel %vm2011_vm0, %v4253_v40, 0.0 }
 0x538   :  { %v2590_v49 = vpop.xlane.xlu0 %2589  ;;  %v2605_v59 = vpop.xlane.xlu1 %2604 }
 0x539   :  { %2717 = vst.msk [vmem:[%s10620_s5 + $0x100] sm:$0xff] %vm2684_vm6, %v2590_v49  ;;  %2722 = vst.msk [vmem:[%s10620_s5 + $0x128] sm:$0xff] %vm2684_vm6, %v2605_v59 }
 0x53b   :  { %4375 = vadd.xlane.f32.xlu0 %v4374_v48  ;;  %4396 = vadd.xlane.f32.xlu1 %v4395_v11  ;;  %v4422_v48 = vsel %vm2011_vm0, %v4248_v36, 0.0  ;;  %v11028_v11 = vld [vmem:[#allocation35_spill] sm:$0xff] }
 0x53c   :  { %v2596_v42 = vpop.xlane.xlu0 %2595  ;;  %v2611_v20 = vpop.xlane.xlu1 %2610  ;;  %v4250_v7 = vmul.f32 %v11028_v11, %v9717_v35 }
 0x53d   :  { %2719 = vst.msk [vmem:[%s10620_s5 + $0x110] sm:$0xff] %vm2684_vm6, %v2596_v42  ;;  %2724 = vst.msk [vmem:[%s10620_s5 + $0x138] sm:$0xff] %vm2684_vm6, %v2611_v20  ;;  %v11029_v42 = vld [vmem:[#allocation43_spill] sm:$0xff] }
 0x53e   :  { %v4428_v33 = vsel %vm2011_vm0, %v4250_v7, 0.0  ;;  %v4252_v20 = vmul.f32 %v11029_v42, %v9717_v35 }
 0x53f   :  { %4381 = vadd.xlane.f32.xlu0 %v4380_v15  ;;  %4402 = vadd.xlane.f32.xlu1 %v4401_v57 }
 0x540   :  { %v2602_v19 = vpop.xlane.xlu0 %2601  ;;  %v2617_v14 = vpop.xlane.xlu1 %2616  ;;  %v4434_v9 = vsel %vm2011_vm0, %v4252_v20, 0.0 }
 0x541   :  { %2721 = vst.msk [vmem:[%s10620_s5 + $0x120] sm:$0xff] %vm2684_vm6, %v2602_v19  ;;  %2726 = vst.msk [vmem:[%s10620_s5 + $0x148] sm:$0xff] %vm2684_vm6, %v2617_v14  ;;  %v4440_v14 = vsel %vm2011_vm0, %v4254_v0, 0.0 }
 0x543   :  { %4387 = vadd.xlane.f32.xlu0 %v4386_v55  ;;  %4408 = vadd.xlane.f32.xlu1 %v4407_v39  ;;  %v11031_v55 = vld [vmem:[#allocation40_spill] sm:$0xff] }
 0x544   :  { %v2608_v3 = vpop.xlane.xlu0 %2607  ;;  %v2623_v29 = vpop.xlane.xlu1 %2622  ;;  %v4256_v39 = vmul.f32 %v11031_v55, %v9717_v35 }
 0x545   :  { %2723 = vst.msk [vmem:[%s10620_s5 + $0x130] sm:$0xff] %vm2684_vm6, %v2608_v3  ;;  %2728 = vst.msk [vmem:[%s10620_s5 + $0x158] sm:$0xff] %vm2684_vm6, %v2623_v29 }
 0x546   :  { %v4446_v58 = vsel %vm2011_vm0, %v4256_v39, 0.0 }
 0x547   :  { %4393 = vadd.xlane.f32.xlu0 %v4392_v17  ;;  %4414 = vadd.xlane.f32.xlu1 %v4413_v13 }
 0x548   :  { %v2614_v22 = vpop.xlane.xlu0 %2613  ;;  %v2629_v28 = vpop.xlane.xlu1 %2628 }
 0x549   :  { %2725 = vst.msk [vmem:[%s10620_s5 + $0x140] sm:$0xff] %vm2684_vm6, %v2614_v22  ;;  %2730 = vst.msk [vmem:[%s10620_s5 + $0x168] sm:$0xff] %vm2684_vm6, %v2629_v28 }
 0x54b   :  { %4399 = vadd.xlane.f32.xlu0 %v4398_v41  ;;  %4420 = vadd.xlane.f32.xlu1 %v4419_v38 }
 0x54c   :  { %v2620_v4 = vpop.xlane.xlu0 %2619  ;;  %v2635_v37 = vpop.xlane.xlu1 %2634 }
 0x54d   :  { %2727 = vst.msk [vmem:[%s10620_s5 + $0x150] sm:$0xff] %vm2684_vm6, %v2620_v4  ;;  %2732 = vst.msk [vmem:[%s10620_s5 + $0x178] sm:$0xff] %vm2684_vm6, %v2635_v37 }
 0x54f   :  { %4405 = vadd.xlane.f32.xlu0 %v4404_v26  ;;  %4426 = vadd.xlane.f32.xlu1 %v4425_v61 }
 0x550   :  { %v2626_v6 = vpop.xlane.xlu0 %2625  ;;  %v2644_v25 = vpop.xlane.xlu1 %2643 }
 0x551   :  { %2729 = vst.msk [vmem:[%s10620_s5 + $0x160] sm:$0xff] %vm2684_vm6, %v2626_v6  ;;  %2735 = vst.msk [vmem:[%s10620_s5 + $0x190] sm:$0xff] %vm2684_vm6, %v2644_v25 }
 0x553   :  { %4411 = vadd.xlane.f32.xlu0 %v4410_v53  ;;  %4432 = vadd.xlane.f32.xlu1 %v4431_v47 }
 0x554   :  { %v2632_v1 = vpop.xlane.xlu0 %2631  ;;  %v2650_v31 = vpop.xlane.xlu1 %2649 }
 0x555   :  { %2731 = vst.msk [vmem:[%s10620_s5 + $0x170] sm:$0xff] %vm2684_vm6, %v2632_v1  ;;  %2737 = vst.msk [vmem:[%s10620_s5 + $0x1a0] sm:$0xff] %vm2684_vm6, %v2650_v31 }
 0x557   :  { %4417 = vadd.xlane.f32.xlu0 %v4416_v32  ;;  %4438 = vadd.xlane.f32.xlu1 %v4437_v50 }
 0x558   :  { %v2638_v49 = vpop.xlane.xlu0 %2637  ;;  %v2656_v59 = vpop.xlane.xlu1 %2655 }
 0x559   :  { %2733 = vst.msk [vmem:[%s10620_s5 + $0x180] sm:$0xff] %vm2684_vm6, %v2638_v49  ;;  %2739 = vst.msk [vmem:[%s10620_s5 + $0x1b0] sm:$0xff] %vm2684_vm6, %v2656_v59 }
 0x55b   :  { %4423 = vadd.xlane.f32.xlu0 %v4422_v48  ;;  %4444 = vadd.xlane.f32.xlu1 %v4443_v46 }
 0x55c   :  { %v2641_v27 = vpop.xlane.xlu0 %2640  ;;  %v2662_v51 = vpop.xlane.xlu1 %2661 }
 0x55d   :  { %2734 = vst.msk [vmem:[%s10620_s5 + $0x188] sm:$0xff] %vm2684_vm6, %v2641_v27  ;;  %2741 = vst.msk [vmem:[%s10620_s5 + $0x1c0] sm:$0xff] %vm2684_vm6, %v2662_v51 }
 0x55f   :  { %4429 = vadd.xlane.f32.xlu0 %v4428_v33 }
 0x560   :  { %v2647_v15 = vpop.xlane.xlu0 %2646  ;;  %v2668_v57 = vpop.xlane.xlu1 %2667 }
 0x561   :  { %2736 = vst.msk [vmem:[%s10620_s5 + $0x198] sm:$0xff] %vm2684_vm6, %v2647_v15  ;;  %2743 = vst.msk [vmem:[%s10620_s5 + $0x1d0] sm:$0xff] %vm2684_vm6, %v2668_v57 }
 0x563   :  { %4435 = vadd.xlane.f32.xlu0 %v4434_v9 }
 0x564   :  { %v2653_v56 = vpop.xlane.xlu0 %2652  ;;  %v2674_v19 = vpop.xlane.xlu1 %2673 }
 0x565   :  { %2738 = vst.msk [vmem:[%s10620_s5 + $0x1a8] sm:$0xff] %vm2684_vm6, %v2653_v56  ;;  %2745 = vst.msk [vmem:[%s10620_s5 + $0x1e0] sm:$0xff] %vm2684_vm6, %v2674_v19 }
 0x567   :  { %4441 = vadd.xlane.f32.xlu0 %v4440_v14 }
 0x568   :  { %v2659_v60 = vpop.xlane.xlu0 %2658  ;;  %v2680_v12 = vpop.xlane.xlu1 %2679 }
 0x569   :  { %2740 = vst.msk [vmem:[%s10620_s5 + $0x1b8] sm:$0xff] %vm2684_vm6, %v2659_v60  ;;  %2747 = vst.msk [vmem:[%s10620_s5 + $0x1f0] sm:$0xff] %vm2684_vm6, %v2680_v12 }
 0x56b   :  { %4447 = vadd.xlane.f32.xlu0 %v4446_v58 }
 0x56c   :  { %v2665_v8 = vpop.xlane.xlu0 %2664  ;;  %v4259_v3 = vpop.xlane.xlu1 %4258 }
 0x56d   :  { %2742 = vst.msk [vmem:[%s10620_s5 + $0x1c8] sm:$0xff] %vm2684_vm6, %v2665_v8  ;;  %4657 = vst.msk [vmem:[%s10620_s5 + $0x200] sm:$0xff] %vm2684_vm6, %v4259_v3 }
 0x570   :  { %v2671_v35 = vpop.xlane.xlu0 %2670  ;;  %v4265_v29 = vpop.xlane.xlu1 %4264 }
 0x571   :  { %2744 = vst.msk [vmem:[%s10620_s5 + $0x1d8] sm:$0xff] %vm2684_vm6, %v2671_v35  ;;  %4659 = vst.msk [vmem:[%s10620_s5 + $0x210] sm:$0xff] %vm2684_vm6, %v4265_v29 }
 0x574   :  { %v2677_v17 = vpop.xlane.xlu0 %2676  ;;  %v4271_v13 = vpop.xlane.xlu1 %4270 }
 0x575   :  { %2746 = vst.msk [vmem:[%s10620_s5 + $0x1e8] sm:$0xff] %vm2684_vm6, %v2677_v17  ;;  %4661 = vst.msk [vmem:[%s10620_s5 + $0x220] sm:$0xff] %vm2684_vm6, %v4271_v13 }
 0x578   :  { %v2683_v44 = vpop.xlane.xlu0 %2682  ;;  %v4277_v16 = vpop.xlane.xlu1 %4276 }
 0x579   :  { %2748 = vst.msk [vmem:[%s10620_s5 + $0x1f8] sm:$0xff] %vm2684_vm6, %v2683_v44  ;;  %4663 = vst.msk [vmem:[%s10620_s5 + $0x230] sm:$0xff] %vm2684_vm6, %v4277_v16 }
 0x57c   :  { %v4262_v63 = vpop.xlane.xlu0 %4261  ;;  %v4283_v23 = vpop.xlane.xlu1 %4282 }
 0x57d   :  { %4658 = vst.msk [vmem:[%s10620_s5 + $0x208] sm:$0xff] %vm2684_vm6, %v4262_v63  ;;  %4665 = vst.msk [vmem:[%s10620_s5 + $0x240] sm:$0xff] %vm2684_vm6, %v4283_v23 }
 0x580   :  { %v4268_v22 = vpop.xlane.xlu0 %4267  ;;  %v4289_v28 = vpop.xlane.xlu1 %4288 }
 0x581   :  { %4660 = vst.msk [vmem:[%s10620_s5 + $0x218] sm:$0xff] %vm2684_vm6, %v4268_v22  ;;  %4667 = vst.msk [vmem:[%s10620_s5 + $0x250] sm:$0xff] %vm2684_vm6, %v4289_v28 }
 0x584   :  { %v4274_v41 = vpop.xlane.xlu0 %4273  ;;  %v4295_v38 = vpop.xlane.xlu1 %4294 }
 0x585   :  { %4662 = vst.msk [vmem:[%s10620_s5 + $0x228] sm:$0xff] %vm2684_vm6, %v4274_v41  ;;  %4669 = vst.msk [vmem:[%s10620_s5 + $0x260] sm:$0xff] %vm2684_vm6, %v4295_v38 }
 0x588   :  { %v4280_v18 = vpop.xlane.xlu0 %4279  ;;  %v4301_v2 = vpop.xlane.xlu1 %4300 }
 0x589   :  { %4664 = vst.msk [vmem:[%s10620_s5 + $0x238] sm:$0xff] %vm2684_vm6, %v4280_v18  ;;  %4671 = vst.msk [vmem:[%s10620_s5 + $0x270] sm:$0xff] %vm2684_vm6, %v4301_v2 }
 0x58c   :  { %v4286_v54 = vpop.xlane.xlu0 %4285  ;;  %v4307_v62 = vpop.xlane.xlu1 %4306 }
 0x58d   :  { %4666 = vst.msk [vmem:[%s10620_s5 + $0x248] sm:$0xff] %vm2684_vm6, %v4286_v54  ;;  %4673 = vst.msk [vmem:[%s10620_s5 + $0x280] sm:$0xff] %vm2684_vm6, %v4307_v62 }
 0x590   :  { %v4292_v4 = vpop.xlane.xlu0 %4291  ;;  %v4313_v37 = vpop.xlane.xlu1 %4312 }
 0x591   :  { %4668 = vst.msk [vmem:[%s10620_s5 + $0x258] sm:$0xff] %vm2684_vm6, %v4292_v4  ;;  %4675 = vst.msk [vmem:[%s10620_s5 + $0x290] sm:$0xff] %vm2684_vm6, %v4313_v37 }
 0x594   :  { %v4298_v26 = vpop.xlane.xlu0 %4297  ;;  %v4319_v61 = vpop.xlane.xlu1 %4318 }
 0x595   :  { %4670 = vst.msk [vmem:[%s10620_s5 + $0x268] sm:$0xff] %vm2684_vm6, %v4298_v26  ;;  %4677 = vst.msk [vmem:[%s10620_s5 + $0x2a0] sm:$0xff] %vm2684_vm6, %v4319_v61 }
 0x598   :  { %v4304_v5 = vpop.xlane.xlu0 %4303  ;;  %v4325_v24 = vpop.xlane.xlu1 %4324 }
 0x599   :  { %4672 = vst.msk [vmem:[%s10620_s5 + $0x278] sm:$0xff] %vm2684_vm6, %v4304_v5  ;;  %4679 = vst.msk [vmem:[%s10620_s5 + $0x2b0] sm:$0xff] %vm2684_vm6, %v4325_v24 }
 0x59c   :  { %v4310_v30 = vpop.xlane.xlu0 %4309  ;;  %v4331_v45 = vpop.xlane.xlu1 %4330 }
 0x59d   :  { %4674 = vst.msk [vmem:[%s10620_s5 + $0x288] sm:$0xff] %vm2684_vm6, %v4310_v30  ;;  %4681 = vst.msk [vmem:[%s10620_s5 + $0x2c0] sm:$0xff] %vm2684_vm6, %v4331_v45 }
 0x5a0   :  { %v4316_v6 = vpop.xlane.xlu0 %4315  ;;  %v4337_v25 = vpop.xlane.xlu1 %4336 }
 0x5a1   :  { %4676 = vst.msk [vmem:[%s10620_s5 + $0x298] sm:$0xff] %vm2684_vm6, %v4316_v6  ;;  %4683 = vst.msk [vmem:[%s10620_s5 + $0x2d0] sm:$0xff] %vm2684_vm6, %v4337_v25 }
 0x5a4   :  { %v4322_v53 = vpop.xlane.xlu0 %4321  ;;  %v4343_v47 = vpop.xlane.xlu1 %4342 }
 0x5a5   :  { %4678 = vst.msk [vmem:[%s10620_s5 + $0x2a8] sm:$0xff] %vm2684_vm6, %v4322_v53  ;;  %4685 = vst.msk [vmem:[%s10620_s5 + $0x2e0] sm:$0xff] %vm2684_vm6, %v4343_v47 }
 0x5a8   :  { %v4328_v10 = vpop.xlane.xlu0 %4327  ;;  %v4349_v21 = vpop.xlane.xlu1 %4348 }
 0x5a9   :  { %4680 = vst.msk [vmem:[%s10620_s5 + $0x2b8] sm:$0xff] %vm2684_vm6, %v4328_v10  ;;  %4687 = vst.msk [vmem:[%s10620_s5 + $0x2f0] sm:$0xff] %vm2684_vm6, %v4349_v21 }
 0x5ac   :  { %v4334_v40 = vpop.xlane.xlu0 %4333  ;;  %v4355_v1 = vpop.xlane.xlu1 %4354 }
 0x5ad   :  { %4682 = vst.msk [vmem:[%s10620_s5 + $0x2c8] sm:$0xff] %vm2684_vm6, %v4334_v40  ;;  %4689 = vst.msk [vmem:[%s10620_s5 + $0x300] sm:$0xff] %vm2684_vm6, %v4355_v1 }
 0x5b0   :  { %v4340_v31 = vpop.xlane.xlu0 %4339  ;;  %v4361_v32 = vpop.xlane.xlu1 %4360 }
 0x5b1   :  { %4684 = vst.msk [vmem:[%s10620_s5 + $0x2d8] sm:$0xff] %vm2684_vm6, %v4340_v31  ;;  %4691 = vst.msk [vmem:[%s10620_s5 + $0x310] sm:$0xff] %vm2684_vm6, %v4361_v32 }
 0x5b4   :  { %v4346_v50 = vpop.xlane.xlu0 %4345  ;;  %v4367_v36 = vpop.xlane.xlu1 %4366 }
 0x5b5   :  { %4686 = vst.msk [vmem:[%s10620_s5 + $0x2e8] sm:$0xff] %vm2684_vm6, %v4346_v50  ;;  %4693 = vst.msk [vmem:[%s10620_s5 + $0x320] sm:$0xff] %vm2684_vm6, %v4367_v36 }
 0x5b8   :  { %v4352_v52 = vpop.xlane.xlu0 %4351  ;;  %v4373_v34 = vpop.xlane.xlu1 %4372 }
 0x5b9   :  { %4688 = vst.msk [vmem:[%s10620_s5 + $0x2f8] sm:$0xff] %vm2684_vm6, %v4352_v52  ;;  %4695 = vst.msk [vmem:[%s10620_s5 + $0x330] sm:$0xff] %vm2684_vm6, %v4373_v34 }
 0x5bc   :  { %v4358_v49 = vpop.xlane.xlu0 %4357  ;;  %v4379_v59 = vpop.xlane.xlu1 %4378 }
 0x5bd   :  { %4690 = vst.msk [vmem:[%s10620_s5 + $0x308] sm:$0xff] %vm2684_vm6, %v4358_v49  ;;  %4697 = vst.msk [vmem:[%s10620_s5 + $0x340] sm:$0xff] %vm2684_vm6, %v4379_v59 }
 0x5c0   :  { %v4364_v48 = vpop.xlane.xlu0 %4363  ;;  %v4385_v46 = vpop.xlane.xlu1 %4384 }
 0x5c1   :  { %4692 = vst.msk [vmem:[%s10620_s5 + $0x318] sm:$0xff] %vm2684_vm6, %v4364_v48  ;;  %4699 = vst.msk [vmem:[%s10620_s5 + $0x350] sm:$0xff] %vm2684_vm6, %v4385_v46 }
 0x5c4   :  { %v4370_v11 = vpop.xlane.xlu0 %4369  ;;  %v4391_v7 = vpop.xlane.xlu1 %4390 }
 0x5c5   :  { %4694 = vst.msk [vmem:[%s10620_s5 + $0x328] sm:$0xff] %vm2684_vm6, %v4370_v11  ;;  %4701 = vst.msk [vmem:[%s10620_s5 + $0x360] sm:$0xff] %vm2684_vm6, %v4391_v7 }
 0x5c8   :  { %v4376_v27 = vpop.xlane.xlu0 %4375  ;;  %v4397_v51 = vpop.xlane.xlu1 %4396 }
 0x5c9   :  { %4696 = vst.msk [vmem:[%s10620_s5 + $0x338] sm:$0xff] %vm2684_vm6, %v4376_v27  ;;  %4703 = vst.msk [vmem:[%s10620_s5 + $0x370] sm:$0xff] %vm2684_vm6, %v4397_v51 }
 0x5cc   :  { %v4382_v33 = vpop.xlane.xlu0 %4381  ;;  %v4403_v42 = vpop.xlane.xlu1 %4402 }
 0x5cd   :  { %4698 = vst.msk [vmem:[%s10620_s5 + $0x348] sm:$0xff] %vm2684_vm6, %v4382_v33  ;;  %4705 = vst.msk [vmem:[%s10620_s5 + $0x380] sm:$0xff] %vm2684_vm6, %v4403_v42 }
 0x5d0   :  { %v4388_v20 = vpop.xlane.xlu0 %4387  ;;  %v4409_v15 = vpop.xlane.xlu1 %4408 }
 0x5d1   :  { %4700 = vst.msk [vmem:[%s10620_s5 + $0x358] sm:$0xff] %vm2684_vm6, %v4388_v20  ;;  %4707 = vst.msk [vmem:[%s10620_s5 + $0x390] sm:$0xff] %vm2684_vm6, %v4409_v15 }
 0x5d4   :  { %v4394_v57 = vpop.xlane.xlu0 %4393  ;;  %v4415_v9 = vpop.xlane.xlu1 %4414 }
 0x5d5   :  { %4702 = vst.msk [vmem:[%s10620_s5 + $0x368] sm:$0xff] %vm2684_vm6, %v4394_v57  ;;  %4709 = vst.msk [vmem:[%s10620_s5 + $0x3a0] sm:$0xff] %vm2684_vm6, %v4415_v9 }
 0x5d8   :  { %v4400_v43 = vpop.xlane.xlu0 %4399  ;;  %v4421_v0 = vpop.xlane.xlu1 %4420 }
 0x5d9   :  { %4704 = vst.msk [vmem:[%s10620_s5 + $0x378] sm:$0xff] %vm2684_vm6, %v4400_v43  ;;  %4711 = vst.msk [vmem:[%s10620_s5 + $0x3b0] sm:$0xff] %vm2684_vm6, %v4421_v0 }
 0x5dc   :  { %v4406_v56 = vpop.xlane.xlu0 %4405  ;;  %v4427_v19 = vpop.xlane.xlu1 %4426 }
 0x5dd   :  { %4706 = vst.msk [vmem:[%s10620_s5 + $0x388] sm:$0xff] %vm2684_vm6, %v4406_v56  ;;  %4713 = vst.msk [vmem:[%s10620_s5 + $0x3c0] sm:$0xff] %vm2684_vm6, %v4427_v19 }
 0x5e0   :  { %v4412_v14 = vpop.xlane.xlu0 %4411  ;;  %v4433_v55 = vpop.xlane.xlu1 %4432 }
 0x5e1   :  { %4708 = vst.msk [vmem:[%s10620_s5 + $0x398] sm:$0xff] %vm2684_vm6, %v4412_v14  ;;  %4715 = vst.msk [vmem:[%s10620_s5 + $0x3d0] sm:$0xff] %vm2684_vm6, %v4433_v55 }
 0x5e4   :  { %v4418_v39 = vpop.xlane.xlu0 %4417  ;;  %v4439_v60 = vpop.xlane.xlu1 %4438 }
 0x5e5   :  { %4710 = vst.msk [vmem:[%s10620_s5 + $0x3a8] sm:$0xff] %vm2684_vm6, %v4418_v39  ;;  %4717 = vst.msk [vmem:[%s10620_s5 + $0x3e0] sm:$0xff] %vm2684_vm6, %v4439_v60 }
 0x5e8   :  { %v4424_v12 = vpop.xlane.xlu0 %4423  ;;  %v4445_v58 = vpop.xlane.xlu1 %4444 }
 0x5e9   :  { %4712 = vst.msk [vmem:[%s10620_s5 + $0x3b8] sm:$0xff] %vm2684_vm6, %v4424_v12  ;;  %4719 = vst.msk [vmem:[%s10620_s5 + $0x3f0] sm:$0xff] %vm2684_vm6, %v4445_v58 }
 0x5ec   :  { %v4430_v8 = vpop.xlane.xlu0 %4429 }
 0x5ed   :  { %4714 = vst.msk [vmem:[%s10620_s5 + $0x3c8] sm:$0xff] %vm2684_vm6, %v4430_v8 }
 0x5f0   :  { %v4436_v3 = vpop.xlane.xlu0 %4435 }
 0x5f1   :  { %4716 = vst.msk [vmem:[%s10620_s5 + $0x3d8] sm:$0xff] %vm2684_vm6, %v4436_v3 }
 0x5f4   :  { %v4442_v35 = vpop.xlane.xlu0 %4441 }
 0x5f5   :  { %4718 = vst.msk [vmem:[%s10620_s5 + $0x3e8] sm:$0xff] %vm2684_vm6, %v4442_v35 }
 0x5f8   :  { %v4448_v29 = vpop.xlane.xlu0 %4447 }
 0x5f9   :  { %4720 = vst.msk [vmem:[%s10620_s5 + $0x3f8] sm:$0xff] %vm2684_vm6, %v4448_v29 }

</bundles_post_ra>
